<compile_context>
chip_gen: v7x
topology: tpu7x:2x2x1
jax: 0.10.0
libtpu: 0.0.40
codegen_flags: <defaults>
</compile_context>

<pallas_src>
import math

import jax
import jax.numpy as jnp
from jax.experimental import pallas as pl
from jax.experimental.pallas import tpu as pltpu

# ----------------------------- hyperparameters ------------------------------
BATCH = 2
NUM_PATCHES = 8                               # sequence length S = 9
PATCH_SIZE = 4
NUM_CHANNELS = 3
PATCH_DIM = PATCH_SIZE ** 2 * NUM_CHANNELS    # 48
IN_PAD = 128                                  # padded patch-feature lanes
LINEAR_DIM = 150
EMBED_DIM = 300                               # E (real)
EMBED_PAD = 384                               # EP = 3*128 (lane-aligned segment)
EMBEDDING_DIMS = 300                          # attention scale = 1/sqrt(300)
ATTENTION_HEADS = 2
TOTAL_CLASSES = 10
OUT_PAD = 128                                 # lane-dense logits width
OUT_ROWS = 8                                  # sublane-dense logits height
BN_EPS = 1e-5
SEQ = NUM_PATCHES + 1                         # 9
SEQ_PAD = 16                                  # padded rows per batch block
ROWS = BATCH * SEQ_PAD                        # 32
WIDTH = (ATTENTION_HEADS + 2) * EMBED_PAD     # 1536 = [bn1 | msa0 | msa1 | skip1]
SKIP1_OFF = (ATTENTION_HEADS + 1) * EMBED_PAD # 1152 lane offset of embedded tokens
MM_DTYPE = jnp.bfloat16                       # MXU input dtype (f32 accumulate)
NEG_INF = -1e30


# ------------------------------- fused kernel -------------------------------
def _vit_fused_kernel(x_ref, slab_ref, pw_ref, pb_ref, wqkv_ref, mask_ref,
                      p1w_ref, p1b_ref, f1w_ref, f1b_ref, f2w_ref, f2b_ref,
                      out_ref, seq_ref, qkv_ref, tok_ref):
    f32 = jnp.float32
    mm = MM_DTYPE
    E, EP, H, SP = EMBED_DIM, EMBED_PAD, ATTENTION_HEADS, SEQ_PAD

    # Lane layout of seq_ref (ROWS, WIDTH), matching the PyTorch concat order:
    #   seg0 [0,    384) : bn1(relu(skip2 @ W1 + b1))      real lanes [0,300)
    #   seg1 [384,  768) : bn0(MSA head 0)                 real lanes [384,684)
    #   seg2 [768, 1152) : bn0(MSA head 1)                 real lanes [768,1068)
    #   seg3 [1152,1536) : skip1 = embedded tokens         real lanes [1152,1452)
    # skip2 == lanes [384, 1536); MLP input == lanes [0, 1536).
    # Padded lanes of every segment are exactly zero when first written
    # (zero-padded weight columns), so matmuls over padded lanes are exact.

    # ---- 1. patch projection + relu + token assembly (one aligned store) ----
    # x rows: per batch block, row 0 (class slot) and rows 9..15 are zero; the
    # host-side slab adds [cls|pos0], the per-patch pos embeddings, and cancels
    # relu(bias) on the zero-input rows, so `tokens` is exactly the PyTorch
    # [class|pos0] / [proj|pos] sequence (and exactly 0 on padded rows/lanes).
    proj = jnp.dot(x_ref[...].astype(mm), pw_ref[...],
                   preferred_element_type=f32) + pb_ref[...]
    proj = jnp.maximum(proj, 0.0)                                  # (ROWS, EP)
    tokens = proj + slab_ref[...]
    seq_ref[:, SKIP1_OFF:WIDTH] = tokens

    # ---- 2. fused Q/K/V for both heads: (ROWS, EP) @ (EP, 3*H*EP), bf16 ----
    qkv_ref[...] = jnp.dot(tokens.astype(mm), wqkv_ref[...],
                           preferred_element_type=f32).astype(mm)

    # ---- 3. batch-fused attention per head: (32,32) scores + mask ----------
    # 1/sqrt(300) is folded into the Q columns of wqkv.  The mask is -1e30 on
    # cross-batch blocks and on padded key rows, 0 elsewhere, so off-block /
    # padded probabilities are exactly zero.
    mask = mask_ref[...]
    for h in range(H):
        c0 = 3 * h * EP
        q = qkv_ref[:, c0:c0 + EP]                                 # (ROWS, EP) bf16
        k = qkv_ref[:, c0 + EP:c0 + 2 * EP]
        v = qkv_ref[:, c0 + 2 * EP:c0 + 3 * EP]
        s = jax.lax.dot_general(q, k, (((1,), (1,)), ((), ())),
                                preferred_element_type=f32) + mask  # (ROWS, ROWS)
        s = s - jnp.max(s, axis=-1, keepdims=True)
        p = jnp.exp(s)
        p = p * pl.reciprocal(jnp.sum(p, axis=-1, keepdims=True), approx=True)
        o = jnp.dot(p.astype(mm), v, preferred_element_type=f32)   # (ROWS, EP)
        seq_ref[:, (1 + h) * EP:(2 + h) * EP] = o                  # aligned store

    # ---- 4. BatchNorm1d(num_patches+1), training mode -----------------------
    # Channel = token (row) index; stats over (batch, feature lanes), biased
    # variance, gamma=1 / beta=0 (PyTorch defaults -> no affine FMA).  Padded
    # feature lanes are exactly zero, so they add nothing to the sums and their
    # (0-mean)^2 contribution to ssq is removed in closed form.  Padded rows
    # (channels 9..15) never mix with real channels and are never read out.
    def _batchnorm(lane_lo, lane_hi, n_real, n_pad_zero):
        blocks = [seq_ref[b * SP:(b + 1) * SP, lane_lo:lane_hi] for b in range(BATCH)]
        tot = blocks[0]
        for b in range(1, BATCH):
            tot = tot + blocks[b]
        mean = jnp.sum(tot, axis=1, keepdims=True) * (1.0 / n_real)       # (SP, 1)
        devs = [blk - mean for blk in blocks]
        ssq = jnp.sum(devs[0] * devs[0], axis=1, keepdims=True)
        for b in range(1, BATCH):
            ssq = ssq + jnp.sum(devs[b] * devs[b], axis=1, keepdims=True)
        ssq = ssq - n_pad_zero * mean * mean                              # drop zero-pad lanes
        inv = jax.lax.rsqrt(ssq * (1.0 / n_real) + BN_EPS)                # (SP, 1)
        for b in range(BATCH):
            seq_ref[b * SP:(b + 1) * SP, lane_lo:lane_hi] = devs[b] * inv

    # BN over the concatenated MSA outputs (segments 1..2)
    _batchnorm(EP, SKIP1_OFF, BATCH * H * E, BATCH * H * (EP - E))

    # ---- 5. LinearProj1 + relu over skip2 = lanes [EP, WIDTH) ---------------
    skip2 = seq_ref[:, EP:WIDTH].astype(mm)                               # (ROWS, 1152)
    h1 = jnp.dot(skip2, p1w_ref[...], preferred_element_type=f32) + p1b_ref[...]
    seq_ref[:, 0:EP] = jnp.maximum(h1, 0.0)                               # aligned store

    # second BN on segment 0
    _batchnorm(0, EP, BATCH * E, BATCH * (EP - E))

    # ---- 6. MLP head on the class tokens (row b*SP of each batch block) -----
    tok_ref[...] = jnp.zeros_like(tok_ref)
    for b in range(BATCH):
        tok_ref[b:b + 1, :] = seq_ref[b * SP:b * SP + 1, :]
    z = jnp.dot(tok_ref[...].astype(mm), f1w_ref[...],
                preferred_element_type=f32) + f1b_ref[...]                # (8, 512)
    z = jnp.dot(z.astype(mm), f2w_ref[...],
                preferred_element_type=f32) + f2b_ref[...]                # (8, 128)
    out_ref[...] = z                                                      # unmasked store


# ------------------------------ parameter setup ------------------------------
def init_params(key):
    ks = jax.random.split(key, 13)
    f32 = jnp.float32
    E, EP, LD, H = EMBED_DIM, EMBED_PAD, LINEAR_DIM, ATTENTION_HEADS

    # ---- logical (unpadded) parameters, mirroring the PyTorch module --------
    cls = jax.random.normal(ks[0], (1, LD), f32)                  # classEmbed
    pos = jax.random.normal(ks[1], (SEQ, LD), f32)                # posEmbed.weight
    proj_w = 0.02 * jax.random.normal(ks[2], (PATCH_DIM, LD), f32)   # (in, out)
    proj_b = 0.01 * jax.random.normal(ks[3], (1, LD), f32)
    wq = 0.02 * jax.random.normal(ks[4], (H, E, E), f32)
    wk = 0.02 * jax.random.normal(ks[5], (H, E, E), f32)
    wv = 0.02 * jax.random.normal(ks[6], (H, E, E), f32)
    p1_w = 0.02 * jax.random.normal(ks[7], (3 * E, E), f32)       # LinearProj1 (in, out)
    p1_b = 0.01 * jax.random.normal(ks[8], (1, E), f32)
    f1_w = 0.02 * jax.random.normal(ks[9], (4 * E, 512), f32)     # fc1 (in, out)
    f1_b = 0.01 * jax.random.normal(ks[10], (1, 512), f32)
    f2_w = 0.02 * jax.random.normal(ks[11], (512, TOTAL_CLASSES), f32)
    f2_b = 0.01 * jax.random.normal(ks[12], (1, TOTAL_CLASSES), f32)
    # BatchNorm1d x2 use PyTorch defaults gamma=1, beta=0 -> no parameters needed.

    p = {}
    # Patch projection padded to (128, 384); zero rows/cols keep math exact.
    p["proj_w"] = (jnp.zeros((IN_PAD, EP), f32)
                   .at[:PATCH_DIM, :LD].set(proj_w).astype(MM_DTYPE))
    p["proj_b"] = jnp.zeros((1, EP), f32).at[:, :LD].set(proj_b)

    # Constant token slab (ROWS, EP): rows 1..8 add [0 | pos_i | 0]; row 0 adds
    # [cls - relu(b) | pos_0 | 0] (cancelling relu(bias) of the zero input row);
    # padded rows 9..15 add [-relu(b) | 0] so they end up exactly zero.
    r = jnp.maximum(proj_b, 0.0)
    zpad = jnp.zeros((1, EP - 2 * LD), f32)
    row_cls = jnp.concatenate([cls - r, pos[0:1], zpad], axis=1)
    rows_patch = jnp.concatenate(
        [jnp.zeros((NUM_PATCHES, LD), f32), pos[1:], jnp.tile(zpad, (NUM_PATCHES, 1))],
        axis=1)
    row_pad = jnp.concatenate([-r, jnp.zeros((1, EP - LD), f32)], axis=1)
    slab_block = jnp.concatenate(
        [row_cls, rows_patch, jnp.tile(row_pad, (SEQ_PAD - SEQ, 1))], axis=0)   # (16, EP)
    p["slab"] = jnp.tile(slab_block, (BATCH, 1))                                # (ROWS, EP)

    # Fused Q/K/V weights, columns [Q0 K0 V0 Q1 K1 V1] each 384 wide; the
    # attention scale 1/sqrt(300) is folded into the Q columns.
    scale = 1.0 / math.sqrt(EMBEDDING_DIMS)
    wqkv = jnp.zeros((EP, 3 * H * EP), f32)
    for h in range(H):
        base = 3 * h * EP
        wqkv = wqkv.at[:E, base:base + E].set(wq[h] * scale)
        wqkv = wqkv.at[:E, base + EP:base + EP + E].set(wk[h])
        wqkv = wqkv.at[:E, base + 2 * EP:base + 2 * EP + E].set(wv[h])
    p["wqkv"] = wqkv.astype(MM_DTYPE)

    # Precomputed softmax mask: 0 inside the same batch block on real key rows,
    # -1e30 on cross-batch entries and padded key rows.
    ri = jnp.arange(ROWS)[:, None]
    ci = jnp.arange(ROWS)[None, :]
    allowed = (ri // SEQ_PAD == ci // SEQ_PAD) & ((ci % SEQ_PAD) < SEQ)
    p["attn_mask"] = jnp.where(allowed, 0.0, NEG_INF).astype(f32)

    # LinearProj1 (900 -> 300) padded to (1152, 384); input segments [h0|h1|skip1].
    p1w = jnp.zeros((3 * EP, EP), f32)
    for s in range(3):
        p1w = p1w.at[s * EP:s * EP + E, :E].set(p1_w[s * E:(s + 1) * E, :])
    p["proj1_w"] = p1w.astype(MM_DTYPE)
    p["proj1_b"] = jnp.zeros((1, EP), f32).at[:, :E].set(p1_b)

    # MLP: fc1 (1200 -> 512) padded to (1536, 512); input segments [bn1|h0|h1|skip1].
    f1w = jnp.zeros((WIDTH, 512), f32)
    for s in range(4):
        f1w = f1w.at[s * EP:s * EP + E, :].set(f1_w[s * E:(s + 1) * E, :])
    p["fc1_w"] = f1w.astype(MM_DTYPE)
    p["fc1_b"] = f1_b
    p["fc2_w"] = (jnp.zeros((512, OUT_PAD), f32)
                  .at[:, :TOTAL_CLASSES].set(f2_w).astype(MM_DTYPE))
    p["fc2_b"] = jnp.zeros((1, OUT_PAD), f32).at[:, :TOTAL_CLASSES].set(f2_b)
    return p


# -------------------------------- forward pass -------------------------------
def _index_map_2d(i):
    return (0, 0)


@jax.jit
def vit_forward(params, x):
    x = x.astype(jnp.float32)
    B, P, PD = x.shape
    # Host-side layout prep: per batch block, row 0 (class slot) and rows 9..15
    # are zero; patch features padded 48 -> 128 lanes.  This makes the kernel's
    # patch projection + token assembly a single aligned matmul + store.
    xp = jnp.pad(x, ((0, 0), (1, SEQ_PAD - 1 - P), (0, IN_PAD - PD)))   # (B, 16, 128)
    x_in = xp.reshape(B * SEQ_PAD, IN_PAD)

    args = (x_in, params["slab"], params["proj_w"], params["proj_b"],
            params["wqkv"], params["attn_mask"], params["proj1_w"],
            params["proj1_b"], params["fc1_w"], params["fc1_b"],
            params["fc2_w"], params["fc2_b"])

    # NOTE: grid stays (1,) — training-mode BatchNorm couples the whole batch,
    # so batch cannot be split across grid steps without a two-pass stats scheme.
    logits_padded = pl.pallas_call(
        _vit_fused_kernel,
        out_shape=jax.ShapeDtypeStruct((OUT_ROWS, OUT_PAD), jnp.float32),
        grid=(1,),
        in_specs=[pl.BlockSpec(a.shape, _index_map_2d) for a in args],
        out_specs=pl.BlockSpec((OUT_ROWS, OUT_PAD), _index_map_2d),
        scratch_shapes=[
            pltpu.VMEM((ROWS, WIDTH), jnp.float32),                         # seq
            pltpu.VMEM((ROWS, 3 * ATTENTION_HEADS * EMBED_PAD), MM_DTYPE),  # qkv (bf16)
            pltpu.VMEM((OUT_ROWS, WIDTH), jnp.float32),                     # class tokens
        ],
        compiler_params=pltpu.CompilerParams(
            dimension_semantics=("arbitrary",),
            vmem_limit_bytes=32 * 1024 * 1024),
    )(*args)
    return logits_padded[:B, :TOTAL_CLASSES]


# ------------------------------------ main -----------------------------------
if __name__ == "__main__":
    key = jax.random.PRNGKey(0)
    k_params, k_x = jax.random.split(key)
    params = init_params(k_params)
    x = jax.random.normal(k_x, (BATCH, NUM_PATCHES, PATCH_DIM), jnp.float32)

    out = jax.block_until_ready(vit_forward(params, x))
    assert out.shape == (BATCH, TOTAL_CLASSES), out.shape
    assert bool(jnp.all(jnp.isfinite(out)))
    print("KERNEL_OK")
</pallas_src>

<mosaic_0001>
module attributes {stable_mosaic.version = 11 : i64} {
  func.func @_vit_fused_kernel(%arg0: i32, %arg1: memref<32x128xf32, #tpu.memory_space<vmem>>, %arg2: memref<32x384xf32, #tpu.memory_space<vmem>>, %arg3: memref<128x384xbf16, #tpu.memory_space<vmem>>, %arg4: memref<1x384xf32, #tpu.memory_space<vmem>>, %arg5: memref<384x2304xbf16, #tpu.memory_space<vmem>>, %arg6: memref<32x32xf32, #tpu.memory_space<vmem>>, %arg7: memref<1152x384xbf16, #tpu.memory_space<vmem>>, %arg8: memref<1x384xf32, #tpu.memory_space<vmem>>, %arg9: memref<1536x512xbf16, #tpu.memory_space<vmem>>, %arg10: memref<1x512xf32, #tpu.memory_space<vmem>>, %arg11: memref<512x128xbf16, #tpu.memory_space<vmem>>, %arg12: memref<1x128xf32, #tpu.memory_space<vmem>>, %arg13: memref<8x128xf32, #tpu.memory_space<vmem>>, %arg14: memref<32x1536xf32, #tpu.memory_space<vmem>>, %arg15: memref<32x2304xbf16, #tpu.memory_space<vmem>>, %arg16: memref<8x1536xf32, #tpu.memory_space<vmem>>) attributes {dimension_semantics = [#tpu.dimension_semantics<arbitrary>], iteration_bounds = array<i64: 1>, scalar_prefetch = 0 : i64, scratch_operands = 3 : i64, tpu.core_type = #tpu.core_type<tc>, window_params = [{pipeline_mode = #tpu.pipeline_mode<synchronous>, transform_indices = @transform_0, window_bounds = array<i64: 32, 128>}, {pipeline_mode = #tpu.pipeline_mode<synchronous>, transform_indices = @transform_1, window_bounds = array<i64: 32, 384>}, {pipeline_mode = #tpu.pipeline_mode<synchronous>, transform_indices = @transform_2, window_bounds = array<i64: 128, 384>}, {pipeline_mode = #tpu.pipeline_mode<synchronous>, transform_indices = @transform_3, window_bounds = array<i64: 1, 384>}, {pipeline_mode = #tpu.pipeline_mode<synchronous>, transform_indices = @transform_4, window_bounds = array<i64: 384, 2304>}, {pipeline_mode = #tpu.pipeline_mode<synchronous>, transform_indices = @transform_5, window_bounds = array<i64: 32, 32>}, {pipeline_mode = #tpu.pipeline_mode<synchronous>, transform_indices = @transform_6, window_bounds = array<i64: 1152, 384>}, {pipeline_mode = #tpu.pipeline_mode<synchronous>, transform_indices = @transform_7, window_bounds = array<i64: 1, 384>}, {pipeline_mode = #tpu.pipeline_mode<synchronous>, transform_indices = @transform_8, window_bounds = array<i64: 1536, 512>}, {pipeline_mode = #tpu.pipeline_mode<synchronous>, transform_indices = @transform_9, window_bounds = array<i64: 1, 512>}, {pipeline_mode = #tpu.pipeline_mode<synchronous>, transform_indices = @transform_10, window_bounds = array<i64: 512, 128>}, {pipeline_mode = #tpu.pipeline_mode<synchronous>, transform_indices = @transform_11, window_bounds = array<i64: 1, 128>}, {pipeline_mode = #tpu.pipeline_mode<synchronous>, transform_indices = @transform_12, window_bounds = array<i64: 8, 128>}]} {
    %c0 = arith.constant 0 : index
    %c0_0 = arith.constant 0 : index
    %0 = vector.load %arg1[%c0, %c0_0] : memref<32x128xf32, #tpu.memory_space<vmem>>, vector<32x128xf32>
    %1 = arith.truncf %0 : vector<32x128xf32> to vector<32x128xbf16>
    %c0_1 = arith.constant 0 : index
    %c0_2 = arith.constant 0 : index
    %2 = vector.load %arg3[%c0_1, %c0_2] : memref<128x384xbf16, #tpu.memory_space<vmem>>, vector<128x384xbf16>
    %cst = arith.constant dense<0.000000e+00> : vector<32x384xf32>
    %3 = tpu.matmul %1, %2, %cst {dimension_numbers = #tpu.dot_dimension_numbers<[1], [0], [0], [1], [0, 0, 1, 1], [], []>} : vector<32x128xbf16>, vector<128x384xbf16>, vector<32x384xf32> -> vector<32x384xf32>
    %c0_3 = arith.constant 0 : index
    %c0_4 = arith.constant 0 : index
    %4 = vector.load %arg4[%c0_3, %c0_4] : memref<1x384xf32, #tpu.memory_space<vmem>>, vector<1x384xf32>
    %5 = vector.broadcast %4 : vector<1x384xf32> to vector<32x384xf32>
    %6 = arith.addf %3, %5 : vector<32x384xf32>
    %cst_5 = arith.constant 0.000000e+00 : f32
    %7 = vector.broadcast %cst_5 : f32 to vector<32x384xf32>
    %8 = arith.maximumf %6, %7 : vector<32x384xf32>
    %c0_6 = arith.constant 0 : index
    %c0_7 = arith.constant 0 : index
    %9 = vector.load %arg2[%c0_6, %c0_7] : memref<32x384xf32, #tpu.memory_space<vmem>>, vector<32x384xf32>
    %10 = arith.addf %8, %9 : vector<32x384xf32>
    %c0_8 = arith.constant 0 : index
    %c1152 = arith.constant 1152 : index
    %11 = vector.load %arg14[%c0_8, %c1152] : memref<32x1536xf32, #tpu.memory_space<vmem>>, vector<32x384xf32>
    tpu.vector_store %arg14[%c0_8, %c1152], %10 {strides = array<i32>} : memref<32x1536xf32, #tpu.memory_space<vmem>>, vector<32x384xf32>,
    %12 = arith.truncf %10 : vector<32x384xf32> to vector<32x384xbf16>
    %c0_9 = arith.constant 0 : index
    %c0_10 = arith.constant 0 : index
    %13 = vector.load %arg5[%c0_9, %c0_10] : memref<384x2304xbf16, #tpu.memory_space<vmem>>, vector<384x2304xbf16>
    %cst_11 = arith.constant dense<0.000000e+00> : vector<32x2304xf32>
    %14 = tpu.matmul %12, %13, %cst_11 {dimension_numbers = #tpu.dot_dimension_numbers<[1], [0], [0], [1], [0, 0, 1, 1], [], []>} : vector<32x384xbf16>, vector<384x2304xbf16>, vector<32x2304xf32> -> vector<32x2304xf32>
    %15 = arith.truncf %14 : vector<32x2304xf32> to vector<32x2304xbf16>
    %c0_12 = arith.constant 0 : index
    %c0_13 = arith.constant 0 : index
    %16 = vector.load %arg15[%c0_12, %c0_13] : memref<32x2304xbf16, #tpu.memory_space<vmem>>, vector<32x2304xbf16>
    tpu.vector_store %arg15[%c0_12, %c0_13], %15 {strides = array<i32>} : memref<32x2304xbf16, #tpu.memory_space<vmem>>, vector<32x2304xbf16>,
    %c0_14 = arith.constant 0 : index
    %c0_15 = arith.constant 0 : index
    %17 = vector.load %arg6[%c0_14, %c0_15] : memref<32x32xf32, #tpu.memory_space<vmem>>, vector<32x32xf32>
    %c0_16 = arith.constant 0 : index
    %c0_17 = arith.constant 0 : index
    %18 = vector.load %arg15[%c0_16, %c0_17] : memref<32x2304xbf16, #tpu.memory_space<vmem>>, vector<32x384xbf16>
    %c0_18 = arith.constant 0 : index
    %c384 = arith.constant 384 : index
    %19 = vector.load %arg15[%c0_18, %c384] : memref<32x2304xbf16, #tpu.memory_space<vmem>>, vector<32x384xbf16>
    %c0_19 = arith.constant 0 : index
    %c768 = arith.constant 768 : index
    %20 = vector.load %arg15[%c0_19, %c768] : memref<32x2304xbf16, #tpu.memory_space<vmem>>, vector<32x384xbf16>
    %cst_20 = arith.constant dense<0.000000e+00> : vector<32x32xf32>
    %21 = tpu.matmul %18, %19, %cst_20 {dimension_numbers = #tpu.dot_dimension_numbers<[1], [1], [0], [0], [0, 0, 1, 0], [], []>} : vector<32x384xbf16>, vector<32x384xbf16>, vector<32x32xf32> -> vector<32x32xf32>
    %22 = arith.addf %21, %17 : vector<32x32xf32>
    %cst_21 = arith.constant dense<0xFF800000> : vector<32xf32>
    %23 = vector.multi_reduction <maximumf>, %22, %cst_21 [1] : vector<32x32xf32> to vector<32xf32>
    %24 = vector.shape_cast %23 : vector<32xf32> to vector<32x1xf32>
    %25 = vector.broadcast %24 : vector<32x1xf32> to vector<32x32xf32>
    %26 = arith.subf %22, %25 : vector<32x32xf32>
    %27 = math.exp %26 : vector<32x32xf32>
    %cst_22 = arith.constant dense<0.000000e+00> : vector<32xf32>
    %28 = vector.multi_reduction <add>, %27, %cst_22 [1] : vector<32x32xf32> to vector<32xf32>
    %29 = vector.shape_cast %28 : vector<32xf32> to vector<32x1xf32>
    %30 = tpu.reciprocal %29 {approx = true} : vector<32x1xf32> -> vector<32x1xf32>
    %31 = vector.broadcast %30 : vector<32x1xf32> to vector<32x32xf32>
    %32 = arith.mulf %27, %31 : vector<32x32xf32>
    %33 = arith.truncf %32 : vector<32x32xf32> to vector<32x32xbf16>
    %cst_23 = arith.constant dense<0.000000e+00> : vector<32x384xf32>
    %34 = tpu.matmul %33, %20, %cst_23 {dimension_numbers = #tpu.dot_dimension_numbers<[1], [0], [0], [1], [0, 0, 1, 1], [], []>} : vector<32x32xbf16>, vector<32x384xbf16>, vector<32x384xf32> -> vector<32x384xf32>
    %c0_24 = arith.constant 0 : index
    %c384_25 = arith.constant 384 : index
    %35 = vector.load %arg14[%c0_24, %c384_25] : memref<32x1536xf32, #tpu.memory_space<vmem>>, vector<32x384xf32>
    tpu.vector_store %arg14[%c0_24, %c384_25], %34 {strides = array<i32>} : memref<32x1536xf32, #tpu.memory_space<vmem>>, vector<32x384xf32>,
    %c0_26 = arith.constant 0 : index
    %c1152_27 = arith.constant 1152 : index
    %36 = vector.load %arg15[%c0_26, %c1152_27] : memref<32x2304xbf16, #tpu.memory_space<vmem>>, vector<32x384xbf16>
    %c0_28 = arith.constant 0 : index
    %c1536 = arith.constant 1536 : index
    %37 = vector.load %arg15[%c0_28, %c1536] : memref<32x2304xbf16, #tpu.memory_space<vmem>>, vector<32x384xbf16>
    %c0_29 = arith.constant 0 : index
    %c1920 = arith.constant 1920 : index
    %38 = vector.load %arg15[%c0_29, %c1920] : memref<32x2304xbf16, #tpu.memory_space<vmem>>, vector<32x384xbf16>
    %cst_30 = arith.constant dense<0.000000e+00> : vector<32x32xf32>
    %39 = tpu.matmul %36, %37, %cst_30 {dimension_numbers = #tpu.dot_dimension_numbers<[1], [1], [0], [0], [0, 0, 1, 0], [], []>} : vector<32x384xbf16>, vector<32x384xbf16>, vector<32x32xf32> -> vector<32x32xf32>
    %40 = arith.addf %39, %17 : vector<32x32xf32>
    %cst_31 = arith.constant dense<0xFF800000> : vector<32xf32>
    %41 = vector.multi_reduction <maximumf>, %40, %cst_31 [1] : vector<32x32xf32> to vector<32xf32>
    %42 = vector.shape_cast %41 : vector<32xf32> to vector<32x1xf32>
    %43 = vector.broadcast %42 : vector<32x1xf32> to vector<32x32xf32>
    %44 = arith.subf %40, %43 : vector<32x32xf32>
    %45 = math.exp %44 : vector<32x32xf32>
    %cst_32 = arith.constant dense<0.000000e+00> : vector<32xf32>
    %46 = vector.multi_reduction <add>, %45, %cst_32 [1] : vector<32x32xf32> to vector<32xf32>
    %47 = vector.shape_cast %46 : vector<32xf32> to vector<32x1xf32>
    %48 = tpu.reciprocal %47 {approx = true} : vector<32x1xf32> -> vector<32x1xf32>
    %49 = vector.broadcast %48 : vector<32x1xf32> to vector<32x32xf32>
    %50 = arith.mulf %45, %49 : vector<32x32xf32>
    %51 = arith.truncf %50 : vector<32x32xf32> to vector<32x32xbf16>
    %cst_33 = arith.constant dense<0.000000e+00> : vector<32x384xf32>
    %52 = tpu.matmul %51, %38, %cst_33 {dimension_numbers = #tpu.dot_dimension_numbers<[1], [0], [0], [1], [0, 0, 1, 1], [], []>} : vector<32x32xbf16>, vector<32x384xbf16>, vector<32x384xf32> -> vector<32x384xf32>
    %c0_34 = arith.constant 0 : index
    %c768_35 = arith.constant 768 : index
    %53 = vector.load %arg14[%c0_34, %c768_35] : memref<32x1536xf32, #tpu.memory_space<vmem>>, vector<32x384xf32>
    tpu.vector_store %arg14[%c0_34, %c768_35], %52 {strides = array<i32>} : memref<32x1536xf32, #tpu.memory_space<vmem>>, vector<32x384xf32>,
    %c0_36 = arith.constant 0 : index
    %c384_37 = arith.constant 384 : index
    %54 = vector.load %arg14[%c0_36, %c384_37] : memref<32x1536xf32, #tpu.memory_space<vmem>>, vector<16x768xf32>
    %c16 = arith.constant 16 : index
    %c384_38 = arith.constant 384 : index
    %55 = vector.load %arg14[%c16, %c384_38] : memref<32x1536xf32, #tpu.memory_space<vmem>>, vector<16x768xf32>
    %56 = arith.addf %54, %55 : vector<16x768xf32>
    %cst_39 = arith.constant dense<0.000000e+00> : vector<16xf32>
    %57 = vector.multi_reduction <add>, %56, %cst_39 [1] : vector<16x768xf32> to vector<16xf32>
    %58 = vector.shape_cast %57 : vector<16xf32> to vector<16x1xf32>
    %cst_40 = arith.constant 8.33333353E-4 : f32
    %59 = vector.broadcast %cst_40 : f32 to vector<16x1xf32>
    %60 = arith.mulf %58, %59 : vector<16x1xf32>
    %61 = vector.broadcast %60 : vector<16x1xf32> to vector<16x768xf32>
    %62 = arith.subf %54, %61 : vector<16x768xf32>
    %63 = vector.broadcast %60 : vector<16x1xf32> to vector<16x768xf32>
    %64 = arith.subf %55, %63 : vector<16x768xf32>
    %65 = arith.mulf %62, %62 : vector<16x768xf32>
    %cst_41 = arith.constant dense<0.000000e+00> : vector<16xf32>
    %66 = vector.multi_reduction <add>, %65, %cst_41 [1] : vector<16x768xf32> to vector<16xf32>
    %67 = vector.shape_cast %66 : vector<16xf32> to vector<16x1xf32>
    %68 = arith.mulf %64, %64 : vector<16x768xf32>
    %cst_42 = arith.constant dense<0.000000e+00> : vector<16xf32>
    %69 = vector.multi_reduction <add>, %68, %cst_42 [1] : vector<16x768xf32> to vector<16xf32>
    %70 = vector.shape_cast %69 : vector<16xf32> to vector<16x1xf32>
    %71 = arith.addf %67, %70 : vector<16x1xf32>
    %cst_43 = arith.constant 3.360000e+02 : f32
    %72 = vector.broadcast %cst_43 : f32 to vector<16x1xf32>
    %73 = arith.mulf %72, %60 : vector<16x1xf32>
    %74 = arith.mulf %73, %60 : vector<16x1xf32>
    %75 = arith.subf %71, %74 : vector<16x1xf32>
    %cst_44 = arith.constant 8.33333353E-4 : f32
    %76 = vector.broadcast %cst_44 : f32 to vector<16x1xf32>
    %77 = arith.mulf %75, %76 : vector<16x1xf32>
    %cst_45 = arith.constant 9.99999974E-6 : f32
    %78 = vector.broadcast %cst_45 : f32 to vector<16x1xf32>
    %79 = arith.addf %77, %78 : vector<16x1xf32>
    %80 = math.rsqrt %79 : vector<16x1xf32>
    %81 = vector.broadcast %80 : vector<16x1xf32> to vector<16x768xf32>
    %82 = arith.mulf %62, %81 : vector<16x768xf32>
    %c0_46 = arith.constant 0 : index
    %c384_47 = arith.constant 384 : index
    %83 = vector.load %arg14[%c0_46, %c384_47] : memref<32x1536xf32, #tpu.memory_space<vmem>>, vector<16x768xf32>
    tpu.vector_store %arg14[%c0_46, %c384_47], %82 {strides = array<i32>} : memref<32x1536xf32, #tpu.memory_space<vmem>>, vector<16x768xf32>,
    %84 = vector.broadcast %80 : vector<16x1xf32> to vector<16x768xf32>
    %85 = arith.mulf %64, %84 : vector<16x768xf32>
    %c16_48 = arith.constant 16 : index
    %c384_49 = arith.constant 384 : index
    %86 = vector.load %arg14[%c16_48, %c384_49] : memref<32x1536xf32, #tpu.memory_space<vmem>>, vector<16x768xf32>
    tpu.vector_store %arg14[%c16_48, %c384_49], %85 {strides = array<i32>} : memref<32x1536xf32, #tpu.memory_space<vmem>>, vector<16x768xf32>,
    %c0_50 = arith.constant 0 : index
    %c384_51 = arith.constant 384 : index
    %87 = vector.load %arg14[%c0_50, %c384_51] : memref<32x1536xf32, #tpu.memory_space<vmem>>, vector<32x1152xf32>
    %88 = arith.truncf %87 : vector<32x1152xf32> to vector<32x1152xbf16>
    %c0_52 = arith.constant 0 : index
    %c0_53 = arith.constant 0 : index
    %89 = vector.load %arg7[%c0_52, %c0_53] : memref<1152x384xbf16, #tpu.memory_space<vmem>>, vector<1152x384xbf16>
    %cst_54 = arith.constant dense<0.000000e+00> : vector<32x384xf32>
    %90 = tpu.matmul %88, %89, %cst_54 {dimension_numbers = #tpu.dot_dimension_numbers<[1], [0], [0], [1], [0, 0, 1, 1], [], []>} : vector<32x1152xbf16>, vector<1152x384xbf16>, vector<32x384xf32> -> vector<32x384xf32>
    %c0_55 = arith.constant 0 : index
    %c0_56 = arith.constant 0 : index
    %91 = vector.load %arg8[%c0_55, %c0_56] : memref<1x384xf32, #tpu.memory_space<vmem>>, vector<1x384xf32>
    %92 = vector.broadcast %91 : vector<1x384xf32> to vector<32x384xf32>
    %93 = arith.addf %90, %92 : vector<32x384xf32>
    %cst_57 = arith.constant 0.000000e+00 : f32
    %94 = vector.broadcast %cst_57 : f32 to vector<32x384xf32>
    %95 = arith.maximumf %93, %94 : vector<32x384xf32>
    %c0_58 = arith.constant 0 : index
    %c0_59 = arith.constant 0 : index
    %96 = vector.load %arg14[%c0_58, %c0_59] : memref<32x1536xf32, #tpu.memory_space<vmem>>, vector<32x384xf32>
    tpu.vector_store %arg14[%c0_58, %c0_59], %95 {strides = array<i32>} : memref<32x1536xf32, #tpu.memory_space<vmem>>, vector<32x384xf32>,
    %c0_60 = arith.constant 0 : index
    %c0_61 = arith.constant 0 : index
    %97 = vector.load %arg14[%c0_60, %c0_61] : memref<32x1536xf32, #tpu.memory_space<vmem>>, vector<16x384xf32>
    %c16_62 = arith.constant 16 : index
    %c0_63 = arith.constant 0 : index
    %98 = vector.load %arg14[%c16_62, %c0_63] : memref<32x1536xf32, #tpu.memory_space<vmem>>, vector<16x384xf32>
    %99 = arith.addf %97, %98 : vector<16x384xf32>
    %cst_64 = arith.constant dense<0.000000e+00> : vector<16xf32>
    %100 = vector.multi_reduction <add>, %99, %cst_64 [1] : vector<16x384xf32> to vector<16xf32>
    %101 = vector.shape_cast %100 : vector<16xf32> to vector<16x1xf32>
    %cst_65 = arith.constant 0.00166666671 : f32
    %102 = vector.broadcast %cst_65 : f32 to vector<16x1xf32>
    %103 = arith.mulf %101, %102 : vector<16x1xf32>
    %104 = vector.broadcast %103 : vector<16x1xf32> to vector<16x384xf32>
    %105 = arith.subf %97, %104 : vector<16x384xf32>
    %106 = vector.broadcast %103 : vector<16x1xf32> to vector<16x384xf32>
    %107 = arith.subf %98, %106 : vector<16x384xf32>
    %108 = arith.mulf %105, %105 : vector<16x384xf32>
    %cst_66 = arith.constant dense<0.000000e+00> : vector<16xf32>
    %109 = vector.multi_reduction <add>, %108, %cst_66 [1] : vector<16x384xf32> to vector<16xf32>
    %110 = vector.shape_cast %109 : vector<16xf32> to vector<16x1xf32>
    %111 = arith.mulf %107, %107 : vector<16x384xf32>
    %cst_67 = arith.constant dense<0.000000e+00> : vector<16xf32>
    %112 = vector.multi_reduction <add>, %111, %cst_67 [1] : vector<16x384xf32> to vector<16xf32>
    %113 = vector.shape_cast %112 : vector<16xf32> to vector<16x1xf32>
    %114 = arith.addf %110, %113 : vector<16x1xf32>
    %cst_68 = arith.constant 1.680000e+02 : f32
    %115 = vector.broadcast %cst_68 : f32 to vector<16x1xf32>
    %116 = arith.mulf %115, %103 : vector<16x1xf32>
    %117 = arith.mulf %116, %103 : vector<16x1xf32>
    %118 = arith.subf %114, %117 : vector<16x1xf32>
    %cst_69 = arith.constant 0.00166666671 : f32
    %119 = vector.broadcast %cst_69 : f32 to vector<16x1xf32>
    %120 = arith.mulf %118, %119 : vector<16x1xf32>
    %cst_70 = arith.constant 9.99999974E-6 : f32
    %121 = vector.broadcast %cst_70 : f32 to vector<16x1xf32>
    %122 = arith.addf %120, %121 : vector<16x1xf32>
    %123 = math.rsqrt %122 : vector<16x1xf32>
    %124 = vector.broadcast %123 : vector<16x1xf32> to vector<16x384xf32>
    %125 = arith.mulf %105, %124 : vector<16x384xf32>
    %c0_71 = arith.constant 0 : index
    %c0_72 = arith.constant 0 : index
    %126 = vector.load %arg14[%c0_71, %c0_72] : memref<32x1536xf32, #tpu.memory_space<vmem>>, vector<16x384xf32>
    tpu.vector_store %arg14[%c0_71, %c0_72], %125 {strides = array<i32>} : memref<32x1536xf32, #tpu.memory_space<vmem>>, vector<16x384xf32>,
    %127 = vector.broadcast %123 : vector<16x1xf32> to vector<16x384xf32>
    %128 = arith.mulf %107, %127 : vector<16x384xf32>
    %c16_73 = arith.constant 16 : index
    %c0_74 = arith.constant 0 : index
    %129 = vector.load %arg14[%c16_73, %c0_74] : memref<32x1536xf32, #tpu.memory_space<vmem>>, vector<16x384xf32>
    tpu.vector_store %arg14[%c16_73, %c0_74], %128 {strides = array<i32>} : memref<32x1536xf32, #tpu.memory_space<vmem>>, vector<16x384xf32>,
    %cst_75 = arith.constant 0.000000e+00 : f32
    %130 = vector.broadcast %cst_75 : f32 to vector<8x1536xf32>
    %c0_76 = arith.constant 0 : index
    %c0_77 = arith.constant 0 : index
    %131 = vector.load %arg16[%c0_76, %c0_77] : memref<8x1536xf32, #tpu.memory_space<vmem>>, vector<8x1536xf32>
    tpu.vector_store %arg16[%c0_76, %c0_77], %130 {strides = array<i32>} : memref<8x1536xf32, #tpu.memory_space<vmem>>, vector<8x1536xf32>,
    %c0_78 = arith.constant 0 : index
    %c0_79 = arith.constant 0 : index
    %132 = vector.load %arg14[%c0_78, %c0_79] : memref<32x1536xf32, #tpu.memory_space<vmem>>, vector<1x1536xf32>
    %c0_80 = arith.constant 0 : index
    %c0_81 = arith.constant 0 : index
    %133 = vector.load %arg16[%c0_80, %c0_81] : memref<8x1536xf32, #tpu.memory_space<vmem>>, vector<1x1536xf32>
    tpu.vector_store %arg16[%c0_80, %c0_81], %132 {strides = array<i32>} : memref<8x1536xf32, #tpu.memory_space<vmem>>, vector<1x1536xf32>,
    %c16_82 = arith.constant 16 : index
    %c0_83 = arith.constant 0 : index
    %134 = vector.load %arg14[%c16_82, %c0_83] : memref<32x1536xf32, #tpu.memory_space<vmem>>, vector<1x1536xf32>
    %c1 = arith.constant 1 : index
    %c0_84 = arith.constant 0 : index
    %135 = vector.load %arg16[%c1, %c0_84] : memref<8x1536xf32, #tpu.memory_space<vmem>>, vector<1x1536xf32>
    tpu.vector_store %arg16[%c1, %c0_84], %134 {strides = array<i32>} : memref<8x1536xf32, #tpu.memory_space<vmem>>, vector<1x1536xf32>,
    %c0_85 = arith.constant 0 : index
    %c0_86 = arith.constant 0 : index
    %136 = vector.load %arg16[%c0_85, %c0_86] : memref<8x1536xf32, #tpu.memory_space<vmem>>, vector<8x1536xf32>
    %137 = arith.truncf %136 : vector<8x1536xf32> to vector<8x1536xbf16>
    %c0_87 = arith.constant 0 : index
    %c0_88 = arith.constant 0 : index
    %138 = vector.load %arg9[%c0_87, %c0_88] : memref<1536x512xbf16, #tpu.memory_space<vmem>>, vector<1536x512xbf16>
    %cst_89 = arith.constant dense<0.000000e+00> : vector<8x512xf32>
    %139 = tpu.matmul %137, %138, %cst_89 {dimension_numbers = #tpu.dot_dimension_numbers<[1], [0], [0], [1], [0, 0, 1, 1], [], []>} : vector<8x1536xbf16>, vector<1536x512xbf16>, vector<8x512xf32> -> vector<8x512xf32>
    %c0_90 = arith.constant 0 : index
    %c0_91 = arith.constant 0 : index
    %140 = vector.load %arg10[%c0_90, %c0_91] : memref<1x512xf32, #tpu.memory_space<vmem>>, vector<1x512xf32>
    %141 = vector.broadcast %140 : vector<1x512xf32> to vector<8x512xf32>
    %142 = arith.addf %139, %141 : vector<8x512xf32>
    %143 = arith.truncf %142 : vector<8x512xf32> to vector<8x512xbf16>
    %c0_92 = arith.constant 0 : index
    %c0_93 = arith.constant 0 : index
    %144 = vector.load %arg11[%c0_92, %c0_93] : memref<512x128xbf16, #tpu.memory_space<vmem>>, vector<512x128xbf16>
    %cst_94 = arith.constant dense<0.000000e+00> : vector<8x128xf32>
    %145 = tpu.matmul %143, %144, %cst_94 {dimension_numbers = #tpu.dot_dimension_numbers<[1], [0], [0], [1], [0, 0, 1, 1], [], []>} : vector<8x512xbf16>, vector<512x128xbf16>, vector<8x128xf32> -> vector<8x128xf32>
    %c0_95 = arith.constant 0 : index
    %c0_96 = arith.constant 0 : index
    %146 = vector.load %arg12[%c0_95, %c0_96] : memref<1x128xf32, #tpu.memory_space<vmem>>, vector<1x128xf32>
    %147 = vector.broadcast %146 : vector<1x128xf32> to vector<8x128xf32>
    %148 = arith.addf %145, %147 : vector<8x128xf32>
    %c0_97 = arith.constant 0 : index
    %c0_98 = arith.constant 0 : index
    %149 = vector.load %arg13[%c0_97, %c0_98] : memref<8x128xf32, #tpu.memory_space<vmem>>, vector<8x128xf32>
    tpu.vector_store %arg13[%c0_97, %c0_98], %148 {strides = array<i32>} : memref<8x128xf32, #tpu.memory_space<vmem>>, vector<8x128xf32>,
    return
  }
  func.func @transform_0(%arg0: i32) -> (i32, i32) {
    %c0_i32 = arith.constant 0 : i32
    %c0_i32_0 = arith.constant 0 : i32
    %c0_i32_1 = arith.constant 0 : i32
    return %c0_i32, %c0_i32_0 : i32, i32
  }
  func.func @transform_1(%arg0: i32) -> (i32, i32) {
    %c0_i32 = arith.constant 0 : i32
    %c0_i32_0 = arith.constant 0 : i32
    %c0_i32_1 = arith.constant 0 : i32
    return %c0_i32, %c0_i32_0 : i32, i32
  }
  func.func @transform_2(%arg0: i32) -> (i32, i32) {
    %c0_i32 = arith.constant 0 : i32
    %c0_i32_0 = arith.constant 0 : i32
    %c0_i32_1 = arith.constant 0 : i32
    return %c0_i32, %c0_i32_0 : i32, i32
  }
  func.func @transform_3(%arg0: i32) -> (i32, i32) {
    %c0_i32 = arith.constant 0 : i32
    %c0_i32_0 = arith.constant 0 : i32
    %c0_i32_1 = arith.constant 0 : i32
    return %c0_i32, %c0_i32_0 : i32, i32
  }
  func.func @transform_4(%arg0: i32) -> (i32, i32) {
    %c0_i32 = arith.constant 0 : i32
    %c0_i32_0 = arith.constant 0 : i32
    %c0_i32_1 = arith.constant 0 : i32
    return %c0_i32, %c0_i32_0 : i32, i32
  }
  func.func @transform_5(%arg0: i32) -> (i32, i32) {
    %c0_i32 = arith.constant 0 : i32
    %c0_i32_0 = arith.constant 0 : i32
    %c0_i32_1 = arith.constant 0 : i32
    return %c0_i32, %c0_i32_0 : i32, i32
  }
  func.func @transform_6(%arg0: i32) -> (i32, i32) {
    %c0_i32 = arith.constant 0 : i32
    %c0_i32_0 = arith.constant 0 : i32
    %c0_i32_1 = arith.constant 0 : i32
    return %c0_i32, %c0_i32_0 : i32, i32
  }
  func.func @transform_7(%arg0: i32) -> (i32, i32) {
    %c0_i32 = arith.constant 0 : i32
    %c0_i32_0 = arith.constant 0 : i32
    %c0_i32_1 = arith.constant 0 : i32
    return %c0_i32, %c0_i32_0 : i32, i32
  }
  func.func @transform_8(%arg0: i32) -> (i32, i32) {
    %c0_i32 = arith.constant 0 : i32
    %c0_i32_0 = arith.constant 0 : i32
    %c0_i32_1 = arith.constant 0 : i32
    return %c0_i32, %c0_i32_0 : i32, i32
  }
  func.func @transform_9(%arg0: i32) -> (i32, i32) {
    %c0_i32 = arith.constant 0 : i32
    %c0_i32_0 = arith.constant 0 : i32
    %c0_i32_1 = arith.constant 0 : i32
    return %c0_i32, %c0_i32_0 : i32, i32
  }
  func.func @transform_10(%arg0: i32) -> (i32, i32) {
    %c0_i32 = arith.constant 0 : i32
    %c0_i32_0 = arith.constant 0 : i32
    %c0_i32_1 = arith.constant 0 : i32
    return %c0_i32, %c0_i32_0 : i32, i32
  }
  func.func @transform_11(%arg0: i32) -> (i32, i32) {
    %c0_i32 = arith.constant 0 : i32
    %c0_i32_0 = arith.constant 0 : i32
    %c0_i32_1 = arith.constant 0 : i32
    return %c0_i32, %c0_i32_0 : i32, i32
  }
  func.func @transform_12(%arg0: i32) -> (i32, i32) {
    %c0_i32 = arith.constant 0 : i32
    %c0_i32_0 = arith.constant 0 : i32
    %c0_i32_1 = arith.constant 0 : i32
    return %c0_i32, %c0_i32_0 : i32, i32
  }
}

</mosaic_0001>

<bundles_post_ra>
// kernel: vit_forward.1
= control target key start
LH: loop header
LB: loop body
LE: loop exit
PB: predicated region body
PF: predicated region fallthrough
CT: control target
= control target key end

     0   :  { %17 = vsyncpa [#allocation6], 0  ;;  %s14769_s0 = inlined_call_operand.vmem [shape: f32[32,128], index: 0, kind: input, shape index: {}]   ;;  %s14770_s1 = inlined_call_operand.hbm [shape: f32[32,384], index: 1, kind: input, shape index: {}]   ;;  %s14771_s2 = inlined_call_operand.hbm [shape: bf16[128,384], index: 2, kind: input, shape index: {}]   ;;  %s14772_s3 = inlined_call_operand.hbm [shape: f32[1,384], index: 3, kind: input, shape index: {}]   ;;  %s14773_s4 = inlined_call_operand.hbm [shape: bf16[384,2304], index: 4, kind: input, shape index: {}]   ;;  %s14774_s5 = inlined_call_operand.hbm [shape: f32[32,32], index: 5, kind: input, shape index: {}]   ;;  %s14775_s6 = inlined_call_operand.hbm [shape: bf16[1152,384], index: 6, kind: input, shape index: {}]   ;;  %s14776_s7 = inlined_call_operand.hbm [shape: f32[1,384], index: 7, kind: input, shape index: {}]   ;;  %s14777_s8 = inlined_call_operand.hbm [shape: bf16[1536,512], index: 8, kind: input, shape index: {}]   ;;  %s14778_s9 = inlined_call_operand.hbm [shape: f32[1,512], index: 9, kind: input, shape index: {}]   ;;  %s14779_s10 = inlined_call_operand.hbm [shape: bf16[512,128], index: 10, kind: input, shape index: {}]   ;;  %s14780_s11 = inlined_call_operand.hbm [shape: f32[1,128], index: 11, kind: input, shape index: {}]   ;;  %s14781_s12 = inlined_call_operand.vmem [shape: f32[8,128], index: 12, kind: output, shape index: {}]  }
   0x1   :  { %18 = vsyncpa [#allocation8], 0 }
   0x2   :  { %19 = vsyncpa [#allocation11], 0 }
   0x3   :  { %20 = vsyncpa [#allocation14], 0 }
   0x4   :  { %21 = vsyncpa [#allocation17], 0 }
   0x5   :  { %22 = vsyncpa [#allocation20], 0  ;;  %s13700_s21 = smov [#allocation7]   ;;  %s13446_s25 = scalar_lea.hbm %s14771_s2, 3072 }
   0x6   :  { %s42_s22 = sshll.u32 %s13700_s21, 4  ;;  %p13447_p0 = scmp.ne.s32.totalorder %s14771_s2, %s13446_s25  ;;  %s43_s22 = int_to_ptr.vmem [resolvable:$true] %s42_s22 }
   0x7   :  { %p13450_p1 = scmp.lt.u32.totalorder %s13446_s25, %s14771_s2 }
   0x9   :  { %p13452_p2 = pnand %p13450_p1, %p13447_p0 }
   0xb   :  { %13455 = shalt.err (!%p13452_p2)
}
   0xc   :  { %s13456_s30 = scalar_lea.vmem %s43_s22, 3072  ;;  %p13461_p4 = scmp.lt.s32.totalorder %s43_s22, %s43_s22 }
   0xd   :  { %p13457_p3 = scmp.ne.s32.totalorder %s43_s22, %s13456_s30  ;;  %p13462_p5 = scmp.lt.s32.totalorder %s13456_s30, %s13456_s30 }
   0xf   :  { %p13463_p6 = por %p13462_p5, %p13461_p4 }
  0x11   :  { %p13464_p7 = pnand %p13463_p6, %p13457_p3 }
  0x13   :  { %13467 = shalt.err (!%p13464_p7)
}
  0x14   :  { %s13701_s13 = smov 192   ;;  %s13702_s14 = smov 12  }
  0x15   :  { %48 = dma.hbm_to_vmem [thread:$0]  %s14771_s2, 3072, %s43_s22, [#allocation8], %s13701_s13, %s13701_s13, %s13702_s14  }
  0x16   :  { %s13703_s17 = smov [#allocation10]   ;;  %s13468_s21 = scalar_lea.hbm %s14773_s4, 55296 }
  0x17   :  { %s64_s18 = sshll.u32 %s13703_s17, 4  ;;  %p13469_p8 = scmp.ne.s32.totalorder %s14773_s4, %s13468_s21  ;;  %s65_s18 = int_to_ptr.vmem [resolvable:$true] %s64_s18 }
  0x18   :  { %p13472_p9 = scmp.lt.u32.totalorder %s13468_s21, %s14773_s4 }
  0x1a   :  { %p13474_p10 = pnand %p13472_p9, %p13469_p8 }
  0x1c   :  { %13477 = shalt.err (!%p13474_p10)
}
  0x1d   :  { %s13478_s27 = scalar_lea.vmem %s65_s18, 55296  ;;  %p13483_p12 = scmp.lt.s32.totalorder %s65_s18, %s65_s18 }
  0x1e   :  { %p13479_p11 = scmp.ne.s32.totalorder %s65_s18, %s13478_s27  ;;  %p13484_p13 = scmp.lt.s32.totalorder %s13478_s27, %s13478_s27 }
  0x20   :  { %p13485_p0 = por %p13484_p13, %p13483_p12 }
  0x22   :  { %p13486_p1 = pnand %p13485_p0, %p13479_p11 }
  0x24   :  { %13489 = shalt.err (!%p13486_p1)
}
  0x25   :  { %s13704_s2 = smov 1152   ;;  %s13705_s22 = smov 72  }
  0x26   :  { %70 = dma.hbm_to_vmem [thread:$0]  %s14773_s4, 55296, %s65_s18, [#allocation11], %s13704_s2, %s13704_s2, %s13705_s22  }
  0x27   :  { %s13706_s30 = smov [#allocation13]   ;;  %s13707_s16 = smov [#allocation16]  }
  0x28   :  { %s88_s15 = sshll.u32 %s13706_s30, 4  ;;  %s110_s17 = sshll.u32 %s13707_s16, 4  ;;  %s89_s15 = int_to_ptr.vmem [resolvable:$true] %s88_s15  ;;  %s13817_s17 = int_to_ptr.vmem [resolvable:$true] %s110_s17 }
  0x29   :  { %s13490_s21 = scalar_lea.hbm %s14775_s6, 27648 }
  0x2a   :  { %p13491_p2 = scmp.ne.s32.totalorder %s14775_s6, %s13490_s21  ;;  %p13494_p3 = scmp.lt.u32.totalorder %s13490_s21, %s14775_s6 }
  0x2c   :  { %p13496_p4 = pnand %p13494_p3, %p13491_p2 }
  0x2e   :  { %13499 = shalt.err (!%p13496_p4)
}
  0x2f   :  { %s13500_s4 = scalar_lea.vmem %s89_s15, 27648  ;;  %p13505_p6 = scmp.lt.s32.totalorder %s89_s15, %s89_s15 }
  0x30   :  { %p13501_p5 = scmp.ne.s32.totalorder %s89_s15, %s13500_s4  ;;  %p13506_p7 = scmp.lt.s32.totalorder %s13500_s4, %s13500_s4 }
  0x32   :  { %p13507_p8 = por %p13506_p7, %p13505_p6 }
  0x34   :  { %p13508_p9 = pnand %p13507_p8, %p13501_p5 }
  0x36   :  { %13511 = shalt.err (!%p13508_p9)
}
  0x37   :  { %94 = dma.hbm_to_vmem [thread:$0]  %s14775_s6, 27648, %s89_s15, [#allocation14], %s13701_s13, %s13701_s13, %s13702_s14  }
  0x38   :  { %s13512_s28 = scalar_lea.hbm %s14777_s8, 49152 }
  0x39   :  { %p13513_p10 = scmp.ne.s32.totalorder %s14777_s8, %s13512_s28  ;;  %p13516_p11 = scmp.lt.u32.totalorder %s13512_s28, %s14777_s8 }
  0x3b   :  { %p13518_p12 = pnand %p13516_p11, %p13513_p10 }
  0x3d   :  { %13521 = shalt.err (!%p13518_p12)
}
  0x3e   :  { %s13522_s20 = scalar_lea.vmem %s13817_s17, 49152  ;;  %p13527_p0 = scmp.lt.s32.totalorder %s13817_s17, %s13817_s17 }
  0x3f   :  { %p13523_p13 = scmp.ne.s32.totalorder %s13817_s17, %s13522_s20  ;;  %p13528_p1 = scmp.lt.s32.totalorder %s13522_s20, %s13522_s20 }
  0x41   :  { %p13529_p2 = por %p13528_p1, %p13527_p0 }
  0x43   :  { %p13530_p3 = pnand %p13529_p2, %p13523_p13 }
  0x45   :  { %13533 = shalt.err (!%p13530_p3)
}
  0x46   :  { %s13708_s6 = smov 256   ;;  %s13709_s13 = smov 16  }
  0x47   :  { %116 = dma.hbm_to_vmem [thread:$0]  %s14777_s8, 49152, %s13817_s17, [#allocation17], %s13708_s6, %s13708_s6, %s13709_s13  }
  0x48   :  { %s13710_s21 = smov [#allocation19]   ;;  %s13534_s26 = scalar_lea.hbm %s14779_s10, 4096 }
  0x49   :  { %s132_s23 = sshll.u32 %s13710_s21, 4  ;;  %p13535_p4 = scmp.ne.s32.totalorder %s14779_s10, %s13534_s26  ;;  %s133_s23 = int_to_ptr.vmem [resolvable:$true] %s132_s23 }
  0x4a   :  { %p13538_p5 = scmp.lt.u32.totalorder %s13534_s26, %s14779_s10 }
  0x4c   :  { %p13540_p6 = pnand %p13538_p5, %p13535_p4 }
  0x4e   :  { %13543 = shalt.err (!%p13540_p6)
}
  0x4f   :  { %s13544_s22 = scalar_lea.vmem %s133_s23, 4096  ;;  %p13549_p8 = scmp.lt.s32.totalorder %s133_s23, %s133_s23 }
  0x50   :  { %p13545_p7 = scmp.ne.s32.totalorder %s133_s23, %s13544_s22  ;;  %p13550_p9 = scmp.lt.s32.totalorder %s13544_s22, %s13544_s22 }
  0x52   :  { %p13551_p10 = por %p13550_p9, %p13549_p8 }
  0x54   :  { %p13552_p11 = pnand %p13551_p10, %p13545_p7 }
  0x56   :  { %13555 = shalt.err (!%p13552_p11)
}
  0x57   :  { %s13711_s8 = smov 64   ;;  %s13712_s17 = smov 4  }
  0x58   :  { %138 = dma.hbm_to_vmem [thread:$0]  %s14779_s10, 4096, %s133_s23, [#allocation20], %s13711_s8, %s13711_s8, %s13712_s17  }
  0x59   :  { %s13713_s30 = smov [#allocation5]   ;;  %s13556_s6 = scalar_lea.hbm %s14770_s1, 1536 }
  0x5a   :  { %s30_s16 = sshll.u32 %s13713_s30, 4  ;;  %p13557_p12 = scmp.ne.s32.totalorder %s14770_s1, %s13556_s6  ;;  %s31_s16 = int_to_ptr.vmem [resolvable:$true] %s30_s16 }
  0x5b   :  { %p13560_p13 = scmp.lt.u32.totalorder %s13556_s6, %s14770_s1 }
  0x5d   :  { %p13562_p0 = pnand %p13560_p13, %p13557_p12 }
  0x5f   :  { %13565 = shalt.err (!%p13562_p0)
}
  0x60   :  { %s13566_s24 = scalar_lea.vmem %s31_s16, 1536  ;;  %p13571_p2 = scmp.lt.s32.totalorder %s31_s16, %s31_s16 }
  0x61   :  { %p13567_p1 = scmp.ne.s32.totalorder %s31_s16, %s13566_s24  ;;  %p13572_p3 = scmp.lt.s32.totalorder %s13566_s24, %s13566_s24 }
  0x63   :  { %p13573_p4 = por %p13572_p3, %p13571_p2 }
  0x65   :  { %p13574_p5 = pnand %p13573_p4, %p13567_p1 }
  0x67   :  { %13577 = shalt.err (!%p13574_p5)
}
  0x68   :  { %s13714_s10 = smov 384   ;;  %s13715_s23 = smov 24  }
  0x69   :  { %36 = dma.hbm_to_vmem [thread:$0]  %s14770_s1, 1536, %s31_s16, [#allocation6], %s13714_s10, %s13714_s10, %s13715_s23  }
  0x6a   :  { %s13716_s4 = smov [#allocation9]   ;;  %s13717_s27 = smov [#allocation12]  }
  0x6b   :  { %s55_s18 = sshll.u32 %s13716_s4, 4  ;;  %s76_s2 = sshll.u32 %s13717_s27, 4  ;;  %s56_s18 = int_to_ptr.vmem [resolvable:$true] %s55_s18  ;;  %s13875_s2 = int_to_ptr.vmem [resolvable:$true] %s76_s2 }
  0x6c   :  { %s13578_s17 = scalar_lea.hbm %s14772_s3, 48 }
  0x6d   :  { %p13579_p6 = scmp.ne.s32.totalorder %s14772_s3, %s13578_s17  ;;  %p13582_p7 = scmp.lt.u32.totalorder %s13578_s17, %s14772_s3 }
  0x6f   :  { %p13584_p8 = pnand %p13582_p7, %p13579_p6 }
  0x71   :  { %13587 = shalt.err (!%p13584_p8)
}
  0x72   :  { %s13588_s1 = scalar_lea.vmem %s56_s18, 48  ;;  %s13592_s16 = scalar_lea.vmem %s56_s18, 64 }
  0x73   :  { %p13589_p9 = scmp.ne.s32.totalorder %s56_s18, %s13588_s1  ;;  %p13593_p10 = scmp.lt.s32.totalorder %s56_s18, %s56_s18 }
  0x74   :  { %p13594_p11 = scmp.lt.s32.totalorder %s13592_s16, %s13588_s1 }
  0x76   :  { %p13595_p12 = por %p13594_p11, %p13593_p10 }
  0x78   :  { %p13596_p13 = pnand %p13595_p12, %p13589_p9 }
  0x7a   :  { %13599 = shalt.err (!%p13596_p13)
}
  0x7b   :  { %58 = dma.hbm_to_vmem [thread:$0]  %s14772_s3, 48, %s56_s18, [#allocation8]  }
  0x7c   :  { %s13600_s15 = scalar_lea.hbm %s14774_s5, 512 }
  0x7d   :  { %p13601_p0 = scmp.ne.s32.totalorder %s14774_s5, %s13600_s15  ;;  %p13604_p1 = scmp.lt.u32.totalorder %s13600_s15, %s14774_s5 }
  0x7f   :  { %p13606_p2 = pnand %p13604_p1, %p13601_p0 }
  0x81   :  { %13609 = shalt.err (!%p13606_p2)
}
  0x82   :  { %s13610_s25 = scalar_lea.vmem %s13875_s2, 512  ;;  %p13615_p4 = scmp.lt.s32.totalorder %s13875_s2, %s13875_s2 }
  0x83   :  { %p13611_p3 = scmp.ne.s32.totalorder %s13875_s2, %s13610_s25  ;;  %p13616_p5 = scmp.lt.s32.totalorder %s13610_s25, %s13610_s25 }
  0x85   :  { %p13617_p6 = por %p13616_p5, %p13615_p4 }
  0x87   :  { %p13618_p7 = pnand %p13617_p6, %p13611_p3 }
  0x89   :  { %13621 = shalt.err (!%p13618_p7)
}
  0x8a   :  { %s13718_s3 = smov 128   ;;  %s13719_s26 = smov 8  }
  0x8b   :  { %82 = dma.hbm_to_vmem [thread:$0]  %s14774_s5, 512, %s13875_s2, [#allocation11], %s13718_s3, %s13718_s3, %s13719_s26  }
  0x8c   :  { %s13720_s27 = smov [#allocation15]   ;;  %s13721_s8 = smov [#allocation18]  }
  0x8d   :  { %s101_s22 = sshll.u32 %s13720_s27, 4  ;;  %s123_s17 = sshll.u32 %s13721_s8, 4  ;;  %s102_s22 = int_to_ptr.vmem [resolvable:$true] %s101_s22  ;;  %s124_s17 = int_to_ptr.vmem [resolvable:$true] %s123_s17 }
  0x8e   :  { %s13622_s30 = scalar_lea.hbm %s14776_s7, 48 }
  0x8f   :  { %p13623_p8 = scmp.ne.s32.totalorder %s14776_s7, %s13622_s30  ;;  %p13626_p9 = scmp.lt.u32.totalorder %s13622_s30, %s14776_s7 }
  0x91   :  { %p13628_p10 = pnand %p13626_p9, %p13623_p8 }
  0x93   :  { %13631 = shalt.err (!%p13628_p10)
}
  0x94   :  { %s13632_s5 = scalar_lea.vmem %s102_s22, 48  ;;  %s13636_s2 = scalar_lea.vmem %s102_s22, 64 }
  0x95   :  { %p13633_p11 = scmp.ne.s32.totalorder %s102_s22, %s13632_s5  ;;  %p13637_p12 = scmp.lt.s32.totalorder %s102_s22, %s102_s22 }
  0x96   :  { %p13638_p13 = scmp.lt.s32.totalorder %s13636_s2, %s13632_s5 }
  0x98   :  { %p13639_p0 = por %p13638_p13, %p13637_p12 }
  0x9a   :  { %p13640_p1 = pnand %p13639_p0, %p13633_p11 }
  0x9c   :  { %13643 = shalt.err (!%p13640_p1)
}
  0x9d   :  { %104 = dma.hbm_to_vmem [thread:$0]  %s14776_s7, 48, %s102_s22, [#allocation14]  }
  0x9e   :  { %s13644_s21 = scalar_lea.hbm %s14778_s9, 64 }
  0x9f   :  { %p13645_p2 = scmp.ne.s32.totalorder %s14778_s9, %s13644_s21  ;;  %p13648_p3 = scmp.lt.u32.totalorder %s13644_s21, %s14778_s9 }
  0xa1   :  { %p13650_p4 = pnand %p13648_p3, %p13645_p2 }
  0xa3   :  { %13653 = shalt.err (!%p13650_p4)
}
  0xa4   :  { %s13654_s3 = scalar_lea.vmem %s124_s17, 64  ;;  %p13659_p6 = scmp.lt.s32.totalorder %s124_s17, %s124_s17 }
  0xa5   :  { %p13655_p5 = scmp.ne.s32.totalorder %s124_s17, %s13654_s3  ;;  %p13660_p7 = scmp.lt.s32.totalorder %s13654_s3, %s13654_s3 }
  0xa7   :  { %p13661_p8 = por %p13660_p7, %p13659_p6 }
  0xa9   :  { %p13662_p9 = pnand %p13661_p8, %p13655_p5 }
  0xab   :  { %13665 = shalt.err (!%p13662_p9)
}
  0xac   :  { %126 = dma.hbm_to_vmem [thread:$0]  %s14778_s9, 64, %s124_s17, [#allocation17]  }
  0xad   :  { %s13722_s4 = smov [#allocation21]   ;;  %s13666_s8 = scalar_lea.hbm %s14780_s11, 16 }
  0xae   :  { %s145_s18 = sshll.u32 %s13722_s4, 4  ;;  %p13667_p10 = scmp.ne.s32.totalorder %s14780_s11, %s13666_s8  ;;  %s146_s18 = int_to_ptr.vmem [resolvable:$true] %s145_s18 }
  0xaf   :  { %p13670_p11 = scmp.lt.u32.totalorder %s13666_s8, %s14780_s11 }
  0xb1   :  { %p13672_p12 = pnand %p13670_p11, %p13667_p10 }
  0xb3   :  { %13675 = shalt.err (!%p13672_p12)
}
  0xb4   :  { %s13676_s1 = scalar_lea.vmem %s146_s18, 16  ;;  %s13680_s9 = scalar_lea.vmem %s146_s18, 32 }
  0xb5   :  { %p13677_p13 = scmp.ne.s32.totalorder %s146_s18, %s13676_s1  ;;  %p13681_p0 = scmp.lt.s32.totalorder %s146_s18, %s146_s18 }
  0xb6   :  { %p13682_p1 = scmp.lt.s32.totalorder %s13680_s9, %s13676_s1 }
  0xb8   :  { %p13683_p2 = por %p13682_p1, %p13681_p0 }
  0xba   :  { %p13684_p3 = pnand %p13683_p2, %p13677_p13 }
  0xbc   :  { %13687 = shalt.err (!%p13684_p3)
}
  0xbd   :  { %148 = dma.hbm_to_vmem [thread:$0]  %s14780_s11, 16, %s146_s18, [#allocation20]  }
  0xbe   :  { %13688 = dma.done.wait [#allocation6], 1536  }
  0xbf   :  { %13689 = vsyncadd [#allocation6], 4294965760 }
  0xc0   :  { %13690 = dma.done.wait [#allocation8], 3120  }
  0xc1   :  { %13691 = vsyncadd [#allocation8], 4294964176 }
  0xc2   :  { %13692 = dma.done.wait [#allocation11], 55808  }
  0xc3   :  { %13693 = vsyncadd [#allocation11], 4294911488 }
  0xc4   :  { %13694 = dma.done.wait [#allocation14], 27696  }
  0xc5   :  { %13695 = vsyncadd [#allocation14], 4294939600 }
  0xc6   :  { %13696 = dma.done.wait [#allocation17], 49216  }
  0xc7   :  { %13697 = vsyncadd [#allocation17], 4294918080 }
  0xc8   :  { %13698 = dma.done.wait [#allocation20], 4112  }
  0xc9   :  { %13699 = vsyncadd [#allocation20], 4294963184  ;;  %v13723_v0 = vmov 0   ;;  %v11830_v1 = vld [vmem:[#allocation7 + $0x4] ss:$12 sps:$4 sm:$0xff]   ;;  %v184_v22 = vld [vmem:[%s14769_s0 + $0x8] sm:$0xff] }
  0xca   :  { %398 = vmatprep.mubr.bf16.mxu0 %v13723_v0  ;;  %v11832_v2 = vld [vmem:[#allocation7] ss:$12 sps:$4 sm:$0xff]   ;;  %366 = vmatprep.subr.bf16.mxu0 %v11830_v1  ;;  %v11833_v3 = vld [vmem:[#allocation7 + $0x1c] ss:$12 sps:$4 sm:$0xff]   ;;  %v11835_v4 = vld [vmem:[#allocation7 + $0x18] ss:$12 sps:$4 sm:$0xff]  }
  0xcb   :  { %367 = vmatpush1.bf16.msra.mxu0 %v11832_v2  ;;  %v11836_v5 = vld [vmem:[#allocation7 + $0x34] ss:$12 sps:$4 sm:$0xff]   ;;  %v11838_v6 = vld [vmem:[#allocation7 + $0x30] ss:$12 sps:$4 sm:$0xff]   ;;  %v11839_v7 = vld [vmem:[#allocation7 + $0x4c] ss:$12 sps:$4 sm:$0xff]  }
  0xcc   :  { %368 = vmatprep.subr.bf16.mxu0 %v11833_v3  ;;  %v11841_v8 = vld [vmem:[#allocation7 + $0x48] ss:$12 sps:$4 sm:$0xff]   ;;  %v11842_v9 = vld [vmem:[#allocation7 + $0x64] ss:$12 sps:$4 sm:$0xff]   ;;  %v11844_v10 = vld [vmem:[#allocation7 + $0x60] ss:$12 sps:$4 sm:$0xff]  }
  0xcd   :  { %v11845_v11 = vld [vmem:[#allocation7 + $0x7c] ss:$12 sps:$4 sm:$0xff]   ;;  %v11847_v12 = vld [vmem:[#allocation7 + $0x78] ss:$12 sps:$4 sm:$0xff]   ;;  %v11848_v13 = vld [vmem:[#allocation7 + $0x94] ss:$12 sps:$4 sm:$0xff]  }
  0xce   :  { %v11865_v14 = vld [vmem:[#allocation10 + $0xc] ss:$72 sps:$4 sm:$0xff]   ;;  %v11867_v15 = vld [vmem:[#allocation10 + $0x8] ss:$72 sps:$4 sm:$0xff]   ;;  %v11871_v18 = vld [vmem:[#allocation10 + $0x9c] ss:$72 sps:$4 sm:$0xff]  }
  0xcf   :  { %369 = vmatpush1.bf16.msra.mxu0 %v11835_v4  ;;  %v11850_v16 = vld [vmem:[#allocation7 + $0x90] ss:$12 sps:$4 sm:$0xff]   ;;  %v11851_v17 = vld [vmem:[#allocation7 + $0xac] ss:$12 sps:$4 sm:$0xff]   ;;  %3220 = vmatprep.subr.bf16.mxu1 %v11865_v14  ;;  %v11853_v20 = vld [vmem:[#allocation7 + $0xa8] ss:$12 sps:$4 sm:$0xff]  }
  0xd0   :  { %370 = vmatprep.subr.bf16.mxu0 %v11836_v5  ;;  %3221 = vmatpush1.bf16.msra.mxu1 %v11867_v15  ;;  %v11873_v19 = vld [vmem:[#allocation10 + $0x98] ss:$72 sps:$4 sm:$0xff]   ;;  %v11877_v23 = vld [vmem:[#allocation10 + $0x12c] ss:$72 sps:$4 sm:$0xff]   ;;  %v11854_v24 = vld [vmem:[#allocation7 + $0x8] ss:$12 sps:$4 sm:$0xff]  }
  0xd1   :  { %v183_v21 = vld [vmem:[%s14769_s0] sm:$0xff]  ;;  %3222 = vmatprep.subr.bf16.mxu1 %v11871_v18  ;;  %v11879_v25 = vld [vmem:[#allocation10 + $0x128] ss:$72 sps:$4 sm:$0xff]   ;;  %v11889_v30 = vld [vmem:[#allocation10 + $0x24c] ss:$72 sps:$4 sm:$0xff]   ;;  %vm4260_vm0 = vcmask 261120  }
  0xd2   :  { %v187_v26 = vpack.c.bf16 %v184_v22, %v183_v21  ;;  %v11883_v27 = vld [vmem:[#allocation10 + $0x1bc] ss:$72 sps:$4 sm:$0xff]   ;;  %v11885_v29 = vld [vmem:[#allocation10 + $0x1b8] ss:$72 sps:$4 sm:$0xff]   ;;  %v185_v31 = vld [vmem:[%s14769_s0 + $0x10] sm:$0xff] }
  0xd3   :  { %371 = vmatpush1.bf16.msra.mxu0 %v11838_v6  ;;  %v11855_v28 = vld [vmem:[#allocation7 + $0x20] ss:$12 sps:$4 sm:$0xff]   ;;  %v186_v32 = vld [vmem:[%s14769_s0 + $0x18] sm:$0xff]  ;;  %v11858_v40 = vld [vmem:[#allocation7 + $0x68] ss:$12 sps:$4 sm:$0xff]  }
  0xd4   :  { %372 = vmatprep.subr.bf16.mxu0 %v11839_v7  ;;  %3223 = vmatpush1.bf16.msra.mxu1 %v11873_v19  ;;  %v11856_v33 = vld [vmem:[#allocation7 + $0x38] ss:$12 sps:$4 sm:$0xff]   ;;  %v11891_v34 = vld [vmem:[#allocation10 + $0x248] ss:$72 sps:$4 sm:$0xff]   ;;  %v188_v35 = vpack.c.bf16 %v186_v32, %v185_v31  ;;  %v11895_v36 = vld [vmem:[#allocation10 + $0x2dc] ss:$72 sps:$4 sm:$0xff]  }
  0xd5   :  { %3224 = vmatprep.subr.bf16.mxu1 %v11877_v23  ;;  %v11857_v37 = vld [vmem:[#allocation7 + $0x50] ss:$12 sps:$4 sm:$0xff]   ;;  %v11903_v41 = vld [vmem:[#allocation10 + $0x368] ss:$72 sps:$4 sm:$0xff]   ;;  %v11907_v42 = vld [vmem:[#allocation10 + $0x3fc] ss:$72 sps:$4 sm:$0xff]  }
  0xd6   :  { %v11897_v38 = vld [vmem:[#allocation10 + $0x2d8] ss:$72 sps:$4 sm:$0xff]   ;;  %v11901_v39 = vld [vmem:[#allocation10 + $0x36c] ss:$72 sps:$4 sm:$0xff]   ;;  %v11859_v43 = vld [vmem:[#allocation7 + $0x80] ss:$12 sps:$4 sm:$0xff]  }
  0xd7   :  { %373 = vmatpush1.bf16.msra.mxu0 %v11841_v8  ;;  %v11909_v44 = vld [vmem:[#allocation10 + $0x3f8] ss:$72 sps:$4 sm:$0xff]   ;;  %v11913_v45 = vld [vmem:[#allocation10 + $0x48c] ss:$72 sps:$4 sm:$0xff]   ;;  %v11915_v47 = vld [vmem:[#allocation10 + $0x488] ss:$72 sps:$4 sm:$0xff]  }
  0xd8   :  { %374 = vmatprep.subr.bf16.mxu0 %v11842_v9  ;;  %3225 = vmatpush1.bf16.msra.mxu1 %v11879_v25  ;;  %v11860_v46 = vld [vmem:[#allocation7 + $0x98] ss:$12 sps:$4 sm:$0xff]   ;;  %v11861_v48 = vld [vmem:[#allocation7 + $0xb0] ss:$12 sps:$4 sm:$0xff]   ;;  %v11919_v49 = vld [vmem:[#allocation10 + $0x51c] ss:$72 sps:$4 sm:$0xff]  }
  0xd9   :  { %3226 = vmatprep.subr.bf16.mxu1 %v11883_v27  ;;  %v11921_v50 = vld [vmem:[#allocation10 + $0x518] ss:$72 sps:$4 sm:$0xff]   ;;  %v11925_v51 = vld [vmem:[#allocation10 + $0x5ac] ss:$72 sps:$4 sm:$0xff]   ;;  %v11927_v53 = vld [vmem:[#allocation10 + $0x5a8] ss:$72 sps:$4 sm:$0xff]  }
  0xda   :  { %v11864_v52 = vld [vmem:[#allocation10 + $0x4] ss:$72 sps:$4 sm:$0xff]   ;;  %v11862_v55 = vld [vmem:[#allocation10] ss:$72 sps:$4 sm:$0xff]   ;;  %v11870_v56 = vld [vmem:[#allocation10 + $0x94] ss:$72 sps:$4 sm:$0xff]  }
  0xdb   :  { %375 = vmatpush1.bf16.msra.mxu0 %v11844_v10  ;;  %v11931_v54 = vld [vmem:[#allocation10 + $0x63c] ss:$72 sps:$4 sm:$0xff]   ;;  %v11933_v57 = vld [vmem:[#allocation10 + $0x638] ss:$72 sps:$4 sm:$0xff]   ;;  %v11937_v58 = vld [vmem:[#allocation10 + $0x6cc] ss:$72 sps:$4 sm:$0xff]  }
  0xdc   :  { %376 = vmatprep.subr.bf16.mxu0 %v11845_v11  ;;  %3227 = vmatpush1.bf16.msra.mxu1 %v11885_v29  ;;  %v11868_v59 = vld [vmem:[#allocation10 + $0x90] ss:$72 sps:$4 sm:$0xff]   ;;  %v11876_v60 = vld [vmem:[#allocation10 + $0x124] ss:$72 sps:$4 sm:$0xff]   ;;  %v11874_v62 = vld [vmem:[#allocation10 + $0x120] ss:$72 sps:$4 sm:$0xff]  }
  0xdd   :  { %3228 = vmatprep.subr.bf16.mxu1 %v11889_v30  ;;  %v11939_v61 = vld [vmem:[#allocation10 + $0x6c8] ss:$72 sps:$4 sm:$0xff]   ;;  %v11882_v63 = vld [vmem:[#allocation10 + $0x1b4] ss:$72 sps:$4 sm:$0xff]   ;;  %v11888_v2 = vld [vmem:[#allocation10 + $0x244] ss:$72 sps:$4 sm:$0xff]  }
  0xde   :  { %v11880_v1 = vld [vmem:[#allocation10 + $0x1b0] ss:$72 sps:$4 sm:$0xff]   ;;  %v11886_v3 = vld [vmem:[#allocation10 + $0x240] ss:$72 sps:$4 sm:$0xff]   ;;  %v11894_v4 = vld [vmem:[#allocation10 + $0x2d4] ss:$72 sps:$4 sm:$0xff]  }
  0xdf   :  { %377 = vmatpush1.bf16.msra.mxu0 %v11847_v12  ;;  %v11892_v5 = vld [vmem:[#allocation10 + $0x2d0] ss:$72 sps:$4 sm:$0xff]   ;;  %v11900_v6 = vld [vmem:[#allocation10 + $0x364] ss:$72 sps:$4 sm:$0xff]   ;;  %v11898_v7 = vld [vmem:[#allocation10 + $0x360] ss:$72 sps:$4 sm:$0xff]  }
  0xe0   :  { %378 = vmatprep.subr.bf16.mxu0 %v11848_v13  ;;  %3229 = vmatpush1.bf16.msra.mxu1 %v11891_v34  ;;  %v11906_v8 = vld [vmem:[#allocation10 + $0x3f4] ss:$72 sps:$4 sm:$0xff]   ;;  %v11904_v9 = vld [vmem:[#allocation10 + $0x3f0] ss:$72 sps:$4 sm:$0xff]   ;;  %v11912_v10 = vld [vmem:[#allocation10 + $0x484] ss:$72 sps:$4 sm:$0xff]   ;;  %v14782_v34 = vlaneseq }
  0xe1   :  { %3230 = vmatprep.subr.bf16.mxu1 %v11895_v36  ;;  %v11910_v11 = vld [vmem:[#allocation10 + $0x480] ss:$72 sps:$4 sm:$0xff]   ;;  %v11918_v12 = vld [vmem:[#allocation10 + $0x514] ss:$72 sps:$4 sm:$0xff]   ;;  %v11916_v13 = vld [vmem:[#allocation10 + $0x510] ss:$72 sps:$4 sm:$0xff]  }
  0xe2   :  { %v11924_v14 = vld [vmem:[#allocation10 + $0x5a4] ss:$72 sps:$4 sm:$0xff]   ;;  %v11922_v15 = vld [vmem:[#allocation10 + $0x5a0] ss:$72 sps:$4 sm:$0xff]   ;;  %v11940_v22 = vld [vmem:[#allocation10 + $0x750] ss:$72 sps:$4 sm:$0xff]  }
  0xe3   :  { %379 = vmatpush1.bf16.msra.mxu0 %v11850_v16  ;;  %v11930_v16 = vld [vmem:[#allocation10 + $0x634] ss:$72 sps:$4 sm:$0xff]   ;;  %v11936_v18 = vld [vmem:[#allocation10 + $0x6c4] ss:$72 sps:$4 sm:$0xff]   ;;  %v11934_v19 = vld [vmem:[#allocation10 + $0x6c0] ss:$72 sps:$4 sm:$0xff]  }
  0xe4   :  { %380 = vmatprep.subr.bf16.mxu0 %v11851_v17  ;;  %3231 = vmatpush1.bf16.msra.mxu1 %v11897_v38  ;;  %v11928_v17 = vld [vmem:[#allocation10 + $0x630] ss:$72 sps:$4 sm:$0xff]   ;;  %v11943_v21 = vld [vmem:[#allocation10 + $0x75c] ss:$72 sps:$4 sm:$0xff]   ;;  %v11949_v25 = vld [vmem:[#allocation10 + $0x7ec] ss:$72 sps:$4 sm:$0xff]  }
  0xe5   :  { %3232 = vmatprep.subr.bf16.mxu1 %v11901_v39  ;;  %v11945_v23 = vld [vmem:[#allocation10 + $0x758] ss:$72 sps:$4 sm:$0xff]   ;;  %v11951_v27 = vld [vmem:[#allocation10 + $0x7e8] ss:$72 sps:$4 sm:$0xff]   ;;  %v11955_v29 = vld [vmem:[#allocation10 + $0x87c] ss:$72 sps:$4 sm:$0xff]  }
  0xe6   :  { %v11952_v30 = vld [vmem:[#allocation10 + $0x870] ss:$72 sps:$4 sm:$0xff]   ;;  %v11960_v32 = vld [vmem:[#allocation10 + $0x904] ss:$72 sps:$4 sm:$0xff]   ;;  %v13959_v36 = vld [vmem:[#allocation9] sm:$0x7] }
  0xe7   :  { %381 = vmatpush1.bf16.msra.mxu0 %v11853_v20  ;;  %v11942_v20 = vld [vmem:[#allocation10 + $0x754] ss:$72 sps:$4 sm:$0xff]   ;;  %v11957_v31 = vld [vmem:[#allocation10 + $0x878] ss:$72 sps:$4 sm:$0xff]  }
  0xe8   :  { %11577 = vmatprep.subr.bf16.mxu0 %v11854_v24  ;;  %3233 = vmatpush1.bf16.msra.mxu1 %v11903_v41 }
  0xe9   :  { %3234 = vmatprep.subr.bf16.mxu1 %v11907_v42 }
  0xea   :  { %399 = vmatmul.mubr.bf16.vlgmr.msra.gmra.mrb[0].mxu0 %v187_v26 }
  0xeb   :  { %11578 = vmatpush3.bf16.msra.mxu0 %v11854_v24  ;;  %408 = vmatprep.mubr.bf16.mxu0 %v13723_v0  ;;  %v11948_v24 = vld [vmem:[#allocation10 + $0x7e4] ss:$72 sps:$4 sm:$0xff]  }
  0xec   :  { %11579 = vmatprep.subr.bf16.mxu0 %v11855_v28  ;;  %3235 = vmatpush1.bf16.msra.mxu1 %v11909_v44 }
  0xed   :  { %3236 = vmatprep.subr.bf16.mxu1 %v11913_v45  ;;  %v481_v45 = vld [vmem:[#allocation5 + $0x8] sm:$0xff] }
  0xef   :  { %11580 = vmatpush3.bf16.msra.mxu0 %v11855_v28  ;;  %v11954_v28 = vld [vmem:[#allocation10 + $0x874] ss:$72 sps:$4 sm:$0xff]  }
  0xf0   :  { %11581 = vmatprep.subr.bf16.mxu0 %v11856_v33  ;;  %3237 = vmatpush1.bf16.msra.mxu1 %v11915_v47 }
  0xf1   :  { %3238 = vmatprep.subr.bf16.mxu1 %v11919_v49 }
  0xf2   :  { %409 = vmatmul.mubr.bf16.gmra.mrb[4].mxu0 %v188_v35 }
  0xf3   :  { %11582 = vmatpush3.bf16.msra.mxu0 %v11856_v33  ;;  %11593 = vmatprep.mubr.bf16.mxu0 %v187_v26  ;;  %v11946_v26 = vld [vmem:[#allocation10 + $0x7e0] ss:$72 sps:$4 sm:$0xff]   ;;  %v11963_v33 = vld [vmem:[#allocation10 + $0x90c] ss:$72 sps:$4 sm:$0xff]  }
  0xf4   :  { %11583 = vmatprep.subr.bf16.mxu0 %v11857_v37  ;;  %3239 = vmatpush1.bf16.msra.mxu1 %v11921_v50 }
  0xf5   :  { %3240 = vmatprep.subr.bf16.mxu1 %v11925_v51 }
  0xf7   :  { %11584 = vmatpush3.bf16.msra.mxu0 %v11857_v37 }
  0xf8   :  { %11585 = vmatprep.subr.bf16.mxu0 %v11858_v40  ;;  %3241 = vmatpush1.bf16.msra.mxu1 %v11927_v53 }
  0xf9   :  { %3242 = vmatprep.subr.bf16.mxu1 %v11931_v54 }
  0xfb   :  { %11586 = vmatpush3.bf16.msra.mxu0 %v11858_v40 }
  0xfc   :  { %11587 = vmatprep.subr.bf16.mxu0 %v11859_v43  ;;  %3243 = vmatpush1.bf16.msra.mxu1 %v11933_v57 }
  0xfd   :  { %3244 = vmatprep.subr.bf16.mxu1 %v11937_v58 }
  0xff   :  { %11588 = vmatpush3.bf16.msra.mxu0 %v11859_v43  ;;  %v480_v43 = vld [vmem:[#allocation5] sm:$0xff] }
 0x100   :  { %11589 = vmatprep.subr.bf16.mxu0 %v11860_v46  ;;  %3245 = vmatpush1.bf16.msra.mxu1 %v11939_v61  ;;  %v11958_v61 = vld [vmem:[#allocation10 + $0x900] ss:$72 sps:$4 sm:$0xff]  }
 0x101   :  { %3246 = vmatprep.subr.bf16.mxu1 %v11943_v21  ;;  %v490_v21 = vld [vmem:[#allocation5 + $0x50] sm:$0xff] }
 0x103   :  { %11590 = vmatpush3.bf16.msra.mxu0 %v11860_v46 }
 0x104   :  { %11591 = vmatprep.subr.bf16.mxu0 %v11861_v48  ;;  %3247 = vmatpush1.bf16.msra.mxu1 %v11945_v23  ;;  %v11975_v23 = vld [vmem:[#allocation10 + $0xa2c] ss:$72 sps:$4 sm:$0xff]  }
 0x105   :  { %3248 = vmatprep.subr.bf16.mxu1 %v11949_v25 }
 0x107   :  { %11592 = vmatpush3.bf16.msra.mxu0 %v11861_v48 }
 0x108   :  { %3114 = vmatprep.subr.bf16.mxu0 %v11864_v52  ;;  %3249 = vmatpush1.bf16.msra.mxu1 %v11951_v27  ;;  %v483_v52 = vld [vmem:[#allocation5 + $0x18] sm:$0xff]  ;;  %v11970_v27 = vld [vmem:[#allocation10 + $0xa20] ss:$72 sps:$4 sm:$0xff]  }
 0x109   :  { %3250 = vmatprep.subr.bf16.mxu1 %v11955_v29 }
 0x10a   :  { %11594 = vmatmul.mubr.bf16.vlgmr.msra.gmra.mrb[8].mxu0 %v188_v35  ;;  %v13957_v35 = vshrl.u32 %v14782_v34, 7 }
 0x10b   :  { %3115 = vmatpush1.bf16.msra.mxu0 %v11862_v55 }
 0x10c   :  { %3116 = vmatprep.subr.bf16.mxu0 %v11870_v56  ;;  %3251 = vmatpush1.bf16.msra.mxu1 %v11957_v31  ;;  %v13962_v37 = vsub.s32 0, %v13957_v35  ;;  %v13965_v38 = vsub.s32 1, %v13957_v35  ;;  %v484_v56 = vld [vmem:[#allocation5 + $0x20] sm:$0xff] }
 0x10d   :  { %3273 = vmatprep.subr.bf16.mxu1 %v11963_v33  ;;  %v11978_v31 = vld [vmem:[#allocation10 + $0xab4] ss:$72 sps:$4 sm:$0xff]  }
 0x10e   :  { %v226_v39 = vrot.slane %v13959_v36, %v13962_v37  ;;  %v230_v40 = vrot.slane %v13959_v36, %v13965_v38 }
 0x10f   :  { %3117 = vmatpush1.bf16.msra.mxu0 %v11868_v59 }
 0x110   :  { %3118 = vmatprep.subr.bf16.mxu0 %v11876_v60 }
 0x113   :  { %3119 = vmatpush1.bf16.msra.mxu0 %v11874_v62  ;;  %v11961_v62 = vld [vmem:[#allocation10 + $0x908] ss:$72 sps:$4 sm:$0xff]  }
 0x114   :  { %3120 = vmatprep.subr.bf16.mxu0 %v11882_v63 }
 0x117   :  { %3121 = vmatpush1.bf16.msra.mxu0 %v11880_v1 }
 0x118   :  { %3122 = vmatprep.subr.bf16.mxu0 %v11888_v2  ;;  %v11966_v2 = vld [vmem:[#allocation10 + $0x994] ss:$72 sps:$4 sm:$0xff]  }
 0x11b   :  { %3123 = vmatpush1.bf16.msra.mxu0 %v11886_v3  ;;  %v11969_v3 = vld [vmem:[#allocation10 + $0x99c] ss:$72 sps:$4 sm:$0xff]  }
 0x11c   :  { %3124 = vmatprep.subr.bf16.mxu0 %v11894_v4 }
 0x11f   :  { %3125 = vmatpush1.bf16.msra.mxu0 %v11892_v5  ;;  %v486_v5 = vld [vmem:[#allocation5 + $0x30] sm:$0xff] }
 0x120   :  { %3126 = vmatprep.subr.bf16.mxu0 %v11900_v6 }
 0x123   :  { %3127 = vmatpush1.bf16.msra.mxu0 %v11898_v7  ;;  %v487_v7 = vld [vmem:[#allocation5 + $0x38] sm:$0xff] }
 0x124   :  { %3128 = vmatprep.subr.bf16.mxu0 %v11906_v8 }
 0x127   :  { %3129 = vmatpush1.bf16.msra.mxu0 %v11904_v9 }
 0x128   :  { %3130 = vmatprep.subr.bf16.mxu0 %v11912_v10 }
 0x12b   :  { %3131 = vmatpush1.bf16.msra.mxu0 %v11910_v11  ;;  %v489_v11 = vld [vmem:[#allocation5 + $0x48] sm:$0xff] }
 0x12c   :  { %3132 = vmatprep.subr.bf16.mxu0 %v11918_v12 }
 0x12f   :  { %3133 = vmatpush1.bf16.msra.mxu0 %v11916_v13 }
 0x130   :  { %3134 = vmatprep.subr.bf16.mxu0 %v11924_v14 }
 0x133   :  { %3135 = vmatpush1.bf16.msra.mxu0 %v11922_v15  ;;  %v11964_v15 = vld [vmem:[#allocation10 + $0x990] ss:$72 sps:$4 sm:$0xff]  }
 0x134   :  { %3136 = vmatprep.subr.bf16.mxu0 %v11930_v16 }
 0x137   :  { %3137 = vmatpush1.bf16.msra.mxu0 %v11928_v17 }
 0x138   :  { %3138 = vmatprep.subr.bf16.mxu0 %v11936_v18  ;;  %v11967_v18 = vld [vmem:[#allocation10 + $0x998] ss:$72 sps:$4 sm:$0xff]  }
 0x13b   :  { %3139 = vmatpush1.bf16.msra.mxu0 %v11934_v19 }
 0x13c   :  { %3140 = vmatprep.subr.bf16.mxu0 %v11942_v20 }
 0x13f   :  { %3141 = vmatpush1.bf16.msra.mxu0 %v11940_v22  ;;  %v11972_v22 = vld [vmem:[#allocation10 + $0xa24] ss:$72 sps:$4 sm:$0xff]  }
 0x140   :  { %3142 = vmatprep.subr.bf16.mxu0 %v11948_v24 }
 0x143   :  { %3143 = vmatpush1.bf16.msra.mxu0 %v11946_v26 }
 0x144   :  { %3144 = vmatprep.subr.bf16.mxu0 %v11954_v28  ;;  %v11973_v28 = vld [vmem:[#allocation10 + $0xa28] ss:$72 sps:$4 sm:$0xff]  }
 0x147   :  { %3145 = vmatpush1.bf16.msra.mxu0 %v11952_v30 }
 0x148   :  { %3167 = vmatprep.subr.bf16.mxu0 %v11960_v32  ;;  %v11981_v32 = vld [vmem:[#allocation10 + $0xabc] ss:$72 sps:$4 sm:$0xff]  }
 0x1bd   :  { %v400_v41 = vpop.f32.mrb[0].mxu0 }
 0x1be   :  { %v401_v42 = vadd.f32 %v400_v41, %v226_v39  ;;  %v402_v44 = vpop.f32.mrb[1].mxu0  ;;  %v11984_v41 = vld [vmem:[#allocation10 + $0xb44] ss:$72 sps:$4 sm:$0xff]  }
 0x1bf   :  { %v403_v46 = vadd.f32 %v402_v44, %v230_v40  ;;  %v404_v47 = vpop.f32.mrb[2].mxu0  ;;  %v11985_v44 = vld [vmem:[#allocation10 + $0xb48] ss:$72 sps:$4 sm:$0xff]  }
 0x1c0   :  { %v468_v48 = vmax.f32 %v401_v42, 0.0  ;;  %v405_v49 = vadd.f32 %v404_v47, %v226_v39  ;;  %v406_v50 = vpop.f32.mrb[3].mxu0  ;;  %v11987_v42 = vld [vmem:[#allocation10 + $0xb4c] ss:$72 sps:$4 sm:$0xff]   ;;  %v11993_v47 = vld [vmem:[#allocation10 + $0xbdc] ss:$72 sps:$4 sm:$0xff]  }
 0x1c1   :  { %v469_v51 = vmax.f32 %v403_v46, 0.0  ;;  %v407_v53 = vadd.f32 %v406_v50, %v230_v40  ;;  %v11990_v46 = vld [vmem:[#allocation10 + $0xbd4] ss:$72 sps:$4 sm:$0xff]  }
 0x1c2   :  { %v492_v54 = vadd.f32 %v480_v43, %v468_v48  ;;  %v471_v55 = vmax.f32 %v405_v49, 0.0  ;;  %v11982_v43 = vld [vmem:[#allocation10 + $0xb40] ss:$72 sps:$4 sm:$0xff]   ;;  %v11988_v48 = vld [vmem:[#allocation10 + $0xbd0] ss:$72 sps:$4 sm:$0xff]  }
 0x1c3   :  { %v493_v57 = vadd.f32 %v481_v45, %v469_v51  ;;  %v472_v58 = vmax.f32 %v407_v53, 0.0  ;;  %v13990_v45 = vsub.s32 2, %v13957_v35  ;;  %v11991_v49 = vld [vmem:[#allocation10 + $0xbd8] ss:$72 sps:$4 sm:$0xff]   ;;  %v11996_v51 = vld [vmem:[#allocation10 + $0xc64] ss:$72 sps:$4 sm:$0xff]  }
 0x1c4   :  { %504 = vst [vmem:[#allocation2 + $0x48] sm:$0xff] %v492_v54  ;;  %v495_v59 = vadd.f32 %v483_v52, %v471_v55  ;;  %v11999_v52 = vld [vmem:[#allocation10 + $0xc6c] ss:$72 sps:$4 sm:$0xff]   ;;  %v11994_v55 = vld [vmem:[#allocation10 + $0xc60] ss:$72 sps:$4 sm:$0xff]  }
 0x1c5   :  { %505 = vst [vmem:[#allocation2 + $0x50] sm:$0xff] %v493_v57  ;;  %v496_v60 = vadd.f32 %v484_v56, %v472_v58  ;;  %v410_v63 = vpop.f32.mrb[4].mxu0  ;;  %v234_v50 = vrot.slane %v13959_v36, %v13990_v45  ;;  %v11997_v56 = vld [vmem:[#allocation10 + $0xc68] ss:$72 sps:$4 sm:$0xff]   ;;  %v491_v36 = vld [vmem:[#allocation5 + $0x58] sm:$0xff] }
 0x1c6   :  { %507 = vst [vmem:[#allocation2 + $0xa8] sm:$0xff] %v495_v59  ;;  %v13971_v1 = vpack.c.bf16 %v495_v59, %v492_v54  ;;  %v411_v4 = vadd.f32 %v410_v63, %v226_v39  ;;  %v412_v6 = vpop.f32.mrb[5].mxu0  ;;  %v488_v54 = vld [vmem:[#allocation5 + $0x40] sm:$0xff]  ;;  %v482_v59 = vld [vmem:[#allocation5 + $0x10] sm:$0xff] }
 0x1c7   :  { %508 = vst [vmem:[#allocation2 + $0xb0] sm:$0xff] %v496_v60  ;;  %v13973_v8 = vpack.c.bf16 %v496_v60, %v493_v57  ;;  %v413_v9 = vadd.f32 %v412_v6, %v230_v40  ;;  %v414_v10 = vpop.f32.mrb[6].mxu0  ;;  %v12002_v60 = vld [vmem:[#allocation10 + $0xcf4] ss:$72 sps:$4 sm:$0xff]  }
 0x1c8   :  { %v474_v12 = vmax.f32 %v411_v4, 0.0  ;;  %v415_v13 = vadd.f32 %v414_v10, %v226_v39  ;;  %v416_v14 = vpop.f32.mrb[7].mxu0  ;;  %v11976_v39 = vld [vmem:[#allocation10 + $0xab0] ss:$72 sps:$4 sm:$0xff]  }
 0x1c9   :  { %3146 = vmatprep.mubr.bf16.mxu0 %v13973_v8  ;;  %3252 = vmatprep.mubr.bf16.mxu1 %v13973_v8  ;;  %v475_v16 = vmax.f32 %v413_v9, 0.0  ;;  %v417_v17 = vadd.f32 %v416_v14, %v230_v40  ;;  %v11979_v40 = vld [vmem:[#allocation10 + $0xab8] ss:$72 sps:$4 sm:$0xff]   ;;  %v12011_v14 = vld [vmem:[#allocation10 + $0x1c] ss:$72 sps:$4 sm:$0xff]  }
 0x1ca   :  { %3147 = vmatmul.mubr.bf16.vlgmr.msra.gmra.mrb[12].mxu0 %v13971_v1  ;;  %3253 = vmatmul.mubr.bf16.vlgmr.msra.gmra.mrb[0].mxu1 %v13971_v1  ;;  %v498_v19 = vadd.f32 %v486_v5, %v474_v12  ;;  %v477_v20 = vmax.f32 %v415_v13, 0.0  ;;  %v485_v5 = vld [vmem:[#allocation5 + $0x28] sm:$0xff]  ;;  %v12000_v9 = vld [vmem:[#allocation10 + $0xcf0] ss:$72 sps:$4 sm:$0xff]   ;;  %v12008_v13 = vld [vmem:[#allocation10 + $0x14] ss:$72 sps:$4 sm:$0xff]  }
 0x1cb   :  { %3168 = vmatpush1.bf16.msra.mxu0 %v11958_v61  ;;  %3274 = vmatpush1.bf16.msra.mxu1 %v11961_v62  ;;  %v499_v24 = vadd.f32 %v487_v7, %v475_v16  ;;  %v478_v25 = vmax.f32 %v417_v17, 0.0  ;;  %v12005_v61 = vld [vmem:[#allocation10 + $0xcfc] ss:$72 sps:$4 sm:$0xff]   ;;  %v12003_v10 = vld [vmem:[#allocation10 + $0xcf8] ss:$72 sps:$4 sm:$0xff]  }
 0x1cc   :  { %3169 = vmatprep.subr.bf16.mxu0 %v11966_v2  ;;  %3275 = vmatprep.subr.bf16.mxu1 %v11969_v3  ;;  %510 = vst [vmem:[#allocation2 + $0x108] sm:$0xff] %v498_v19  ;;  %v501_v26 = vadd.f32 %v489_v11, %v477_v20  ;;  %v12009_v20 = vld [vmem:[#allocation10 + $0x18] ss:$72 sps:$4 sm:$0xff]  }
 0x1cd   :  { %511 = vst [vmem:[#allocation2 + $0x110] sm:$0xff] %v499_v24  ;;  %v502_v29 = vadd.f32 %v490_v21, %v478_v25  ;;  %v12012_v25 = vld [vmem:[#allocation10 + $0xa0] ss:$72 sps:$4 sm:$0xff]  }
 0x1ce   :  { %513 = vst [vmem:[#allocation2 + $0x168] sm:$0xff] %v501_v26  ;;  %v13979_v30 = vpack.c.bf16 %v501_v26, %v498_v19  ;;  %v12006_v19 = vld [vmem:[#allocation10 + $0x10] ss:$72 sps:$4 sm:$0xff]  }
 0x1cf   :  { %3170 = vmatpush1.bf16.msra.mxu0 %v11964_v15  ;;  %3276 = vmatpush1.bf16.msra.mxu1 %v11967_v18  ;;  %514 = vst [vmem:[#allocation2 + $0x170] sm:$0xff] %v502_v29  ;;  %v13981_v33 = vpack.c.bf16 %v502_v29, %v499_v24  ;;  %v12015_v26 = vld [vmem:[#allocation10 + $0xa8] ss:$72 sps:$4 sm:$0xff]  }
 0x1d0   :  { %3171 = vmatprep.subr.bf16.mxu0 %v11972_v22  ;;  %3277 = vmatprep.subr.bf16.mxu1 %v11975_v23  ;;  %v12014_v22 = vld [vmem:[#allocation10 + $0xa4] ss:$72 sps:$4 sm:$0xff]   ;;  %v12018_v29 = vld [vmem:[#allocation10 + $0x130] ss:$72 sps:$4 sm:$0xff]  }
 0x1d1   :  { %3156 = vmatprep.mubr.bf16.mxu0 %v13981_v33  ;;  %3262 = vmatprep.mubr.bf16.mxu1 %v13981_v33  ;;  %v12017_v23 = vld [vmem:[#allocation10 + $0xac] ss:$72 sps:$4 sm:$0xff]  }
 0x1d2   :  { %3157 = vmatmul.mubr.bf16.gmra.mrb[16].mxu0 %v13979_v30  ;;  %3263 = vmatmul.mubr.bf16.gmra.mrb[4].mxu1 %v13979_v30 }
 0x1d3   :  { %3172 = vmatpush1.bf16.msra.mxu0 %v11970_v27  ;;  %3278 = vmatpush1.bf16.msra.mxu1 %v11973_v28  ;;  %v12020_v27 = vld [vmem:[#allocation10 + $0x134] ss:$72 sps:$4 sm:$0xff]  }
 0x1d4   :  { %3173 = vmatprep.subr.bf16.mxu0 %v11978_v31  ;;  %3279 = vmatprep.subr.bf16.mxu1 %v11981_v32  ;;  %v12023_v28 = vld [vmem:[#allocation10 + $0x13c] ss:$72 sps:$4 sm:$0xff]   ;;  %v12021_v31 = vld [vmem:[#allocation10 + $0x138] ss:$72 sps:$4 sm:$0xff]  }
 0x1d5   :  { %3199 = vmatprep.mubr.bf16.mxu0 %v13723_v0  ;;  %3305 = vmatprep.mubr.bf16.mxu1 %v13723_v0  ;;  %v12024_v32 = vld [vmem:[#allocation10 + $0x1c0] ss:$72 sps:$4 sm:$0xff]  }
 0x1d7   :  { %3174 = vmatpush1.bf16.msra.mxu0 %v11976_v39  ;;  %3280 = vmatpush1.bf16.msra.mxu1 %v11979_v40  ;;  %v12026_v39 = vld [vmem:[#allocation10 + $0x1c4] ss:$72 sps:$4 sm:$0xff]  }
 0x1d8   :  { %3175 = vmatprep.subr.bf16.mxu0 %v11984_v41  ;;  %3281 = vmatprep.subr.bf16.mxu1 %v11987_v42  ;;  %v12029_v40 = vld [vmem:[#allocation10 + $0x1cc] ss:$72 sps:$4 sm:$0xff]   ;;  %v12027_v41 = vld [vmem:[#allocation10 + $0x1c8] ss:$72 sps:$4 sm:$0xff]  }
 0x1d9   :  { %v12032_v42 = vld [vmem:[#allocation10 + $0x254] ss:$72 sps:$4 sm:$0xff]  }
 0x1db   :  { %3176 = vmatpush1.bf16.msra.mxu0 %v11982_v43  ;;  %3282 = vmatpush1.bf16.msra.mxu1 %v11985_v44  ;;  %v12030_v43 = vld [vmem:[#allocation10 + $0x250] ss:$72 sps:$4 sm:$0xff]   ;;  %v12035_v44 = vld [vmem:[#allocation10 + $0x25c] ss:$72 sps:$4 sm:$0xff]  }
 0x1dc   :  { %3177 = vmatprep.subr.bf16.mxu0 %v11990_v46  ;;  %3283 = vmatprep.subr.bf16.mxu1 %v11993_v47  ;;  %v12033_v46 = vld [vmem:[#allocation10 + $0x258] ss:$72 sps:$4 sm:$0xff]   ;;  %v12038_v47 = vld [vmem:[#allocation10 + $0x2e4] ss:$72 sps:$4 sm:$0xff]  }
 0x1dd   :  { %v11595_v53 = vpop.f32.mrb[8].mxu0 }
 0x1de   :  { %v462_v57 = vadd.f32 %v11595_v53, %v234_v50  ;;  %v453_v58 = vpop.f32.mrb[9].mxu0  ;;  %v12042_v53 = vld [vmem:[#allocation10 + $0x370] ss:$72 sps:$4 sm:$0xff]  }
 0x1df   :  { %v454_v62 = vadd.f32 %v453_v58, %v234_v50  ;;  %3178 = vmatpush1.bf16.msra.mxu0 %v11988_v48  ;;  %3284 = vmatpush1.bf16.msra.mxu1 %v11991_v49  ;;  %v11596_v63 = vpop.f32.mrb[10].mxu0  ;;  %v12036_v48 = vld [vmem:[#allocation10 + $0x2e0] ss:$72 sps:$4 sm:$0xff]   ;;  %v12041_v49 = vld [vmem:[#allocation10 + $0x2ec] ss:$72 sps:$4 sm:$0xff]  }
 0x1e0   :  { %v476_v2 = vmax.f32 %v462_v57, 0.0  ;;  %v465_v3 = vadd.f32 %v11596_v63, %v234_v50  ;;  %v456_v4 = vpop.f32.mrb[11].mxu0  ;;  %3179 = vmatprep.subr.bf16.mxu0 %v11996_v51  ;;  %3285 = vmatprep.subr.bf16.mxu1 %v11999_v52  ;;  %v12044_v51 = vld [vmem:[#allocation10 + $0x374] ss:$72 sps:$4 sm:$0xff]   ;;  %v12051_v58 = vld [vmem:[#allocation10 + $0x408] ss:$72 sps:$4 sm:$0xff]  }
 0x1e1   :  { %v470_v6 = vmax.f32 %v454_v62, 0.0  ;;  %v457_v7 = vadd.f32 %v456_v4, %v234_v50  ;;  %v12039_v50 = vld [vmem:[#allocation10 + $0x2e8] ss:$72 sps:$4 sm:$0xff]   ;;  %v12047_v52 = vld [vmem:[#allocation10 + $0x37c] ss:$72 sps:$4 sm:$0xff]  }
 0x1e2   :  { %v500_v11 = vadd.f32 %v488_v54, %v476_v2  ;;  %v479_v12 = vmax.f32 %v465_v3, 0.0  ;;  %v12045_v54 = vld [vmem:[#allocation10 + $0x378] ss:$72 sps:$4 sm:$0xff]   ;;  %v12053_v57 = vld [vmem:[#allocation10 + $0x40c] ss:$72 sps:$4 sm:$0xff]  }
 0x1e3   :  { %v494_v15 = vadd.f32 %v482_v59, %v470_v6  ;;  %v473_v16 = vmax.f32 %v457_v7, 0.0  ;;  %3180 = vmatpush1.bf16.msra.mxu0 %v11994_v55  ;;  %3286 = vmatpush1.bf16.msra.mxu1 %v11997_v56  ;;  %v12050_v55 = vld [vmem:[#allocation10 + $0x404] ss:$72 sps:$4 sm:$0xff]   ;;  %v12048_v56 = vld [vmem:[#allocation10 + $0x400] ss:$72 sps:$4 sm:$0xff]  }
 0x1e4   :  { %512 = vst [vmem:[#allocation2 + $0x118] sm:$0xff] %v500_v11  ;;  %v503_v17 = vadd.f32 %v491_v36, %v479_v12  ;;  %3181 = vmatprep.subr.bf16.mxu0 %v12002_v60  ;;  %3287 = vmatprep.subr.bf16.mxu1 %v12005_v61  ;;  %v12056_v59 = vld [vmem:[#allocation10 + $0x494] ss:$72 sps:$4 sm:$0xff]   ;;  %v12054_v60 = vld [vmem:[#allocation10 + $0x490] ss:$72 sps:$4 sm:$0xff]  }
 0x1e5   :  { %506 = vst [vmem:[#allocation2 + $0x58] sm:$0xff] %v494_v15  ;;  %v497_v18 = vadd.f32 %v485_v5, %v473_v16  ;;  %v12059_v61 = vld [vmem:[#allocation10 + $0x49c] ss:$72 sps:$4 sm:$0xff]   ;;  %v12057_v62 = vld [vmem:[#allocation10 + $0x498] ss:$72 sps:$4 sm:$0xff]  }
 0x1e6   :  { %515 = vst [vmem:[#allocation2 + $0x178] sm:$0xff] %v503_v17  ;;  %v13994_v21 = vpack.c.bf16 %v503_v17, %v500_v11  ;;  %v12062_v63 = vld [vmem:[#allocation10 + $0x524] ss:$72 sps:$4 sm:$0xff]   ;;  %v12060_v2 = vld [vmem:[#allocation10 + $0x520] ss:$72 sps:$4 sm:$0xff]  }
 0x1e7   :  { %509 = vst [vmem:[#allocation2 + $0xb8] sm:$0xff] %v497_v18  ;;  %v13996_v24 = vpack.c.bf16 %v497_v18, %v494_v15  ;;  %3182 = vmatpush1.bf16.msra.mxu0 %v12000_v9  ;;  %3288 = vmatpush1.bf16.msra.mxu1 %v12003_v10  ;;  %v12065_v36 = vld [vmem:[#allocation10 + $0x52c] ss:$72 sps:$4 sm:$0xff]   ;;  %v12063_v3 = vld [vmem:[#allocation10 + $0x528] ss:$72 sps:$4 sm:$0xff]  }
 0x1e8   :  { %3326 = vmatprep.subr.bf16.mxu0 %v12008_v13  ;;  %3432 = vmatprep.subr.bf16.mxu1 %v12011_v14  ;;  %v12068_v4 = vld [vmem:[#allocation10 + $0x5b4] ss:$72 sps:$4 sm:$0xff]   ;;  %v12066_v6 = vld [vmem:[#allocation10 + $0x5b0] ss:$72 sps:$4 sm:$0xff]   ;;  %v12074_v9 = vld [vmem:[#allocation10 + $0x644] ss:$72 sps:$4 sm:$0xff]  }
 0x1e9   :  { %v12071_v5 = vld [vmem:[#allocation10 + $0x5bc] ss:$72 sps:$4 sm:$0xff]   ;;  %v12069_v7 = vld [vmem:[#allocation10 + $0x5b8] ss:$72 sps:$4 sm:$0xff]   ;;  %v12077_v10 = vld [vmem:[#allocation10 + $0x64c] ss:$72 sps:$4 sm:$0xff]  }
 0x1ea   :  { %3200 = vmatmul.mubr.bf16.vlgmr.msra.gmra.mrb[12].mxu0 %v13996_v24  ;;  %3306 = vmatmul.mubr.bf16.vlgmr.msra.gmra.mrb[0].mxu1 %v13996_v24  ;;  %v12072_v11 = vld [vmem:[#allocation10 + $0x640] ss:$72 sps:$4 sm:$0xff]   ;;  %v12080_v13 = vld [vmem:[#allocation10 + $0x6d4] ss:$72 sps:$4 sm:$0xff]   ;;  %v12078_v15 = vld [vmem:[#allocation10 + $0x6d0] ss:$72 sps:$4 sm:$0xff]  }
 0x1eb   :  { %3327 = vmatpush1.bf16.msra.mxu0 %v12006_v19  ;;  %3433 = vmatpush1.bf16.msra.mxu1 %v12009_v20  ;;  %v12075_v12 = vld [vmem:[#allocation10 + $0x648] ss:$72 sps:$4 sm:$0xff]   ;;  %v12083_v14 = vld [vmem:[#allocation10 + $0x6dc] ss:$72 sps:$4 sm:$0xff]   ;;  %v12081_v16 = vld [vmem:[#allocation10 + $0x6d8] ss:$72 sps:$4 sm:$0xff]  }
 0x1ec   :  { %3328 = vmatprep.subr.bf16.mxu0 %v12014_v22  ;;  %3434 = vmatprep.subr.bf16.mxu1 %v12017_v23  ;;  %v12086_v17 = vld [vmem:[#allocation10 + $0x764] ss:$72 sps:$4 sm:$0xff]   ;;  %v12084_v19 = vld [vmem:[#allocation10 + $0x760] ss:$72 sps:$4 sm:$0xff]   ;;  %v12092_v22 = vld [vmem:[#allocation10 + $0x7f4] ss:$72 sps:$4 sm:$0xff]  }
 0x1ed   :  { %3209 = vmatprep.mubr.bf16.mxu0 %v13723_v0  ;;  %3315 = vmatprep.mubr.bf16.mxu1 %v13723_v0  ;;  %v12089_v18 = vld [vmem:[#allocation10 + $0x76c] ss:$72 sps:$4 sm:$0xff]   ;;  %v12087_v20 = vld [vmem:[#allocation10 + $0x768] ss:$72 sps:$4 sm:$0xff]   ;;  %v12095_v23 = vld [vmem:[#allocation10 + $0x7fc] ss:$72 sps:$4 sm:$0xff]  }
 0x1ef   :  { %3329 = vmatpush1.bf16.msra.mxu0 %v12012_v25  ;;  %3435 = vmatpush1.bf16.msra.mxu1 %v12015_v26  ;;  %v12090_v25 = vld [vmem:[#allocation10 + $0x7f0] ss:$72 sps:$4 sm:$0xff]  }
 0x1f0   :  { %3330 = vmatprep.subr.bf16.mxu0 %v12020_v27  ;;  %3436 = vmatprep.subr.bf16.mxu1 %v12023_v28  ;;  %v12093_v26 = vld [vmem:[#allocation10 + $0x7f8] ss:$72 sps:$4 sm:$0xff]   ;;  %v12098_v27 = vld [vmem:[#allocation10 + $0x884] ss:$72 sps:$4 sm:$0xff]  }
 0x1f1   :  { %v12101_v28 = vld [vmem:[#allocation10 + $0x88c] ss:$72 sps:$4 sm:$0xff]  }
 0x1f2   :  { %3210 = vmatmul.mubr.bf16.gmra.mrb[16].mxu0 %v13994_v21  ;;  %3316 = vmatmul.mubr.bf16.gmra.mrb[4].mxu1 %v13994_v21 }
 0x1f3   :  { %3331 = vmatpush1.bf16.msra.mxu0 %v12018_v29  ;;  %3358 = vmatprep.mubr.bf16.mxu0 %v13973_v8  ;;  %v12096_v29 = vld [vmem:[#allocation10 + $0x880] ss:$72 sps:$4 sm:$0xff]  }
 0x1f4   :  { %3437 = vmatpush1.bf16.msra.mxu1 %v12021_v31  ;;  %3464 = vmatprep.mubr.bf16.mxu1 %v13973_v8  ;;  %v12099_v31 = vld [vmem:[#allocation10 + $0x888] ss:$72 sps:$4 sm:$0xff]  }
 0x1f5   :  { %3332 = vmatprep.subr.bf16.mxu0 %v12026_v39  ;;  %3438 = vmatprep.subr.bf16.mxu1 %v12029_v40  ;;  %v12107_v39 = vld [vmem:[#allocation10 + $0x91c] ss:$72 sps:$4 sm:$0xff]   ;;  %v12102_v40 = vld [vmem:[#allocation10 + $0x910] ss:$72 sps:$4 sm:$0xff]  }
 0x1f7   :  { %3333 = vmatpush1.bf16.msra.mxu0 %v12024_v32  ;;  %v12104_v32 = vld [vmem:[#allocation10 + $0x914] ss:$72 sps:$4 sm:$0xff]  }
 0x1f8   :  { %3439 = vmatpush1.bf16.msra.mxu1 %v12027_v41  ;;  %3334 = vmatprep.subr.bf16.mxu0 %v12032_v42  ;;  %v12105_v41 = vld [vmem:[#allocation10 + $0x918] ss:$72 sps:$4 sm:$0xff]   ;;  %v12110_v42 = vld [vmem:[#allocation10 + $0x9a4] ss:$72 sps:$4 sm:$0xff]  }
 0x1f9   :  { %3440 = vmatprep.subr.bf16.mxu1 %v12035_v44  ;;  %v12108_v44 = vld [vmem:[#allocation10 + $0x9a0] ss:$72 sps:$4 sm:$0xff]  }
 0x1fb   :  { %3335 = vmatpush1.bf16.msra.mxu0 %v12030_v43  ;;  %v12113_v43 = vld [vmem:[#allocation10 + $0x9ac] ss:$72 sps:$4 sm:$0xff]  }
 0x1fc   :  { %3441 = vmatpush1.bf16.msra.mxu1 %v12033_v46  ;;  %3336 = vmatprep.subr.bf16.mxu0 %v12038_v47  ;;  %v12111_v46 = vld [vmem:[#allocation10 + $0x9a8] ss:$72 sps:$4 sm:$0xff]   ;;  %v12116_v47 = vld [vmem:[#allocation10 + $0xa34] ss:$72 sps:$4 sm:$0xff]  }
 0x1fd   :  { %3442 = vmatprep.subr.bf16.mxu1 %v12041_v49  ;;  %v12119_v49 = vld [vmem:[#allocation10 + $0xa3c] ss:$72 sps:$4 sm:$0xff]  }
 0x1ff   :  { %3337 = vmatpush1.bf16.msra.mxu0 %v12036_v48  ;;  %v12114_v48 = vld [vmem:[#allocation10 + $0xa30] ss:$72 sps:$4 sm:$0xff]  }
 0x200   :  { %3443 = vmatpush1.bf16.msra.mxu1 %v12039_v50  ;;  %3338 = vmatprep.subr.bf16.mxu0 %v12044_v51  ;;  %v12117_v50 = vld [vmem:[#allocation10 + $0xa38] ss:$72 sps:$4 sm:$0xff]   ;;  %v12122_v51 = vld [vmem:[#allocation10 + $0xac4] ss:$72 sps:$4 sm:$0xff]  }
 0x201   :  { %3444 = vmatprep.subr.bf16.mxu1 %v12047_v52  ;;  %v12125_v52 = vld [vmem:[#allocation10 + $0xacc] ss:$72 sps:$4 sm:$0xff]  }
 0x203   :  { %3339 = vmatpush1.bf16.msra.mxu0 %v12042_v53  ;;  %v12120_v53 = vld [vmem:[#allocation10 + $0xac0] ss:$72 sps:$4 sm:$0xff]  }
 0x204   :  { %3445 = vmatpush1.bf16.msra.mxu1 %v12045_v54  ;;  %3340 = vmatprep.subr.bf16.mxu0 %v12050_v55  ;;  %v12123_v54 = vld [vmem:[#allocation10 + $0xac8] ss:$72 sps:$4 sm:$0xff]   ;;  %v12128_v55 = vld [vmem:[#allocation10 + $0xb54] ss:$72 sps:$4 sm:$0xff]  }
 0x205   :  { %3446 = vmatprep.subr.bf16.mxu1 %v12053_v57  ;;  %v12126_v57 = vld [vmem:[#allocation10 + $0xb50] ss:$72 sps:$4 sm:$0xff]  }
 0x207   :  { %3341 = vmatpush1.bf16.msra.mxu0 %v12048_v56  ;;  %v12131_v56 = vld [vmem:[#allocation10 + $0xb5c] ss:$72 sps:$4 sm:$0xff]  }
 0x208   :  { %3447 = vmatpush1.bf16.msra.mxu1 %v12051_v58  ;;  %3342 = vmatprep.subr.bf16.mxu0 %v12056_v59  ;;  %v12129_v58 = vld [vmem:[#allocation10 + $0xb58] ss:$72 sps:$4 sm:$0xff]   ;;  %v12134_v59 = vld [vmem:[#allocation10 + $0xbe4] ss:$72 sps:$4 sm:$0xff]  }
 0x209   :  { %3448 = vmatprep.subr.bf16.mxu1 %v12059_v61  ;;  %v12137_v61 = vld [vmem:[#allocation10 + $0xbec] ss:$72 sps:$4 sm:$0xff]  }
 0x20b   :  { %3343 = vmatpush1.bf16.msra.mxu0 %v12054_v60  ;;  %v12132_v60 = vld [vmem:[#allocation10 + $0xbe0] ss:$72 sps:$4 sm:$0xff]  }
 0x20c   :  { %3449 = vmatpush1.bf16.msra.mxu1 %v12057_v62  ;;  %3344 = vmatprep.subr.bf16.mxu0 %v12062_v63  ;;  %v12135_v62 = vld [vmem:[#allocation10 + $0xbe8] ss:$72 sps:$4 sm:$0xff]   ;;  %v12140_v63 = vld [vmem:[#allocation10 + $0xc74] ss:$72 sps:$4 sm:$0xff]  }
 0x20d   :  { %3450 = vmatprep.subr.bf16.mxu1 %v12065_v36  ;;  %v12138_v36 = vld [vmem:[#allocation10 + $0xc70] ss:$72 sps:$4 sm:$0xff]  }
 0x20f   :  { %3345 = vmatpush1.bf16.msra.mxu0 %v12060_v2  ;;  %v12143_v2 = vld [vmem:[#allocation10 + $0xc7c] ss:$72 sps:$4 sm:$0xff]  }
 0x210   :  { %3451 = vmatpush1.bf16.msra.mxu1 %v12063_v3  ;;  %3346 = vmatprep.subr.bf16.mxu0 %v12068_v4  ;;  %v12141_v3 = vld [vmem:[#allocation10 + $0xc78] ss:$72 sps:$4 sm:$0xff]   ;;  %v12146_v4 = vld [vmem:[#allocation10 + $0xd04] ss:$72 sps:$4 sm:$0xff]  }
 0x211   :  { %3452 = vmatprep.subr.bf16.mxu1 %v12071_v5  ;;  %v12144_v5 = vld [vmem:[#allocation10 + $0xd00] ss:$72 sps:$4 sm:$0xff]  }
 0x213   :  { %3347 = vmatpush1.bf16.msra.mxu0 %v12066_v6  ;;  %v12149_v6 = vld [vmem:[#allocation10 + $0xd0c] ss:$72 sps:$4 sm:$0xff]  }
 0x214   :  { %3453 = vmatpush1.bf16.msra.mxu1 %v12069_v7  ;;  %3348 = vmatprep.subr.bf16.mxu0 %v12074_v9  ;;  %v12147_v7 = vld [vmem:[#allocation10 + $0xd08] ss:$72 sps:$4 sm:$0xff]   ;;  %v12152_v9 = vld [vmem:[#allocation10 + $0x24] ss:$72 sps:$4 sm:$0xff]  }
 0x215   :  { %3454 = vmatprep.subr.bf16.mxu1 %v12077_v10  ;;  %v12150_v10 = vld [vmem:[#allocation10 + $0x20] ss:$72 sps:$4 sm:$0xff]  }
 0x217   :  { %3349 = vmatpush1.bf16.msra.mxu0 %v12072_v11  ;;  %v12155_v11 = vld [vmem:[#allocation10 + $0x2c] ss:$72 sps:$4 sm:$0xff]  }
 0x218   :  { %3455 = vmatpush1.bf16.msra.mxu1 %v12075_v12  ;;  %3350 = vmatprep.subr.bf16.mxu0 %v12080_v13  ;;  %v12153_v12 = vld [vmem:[#allocation10 + $0x28] ss:$72 sps:$4 sm:$0xff]   ;;  %v12158_v13 = vld [vmem:[#allocation10 + $0xb4] ss:$72 sps:$4 sm:$0xff]  }
 0x219   :  { %3456 = vmatprep.subr.bf16.mxu1 %v12083_v14  ;;  %v12156_v14 = vld [vmem:[#allocation10 + $0xb0] ss:$72 sps:$4 sm:$0xff]  }
 0x21b   :  { %3351 = vmatpush1.bf16.msra.mxu0 %v12078_v15  ;;  %v12161_v15 = vld [vmem:[#allocation10 + $0xbc] ss:$72 sps:$4 sm:$0xff]  }
 0x21c   :  { %3457 = vmatpush1.bf16.msra.mxu1 %v12081_v16  ;;  %3352 = vmatprep.subr.bf16.mxu0 %v12086_v17  ;;  %v12159_v16 = vld [vmem:[#allocation10 + $0xb8] ss:$72 sps:$4 sm:$0xff]   ;;  %v12164_v17 = vld [vmem:[#allocation10 + $0x144] ss:$72 sps:$4 sm:$0xff]  }
 0x21d   :  { %3458 = vmatprep.subr.bf16.mxu1 %v12089_v18  ;;  %v12162_v18 = vld [vmem:[#allocation10 + $0x140] ss:$72 sps:$4 sm:$0xff]  }
 0x21f   :  { %3353 = vmatpush1.bf16.msra.mxu0 %v12084_v19  ;;  %v12167_v19 = vld [vmem:[#allocation10 + $0x14c] ss:$72 sps:$4 sm:$0xff]  }
 0x220   :  { %3459 = vmatpush1.bf16.msra.mxu1 %v12087_v20  ;;  %3354 = vmatprep.subr.bf16.mxu0 %v12092_v22  ;;  %v12165_v20 = vld [vmem:[#allocation10 + $0x148] ss:$72 sps:$4 sm:$0xff]  }
 0x221   :  { %3460 = vmatprep.subr.bf16.mxu1 %v12095_v23  ;;  %v12168_v22 = vld [vmem:[#allocation10 + $0x1d0] ss:$72 sps:$4 sm:$0xff]   ;;  %v12170_v23 = vld [vmem:[#allocation10 + $0x1d4] ss:$72 sps:$4 sm:$0xff]  }
 0x223   :  { %3355 = vmatpush1.bf16.msra.mxu0 %v12090_v25  ;;  %v12173_v25 = vld [vmem:[#allocation10 + $0x1dc] ss:$72 sps:$4 sm:$0xff]  }
 0x224   :  { %3461 = vmatpush1.bf16.msra.mxu1 %v12093_v26  ;;  %3356 = vmatprep.subr.bf16.mxu0 %v12098_v27  ;;  %v12171_v26 = vld [vmem:[#allocation10 + $0x1d8] ss:$72 sps:$4 sm:$0xff]   ;;  %v12176_v27 = vld [vmem:[#allocation10 + $0x264] ss:$72 sps:$4 sm:$0xff]  }
 0x225   :  { %3462 = vmatprep.subr.bf16.mxu1 %v12101_v28  ;;  %v12174_v28 = vld [vmem:[#allocation10 + $0x260] ss:$72 sps:$4 sm:$0xff]  }
 0x227   :  { %3357 = vmatpush1.bf16.msra.mxu0 %v12096_v29  ;;  %v12179_v29 = vld [vmem:[#allocation10 + $0x26c] ss:$72 sps:$4 sm:$0xff]  }
 0x228   :  { %3463 = vmatpush1.bf16.msra.mxu1 %v12099_v31  ;;  %3379 = vmatprep.subr.bf16.mxu0 %v12104_v32  ;;  %v12177_v31 = vld [vmem:[#allocation10 + $0x268] ss:$72 sps:$4 sm:$0xff]   ;;  %v12182_v32 = vld [vmem:[#allocation10 + $0x2f4] ss:$72 sps:$4 sm:$0xff]  }
 0x229   :  { %3485 = vmatprep.subr.bf16.mxu1 %v12107_v39  ;;  %v12180_v39 = vld [vmem:[#allocation10 + $0x2f0] ss:$72 sps:$4 sm:$0xff]  }
 0x22a   :  { %3359 = vmatmul.mubr.bf16.vlgmr.msra.gmra.mrb[20].mxu0 %v13971_v1 }
 0x22b   :  { %3465 = vmatmul.mubr.bf16.vlgmr.msra.gmra.mrb[8].mxu1 %v13971_v1  ;;  %3368 = vmatprep.mubr.bf16.mxu0 %v13981_v33 }
 0x22c   :  { %3380 = vmatpush1.bf16.msra.mxu0 %v12102_v40  ;;  %3474 = vmatprep.mubr.bf16.mxu1 %v13981_v33  ;;  %v12185_v40 = vld [vmem:[#allocation10 + $0x2fc] ss:$72 sps:$4 sm:$0xff]  }
 0x22d   :  { %3486 = vmatpush1.bf16.msra.mxu1 %v12105_v41  ;;  %3381 = vmatprep.subr.bf16.mxu0 %v12110_v42  ;;  %v12183_v41 = vld [vmem:[#allocation10 + $0x2f8] ss:$72 sps:$4 sm:$0xff]   ;;  %v12188_v42 = vld [vmem:[#allocation10 + $0x384] ss:$72 sps:$4 sm:$0xff]  }
 0x22e   :  { %3487 = vmatprep.subr.bf16.mxu1 %v12113_v43  ;;  %v12186_v43 = vld [vmem:[#allocation10 + $0x380] ss:$72 sps:$4 sm:$0xff]  }
 0x230   :  { %3382 = vmatpush1.bf16.msra.mxu0 %v12108_v44  ;;  %v12191_v44 = vld [vmem:[#allocation10 + $0x38c] ss:$72 sps:$4 sm:$0xff]  }
 0x231   :  { %3488 = vmatpush1.bf16.msra.mxu1 %v12111_v46  ;;  %3383 = vmatprep.subr.bf16.mxu0 %v12116_v47  ;;  %v12189_v46 = vld [vmem:[#allocation10 + $0x388] ss:$72 sps:$4 sm:$0xff]   ;;  %v12194_v47 = vld [vmem:[#allocation10 + $0x414] ss:$72 sps:$4 sm:$0xff]  }
 0x232   :  { %3369 = vmatmul.mubr.bf16.gmra.mrb[24].mxu0 %v13979_v30  ;;  %3489 = vmatprep.subr.bf16.mxu1 %v12119_v49  ;;  %v12197_v49 = vld [vmem:[#allocation10 + $0x41c] ss:$72 sps:$4 sm:$0xff]  }
 0x233   :  { %3475 = vmatmul.mubr.bf16.gmra.mrb[12].mxu1 %v13979_v30  ;;  %3411 = vmatprep.mubr.bf16.mxu0 %v13723_v0 }
 0x234   :  { %3384 = vmatpush1.bf16.msra.mxu0 %v12114_v48  ;;  %3517 = vmatprep.mubr.bf16.mxu1 %v13723_v0  ;;  %v12192_v48 = vld [vmem:[#allocation10 + $0x410] ss:$72 sps:$4 sm:$0xff]  }
 0x235   :  { %3490 = vmatpush1.bf16.msra.mxu1 %v12117_v50  ;;  %3385 = vmatprep.subr.bf16.mxu0 %v12122_v51  ;;  %v12195_v50 = vld [vmem:[#allocation10 + $0x418] ss:$72 sps:$4 sm:$0xff]   ;;  %v12200_v51 = vld [vmem:[#allocation10 + $0x4a4] ss:$72 sps:$4 sm:$0xff]  }
 0x236   :  { %3491 = vmatprep.subr.bf16.mxu1 %v12125_v52  ;;  %v12198_v52 = vld [vmem:[#allocation10 + $0x4a0] ss:$72 sps:$4 sm:$0xff]  }
 0x238   :  { %3386 = vmatpush1.bf16.msra.mxu0 %v12120_v53  ;;  %v12203_v53 = vld [vmem:[#allocation10 + $0x4ac] ss:$72 sps:$4 sm:$0xff]  }
 0x239   :  { %3492 = vmatpush1.bf16.msra.mxu1 %v12123_v54  ;;  %3387 = vmatprep.subr.bf16.mxu0 %v12128_v55  ;;  %v12201_v54 = vld [vmem:[#allocation10 + $0x4a8] ss:$72 sps:$4 sm:$0xff]   ;;  %v12206_v55 = vld [vmem:[#allocation10 + $0x534] ss:$72 sps:$4 sm:$0xff]  }
 0x23a   :  { %3493 = vmatprep.subr.bf16.mxu1 %v12131_v56  ;;  %v12209_v56 = vld [vmem:[#allocation10 + $0x53c] ss:$72 sps:$4 sm:$0xff]  }
 0x23c   :  { %3388 = vmatpush1.bf16.msra.mxu0 %v12126_v57  ;;  %v12204_v57 = vld [vmem:[#allocation10 + $0x530] ss:$72 sps:$4 sm:$0xff]  }
 0x23d   :  { %3494 = vmatpush1.bf16.msra.mxu1 %v12129_v58  ;;  %3389 = vmatprep.subr.bf16.mxu0 %v12134_v59  ;;  %v12207_v58 = vld [vmem:[#allocation10 + $0x538] ss:$72 sps:$4 sm:$0xff]   ;;  %v12212_v59 = vld [vmem:[#allocation10 + $0x5c4] ss:$72 sps:$4 sm:$0xff]  }
 0x23e   :  { %3495 = vmatprep.subr.bf16.mxu1 %v12137_v61  ;;  %v12210_v61 = vld [vmem:[#allocation10 + $0x5c0] ss:$72 sps:$4 sm:$0xff]  }
 0x240   :  { %3390 = vmatpush1.bf16.msra.mxu0 %v12132_v60  ;;  %v12215_v60 = vld [vmem:[#allocation10 + $0x5cc] ss:$72 sps:$4 sm:$0xff]  }
 0x241   :  { %3496 = vmatpush1.bf16.msra.mxu1 %v12135_v62  ;;  %3391 = vmatprep.subr.bf16.mxu0 %v12140_v63  ;;  %v12213_v62 = vld [vmem:[#allocation10 + $0x5c8] ss:$72 sps:$4 sm:$0xff]   ;;  %v12218_v63 = vld [vmem:[#allocation10 + $0x654] ss:$72 sps:$4 sm:$0xff]  }
 0x242   :  { %3497 = vmatprep.subr.bf16.mxu1 %v12143_v2  ;;  %v12216_v2 = vld [vmem:[#allocation10 + $0x650] ss:$72 sps:$4 sm:$0xff]  }
 0x244   :  { %3392 = vmatpush1.bf16.msra.mxu0 %v12138_v36  ;;  %v12221_v36 = vld [vmem:[#allocation10 + $0x65c] ss:$72 sps:$4 sm:$0xff]  }
 0x245   :  { %3498 = vmatpush1.bf16.msra.mxu1 %v12141_v3  ;;  %3393 = vmatprep.subr.bf16.mxu0 %v12146_v4  ;;  %v12219_v3 = vld [vmem:[#allocation10 + $0x658] ss:$72 sps:$4 sm:$0xff]   ;;  %v12224_v4 = vld [vmem:[#allocation10 + $0x6e4] ss:$72 sps:$4 sm:$0xff]  }
 0x246   :  { %3499 = vmatprep.subr.bf16.mxu1 %v12149_v6  ;;  %v12222_v6 = vld [vmem:[#allocation10 + $0x6e0] ss:$72 sps:$4 sm:$0xff]  }
 0x248   :  { %3394 = vmatpush1.bf16.msra.mxu0 %v12144_v5  ;;  %v12227_v5 = vld [vmem:[#allocation10 + $0x6ec] ss:$72 sps:$4 sm:$0xff]  }
 0x249   :  { %3500 = vmatpush1.bf16.msra.mxu1 %v12147_v7  ;;  %3538 = vmatprep.subr.bf16.mxu0 %v12152_v9  ;;  %v12225_v7 = vld [vmem:[#allocation10 + $0x6e8] ss:$72 sps:$4 sm:$0xff]   ;;  %v12230_v9 = vld [vmem:[#allocation10 + $0x774] ss:$72 sps:$4 sm:$0xff]  }
 0x24a   :  { %3644 = vmatprep.subr.bf16.mxu1 %v12155_v11  ;;  %v12228_v11 = vld [vmem:[#allocation10 + $0x770] ss:$72 sps:$4 sm:$0xff]  }
 0x24b   :  { %3412 = vmatmul.mubr.bf16.vlgmr.msra.gmra.mrb[20].mxu0 %v13996_v24 }
 0x24c   :  { %3518 = vmatmul.mubr.bf16.vlgmr.msra.gmra.mrb[8].mxu1 %v13996_v24  ;;  %3539 = vmatpush1.bf16.msra.mxu0 %v12150_v10  ;;  %v12233_v10 = vld [vmem:[#allocation10 + $0x77c] ss:$72 sps:$4 sm:$0xff]  }
 0x24d   :  { %3645 = vmatpush1.bf16.msra.mxu1 %v12153_v12  ;;  %3540 = vmatprep.subr.bf16.mxu0 %v12158_v13  ;;  %v12231_v12 = vld [vmem:[#allocation10 + $0x778] ss:$72 sps:$4 sm:$0xff]   ;;  %v12236_v13 = vld [vmem:[#allocation10 + $0x804] ss:$72 sps:$4 sm:$0xff]  }
 0x24e   :  { %3646 = vmatprep.subr.bf16.mxu1 %v12161_v15  ;;  %3421 = vmatprep.mubr.bf16.mxu0 %v13723_v0  ;;  %v12234_v15 = vld [vmem:[#allocation10 + $0x800] ss:$72 sps:$4 sm:$0xff]  }
 0x24f   :  { %3527 = vmatprep.mubr.bf16.mxu1 %v13723_v0 }
 0x250   :  { %3541 = vmatpush1.bf16.msra.mxu0 %v12156_v14  ;;  %v12239_v14 = vld [vmem:[#allocation10 + $0x80c] ss:$72 sps:$4 sm:$0xff]  }
 0x251   :  { %3647 = vmatpush1.bf16.msra.mxu1 %v12159_v16  ;;  %3542 = vmatprep.subr.bf16.mxu0 %v12164_v17  ;;  %v12237_v16 = vld [vmem:[#allocation10 + $0x808] ss:$72 sps:$4 sm:$0xff]   ;;  %v12242_v17 = vld [vmem:[#allocation10 + $0x894] ss:$72 sps:$4 sm:$0xff]  }
 0x252   :  { %3648 = vmatprep.subr.bf16.mxu1 %v12167_v19  ;;  %v12240_v19 = vld [vmem:[#allocation10 + $0x890] ss:$72 sps:$4 sm:$0xff]  }
 0x253   :  { %3422 = vmatmul.mubr.bf16.gmra.mrb[24].mxu0 %v13994_v21 }
 0x254   :  { %3528 = vmatmul.mubr.bf16.gmra.mrb[12].mxu1 %v13994_v21  ;;  %3543 = vmatpush1.bf16.msra.mxu0 %v12162_v18  ;;  %v12245_v18 = vld [vmem:[#allocation10 + $0x89c] ss:$72 sps:$4 sm:$0xff]  }
 0x255   :  { %3570 = vmatprep.mubr.bf16.mxu0 %v13973_v8  ;;  %3649 = vmatpush1.bf16.msra.mxu1 %v12165_v20  ;;  %v12243_v20 = vld [vmem:[#allocation10 + $0x898] ss:$72 sps:$4 sm:$0xff]  }
 0x256   :  { %3676 = vmatprep.mubr.bf16.mxu1 %v13973_v8  ;;  %3544 = vmatprep.subr.bf16.mxu0 %v12170_v23  ;;  %v12251_v23 = vld [vmem:[#allocation10 + $0x92c] ss:$72 sps:$4 sm:$0xff]  }
 0x257   :  { %3650 = vmatprep.subr.bf16.mxu1 %v12173_v25  ;;  %v12246_v25 = vld [vmem:[#allocation10 + $0x920] ss:$72 sps:$4 sm:$0xff]  }
 0x258   :  { %3545 = vmatpush1.bf16.msra.mxu0 %v12168_v22  ;;  %v12248_v22 = vld [vmem:[#allocation10 + $0x924] ss:$72 sps:$4 sm:$0xff]  }
 0x259   :  { %3651 = vmatpush1.bf16.msra.mxu1 %v12171_v26  ;;  %3546 = vmatprep.subr.bf16.mxu0 %v12176_v27  ;;  %v12249_v26 = vld [vmem:[#allocation10 + $0x928] ss:$72 sps:$4 sm:$0xff]   ;;  %v12254_v27 = vld [vmem:[#allocation10 + $0x9b4] ss:$72 sps:$4 sm:$0xff]  }
 0x25a   :  { %3652 = vmatprep.subr.bf16.mxu1 %v12179_v29  ;;  %v12252_v29 = vld [vmem:[#allocation10 + $0x9b0] ss:$72 sps:$4 sm:$0xff]  }
 0x25c   :  { %3547 = vmatpush1.bf16.msra.mxu0 %v12174_v28  ;;  %v12257_v28 = vld [vmem:[#allocation10 + $0x9bc] ss:$72 sps:$4 sm:$0xff]  }
 0x25d   :  { %3653 = vmatpush1.bf16.msra.mxu1 %v12177_v31  ;;  %3548 = vmatprep.subr.bf16.mxu0 %v12182_v32  ;;  %v12255_v31 = vld [vmem:[#allocation10 + $0x9b8] ss:$72 sps:$4 sm:$0xff]   ;;  %v12260_v32 = vld [vmem:[#allocation10 + $0xa44] ss:$72 sps:$4 sm:$0xff]  }
 0x25e   :  { %3654 = vmatprep.subr.bf16.mxu1 %v12185_v40  ;;  %v12258_v40 = vld [vmem:[#allocation10 + $0xa40] ss:$72 sps:$4 sm:$0xff]  }
 0x260   :  { %3549 = vmatpush1.bf16.msra.mxu0 %v12180_v39  ;;  %v12263_v39 = vld [vmem:[#allocation10 + $0xa4c] ss:$72 sps:$4 sm:$0xff]  }
 0x261   :  { %3655 = vmatpush1.bf16.msra.mxu1 %v12183_v41  ;;  %3550 = vmatprep.subr.bf16.mxu0 %v12188_v42  ;;  %v12261_v41 = vld [vmem:[#allocation10 + $0xa48] ss:$72 sps:$4 sm:$0xff]   ;;  %v12266_v42 = vld [vmem:[#allocation10 + $0xad4] ss:$72 sps:$4 sm:$0xff]  }
 0x262   :  { %3656 = vmatprep.subr.bf16.mxu1 %v12191_v44  ;;  %v12264_v44 = vld [vmem:[#allocation10 + $0xad0] ss:$72 sps:$4 sm:$0xff]  }
 0x264   :  { %3551 = vmatpush1.bf16.msra.mxu0 %v12186_v43  ;;  %v12269_v43 = vld [vmem:[#allocation10 + $0xadc] ss:$72 sps:$4 sm:$0xff]  }
 0x265   :  { %3657 = vmatpush1.bf16.msra.mxu1 %v12189_v46  ;;  %3552 = vmatprep.subr.bf16.mxu0 %v12194_v47  ;;  %v12267_v46 = vld [vmem:[#allocation10 + $0xad8] ss:$72 sps:$4 sm:$0xff]   ;;  %v12272_v47 = vld [vmem:[#allocation10 + $0xb64] ss:$72 sps:$4 sm:$0xff]  }
 0x266   :  { %3658 = vmatprep.subr.bf16.mxu1 %v12197_v49  ;;  %v12275_v49 = vld [vmem:[#allocation10 + $0xb6c] ss:$72 sps:$4 sm:$0xff]  }
 0x268   :  { %3553 = vmatpush1.bf16.msra.mxu0 %v12192_v48  ;;  %v12270_v48 = vld [vmem:[#allocation10 + $0xb60] ss:$72 sps:$4 sm:$0xff]  }
 0x269   :  { %3659 = vmatpush1.bf16.msra.mxu1 %v12195_v50  ;;  %3554 = vmatprep.subr.bf16.mxu0 %v12200_v51  ;;  %v12273_v50 = vld [vmem:[#allocation10 + $0xb68] ss:$72 sps:$4 sm:$0xff]   ;;  %v12278_v51 = vld [vmem:[#allocation10 + $0xbf4] ss:$72 sps:$4 sm:$0xff]  }
 0x26a   :  { %3660 = vmatprep.subr.bf16.mxu1 %v12203_v53  ;;  %v12276_v53 = vld [vmem:[#allocation10 + $0xbf0] ss:$72 sps:$4 sm:$0xff]  }
 0x26c   :  { %3555 = vmatpush1.bf16.msra.mxu0 %v12198_v52  ;;  %v12281_v52 = vld [vmem:[#allocation10 + $0xbfc] ss:$72 sps:$4 sm:$0xff]  }
 0x26d   :  { %3661 = vmatpush1.bf16.msra.mxu1 %v12201_v54  ;;  %3556 = vmatprep.subr.bf16.mxu0 %v12206_v55  ;;  %v12279_v54 = vld [vmem:[#allocation10 + $0xbf8] ss:$72 sps:$4 sm:$0xff]   ;;  %v12284_v55 = vld [vmem:[#allocation10 + $0xc84] ss:$72 sps:$4 sm:$0xff]  }
 0x26e   :  { %3662 = vmatprep.subr.bf16.mxu1 %v12209_v56  ;;  %v12287_v56 = vld [vmem:[#allocation10 + $0xc8c] ss:$72 sps:$4 sm:$0xff]  }
 0x270   :  { %3557 = vmatpush1.bf16.msra.mxu0 %v12204_v57  ;;  %v12282_v57 = vld [vmem:[#allocation10 + $0xc80] ss:$72 sps:$4 sm:$0xff]  }
 0x271   :  { %3663 = vmatpush1.bf16.msra.mxu1 %v12207_v58  ;;  %3558 = vmatprep.subr.bf16.mxu0 %v12212_v59  ;;  %v12285_v58 = vld [vmem:[#allocation10 + $0xc88] ss:$72 sps:$4 sm:$0xff]   ;;  %v12290_v59 = vld [vmem:[#allocation10 + $0xd14] ss:$72 sps:$4 sm:$0xff]  }
 0x272   :  { %3664 = vmatprep.subr.bf16.mxu1 %v12215_v60  ;;  %v12288_v60 = vld [vmem:[#allocation10 + $0xd10] ss:$72 sps:$4 sm:$0xff]  }
 0x274   :  { %3559 = vmatpush1.bf16.msra.mxu0 %v12210_v61  ;;  %v12293_v61 = vld [vmem:[#allocation10 + $0xd1c] ss:$72 sps:$4 sm:$0xff]  }
 0x275   :  { %3665 = vmatpush1.bf16.msra.mxu1 %v12213_v62  ;;  %3560 = vmatprep.subr.bf16.mxu0 %v12218_v63  ;;  %v12291_v62 = vld [vmem:[#allocation10 + $0xd18] ss:$72 sps:$4 sm:$0xff]   ;;  %v12296_v63 = vld [vmem:[#allocation10 + $0x34] ss:$72 sps:$4 sm:$0xff]  }
 0x276   :  { %3666 = vmatprep.subr.bf16.mxu1 %v12221_v36  ;;  %v12299_v36 = vld [vmem:[#allocation10 + $0x3c] ss:$72 sps:$4 sm:$0xff]  }
 0x278   :  { %3561 = vmatpush1.bf16.msra.mxu0 %v12216_v2  ;;  %v12294_v2 = vld [vmem:[#allocation10 + $0x30] ss:$72 sps:$4 sm:$0xff]  }
 0x279   :  { %3667 = vmatpush1.bf16.msra.mxu1 %v12219_v3  ;;  %3562 = vmatprep.subr.bf16.mxu0 %v12224_v4  ;;  %v12297_v3 = vld [vmem:[#allocation10 + $0x38] ss:$72 sps:$4 sm:$0xff]   ;;  %v12302_v4 = vld [vmem:[#allocation10 + $0xc4] ss:$72 sps:$4 sm:$0xff]  }
 0x27a   :  { %3668 = vmatprep.subr.bf16.mxu1 %v12227_v5  ;;  %v12300_v5 = vld [vmem:[#allocation10 + $0xc0] ss:$72 sps:$4 sm:$0xff]  }
 0x27c   :  { %3563 = vmatpush1.bf16.msra.mxu0 %v12222_v6  ;;  %v12305_v6 = vld [vmem:[#allocation10 + $0xcc] ss:$72 sps:$4 sm:$0xff]  }
 0x27d   :  { %3669 = vmatpush1.bf16.msra.mxu1 %v12225_v7  ;;  %3564 = vmatprep.subr.bf16.mxu0 %v12230_v9  ;;  %v12303_v7 = vld [vmem:[#allocation10 + $0xc8] ss:$72 sps:$4 sm:$0xff]   ;;  %v12308_v9 = vld [vmem:[#allocation10 + $0x154] ss:$72 sps:$4 sm:$0xff]  }
 0x27e   :  { %3670 = vmatprep.subr.bf16.mxu1 %v12233_v10  ;;  %v12311_v10 = vld [vmem:[#allocation10 + $0x15c] ss:$72 sps:$4 sm:$0xff]  }
 0x280   :  { %3565 = vmatpush1.bf16.msra.mxu0 %v12228_v11  ;;  %v12306_v11 = vld [vmem:[#allocation10 + $0x150] ss:$72 sps:$4 sm:$0xff]  }
 0x281   :  { %3671 = vmatpush1.bf16.msra.mxu1 %v12231_v12  ;;  %3566 = vmatprep.subr.bf16.mxu0 %v12236_v13  ;;  %v12309_v12 = vld [vmem:[#allocation10 + $0x158] ss:$72 sps:$4 sm:$0xff]   ;;  %v12314_v13 = vld [vmem:[#allocation10 + $0x1e4] ss:$72 sps:$4 sm:$0xff]  }
 0x282   :  { %3672 = vmatprep.subr.bf16.mxu1 %v12239_v14  ;;  %v12317_v14 = vld [vmem:[#allocation10 + $0x1ec] ss:$72 sps:$4 sm:$0xff]  }
 0x284   :  { %3567 = vmatpush1.bf16.msra.mxu0 %v12234_v15  ;;  %v12312_v15 = vld [vmem:[#allocation10 + $0x1e0] ss:$72 sps:$4 sm:$0xff]  }
 0x285   :  { %3673 = vmatpush1.bf16.msra.mxu1 %v12237_v16  ;;  %3568 = vmatprep.subr.bf16.mxu0 %v12242_v17  ;;  %v12315_v16 = vld [vmem:[#allocation10 + $0x1e8] ss:$72 sps:$4 sm:$0xff]   ;;  %v12320_v17 = vld [vmem:[#allocation10 + $0x274] ss:$72 sps:$4 sm:$0xff]  }
 0x286   :  { %3674 = vmatprep.subr.bf16.mxu1 %v12245_v18  ;;  %v12323_v18 = vld [vmem:[#allocation10 + $0x27c] ss:$72 sps:$4 sm:$0xff]  }
 0x288   :  { %3569 = vmatpush1.bf16.msra.mxu0 %v12240_v19  ;;  %v12318_v19 = vld [vmem:[#allocation10 + $0x270] ss:$72 sps:$4 sm:$0xff]  }
 0x289   :  { %3675 = vmatpush1.bf16.msra.mxu1 %v12243_v20  ;;  %3591 = vmatprep.subr.bf16.mxu0 %v12248_v22  ;;  %v12321_v20 = vld [vmem:[#allocation10 + $0x278] ss:$72 sps:$4 sm:$0xff]   ;;  %v12326_v22 = vld [vmem:[#allocation10 + $0x304] ss:$72 sps:$4 sm:$0xff]  }
 0x28a   :  { %3697 = vmatprep.subr.bf16.mxu1 %v12251_v23  ;;  %v12329_v23 = vld [vmem:[#allocation10 + $0x30c] ss:$72 sps:$4 sm:$0xff]  }
 0x28b   :  { %3571 = vmatmul.mubr.bf16.vlgmr.msra.gmra.mrb[28].mxu0 %v13971_v1 }
 0x28c   :  { %3677 = vmatmul.mubr.bf16.vlgmr.msra.gmra.mrb[16].mxu1 %v13971_v1  ;;  %3580 = vmatprep.mubr.bf16.mxu0 %v13981_v33 }
 0x28d   :  { %3592 = vmatpush1.bf16.msra.mxu0 %v12246_v25  ;;  %3686 = vmatprep.mubr.bf16.mxu1 %v13981_v33  ;;  %v12324_v25 = vld [vmem:[#allocation10 + $0x300] ss:$72 sps:$4 sm:$0xff]  }
 0x28e   :  { %3698 = vmatpush1.bf16.msra.mxu1 %v12249_v26  ;;  %3593 = vmatprep.subr.bf16.mxu0 %v12254_v27  ;;  %v12327_v26 = vld [vmem:[#allocation10 + $0x308] ss:$72 sps:$4 sm:$0xff]  }
 0x28f   :  { %3699 = vmatprep.subr.bf16.mxu1 %v12257_v28 }
 0x291   :  { %3594 = vmatpush1.bf16.msra.mxu0 %v12252_v29 }
 0x292   :  { %3700 = vmatpush1.bf16.msra.mxu1 %v12255_v31  ;;  %3595 = vmatprep.subr.bf16.mxu0 %v12260_v32  ;;  %v12332_v32 = vld [vmem:[#allocation10 + $0x394] ss:$72 sps:$4 sm:$0xff]  }
 0x293   :  { %3581 = vmatmul.mubr.bf16.gmra.mrb[32].mxu0 %v13979_v30  ;;  %3701 = vmatprep.subr.bf16.mxu1 %v12263_v39  ;;  %v12335_v39 = vld [vmem:[#allocation10 + $0x39c] ss:$72 sps:$4 sm:$0xff]  }
 0x294   :  { %3687 = vmatmul.mubr.bf16.gmra.mrb[20].mxu1 %v13979_v30  ;;  %3623 = vmatprep.mubr.bf16.mxu0 %v13723_v0 }
 0x295   :  { %3596 = vmatpush1.bf16.msra.mxu0 %v12258_v40  ;;  %3729 = vmatprep.mubr.bf16.mxu1 %v13723_v0 }
 0x296   :  { %3702 = vmatpush1.bf16.msra.mxu1 %v12261_v41  ;;  %3597 = vmatprep.subr.bf16.mxu0 %v12266_v42  ;;  %v12330_v42 = vld [vmem:[#allocation10 + $0x390] ss:$72 sps:$4 sm:$0xff]  }
 0x297   :  { %3703 = vmatprep.subr.bf16.mxu1 %v12269_v43 }
 0x299   :  { %3598 = vmatpush1.bf16.msra.mxu0 %v12264_v44 }
 0x29a   :  { %3704 = vmatpush1.bf16.msra.mxu1 %v12267_v46  ;;  %3599 = vmatprep.subr.bf16.mxu0 %v12272_v47 }
 0x29b   :  { %3705 = vmatprep.subr.bf16.mxu1 %v12275_v49 }
 0x29d   :  { %3600 = vmatpush1.bf16.msra.mxu0 %v12270_v48  ;;  %v12333_v48 = vld [vmem:[#allocation10 + $0x398] ss:$72 sps:$4 sm:$0xff]  }
 0x29e   :  { %3706 = vmatpush1.bf16.msra.mxu1 %v12273_v50  ;;  %3601 = vmatprep.subr.bf16.mxu0 %v12278_v51  ;;  %v12338_v51 = vld [vmem:[#allocation10 + $0x424] ss:$72 sps:$4 sm:$0xff]  }
 0x29f   :  { %3707 = vmatprep.subr.bf16.mxu1 %v12281_v52  ;;  %v12341_v52 = vld [vmem:[#allocation10 + $0x42c] ss:$72 sps:$4 sm:$0xff]  }
 0x2a1   :  { %3602 = vmatpush1.bf16.msra.mxu0 %v12276_v53  ;;  %v12336_v53 = vld [vmem:[#allocation10 + $0x420] ss:$72 sps:$4 sm:$0xff]  }
 0x2a2   :  { %3708 = vmatpush1.bf16.msra.mxu1 %v12279_v54  ;;  %3603 = vmatprep.subr.bf16.mxu0 %v12284_v55  ;;  %v12339_v54 = vld [vmem:[#allocation10 + $0x428] ss:$72 sps:$4 sm:$0xff]  }
 0x2a3   :  { %3709 = vmatprep.subr.bf16.mxu1 %v12287_v56 }
 0x2a5   :  { %3604 = vmatpush1.bf16.msra.mxu0 %v12282_v57 }
 0x2a6   :  { %3710 = vmatpush1.bf16.msra.mxu1 %v12285_v58  ;;  %3605 = vmatprep.subr.bf16.mxu0 %v12290_v59  ;;  %v12344_v59 = vld [vmem:[#allocation10 + $0x4b4] ss:$72 sps:$4 sm:$0xff]  }
 0x2a7   :  { %3711 = vmatprep.subr.bf16.mxu1 %v12293_v61 }
 0x2a9   :  { %3606 = vmatpush1.bf16.msra.mxu0 %v12288_v60  ;;  %v12347_v60 = vld [vmem:[#allocation10 + $0x4bc] ss:$72 sps:$4 sm:$0xff]  }
 0x2aa   :  { %3712 = vmatpush1.bf16.msra.mxu1 %v12291_v62  ;;  %3750 = vmatprep.subr.bf16.mxu0 %v12296_v63  ;;  %v12342_v63 = vld [vmem:[#allocation10 + $0x4b0] ss:$72 sps:$4 sm:$0xff]  }
 0x2ab   :  { %3856 = vmatprep.subr.bf16.mxu1 %v12299_v36 }
 0x2ac   :  { %3624 = vmatmul.mubr.bf16.vlgmr.msra.gmra.mrb[28].mxu0 %v13996_v24 }
 0x2ad   :  { %3730 = vmatmul.mubr.bf16.vlgmr.msra.gmra.mrb[16].mxu1 %v13996_v24  ;;  %3751 = vmatpush1.bf16.msra.mxu0 %v12294_v2 }
 0x2ae   :  { %3857 = vmatpush1.bf16.msra.mxu1 %v12297_v3  ;;  %3752 = vmatprep.subr.bf16.mxu0 %v12302_v4 }
 0x2af   :  { %3858 = vmatprep.subr.bf16.mxu1 %v12305_v6  ;;  %3633 = vmatprep.mubr.bf16.mxu0 %v13723_v0  ;;  %v12350_v6 = vld [vmem:[#allocation10 + $0x544] ss:$72 sps:$4 sm:$0xff]  }
 0x2b0   :  { %3739 = vmatprep.mubr.bf16.mxu1 %v13723_v0 }
 0x2b1   :  { %3753 = vmatpush1.bf16.msra.mxu0 %v12300_v5  ;;  %v12345_v5 = vld [vmem:[#allocation10 + $0x4b8] ss:$72 sps:$4 sm:$0xff]  }
 0x2b2   :  { %3859 = vmatpush1.bf16.msra.mxu1 %v12303_v7  ;;  %3754 = vmatprep.subr.bf16.mxu0 %v12308_v9 }
 0x2b3   :  { %3860 = vmatprep.subr.bf16.mxu1 %v12311_v10  ;;  %v12353_v10 = vld [vmem:[#allocation10 + $0x54c] ss:$72 sps:$4 sm:$0xff]  }
 0x2b4   :  { %3634 = vmatmul.mubr.bf16.gmra.mrb[32].mxu0 %v13994_v21 }
 0x2b5   :  { %3740 = vmatmul.mubr.bf16.gmra.mrb[20].mxu1 %v13994_v21  ;;  %3755 = vmatpush1.bf16.msra.mxu0 %v12306_v11  ;;  %v12348_v11 = vld [vmem:[#allocation10 + $0x540] ss:$72 sps:$4 sm:$0xff]  }
 0x2b6   :  { %3782 = vmatprep.mubr.bf16.mxu0 %v13973_v8  ;;  %3861 = vmatpush1.bf16.msra.mxu1 %v12309_v12  ;;  %v12351_v12 = vld [vmem:[#allocation10 + $0x548] ss:$72 sps:$4 sm:$0xff]  }
 0x2b7   :  { %3888 = vmatprep.mubr.bf16.mxu1 %v13973_v8  ;;  %3756 = vmatprep.subr.bf16.mxu0 %v12314_v13  ;;  %v12356_v13 = vld [vmem:[#allocation10 + $0x5d4] ss:$72 sps:$4 sm:$0xff]  }
 0x2b8   :  { %3862 = vmatprep.subr.bf16.mxu1 %v12317_v14  ;;  %v12359_v14 = vld [vmem:[#allocation10 + $0x5dc] ss:$72 sps:$4 sm:$0xff]  }
 0x2b9   :  { %3757 = vmatpush1.bf16.msra.mxu0 %v12312_v15  ;;  %v12354_v15 = vld [vmem:[#allocation10 + $0x5d0] ss:$72 sps:$4 sm:$0xff]  }
 0x2ba   :  { %3863 = vmatpush1.bf16.msra.mxu1 %v12315_v16  ;;  %3758 = vmatprep.subr.bf16.mxu0 %v12320_v17  ;;  %v12357_v16 = vld [vmem:[#allocation10 + $0x5d8] ss:$72 sps:$4 sm:$0xff]   ;;  %v12362_v17 = vld [vmem:[#allocation10 + $0x664] ss:$72 sps:$4 sm:$0xff]  }
 0x2bb   :  { %3864 = vmatprep.subr.bf16.mxu1 %v12323_v18  ;;  %v12365_v18 = vld [vmem:[#allocation10 + $0x66c] ss:$72 sps:$4 sm:$0xff]  }
 0x2bd   :  { %3759 = vmatpush1.bf16.msra.mxu0 %v12318_v19  ;;  %v14038_v27 = vpop.f32.mrb[12].mxu0  ;;  %v14040_v28 = vpop.f32.mrb[0].mxu1  ;;  %v12360_v19 = vld [vmem:[#allocation10 + $0x660] ss:$72 sps:$4 sm:$0xff]  }
 0x2be   :  { %3865 = vmatpush1.bf16.msra.mxu1 %v12321_v20  ;;  %v14042_v29 = vpop.f32.mrb[13].mxu0  ;;  %v14044_v31 = vpop.f32.mrb[1].mxu1  ;;  %3760 = vmatprep.subr.bf16.mxu0 %v12326_v22  ;;  %v12363_v20 = vld [vmem:[#allocation10 + $0x668] ss:$72 sps:$4 sm:$0xff]   ;;  %v12368_v22 = vld [vmem:[#allocation10 + $0x6f4] ss:$72 sps:$4 sm:$0xff]  }
 0x2bf   :  { %3866 = vmatprep.subr.bf16.mxu1 %v12329_v23  ;;  %v14046_v40 = vpop.f32.mrb[14].mxu0  ;;  %v14048_v41 = vpop.f32.mrb[2].mxu1  ;;  %v12371_v23 = vld [vmem:[#allocation10 + $0x6fc] ss:$72 sps:$4 sm:$0xff]  }
 0x2c0   :  { %v4068_v43 = vpack.c.bf16 %v14046_v40, %v14038_v27  ;;  %v4070_v44 = vpack.c.bf16 %v14048_v41, %v14040_v28  ;;  %v14054_v46 = vpop.f32.mrb[15].mxu0  ;;  %v14056_v47 = vpop.f32.mrb[3].mxu1  ;;  %v12479_v27 = vld [vmem:[#allocation10 + $0x794] ss:$72 sps:$4 sm:$0xff]   ;;  %v12477_v40 = vld [vmem:[#allocation10 + $0x790] ss:$72 sps:$4 sm:$0xff]  }
 0x2c1   :  { %3761 = vmatpush1.bf16.msra.mxu0 %v12324_v25  ;;  %v4069_v49 = vpack.c.bf16 %v14054_v46, %v14042_v29  ;;  %v4071_v50 = vpack.c.bf16 %v14056_v47, %v14044_v31  ;;  %v12366_v25 = vld [vmem:[#allocation10 + $0x6f0] ss:$72 sps:$4 sm:$0xff]   ;;  %v12467_v31 = vld [vmem:[#allocation10 + $0x554] ss:$72 sps:$4 sm:$0xff]   ;;  %v12488_v41 = vld [vmem:[#allocation10 + $0x944] ss:$72 sps:$4 sm:$0xff]  }
 0x2c2   :  { %3867 = vmatpush1.bf16.msra.mxu1 %v12327_v26  ;;  %3762 = vmatprep.subr.bf16.mxu0 %v12332_v32  ;;  %v12369_v26 = vld [vmem:[#allocation10 + $0x6f8] ss:$72 sps:$4 sm:$0xff]   ;;  %v12374_v32 = vld [vmem:[#allocation10 + $0x784] ss:$72 sps:$4 sm:$0xff]  }
 0x2c3   :  { %3868 = vmatprep.subr.bf16.mxu1 %v12335_v39  ;;  %v12377_v39 = vld [vmem:[#allocation10 + $0x78c] ss:$72 sps:$4 sm:$0xff]   ;;  %v12465_v47 = vld [vmem:[#allocation10 + $0x550] ss:$72 sps:$4 sm:$0xff]  }
 0x2c4   :  { %v12483_v28 = vld [vmem:[#allocation10 + $0x8b0] ss:$72 sps:$4 sm:$0xff]  }
 0x2c5   :  { %3763 = vmatpush1.bf16.msra.mxu0 %v12330_v42  ;;  %v14062_v55 = vpop.f32.mrb[16].mxu0  ;;  %v14064_v56 = vpop.f32.mrb[4].mxu1  ;;  %v12372_v42 = vld [vmem:[#allocation10 + $0x780] ss:$72 sps:$4 sm:$0xff]  }
 0x2c6   :  { %3869 = vmatpush1.bf16.msra.mxu1 %v12333_v48  ;;  %v14066_v57 = vpop.f32.mrb[17].mxu0  ;;  %v14068_v58 = vpop.f32.mrb[5].mxu1  ;;  %3764 = vmatprep.subr.bf16.mxu0 %v12338_v51  ;;  %v12375_v48 = vld [vmem:[#allocation10 + $0x788] ss:$72 sps:$4 sm:$0xff]   ;;  %v12380_v51 = vld [vmem:[#allocation10 + $0x814] ss:$72 sps:$4 sm:$0xff]  }
 0x2c7   :  { %3870 = vmatprep.subr.bf16.mxu1 %v12341_v52  ;;  %v14070_v61 = vpop.f32.mrb[18].mxu0  ;;  %v14072_v62 = vpop.f32.mrb[6].mxu1  ;;  %v12383_v52 = vld [vmem:[#allocation10 + $0x81c] ss:$72 sps:$4 sm:$0xff]  }
 0x2c8   :  { %v4086_v36 = vpack.c.bf16 %v14070_v61, %v14062_v55  ;;  %v4088_v2 = vpack.c.bf16 %v14072_v62, %v14064_v56  ;;  %v14078_v3 = vpop.f32.mrb[19].mxu0  ;;  %v14080_v4 = vpop.f32.mrb[7].mxu1  ;;  %v12485_v55 = vld [vmem:[#allocation10 + $0x8b4] ss:$72 sps:$4 sm:$0xff]   ;;  %v12489_v56 = vld [vmem:[#allocation10 + $0x9d0] ss:$72 sps:$4 sm:$0xff]  }
 0x2c9   :  { %3765 = vmatpush1.bf16.msra.mxu0 %v12336_v53  ;;  %v4087_v7 = vpack.c.bf16 %v14078_v3, %v14066_v57  ;;  %v4089_v9 = vpack.c.bf16 %v14080_v4, %v14068_v58  ;;  %v12378_v53 = vld [vmem:[#allocation10 + $0x810] ss:$72 sps:$4 sm:$0xff]   ;;  %v12476_v4 = vld [vmem:[#allocation10 + $0x704] ss:$72 sps:$4 sm:$0xff]   ;;  %v12480_v57 = vld [vmem:[#allocation10 + $0x820] ss:$72 sps:$4 sm:$0xff]  }
 0x2ca   :  { %3871 = vmatpush1.bf16.msra.mxu1 %v12339_v54  ;;  %3766 = vmatprep.subr.bf16.mxu0 %v12344_v59  ;;  %v12381_v54 = vld [vmem:[#allocation10 + $0x818] ss:$72 sps:$4 sm:$0xff]   ;;  %v12386_v59 = vld [vmem:[#allocation10 + $0x8a4] ss:$72 sps:$4 sm:$0xff]   ;;  %v12491_v61 = vld [vmem:[#allocation10 + $0x9d4] ss:$72 sps:$4 sm:$0xff]  }
 0x2cb   :  { %3872 = vmatprep.subr.bf16.mxu1 %v12347_v60  ;;  %v12389_v60 = vld [vmem:[#allocation10 + $0x8ac] ss:$72 sps:$4 sm:$0xff]   ;;  %v12471_v58 = vld [vmem:[#allocation10 + $0x670] ss:$72 sps:$4 sm:$0xff]  }
 0x2cc   :  { %v12494_v62 = vld [vmem:[#allocation10 + $0xa64] ss:$72 sps:$4 sm:$0xff]   ;;  %v12495_v3 = vld [vmem:[#allocation10 + $0xaf0] ss:$72 sps:$4 sm:$0xff]  }
 0x2cd   :  { %3767 = vmatpush1.bf16.msra.mxu0 %v12342_v63  ;;  %v12384_v63 = vld [vmem:[#allocation10 + $0x8a0] ss:$72 sps:$4 sm:$0xff]  }
 0x2ce   :  { %3873 = vmatpush1.bf16.msra.mxu1 %v12345_v5  ;;  %3768 = vmatprep.subr.bf16.mxu0 %v12350_v6  ;;  %v12387_v5 = vld [vmem:[#allocation10 + $0x8a8] ss:$72 sps:$4 sm:$0xff]   ;;  %v12392_v6 = vld [vmem:[#allocation10 + $0x934] ss:$72 sps:$4 sm:$0xff]  }
 0x2cf   :  { %3874 = vmatprep.subr.bf16.mxu1 %v12353_v10  ;;  %v12395_v10 = vld [vmem:[#allocation10 + $0x93c] ss:$72 sps:$4 sm:$0xff]  }
 0x2d1   :  { %3769 = vmatpush1.bf16.msra.mxu0 %v12348_v11  ;;  %v12390_v11 = vld [vmem:[#allocation10 + $0x930] ss:$72 sps:$4 sm:$0xff]  }
 0x2d2   :  { %3875 = vmatpush1.bf16.msra.mxu1 %v12351_v12  ;;  %3770 = vmatprep.subr.bf16.mxu0 %v12356_v13  ;;  %v12393_v12 = vld [vmem:[#allocation10 + $0x938] ss:$72 sps:$4 sm:$0xff]   ;;  %v12398_v13 = vld [vmem:[#allocation10 + $0x9c4] ss:$72 sps:$4 sm:$0xff]  }
 0x2d3   :  { %3876 = vmatprep.subr.bf16.mxu1 %v12359_v14  ;;  %v12401_v14 = vld [vmem:[#allocation10 + $0x9cc] ss:$72 sps:$4 sm:$0xff]  }
 0x2d5   :  { %3771 = vmatpush1.bf16.msra.mxu0 %v12354_v15  ;;  %v12396_v15 = vld [vmem:[#allocation10 + $0x9c0] ss:$72 sps:$4 sm:$0xff]  }
 0x2d6   :  { %3877 = vmatpush1.bf16.msra.mxu1 %v12357_v16  ;;  %3772 = vmatprep.subr.bf16.mxu0 %v12362_v17  ;;  %v12399_v16 = vld [vmem:[#allocation10 + $0x9c8] ss:$72 sps:$4 sm:$0xff]   ;;  %v12404_v17 = vld [vmem:[#allocation10 + $0xa54] ss:$72 sps:$4 sm:$0xff]  }
 0x2d7   :  { %3878 = vmatprep.subr.bf16.mxu1 %v12365_v18  ;;  %v12407_v18 = vld [vmem:[#allocation10 + $0xa5c] ss:$72 sps:$4 sm:$0xff]  }
 0x2d9   :  { %3773 = vmatpush1.bf16.msra.mxu0 %v12360_v19  ;;  %v12402_v19 = vld [vmem:[#allocation10 + $0xa50] ss:$72 sps:$4 sm:$0xff]  }
 0x2da   :  { %3879 = vmatpush1.bf16.msra.mxu1 %v12363_v20  ;;  %3774 = vmatprep.subr.bf16.mxu0 %v12368_v22  ;;  %v12405_v20 = vld [vmem:[#allocation10 + $0xa58] ss:$72 sps:$4 sm:$0xff]   ;;  %v12410_v22 = vld [vmem:[#allocation10 + $0xae4] ss:$72 sps:$4 sm:$0xff]  }
 0x2db   :  { %3880 = vmatprep.subr.bf16.mxu1 %v12371_v23  ;;  %v12413_v23 = vld [vmem:[#allocation10 + $0xaec] ss:$72 sps:$4 sm:$0xff]  }
 0x2dd   :  { %3775 = vmatpush1.bf16.msra.mxu0 %v12366_v25  ;;  %v12408_v25 = vld [vmem:[#allocation10 + $0xae0] ss:$72 sps:$4 sm:$0xff]  }
 0x2de   :  { %3881 = vmatpush1.bf16.msra.mxu1 %v12369_v26  ;;  %3776 = vmatprep.subr.bf16.mxu0 %v12374_v32  ;;  %v12411_v26 = vld [vmem:[#allocation10 + $0xae8] ss:$72 sps:$4 sm:$0xff]   ;;  %v12416_v32 = vld [vmem:[#allocation10 + $0xb74] ss:$72 sps:$4 sm:$0xff]  }
 0x2df   :  { %3882 = vmatprep.subr.bf16.mxu1 %v12377_v39  ;;  %v12419_v39 = vld [vmem:[#allocation10 + $0xb7c] ss:$72 sps:$4 sm:$0xff]  }
 0x2e1   :  { %3777 = vmatpush1.bf16.msra.mxu0 %v12372_v42  ;;  %v12414_v42 = vld [vmem:[#allocation10 + $0xb70] ss:$72 sps:$4 sm:$0xff]  }
 0x2e2   :  { %3883 = vmatpush1.bf16.msra.mxu1 %v12375_v48  ;;  %3778 = vmatprep.subr.bf16.mxu0 %v12380_v51  ;;  %v12417_v48 = vld [vmem:[#allocation10 + $0xb78] ss:$72 sps:$4 sm:$0xff]   ;;  %v12422_v51 = vld [vmem:[#allocation10 + $0xc04] ss:$72 sps:$4 sm:$0xff]  }
 0x2e3   :  { %3884 = vmatprep.subr.bf16.mxu1 %v12383_v52  ;;  %v12425_v52 = vld [vmem:[#allocation10 + $0xc0c] ss:$72 sps:$4 sm:$0xff]  }
 0x2e5   :  { %3779 = vmatpush1.bf16.msra.mxu0 %v12378_v53  ;;  %v12420_v53 = vld [vmem:[#allocation10 + $0xc00] ss:$72 sps:$4 sm:$0xff]  }
 0x2e6   :  { %3885 = vmatpush1.bf16.msra.mxu1 %v12381_v54  ;;  %3780 = vmatprep.subr.bf16.mxu0 %v12386_v59  ;;  %v12423_v54 = vld [vmem:[#allocation10 + $0xc08] ss:$72 sps:$4 sm:$0xff]   ;;  %v12428_v59 = vld [vmem:[#allocation10 + $0xc94] ss:$72 sps:$4 sm:$0xff]  }
 0x2e7   :  { %3886 = vmatprep.subr.bf16.mxu1 %v12389_v60  ;;  %v12431_v60 = vld [vmem:[#allocation10 + $0xc9c] ss:$72 sps:$4 sm:$0xff]  }
 0x2e9   :  { %3781 = vmatpush1.bf16.msra.mxu0 %v12384_v63  ;;  %v12426_v63 = vld [vmem:[#allocation10 + $0xc90] ss:$72 sps:$4 sm:$0xff]  }
 0x2ea   :  { %3887 = vmatpush1.bf16.msra.mxu1 %v12387_v5  ;;  %3803 = vmatprep.subr.bf16.mxu0 %v12392_v6  ;;  %v12429_v5 = vld [vmem:[#allocation10 + $0xc98] ss:$72 sps:$4 sm:$0xff]   ;;  %v12434_v6 = vld [vmem:[#allocation10 + $0xd24] ss:$72 sps:$4 sm:$0xff]  }
 0x2eb   :  { %3909 = vmatprep.subr.bf16.mxu1 %v12395_v10  ;;  %v12437_v10 = vld [vmem:[#allocation10 + $0xd2c] ss:$72 sps:$4 sm:$0xff]  }
 0x2ec   :  { %3783 = vmatmul.mubr.bf16.vlgmr.msra.gmra.mrb[36].mxu0 %v13971_v1 }
 0x2ed   :  { %3889 = vmatmul.mubr.bf16.vlgmr.msra.gmra.mrb[24].mxu1 %v13971_v1  ;;  %3792 = vmatprep.mubr.bf16.mxu0 %v13981_v33 }
 0x2ee   :  { %3804 = vmatpush1.bf16.msra.mxu0 %v12390_v11  ;;  %3898 = vmatprep.mubr.bf16.mxu1 %v13981_v33  ;;  %v12432_v11 = vld [vmem:[#allocation10 + $0xd20] ss:$72 sps:$4 sm:$0xff]  }
 0x2ef   :  { %3910 = vmatpush1.bf16.msra.mxu1 %v12393_v12  ;;  %3805 = vmatprep.subr.bf16.mxu0 %v12398_v13  ;;  %v12435_v12 = vld [vmem:[#allocation10 + $0xd28] ss:$72 sps:$4 sm:$0xff]   ;;  %v12440_v13 = vld [vmem:[#allocation10 + $0x44] ss:$72 sps:$4 sm:$0xff]  }
 0x2f0   :  { %3911 = vmatprep.subr.bf16.mxu1 %v12401_v14  ;;  %v12438_v14 = vld [vmem:[#allocation10 + $0x40] ss:$72 sps:$4 sm:$0xff]  }
 0x2f2   :  { %3806 = vmatpush1.bf16.msra.mxu0 %v12396_v15  ;;  %v12443_v15 = vld [vmem:[#allocation10 + $0xd4] ss:$72 sps:$4 sm:$0xff]  }
 0x2f3   :  { %3912 = vmatpush1.bf16.msra.mxu1 %v12399_v16  ;;  %3807 = vmatprep.subr.bf16.mxu0 %v12404_v17  ;;  %v12441_v16 = vld [vmem:[#allocation10 + $0xd0] ss:$72 sps:$4 sm:$0xff]   ;;  %v12446_v17 = vld [vmem:[#allocation10 + $0x164] ss:$72 sps:$4 sm:$0xff]  }
 0x2f4   :  { %3793 = vmatmul.mubr.bf16.gmra.mrb[40].mxu0 %v13979_v30  ;;  %3913 = vmatprep.subr.bf16.mxu1 %v12407_v18  ;;  %v12444_v18 = vld [vmem:[#allocation10 + $0x160] ss:$72 sps:$4 sm:$0xff]  }
 0x2f5   :  { %3899 = vmatmul.mubr.bf16.gmra.mrb[28].mxu1 %v13979_v30  ;;  %3835 = vmatprep.mubr.bf16.mxu0 %v13723_v0 }
 0x2f6   :  { %3808 = vmatpush1.bf16.msra.mxu0 %v12402_v19  ;;  %3941 = vmatprep.mubr.bf16.mxu1 %v13723_v0  ;;  %v12449_v19 = vld [vmem:[#allocation10 + $0x1f4] ss:$72 sps:$4 sm:$0xff]  }
 0x2f7   :  { %3914 = vmatpush1.bf16.msra.mxu1 %v12405_v20  ;;  %3809 = vmatprep.subr.bf16.mxu0 %v12410_v22  ;;  %v12447_v20 = vld [vmem:[#allocation10 + $0x1f0] ss:$72 sps:$4 sm:$0xff]   ;;  %v12452_v22 = vld [vmem:[#allocation10 + $0x284] ss:$72 sps:$4 sm:$0xff]  }
 0x2f8   :  { %3915 = vmatprep.subr.bf16.mxu1 %v12413_v23  ;;  %v12450_v23 = vld [vmem:[#allocation10 + $0x280] ss:$72 sps:$4 sm:$0xff]  }
 0x2fa   :  { %3810 = vmatpush1.bf16.msra.mxu0 %v12408_v25  ;;  %v12455_v25 = vld [vmem:[#allocation10 + $0x314] ss:$72 sps:$4 sm:$0xff]  }
 0x2fb   :  { %3916 = vmatpush1.bf16.msra.mxu1 %v12411_v26  ;;  %3811 = vmatprep.subr.bf16.mxu0 %v12416_v32  ;;  %v12453_v32 = vld [vmem:[#allocation10 + $0x310] ss:$72 sps:$4 sm:$0xff]  }
 0x2fc   :  { %3917 = vmatprep.subr.bf16.mxu1 %v12419_v39 }
 0x2fe   :  { %3812 = vmatpush1.bf16.msra.mxu0 %v12414_v42 }
 0x2ff   :  { %3918 = vmatpush1.bf16.msra.mxu1 %v12417_v48  ;;  %3813 = vmatprep.subr.bf16.mxu0 %v12422_v51  ;;  %v12458_v48 = vld [vmem:[#allocation10 + $0x3a4] ss:$72 sps:$4 sm:$0xff]  }
 0x300   :  { %3919 = vmatprep.subr.bf16.mxu1 %v12425_v52 }
 0x302   :  { %3814 = vmatpush1.bf16.msra.mxu0 %v12420_v53 }
 0x303   :  { %3920 = vmatpush1.bf16.msra.mxu1 %v12423_v54  ;;  %3815 = vmatprep.subr.bf16.mxu0 %v12428_v59  ;;  %v12456_v59 = vld [vmem:[#allocation10 + $0x3a0] ss:$72 sps:$4 sm:$0xff]  }
 0x304   :  { %3921 = vmatprep.subr.bf16.mxu1 %v12431_v60 }
 0x306   :  { %3816 = vmatpush1.bf16.msra.mxu0 %v12426_v63  ;;  %v12461_v63 = vld [vmem:[#allocation10 + $0x434] ss:$72 sps:$4 sm:$0xff]  }
 0x307   :  { %3922 = vmatpush1.bf16.msra.mxu1 %v12429_v5  ;;  %3817 = vmatprep.subr.bf16.mxu0 %v12434_v6  ;;  %v12459_v6 = vld [vmem:[#allocation10 + $0x430] ss:$72 sps:$4 sm:$0xff]  }
 0x308   :  { %3923 = vmatprep.subr.bf16.mxu1 %v12437_v10 }
 0x30a   :  { %3818 = vmatpush1.bf16.msra.mxu0 %v12432_v11 }
 0x30b   :  { %3924 = vmatpush1.bf16.msra.mxu1 %v12435_v12  ;;  %3962 = vmatprep.subr.bf16.mxu0 %v12440_v13  ;;  %v12464_v12 = vld [vmem:[#allocation10 + $0x4c4] ss:$72 sps:$4 sm:$0xff]  }
 0x30d   :  { %3836 = vmatmul.mubr.bf16.vlgmr.msra.gmra.mrb[36].mxu0 %v13996_v24 }
 0x30e   :  { %3942 = vmatmul.mubr.bf16.vlgmr.msra.gmra.mrb[24].mxu1 %v13996_v24  ;;  %3963 = vmatpush1.bf16.msra.mxu0 %v12438_v14 }
 0x30f   :  { %3964 = vmatprep.subr.bf16.mxu0 %v12443_v15  ;;  %3845 = vmatprep.mubr.bf16.mxu0 %v13723_v0 }
 0x310   :  { %3951 = vmatprep.mubr.bf16.mxu1 %v13723_v0 }
 0x312   :  { %3965 = vmatpush1.bf16.msra.mxu0 %v12441_v16 }
 0x313   :  { %3966 = vmatprep.subr.bf16.mxu0 %v12446_v17 }
 0x315   :  { %3846 = vmatmul.mubr.bf16.gmra.mrb[40].mxu0 %v13994_v21 }
 0x316   :  { %3952 = vmatmul.mubr.bf16.gmra.mrb[28].mxu1 %v13994_v21  ;;  %3967 = vmatpush1.bf16.msra.mxu0 %v12444_v18 }
 0x317   :  { %3994 = vmatprep.mubr.bf16.mxu0 %v13973_v8  ;;  %4194 = vmatprep.mubr.bf16.mxu1 %v4069_v49 }
 0x318   :  { %3968 = vmatprep.subr.bf16.mxu0 %v12449_v19 }
 0x31a   :  { %3969 = vmatpush1.bf16.msra.mxu0 %v12447_v20 }
 0x31b   :  { %3970 = vmatprep.subr.bf16.mxu0 %v12452_v22  ;;  %v12462_v22 = vld [vmem:[#allocation10 + $0x4c0] ss:$72 sps:$4 sm:$0xff]  }
 0x31e   :  { %3971 = vmatpush1.bf16.msra.mxu0 %v12450_v23  ;;  %v3413_v26 = vpop.f32.mrb[20].mxu0 }
 0x31f   :  { %v14104_v39 = vpop.f32.mrb[8].mxu1  ;;  %v3415_v42 = vpop.f32.mrb[21].mxu0  ;;  %3972 = vmatprep.subr.bf16.mxu0 %v12455_v25  ;;  %v12468_v25 = vld [vmem:[#allocation10 + $0x5e0] ss:$72 sps:$4 sm:$0xff]  }
 0x320   :  { %v3521_v51 = vpop.f32.mrb[9].mxu1  ;;  %v3417_v8 = vpop.f32.mrb[22].mxu0 }
 0x321   :  { %v4072_v52 = vpack.c.bf16 %v3417_v8, %v3413_v26  ;;  %v14106_v53 = vpop.f32.mrb[10].mxu1  ;;  %v3419_v29 = vpop.f32.mrb[23].mxu0  ;;  %v12473_v26 = vld [vmem:[#allocation10 + $0x674] ss:$72 sps:$4 sm:$0xff]  }
 0x322   :  { %v4074_v46 = vpack.c.bf16 %v14106_v53, %v14104_v39  ;;  %3973 = vmatpush1.bf16.msra.mxu0 %v12453_v32  ;;  %v4073_v49 = vpack.c.bf16 %v3419_v29, %v3415_v42  ;;  %v3525_v54 = vpop.f32.mrb[11].mxu1  ;;  %v12501_v32 = vld [vmem:[#allocation10 + $0xc10] ss:$72 sps:$4 sm:$0xff]   ;;  %v12506_v39 = vld [vmem:[#allocation10 + $0xca4] ss:$72 sps:$4 sm:$0xff]  }
 0x323   :  { %v4075_v60 = vpack.c.bf16 %v3525_v54, %v3521_v51  ;;  %3974 = vmatprep.subr.bf16.mxu0 %v12458_v48  ;;  %4162 = vmatprep.subr.bf16.mxu1 %v4072_v52  ;;  %v12504_v42 = vld [vmem:[#allocation10 + $0xca0] ss:$72 sps:$4 sm:$0xff]   ;;  %v12509_v48 = vld [vmem:[#allocation10 + $0xd34] ss:$72 sps:$4 sm:$0xff]  }
 0x324   :  { %4163 = vmatpush1.bf16.xpose.msra.mxu1 %v4071_v50  ;;  %v12470_v50 = vld [vmem:[#allocation10 + $0x5e4] ss:$72 sps:$4 sm:$0xff]  }
 0x326   :  { %3975 = vmatpush1.bf16.msra.mxu0 %v12456_v59  ;;  %v3423_v5 = vpop.f32.mrb[24].mxu0 }
 0x327   :  { %v3529_v10 = vpop.f32.mrb[12].mxu1  ;;  %v3425_v11 = vpop.f32.mrb[25].mxu0  ;;  %3976 = vmatprep.subr.bf16.mxu0 %v12461_v63 }
 0x328   :  { %v3531_v13 = vpop.f32.mrb[13].mxu1  ;;  %v3427_v14 = vpop.f32.mrb[26].mxu0 }
 0x329   :  { %v4090_v15 = vpack.c.bf16 %v3427_v14, %v3423_v5  ;;  %v3533_v16 = vpop.f32.mrb[14].mxu1  ;;  %v3429_v17 = vpop.f32.mrb[27].mxu0 }
 0x32a   :  { %v4092_v18 = vpack.c.bf16 %v3533_v16, %v3529_v10  ;;  %3977 = vmatpush1.bf16.msra.mxu0 %v12459_v6  ;;  %v4091_v19 = vpack.c.bf16 %v3429_v17, %v3425_v11  ;;  %v3535_v20 = vpop.f32.mrb[15].mxu1 }
 0x32b   :  { %v4093_v23 = vpack.c.bf16 %v3535_v20, %v3531_v13  ;;  %3978 = vmatprep.subr.bf16.mxu0 %v12464_v12  ;;  %4164 = vmatprep.subr.bf16.mxu1 %v4090_v15 }
 0x32c   :  { %4165 = vmatpush1.bf16.xpose.msra.mxu1 %v4089_v9  ;;  %v12474_v9 = vld [vmem:[#allocation10 + $0x700] ss:$72 sps:$4 sm:$0xff]  }
 0x32d   :  { %11597 = vmatprep.subr.bf16.mxu1 %v4073_v49 }
 0x32e   :  { %3979 = vmatpush1.bf16.msra.mxu0 %v12462_v22 }
 0x32f   :  { %3980 = vmatprep.subr.bf16.mxu0 %v12467_v31 }
 0x332   :  { %3981 = vmatpush1.bf16.msra.mxu0 %v12465_v47 }
 0x333   :  { %3982 = vmatprep.subr.bf16.mxu0 %v12470_v50  ;;  %4195 = vmatmul.mubr.bf16.vlgmr.msra.gmra.mrb[32].mxu1 %v4068_v43  ;;  %v12482_v43 = vld [vmem:[#allocation10 + $0x824] ss:$72 sps:$4 sm:$0xff]  }
 0x334   :  { %4202 = vmatprep.mubr.bf16.mxu1 %v4087_v7  ;;  %11598 = vmatpush3.bf16.xpose.msra.mxu1 %v4073_v49  ;;  %v12500_v7 = vld [vmem:[#allocation10 + $0xb84] ss:$72 sps:$4 sm:$0xff]  }
 0x335   :  { %11599 = vmatprep.subr.bf16.mxu1 %v4091_v19 }
 0x336   :  { %3983 = vmatpush1.bf16.msra.mxu0 %v12468_v25 }
 0x337   :  { %3984 = vmatprep.subr.bf16.mxu0 %v12473_v26 }
 0x33a   :  { %3985 = vmatpush1.bf16.msra.mxu0 %v12471_v58 }
 0x33b   :  { %3986 = vmatprep.subr.bf16.mxu0 %v12476_v4  ;;  %4203 = vmatmul.mubr.bf16.gmra.mrb[36].mxu1 %v4086_v36  ;;  %v12492_v36 = vld [vmem:[#allocation10 + $0xa60] ss:$72 sps:$4 sm:$0xff]  }
 0x33c   :  { %11600 = vmatpush3.bf16.xpose.msra.mxu1 %v4091_v19  ;;  %11601 = vmatprep.mubr.bf16.mxu1 %v4070_v44  ;;  %v12486_v44 = vld [vmem:[#allocation10 + $0x940] ss:$72 sps:$4 sm:$0xff]  }
 0x33d   :  { %4313 = vmatprep.subr.bf16.mxu1 %v4075_v60 }
 0x33e   :  { %3987 = vmatpush1.bf16.msra.mxu0 %v12474_v9 }
 0x33f   :  { %3988 = vmatprep.subr.bf16.mxu0 %v12479_v27 }
 0x342   :  { %3989 = vmatpush1.bf16.msra.mxu0 %v12477_v40 }
 0x343   :  { %3990 = vmatprep.subr.bf16.mxu0 %v12482_v43  ;;  %11602 = vmatmul.mubr.bf16.vlgmr.msra.gmra.mrb[40].mxu1 %v4088_v2  ;;  %v12497_v2 = vld [vmem:[#allocation10 + $0xaf4] ss:$72 sps:$4 sm:$0xff]  }
 0x344   :  { %4314 = vmatpush1.bf16.msra.mxu1 %v4074_v46  ;;  %4345 = vmatprep.mubr.bf16.mxu1 %v13723_v0 }
 0x345   :  { %4315 = vmatprep.subr.bf16.mxu1 %v4093_v23 }
 0x346   :  { %3991 = vmatpush1.bf16.msra.mxu0 %v12480_v57 }
 0x347   :  { %3992 = vmatprep.subr.bf16.mxu0 %v12485_v55 }
 0x348   :  { %4316 = vmatpush1.bf16.msra.mxu1 %v4092_v18 }
 0x34a   :  { %3993 = vmatpush1.bf16.msra.mxu0 %v12483_v28 }
 0x34b   :  { %4015 = vmatprep.subr.bf16.mxu0 %v12488_v41 }
 0x34d   :  { %3995 = vmatmul.mubr.bf16.vlgmr.msra.gmra.mrb[44].mxu0 %v13971_v1  ;;  %v12498_v1 = vld [vmem:[#allocation10 + $0xb80] ss:$72 sps:$4 sm:$0xff]  }
 0x34e   :  { %4004 = vmatprep.mubr.bf16.mxu0 %v13981_v33  ;;  %4016 = vmatpush1.bf16.msra.mxu0 %v12486_v44  ;;  %v12503_v33 = vld [vmem:[#allocation10 + $0xc14] ss:$72 sps:$4 sm:$0xff]  }
 0x34f   :  { %4017 = vmatprep.subr.bf16.mxu0 %v12491_v61 }
 0x352   :  { %4018 = vmatpush1.bf16.msra.mxu0 %v12489_v56 }
 0x353   :  { %4019 = vmatprep.subr.bf16.mxu0 %v12494_v62 }
 0x355   :  { %4005 = vmatmul.mubr.bf16.gmra.mrb[48].mxu0 %v13979_v30  ;;  %v12507_v30 = vld [vmem:[#allocation10 + $0xd30] ss:$72 sps:$4 sm:$0xff]  }
 0x356   :  { %4020 = vmatpush1.bf16.msra.mxu0 %v12492_v36  ;;  %4047 = vmatprep.mubr.bf16.mxu0 %v13723_v0 }
 0x357   :  { %4021 = vmatprep.subr.bf16.mxu0 %v12497_v2 }
 0x35a   :  { %4022 = vmatpush1.bf16.msra.mxu0 %v12495_v3 }
 0x35b   :  { %4023 = vmatprep.subr.bf16.mxu0 %v12500_v7 }
 0x35e   :  { %4024 = vmatpush1.bf16.msra.mxu0 %v12498_v1 }
 0x35f   :  { %4025 = vmatprep.subr.bf16.mxu0 %v12503_v33 }
 0x362   :  { %4026 = vmatpush1.bf16.msra.mxu0 %v12501_v32 }
 0x363   :  { %4027 = vmatprep.subr.bf16.mxu0 %v12506_v39 }
 0x366   :  { %4028 = vmatpush1.bf16.msra.mxu0 %v12504_v42 }
 0x367   :  { %4029 = vmatprep.subr.bf16.mxu0 %v12509_v48  ;;  %v14223_v48 = vld [vmem:[#allocation12 + $0x10] sm:$0xff] }
 0x36a   :  { %4030 = vmatpush1.bf16.msra.mxu0 %v12507_v30  ;;  %v14225_v30 = vld [vmem:[#allocation12] sm:$0xff] }
 0x36d   :  { %4048 = vmatmul.mubr.bf16.vlgmr.msra.gmra.mrb[44].mxu0 %v13996_v24 }
 0x36e   :  { %4057 = vmatprep.mubr.bf16.mxu0 %v13723_v0 }
 0x375   :  { %4058 = vmatmul.mubr.bf16.gmra.mrb[48].mxu0 %v13994_v21 }
 0x37f   :  { %v3625_v51 = vpop.f32.mrb[28].mxu0 }
 0x380   :  { %v14142_v8 = vpop.f32.mrb[16].mxu1  ;;  %v14144_v52 = vpop.f32.mrb[29].mxu0 }
 0x381   :  { %v14146_v53 = vpop.f32.mrb[17].mxu1  ;;  %v3629_v29 = vpop.f32.mrb[30].mxu0 }
 0x382   :  { %v14148_v46 = vpack.c.bf16 %v3629_v29, %v3625_v51  ;;  %v14150_v49 = vpop.f32.mrb[18].mxu1  ;;  %v14152_v54 = vpop.f32.mrb[31].mxu0  ;;  %v14227_v51 = vld [vmem:[#allocation12 + $0x18] sm:$0xff]  ;;  %v14229_v29 = vld [vmem:[#allocation12 + $0x8] sm:$0xff] }
 0x383   :  { %v4078_v24 = vpack.c.bf16 %v14150_v49, %v14142_v8  ;;  %v14158_v59 = vpop.f32.mrb[19].mxu1 }
 0x384   :  { %11605 = vmatprep.subr.bf16.mxu1 %v14148_v46  ;;  %v14788_v49 = vpack.c.bf16 %v14158_v59, %v14146_v53 }
 0x387   :  { %v3635_v63 = vpop.f32.mrb[32].mxu0 }
 0x388   :  { %v14163_v5 = vpop.f32.mrb[20].mxu1  ;;  %v14165_v6 = vpop.f32.mrb[33].mxu0 }
 0x389   :  { %v14167_v10 = vpop.f32.mrb[21].mxu1  ;;  %v3639_v11 = vpop.f32.mrb[34].mxu0 }
 0x38a   :  { %v14169_v12 = vpack.c.bf16 %v3639_v11, %v3635_v63  ;;  %v14171_v13 = vpop.f32.mrb[22].mxu1  ;;  %v14173_v14 = vpop.f32.mrb[35].mxu0 }
 0x38b   :  { %v14179_v17 = vpop.f32.mrb[23].mxu1  ;;  %v14787_v8 = vpack.c.bf16 %v14173_v14, %v14165_v6 }
 0x3e0   :  { %v14183_v19 = vpop.f32.mrb[36].mxu0 }
 0x3e1   :  { %v3943_v20 = vpop.f32.mrb[24].mxu1  ;;  %v14185_v22 = vpop.f32.mrb[37].mxu0 }
 0x3e2   :  { %v14187_v23 = vpop.f32.mrb[25].mxu1  ;;  %v14189_v31 = vpop.f32.mrb[38].mxu0 }
 0x3e3   :  { %v4080_v47 = vpack.c.bf16 %v14189_v31, %v14183_v19  ;;  %v3947_v50 = vpop.f32.mrb[26].mxu1  ;;  %v14193_v25 = vpop.f32.mrb[39].mxu0  ;;  %v14786_v19 = vpack.c.bf16 %v14171_v13, %v14163_v5 }
 0x3e4   :  { %v14195_v26 = vpack.c.bf16 %v3947_v50, %v3943_v20  ;;  %v4081_v58 = vpack.c.bf16 %v14193_v25, %v14185_v22  ;;  %v14199_v4 = vpop.f32.mrb[27].mxu1  ;;  %v14785_v22 = vpack.c.bf16 %v14152_v54, %v14144_v52  ;;  %v14790_v54 = vpack.c.bf16 %v14179_v17, %v14167_v10 }
 0x3e8   :  { %v14203_v27 = vpop.f32.mrb[40].mxu0 }
 0x3e9   :  { %v3953_v40 = vpop.f32.mrb[28].mxu1  ;;  %v14205_v43 = vpop.f32.mrb[41].mxu0 }
 0x3ea   :  { %v14207_v57 = vpop.f32.mrb[29].mxu1  ;;  %v14209_v55 = vpop.f32.mrb[42].mxu0 }
 0x3eb   :  { %v3957_v41 = vpop.f32.mrb[30].mxu1  ;;  %v14213_v44 = vpop.f32.mrb[43].mxu0 }
 0x3ec   :  { %v14215_v61 = vpack.c.bf16 %v3957_v41, %v3953_v40  ;;  %v14219_v62 = vpop.f32.mrb[31].mxu1 }
 0x3ed   :  { %v14793_v53 = vpack.c.bf16 %v14219_v62, %v14207_v57 }
 0x406   :  { %v4196_v2 = vpop.f32.mrb[32].mxu1 }
 0x407   :  { %v4198_v3 = vpop.f32.mrb[33].mxu1  ;;  %v4197_v11 = vadd.f32 %v4196_v2, %v14225_v30 }
 0x408   :  { %v4199_v7 = vpop.f32.mrb[34].mxu1 }
 0x409   :  { %v4201_v1 = vpop.f32.mrb[35].mxu1  ;;  %v4200_v3 = vadd.f32 %v4199_v7, %v14229_v29 }
 0x40e   :  { %v4204_v33 = vpop.f32.mrb[36].mxu1 }
 0x40f   :  { %v4206_v32 = vpop.f32.mrb[37].mxu1  ;;  %v4205_v63 = vadd.f32 %v4204_v33, %v14223_v48 }
 0x410   :  { %v4207_v39 = vpop.f32.mrb[38].mxu1 }
 0x411   :  { %v4209_v42 = vpop.f32.mrb[39].mxu1  ;;  %v4208_v50 = vadd.f32 %v4207_v39, %v14227_v51 }
 0x416   :  { %v11603_v20 = vpop.f32.mrb[40].mxu1 }
 0x417   :  { %v4254_v40 = vadd.f32 %v11603_v20, %v4205_v63  ;;  %v4245_v41 = vpop.f32.mrb[41].mxu1 }
 0x418   :  { %v4246_v1 = vadd.f32 %v4245_v41, %v4197_v11  ;;  %v11604_v32 = vpop.f32.mrb[42].mxu1 }
 0x419   :  { %v4257_v42 = vadd.f32 %v11604_v32, %v4208_v50  ;;  %v4248_v34 = vpop.f32.mrb[43].mxu1  ;;  %v4267_v36 = vsel %vm4260_vm0, %v4254_v40, -inf }
 0x41a   :  { %v4249_v9 = vadd.f32 %v4248_v34, %v4200_v3  ;;  %4268 = vmax.xlane.f32.xlu1 %v4267_v36  ;;  %v4261_v33 = vsel %vm4260_vm0, %v4246_v1, -inf }
 0x41b   :  { %4262 = vmax.xlane.f32.xlu0 %v4261_v33  ;;  %v4270_v2 = vsel %vm4260_vm0, %v4257_v42, -inf }
 0x41c   :  { %v4264_v39 = vsel %vm4260_vm0, %v4249_v9, -inf }
 0x41e   :  { %4271 = vmax.xlane.f32.xlu1 %v4270_v2 }
 0x41f   :  { %4265 = vmax.xlane.f32.xlu0 %v4264_v39 }
 0x440   :  { %v14239_v63 = vpop.f32.mrb[44].mxu0 }
 0x441   :  { %v4051_v7 = vpop.f32.mrb[45].mxu0 }
 0x442   :  { %v14241_v11 = vpop.f32.mrb[46].mxu0 }
 0x443   :  { %v4055_v50 = vpop.f32.mrb[47].mxu0  ;;  %v14789_v52 = vpack.c.bf16 %v14241_v11, %v14239_v63 }
 0x444   :  { %v4085_v34 = vpack.c.bf16 %v4055_v50, %v4051_v7 }
 0x446   :  { %11621 = vmatprep.subr.bf16.mxu0 %v4085_v34 }
 0x447   :  { %11622 = vmatpush3.bf16.msra.mxu0 %v4085_v34 }
 0x448   :  { %v14245_v36 = vpop.f32.mrb[48].mxu0 }
 0x449   :  { %v4061_v41 = vpop.f32.mrb[49].mxu0 }
 0x44a   :  { %v14247_v3 = vpop.f32.mrb[50].mxu0 }
 0x44b   :  { %v4065_v33 = vpop.f32.mrb[51].mxu0  ;;  %v14792_v5 = vpack.c.bf16 %v14247_v3, %v14245_v36 }
 0x44c   :  { %v4103_v2 = vpack.c.bf16 %v4065_v33, %v4061_v41 }
 0x44e   :  { %11623 = vmatprep.subr.bf16.mxu0 %v4103_v2 }
 0x44f   :  { %11624 = vmatpush3.bf16.msra.mxu0 %v4103_v2 }
 0x4a7   :  { %v4269_v39 = vpop.xlane.xlu1 %4268 }
 0x4a8   :  { %v4275_v18 = vsub.f32 %v4254_v40, %v4269_v39  ;;  %v4263_v60 = vpop.xlane.xlu0 %4262 }
 0x4a9   :  { %v4273_v20 = vsub.f32 %v4246_v1, %v4263_v60 }
 0x4aa   :  { %v4281_v16 = vmul.f32 1.442695, %v4275_v18 }
 0x4ab   :  { %v4277_v7 = vmul.f32 1.442695, %v4273_v20  ;;  %v4272_v50 = vpop.xlane.xlu1 %4271 }
 0x4ac   :  { %v4276_v34 = vsub.f32 %v4257_v42, %v4272_v50  ;;  %v4266_v15 = vpop.xlane.xlu0 %4265 }
 0x4ad   :  { %13406 = vpow2.f32 %v4277_v7  ;;  %v4274_v21 = vsub.f32 %v4249_v9, %v4266_v15 }
 0x4ae   :  { %13408 = vpow2.f32 %v4281_v16  ;;  %v4283_v28 = vmul.f32 1.442695, %v4276_v34 }
 0x4af   :  { %v4279_v56 = vmul.f32 1.442695, %v4274_v21 }
 0x4b1   :  { %13410 = vpow2.f32 %v4279_v56 }
 0x4b2   :  { %13412 = vpow2.f32 %v4283_v28 }
 0x4b7   :  { %v13407_v32 = vpop.eup %13406 }
 0x4b8   :  { %v4285_v41 = vsel %vm4260_vm0, %v13407_v32, 0.0  ;;  %v13409_v33 = vpop.eup %13408 }
 0x4b9   :  { %4286 = vadd.xlane.f32.xlu0 %v4285_v41  ;;  %v4291_v60 = vsel %vm4260_vm0, %v13409_v33, 0.0 }
 0x4bb   :  { %v13411_v40 = vpop.eup %13410 }
 0x4bc   :  { %v4288_v18 = vsel %vm4260_vm0, %v13411_v40, 0.0  ;;  %v13413_v1 = vpop.eup %13412 }
 0x4bd   :  { %4292 = vadd.xlane.f32.xlu0 %v4291_v60  ;;  %4289 = vadd.xlane.f32.xlu1 %v4288_v18  ;;  %v4294_v15 = vsel %vm4260_vm0, %v13413_v1, 0.0 }
 0x4c1   :  { %4295 = vadd.xlane.f32.xlu1 %v4294_v15 }
 0x546   :  { %v4287_v16 = vpop.xlane.xlu0 %4286 }
 0x547   :  { %13414 = vrcp.f32 %v4287_v16 }
 0x54a   :  { %v4290_v21 = vpop.xlane.xlu1 %4289  ;;  %v4293_v9 = vpop.xlane.xlu0 %4292 }
 0x54b   :  { %13416 = vrcp.f32 %v4290_v21 }
 0x54e   :  { %v4296_v28 = vpop.xlane.xlu1 %4295 }
 0x54f   :  { %13418 = vrcp.f32 %v4296_v28 }
 0x550   :  { %13420 = vrcp.f32 %v4293_v9 }
 0x551   :  { %v13415_v56 = vpop.eup %13414 }
 0x552   :  { %v4301_v20 = vmul.f32 %v13415_v56, %v13407_v32 }
 0x555   :  { %v13417_v42 = vpop.eup %13416 }
 0x556   :  { %v4302_v2 = vmul.f32 %v13417_v42, %v13411_v40 }
 0x558   :  { %v4305_v39 = vpack.c.bf16 %v4302_v2, %v4301_v20 }
 0x559   :  { %v13419_v7 = vpop.eup %13418 }
 0x55a   :  { %10744 = vmatmul.mubr.msk.bf16.vlgmr.msra.gmra.mrb[44].mxu1 %vm4260_vm0, %v4305_v39  ;;  %v13421_v50 = vpop.eup %13420  ;;  %v4304_v34 = vmul.f32 %v13419_v7, %v13413_v1 }
 0x55b   :  { %11606 = vmatpush3.bf16.msra.mxu1 %v14148_v46  ;;  %4355 = vmatprep.mubr.bf16.mxu1 %v13723_v0  ;;  %v4303_v41 = vmul.f32 %v13421_v50, %v13409_v33  ;;  %v14783_v46 = vpack.c.bf16 %v14213_v44, %v14205_v43 }
 0x55c   :  { %11607 = vmatprep.subr.bf16.mxu1 %v14169_v12 }
 0x55d   :  { %v4306_v32 = vpack.c.bf16 %v4304_v34, %v4303_v41 }
 0x55f   :  { %11608 = vmatpush3.bf16.msra.mxu1 %v14169_v12  ;;  %v14784_v12 = vpack.c.bf16 %v14209_v55, %v14203_v27 }
 0x560   :  { %4445 = vmatprep.subr.bf16.mxu1 %v4081_v58 }
 0x562   :  { %10745 = vmatmul.mubr.msk.bf16.gmra.mrb[48].mxu1 %vm4260_vm0, %v4306_v32 }
 0x563   :  { %11609 = vmatprep.mubr.msk.bf16.mxu1 %vm4260_vm0, %v4305_v39 }
 0x56a   :  { %11610 = vmatmul.mubr.msk.bf16.vlgmr.msra.gmra.mrb[52].mxu1 %vm4260_vm0, %v4306_v32 }
 0x56b   :  { %4446 = vmatpush1.bf16.xpose.msra.mxu1 %v4080_v47  ;;  %4477 = vmatprep.mubr.bf16.mxu1 %v4078_v24  ;;  %v14791_v24 = vpack.c.bf16 %v14199_v4, %v14187_v23 }
 0x56c   :  { %4447 = vmatprep.subr.bf16.mxu1 %v14783_v46 }
 0x573   :  { %4448 = vmatpush1.bf16.xpose.msra.mxu1 %v14784_v12 }
 0x574   :  { %11613 = vmatprep.subr.bf16.mxu1 %v14195_v26 }
 0x57a   :  { %4478 = vmatmul.mubr.bf16.vlgmr.msra.gmra.mrb[56].mxu1 %v14785_v22 }
 0x57b   :  { %4485 = vmatprep.mubr.bf16.mxu1 %v14786_v19  ;;  %11614 = vmatpush3.bf16.xpose.msra.mxu1 %v14195_v26 }
 0x57c   :  { %11615 = vmatprep.subr.bf16.mxu1 %v14215_v61 }
 0x582   :  { %4486 = vmatmul.mubr.bf16.gmra.mrb[60].mxu1 %v14787_v8 }
 0x583   :  { %11616 = vmatpush3.bf16.xpose.msra.mxu1 %v14215_v61  ;;  %11617 = vmatprep.mubr.bf16.mxu1 %v14788_v49 }
 0x584   :  { %4595 = vmatprep.subr.bf16.mxu1 %v14789_v52 }
 0x58a   :  { %11618 = vmatmul.mubr.bf16.vlgmr.msra.gmra.mrb[64].mxu1 %v14790_v54 }
 0x58b   :  { %4596 = vmatpush1.bf16.msra.mxu1 %v14791_v24  ;;  %4627 = vmatprep.mubr.bf16.mxu1 %v13723_v0 }
 0x58c   :  { %4597 = vmatprep.subr.bf16.mxu1 %v14792_v5 }
 0x58f   :  { %4598 = vmatpush1.bf16.msra.mxu1 %v14793_v53 }
 0x62d   :  { %v14310_v59 = vpop.f32.mrb[44].mxu1 }
 0x62e   :  { %v14312_v6 = vpop.f32.mrb[45].mxu1 }
 0x62f   :  { %v14314_v10 = vpop.f32.mrb[46].mxu1 }
 0x630   :  { %v14316_v13 = vpop.f32.mrb[47].mxu1 }
 0x635   :  { %v14318_v14 = vpop.f32.mrb[48].mxu1 }
 0x636   :  { %v14320_v17 = vpop.f32.mrb[49].mxu1  ;;  %v4733_v23 = vadd.f32 %v14318_v14, %v14310_v59 }
 0x637   :  { %v14324_v31 = vpop.f32.mrb[50].mxu1  ;;  %v4734_v47 = vadd.f32 %v14320_v17, %v14312_v6 }
 0x638   :  { %v14328_v25 = vpop.f32.mrb[51].mxu1  ;;  %v4739_v26 = vadd.f32 %v14324_v31, %v14314_v10 }
 0x639   :  { %v4745_v58 = vadd.f32 %v4734_v47, %v4733_v23  ;;  %v4740_v4 = vadd.f32 %v14328_v25, %v14316_v13 }
 0x63b   :  { %v4752_v27 = vadd.f32 %v4740_v4, %v4739_v26 }
 0x63d   :  { %v14334_v43 = vpop.f32.mrb[52].mxu1 }
 0x63e   :  { %v14336_v57 = vpop.f32.mrb[53].mxu1 }
 0x63f   :  { %v14338_v55 = vpop.f32.mrb[54].mxu1  ;;  %v4735_v44 = vadd.f32 %v14334_v43, %v14336_v57 }
 0x640   :  { %v14342_v61 = vpop.f32.mrb[55].mxu1 }
 0x641   :  { %v14344_v62 = vadd.f32 %v4745_v58, %v4735_v44  ;;  %v4741_v63 = vadd.f32 %v14338_v55, %v14342_v61 }
 0x643   :  { %v14348_v11 = vadd.f32 %v4752_v27, %v4741_v63 }
 0x64d   :  { %v4479_v36 = vpop.f32.mrb[56].mxu1 }
 0x64e   :  { %v4481_v3 = vpop.f32.mrb[57].mxu1  ;;  %v4480_v21 = vadd.f32 %v4479_v36, %v14225_v30 }
 0x64f   :  { %v4482_v33 = vpop.f32.mrb[58].mxu1 }
 0x650   :  { %v4484_v40 = vpop.f32.mrb[59].mxu1  ;;  %v4483_v20 = vadd.f32 %v4482_v33, %v14229_v29 }
 0x655   :  { %v4487_v60 = vpop.f32.mrb[60].mxu1 }
 0x656   :  { %v4489_v18 = vpop.f32.mrb[61].mxu1  ;;  %v4488_v16 = vadd.f32 %v4487_v60, %v14223_v48 }
 0x657   :  { %v4490_v1 = vpop.f32.mrb[62].mxu1 }
 0x658   :  { %v4492_v15 = vpop.f32.mrb[63].mxu1  ;;  %v4491_v28 = vadd.f32 %v4490_v1, %v14227_v51 }
 0x65d   :  { %v11619_v9 = vpop.f32.mrb[64].mxu1 }
 0x65e   :  { %v4537_v56 = vadd.f32 %v11619_v9, %v4488_v16  ;;  %v4528_v42 = vpop.f32.mrb[65].mxu1 }
 0x65f   :  { %v4529_v2 = vadd.f32 %v4528_v42, %v4480_v21  ;;  %v11620_v39 = vpop.f32.mrb[66].mxu1 }
 0x660   :  { %v4540_v7 = vadd.f32 %v11620_v39, %v4491_v28  ;;  %v4531_v50 = vpop.f32.mrb[67].mxu1  ;;  %v4549_v48 = vsel %vm4260_vm0, %v4537_v56, -inf }
 0x661   :  { %v4532_v34 = vadd.f32 %v4531_v50, %v4483_v20  ;;  %v4543_v41 = vsel %vm4260_vm0, %v4529_v2, -inf }
 0x662   :  { %4544 = vmax.xlane.f32.xlu0 %v4543_v41  ;;  %v4552_v30 = vsel %vm4260_vm0, %v4540_v7, -inf }
 0x663   :  { %v4546_v32 = vsel %vm4260_vm0, %v4532_v34, -inf }
 0x664   :  { %4547 = vmax.xlane.f32.xlu1 %v4546_v32 }
 0x666   :  { %4550 = vmax.xlane.f32.xlu0 %v4549_v48 }
 0x668   :  { %4553 = vmax.xlane.f32.xlu1 %v4552_v30 }
 0x6ef   :  { %v4545_v51 = vpop.xlane.xlu0 %4544 }
 0x6f0   :  { %v4555_v46 = vsub.f32 %v4529_v2, %v4545_v51 }
 0x6f1   :  { %v4548_v29 = vpop.xlane.xlu1 %4547 }
 0x6f2   :  { %v4559_v12 = vmul.f32 1.442695, %v4555_v46  ;;  %v4556_v22 = vsub.f32 %v4532_v34, %v4548_v29 }
 0x6f3   :  { %v4551_v19 = vpop.xlane.xlu0 %4550 }
 0x6f4   :  { %13422 = vpow2.f32 %v4559_v12  ;;  %v4561_v8 = vmul.f32 1.442695, %v4556_v22  ;;  %v4557_v49 = vsub.f32 %v4537_v56, %v4551_v19 }
 0x6f5   :  { %v4554_v52 = vpop.xlane.xlu1 %4553 }
 0x6f6   :  { %13424 = vpow2.f32 %v4561_v8  ;;  %v4563_v54 = vmul.f32 1.442695, %v4557_v49  ;;  %v4558_v24 = vsub.f32 %v4540_v7, %v4554_v52 }
 0x6f8   :  { %13426 = vpow2.f32 %v4563_v54  ;;  %v4565_v5 = vmul.f32 1.442695, %v4558_v24 }
 0x6fa   :  { %13428 = vpow2.f32 %v4565_v5 }
 0x6fe   :  { %v13423_v53 = vpop.eup %13422 }
 0x6ff   :  { %v4567_v23 = vsel %vm4260_vm0, %v13423_v53, 0.0 }
 0x700   :  { %v13425_v47 = vpop.eup %13424  ;;  %4568 = vadd.xlane.f32.xlu0 %v4567_v23  ;;  %v12510_v23 = vld [vmem:[#allocation13] ss:$12 sps:$4 sm:$0xff]  }
 0x701   :  { %v4570_v26 = vsel %vm4260_vm0, %v13425_v47, 0.0 }
 0x702   :  { %v13427_v58 = vpop.eup %13426  ;;  %4571 = vadd.xlane.f32.xlu1 %v4570_v26  ;;  %v12515_v26 = vld [vmem:[#allocation13 + $0x1c] ss:$12 sps:$4 sm:$0xff]  }
 0x703   :  { %v4573_v4 = vsel %vm4260_vm0, %v13427_v58, 0.0 }
 0x704   :  { %v13429_v27 = vpop.eup %13428  ;;  %4574 = vadd.xlane.f32.xlu0 %v4573_v4  ;;  %v12516_v4 = vld [vmem:[#allocation13 + $0x30] ss:$12 sps:$4 sm:$0xff]  }
 0x705   :  { %v4576_v44 = vsel %vm4260_vm0, %v13429_v27, 0.0 }
 0x706   :  { %4577 = vadd.xlane.f32.xlu1 %v4576_v44  ;;  %v12519_v44 = vld [vmem:[#allocation13 + $0x48] ss:$12 sps:$4 sm:$0xff]  }
 0x78d   :  { %v4569_v63 = vpop.xlane.xlu0 %4568 }
 0x78e   :  { %13430 = vrcp.f32 %v4569_v63  ;;  %v12522_v63 = vld [vmem:[#allocation13 + $0x60] ss:$12 sps:$4 sm:$0xff]  }
 0x78f   :  { %v4572_v36 = vpop.xlane.xlu1 %4571 }
 0x790   :  { %13432 = vrcp.f32 %v4572_v36  ;;  %v12527_v36 = vld [vmem:[#allocation13 + $0x7c] ss:$12 sps:$4 sm:$0xff]  }
 0x791   :  { %v4575_v3 = vpop.xlane.xlu0 %4574 }
 0x792   :  { %13434 = vrcp.f32 %v4575_v3  ;;  %v12525_v3 = vld [vmem:[#allocation13 + $0x78] ss:$12 sps:$4 sm:$0xff]  }
 0x793   :  { %v4578_v33 = vpop.xlane.xlu1 %4577 }
 0x794   :  { %13436 = vrcp.f32 %v4578_v33  ;;  %v12530_v33 = vld [vmem:[#allocation13 + $0x94] ss:$12 sps:$4 sm:$0xff]  }
 0x798   :  { %v13431_v40 = vpop.eup %13430 }
 0x799   :  { %v4583_v18 = vmul.f32 %v13431_v40, %v13423_v53  ;;  %v12528_v40 = vld [vmem:[#allocation13 + $0x90] ss:$12 sps:$4 sm:$0xff]  }
 0x79a   :  { %v13433_v60 = vpop.eup %13432 }
 0x79b   :  { %v4584_v1 = vmul.f32 %v13433_v60, %v13425_v47  ;;  %v12512_v47 = vld [vmem:[#allocation13 + $0x4] ss:$12 sps:$4 sm:$0xff]  }
 0x79c   :  { %v13435_v15 = vpop.eup %13434  ;;  %6410 = vmatprep.subr.bf16.mxu1 %v12512_v47 }
 0x79d   :  { %v4587_v16 = vpack.c.bf16 %v4584_v1, %v4583_v18  ;;  %v4585_v9 = vmul.f32 %v13435_v15, %v13427_v58  ;;  %v12518_v58 = vld [vmem:[#allocation13 + $0x34] ss:$12 sps:$4 sm:$0xff]  }
 0x79e   :  { %v13437_v21 = vpop.eup %13436 }
 0x79f   :  { %v4586_v28 = vmul.f32 %v13437_v21, %v13429_v27  ;;  %10748 = vmatmul.mubr.msk.bf16.vlgmr.msra.gmra.mrb[68].mxu1 %vm4260_vm0, %v4587_v16  ;;  %11625 = vmatprep.mubr.msk.bf16.mxu0 %vm4260_vm0, %v4587_v16  ;;  %v12521_v27 = vld [vmem:[#allocation13 + $0x4c] ss:$12 sps:$4 sm:$0xff]  }
 0x7a0   :  { %4637 = vmatprep.mubr.bf16.mxu1 %v13723_v0  ;;  %6411 = vmatpush1.bf16.msra.mxu1 %v12510_v23 }
 0x7a1   :  { %v4588_v56 = vpack.c.bf16 %v4586_v28, %v4585_v9  ;;  %6412 = vmatprep.subr.bf16.mxu1 %v12515_v26 }
 0x7a3   :  { %11626 = vmatmul.mubr.msk.bf16.vlgmr.msra.gmra.mrb[52].mxu0 %vm4260_vm0, %v4588_v56 }
 0x7a7   :  { %10749 = vmatmul.mubr.msk.bf16.gmra.mrb[72].mxu1 %vm4260_vm0, %v4588_v56 }
 0x872   :  { %v4629_v42 = vpop.f32.mrb[68].mxu1 }
 0x873   :  { %v4631_v20 = vpop.f32.mrb[69].mxu1 }
 0x874   :  { %v14367_v2 = vpop.f32.mrb[70].mxu1 }
 0x875   :  { %v14369_v39 = vpop.f32.mrb[71].mxu1 }
 0x876   :  { %v14371_v7 = vpop.f32.mrb[52].mxu0 }
 0x877   :  { %v4682_v50 = vpop.f32.mrb[53].mxu0 }
 0x878   :  { %v14373_v34 = vpop.f32.mrb[54].mxu0  ;;  %v4738_v41 = vadd.f32 %v14371_v7, %v4682_v50 }
 0x879   :  { %v14376_v32 = vpop.f32.mrb[55].mxu0 }
 0x87a   :  { %v14378_v48 = vpop.f32.mrb[72].mxu1  ;;  %v4744_v30 = vadd.f32 %v14373_v34, %v14376_v32 }
 0x87b   :  { %v14382_v51 = vpop.f32.mrb[73].mxu1  ;;  %v4736_v46 = vadd.f32 %v14378_v48, %v4629_v42 }
 0x87c   :  { %v14385_v29 = vpop.f32.mrb[74].mxu1  ;;  %v4737_v12 = vadd.f32 %v14382_v51, %v4631_v20 }
 0x87d   :  { %v14388_v22 = vpop.f32.mrb[75].mxu1  ;;  %v4747_v19 = vadd.f32 %v14344_v62, %v4736_v46  ;;  %v4742_v8 = vadd.f32 %v14385_v29, %v14367_v2  ;;  %v12513_v62 = vld [vmem:[#allocation13 + $0x18] ss:$12 sps:$4 sm:$0xff]  }
 0x87e   :  { %v4743_v49 = vadd.f32 %v14388_v22, %v14369_v39  ;;  %6413 = vmatpush1.bf16.msra.mxu1 %v12513_v62 }
 0x87f   :  { %v4748_v52 = vadd.f32 %v4747_v19, %v4737_v12  ;;  %v4754_v54 = vadd.f32 %v14348_v11, %v4742_v8  ;;  %6414 = vmatprep.subr.bf16.mxu1 %v12518_v58  ;;  %v12524_v11 = vld [vmem:[#allocation13 + $0x64] ss:$12 sps:$4 sm:$0xff]  }
 0x881   :  { %v4749_v24 = vadd.f32 %v4748_v52, %v4738_v41  ;;  %v4755_v5 = vadd.f32 %v4754_v54, %v4743_v49 }
 0x882   :  { %6415 = vmatpush1.bf16.msra.mxu1 %v12516_v4 }
 0x883   :  { %4750 = vadd.xlane.f32.xlu0 %v4749_v24  ;;  %v4756_v53 = vadd.f32 %v4755_v5, %v4744_v30  ;;  %6416 = vmatprep.subr.bf16.mxu1 %v12521_v27 }
 0x885   :  { %4757 = vadd.xlane.f32.xlu1 %v4756_v53 }
 0x886   :  { %6417 = vmatpush1.bf16.msra.mxu1 %v12519_v44 }
 0x887   :  { %6418 = vmatprep.subr.bf16.mxu1 %v12524_v11 }
 0x88a   :  { %6419 = vmatpush1.bf16.msra.mxu1 %v12522_v63 }
 0x88b   :  { %6420 = vmatprep.subr.bf16.mxu1 %v12527_v36 }
 0x88e   :  { %6421 = vmatpush1.bf16.msra.mxu1 %v12525_v3 }
 0x88f   :  { %6422 = vmatprep.subr.bf16.mxu1 %v12530_v33 }
 0x892   :  { %6423 = vmatpush1.bf16.msra.mxu1 %v12528_v40 }
 0x910   :  { %v4751_v60 = vpop.xlane.xlu0 %4750 }
 0x911   :  { %v14396_v18 = vmul.f32 0.00083333335, %v4751_v60 }
 0x912   :  { %v4758_v1 = vpop.xlane.xlu1 %4757 }
 0x913   :  { %v14398_v15 = vmul.f32 0.00083333335, %v4758_v1  ;;  %v14402_v16 = vsub.f32 %v14310_v59, %v14396_v18  ;;  %v14406_v21 = vsub.f32 %v14312_v6, %v14396_v18  ;;  %v14410_v9 = vsub.f32 %v14336_v57, %v14396_v18 }
 0x914   :  { %v14413_v28 = vsub.f32 %v4629_v42, %v14396_v18  ;;  %v14416_v56 = vsub.f32 %v4631_v20, %v14396_v18  ;;  %v14427_v30 = vsub.f32 %v4682_v50, %v14396_v18  ;;  %v14437_v20 = vsub.f32 %v14318_v14, %v14396_v18 }
 0x915   :  { %v4785_v41 = vmul.f32 %v14402_v16, %v14402_v16  ;;  %v4786_v59 = vmul.f32 %v14406_v21, %v14406_v21  ;;  %v14424_v6 = vsub.f32 %v14314_v10, %v14398_v15  ;;  %v4787_v57 = vmul.f32 %v14410_v9, %v14410_v9 }
 0x916   :  { %v14433_v42 = vsub.f32 %v14316_v13, %v14398_v15  ;;  %v14441_v12 = vsub.f32 %v14342_v61, %v14398_v15  ;;  %v14445_v10 = vsub.f32 %v14367_v2, %v14398_v15  ;;  %v14449_v50 = vsub.f32 %v14369_v39, %v14398_v15 }
 0x917   :  { %v4797_v46 = vadd.f32 %v4786_v59, %v4785_v41  ;;  %v14453_v13 = vsub.f32 %v14376_v32, %v14398_v15  ;;  %v4791_v14 = vmul.f32 %v14424_v6, %v14424_v6  ;;  %v14461_v61 = vsub.f32 %v14320_v17, %v14396_v18 }
 0x918   :  { %v4792_v19 = vmul.f32 %v14433_v42, %v14433_v42  ;;  %v4788_v2 = vmul.f32 %v14413_v28, %v14413_v28  ;;  %v4789_v39 = vmul.f32 %v14416_v56, %v14416_v56  ;;  %v4790_v32 = vmul.f32 %v14427_v30, %v14427_v30 }
 0x919   :  { %v4798_v8 = vadd.f32 %v4797_v46, %v4787_v57  ;;  %v4793_v49 = vmul.f32 %v14441_v12, %v14441_v12  ;;  %v14473_v54 = vsub.f32 %v14334_v43, %v14396_v18  ;;  %v4794_v24 = vmul.f32 %v14445_v10, %v14445_v10 }
 0x91a   :  { %v4804_v52 = vadd.f32 %v4792_v19, %v4791_v14  ;;  %v14479_v5 = vsub.f32 %v14378_v48, %v14396_v18  ;;  %v4811_v53 = vmul.f32 %v14437_v20, %v14437_v20  ;;  %v4795_v23 = vmul.f32 %v14449_v50, %v14449_v50 }
 0x91b   :  { %v4799_v17 = vadd.f32 %v4798_v8, %v4788_v2  ;;  %v4796_v47 = vmul.f32 %v14453_v13, %v14453_v13  ;;  %v4812_v43 = vmul.f32 %v14461_v61, %v14461_v61  ;;  %v14491_v58 = vsub.f32 %v14382_v51, %v14396_v18 }
 0x91c   :  { %v4805_v26 = vadd.f32 %v4804_v52, %v4793_v49  ;;  %v4813_v48 = vmul.f32 %v14473_v54, %v14473_v54  ;;  %v14497_v4 = vsub.f32 %v14324_v31, %v14398_v15  ;;  %v14501_v11 = vsub.f32 %v14328_v25, %v14398_v15 }
 0x91d   :  { %v4800_v62 = vadd.f32 %v4799_v17, %v4789_v39  ;;  %v4823_v44 = vadd.f32 %v4812_v43, %v4811_v53  ;;  %v14505_v63 = vsub.f32 %v14338_v55, %v14398_v15  ;;  %v14509_v51 = vsub.f32 %v14371_v7, %v14396_v18  ;;  %v12531_v17 = vld [vmem:[#allocation13 + $0xa8] ss:$12 sps:$4 sm:$0xff]   ;;  %v12542_v43 = vld [vmem:[#allocation13 + $0xe0] ss:$12 sps:$4 sm:$0xff]  }
 0x91e   :  { %v4806_v27 = vadd.f32 %v4805_v26, %v4794_v24  ;;  %v4814_v3 = vmul.f32 %v14479_v5, %v14479_v5  ;;  %v14515_v31 = vsub.f32 %v14385_v29, %v14398_v15  ;;  %v4817_v25 = vmul.f32 %v14497_v4, %v14497_v4  ;;  %v12533_v24 = vld [vmem:[#allocation13 + $0xac] ss:$12 sps:$4 sm:$0xff]   ;;  %v12537_v53 = vld [vmem:[#allocation13 + $0xc8] ss:$12 sps:$4 sm:$0xff]  }
 0x91f   :  { %v4801_v36 = vadd.f32 %v4800_v62, %v4790_v32  ;;  %v4824_v40 = vadd.f32 %v4823_v44, %v4813_v48  ;;  %v4818_v55 = vmul.f32 %v14501_v11, %v14501_v11  ;;  %v4815_v7 = vmul.f32 %v14491_v58, %v14491_v58  ;;  %6424 = vmatprep.subr.bf16.mxu1 %v12533_v24  ;;  %v12541_v26 = vld [vmem:[#allocation13 + $0xdc] ss:$12 sps:$4 sm:$0xff]   ;;  %v12539_v62 = vld [vmem:[#allocation13 + $0xd8] ss:$12 sps:$4 sm:$0xff]   ;;  %v12543_v48 = vld [vmem:[#allocation13 + $0x20] ss:$12 sps:$4 sm:$0xff]  }
 0x920   :  { %v4807_v33 = vadd.f32 %v4806_v27, %v4795_v23  ;;  %v14525_v60 = vsub.f32 %v14388_v22, %v14398_v15  ;;  %v4819_v29 = vmul.f32 %v14505_v63, %v14505_v63  ;;  %v4816_v57 = vmul.f32 %v14509_v51, %v14509_v51  ;;  %6425 = vmatpush1.bf16.msra.mxu1 %v12531_v17  ;;  %v12534_v23 = vld [vmem:[#allocation13 + $0xc0] ss:$12 sps:$4 sm:$0xff]   ;;  %v12547_v44 = vld [vmem:[#allocation13 + $0xf8] ss:$12 sps:$4 sm:$0xff]   ;;  %v12573_v17 = vld [vmem:[#allocation13 + $0xb0] ss:$12 sps:$4 sm:$0xff]  }
 0x921   :  { %4802 = vadd.xlane.f32.xlu0 %v4801_v36  ;;  %v4825_v41 = vadd.f32 %v4824_v40, %v4814_v3  ;;  %v4830_v59 = vadd.f32 %v4818_v55, %v4817_v25  ;;  %v14533_v14 = vsub.f32 %v14373_v34, %v14398_v15  ;;  %v4820_v19 = vmul.f32 %v14515_v31, %v14515_v31  ;;  %v12536_v34 = vld [vmem:[#allocation13 + $0xc4] ss:$12 sps:$4 sm:$0xff]   ;;  %v12546_v27 = vld [vmem:[#allocation13 + $0xf4] ss:$12 sps:$4 sm:$0xff]  }
 0x922   :  { %v4808_v1 = vadd.f32 %v4807_v33, %v4796_v47  ;;  %v4821_v39 = vmul.f32 %v14525_v60, %v14525_v60  ;;  %v12538_v47 = vld [vmem:[#allocation13 + $0x8] ss:$12 sps:$4 sm:$0xff]   ;;  %6426 = vmatprep.subr.bf16.mxu1 %v12536_v34  ;;  %11411 = vmatprep.subr.bf16.mxu0 %v12537_v53  ;;  %v12544_v36 = vld [vmem:[#allocation13 + $0xf0] ss:$12 sps:$4 sm:$0xff]   ;;  %v12548_v3 = vld [vmem:[#allocation13 + $0x38] ss:$12 sps:$4 sm:$0xff]  }
 0x923   :  { %v4826_v46 = vadd.f32 %v4825_v41, %v4815_v7  ;;  %v4831_v22 = vadd.f32 %v4830_v59, %v4819_v29  ;;  %v4822_v32 = vmul.f32 %v14533_v14, %v14533_v14  ;;  %11412 = vmatpush3.bf16.msra.mxu0 %v12538_v47  ;;  %v12551_v33 = vld [vmem:[#allocation13 + $0x10c] ss:$12 sps:$4 sm:$0xff]   ;;  %v12552_v40 = vld [vmem:[#allocation13 + $0x110] ss:$12 sps:$4 sm:$0xff]   ;;  %v12549_v25 = vld [vmem:[#allocation13 + $0x108] ss:$12 sps:$4 sm:$0xff]  }
 0x924   :  { %4809 = vadd.xlane.f32.xlu1 %v4808_v1  ;;  %6427 = vmatpush1.bf16.msra.mxu1 %v12534_v23  ;;  %v12553_v55 = vld [vmem:[#allocation13 + $0x50] ss:$12 sps:$4 sm:$0xff]   ;;  %v12557_v1 = vld [vmem:[#allocation13 + $0x128] ss:$12 sps:$4 sm:$0xff]   ;;  %v12554_v41 = vld [vmem:[#allocation13 + $0x120] ss:$12 sps:$4 sm:$0xff]  }
 0x925   :  { %v4827_v2 = vadd.f32 %v4826_v46, %v4816_v57  ;;  %v4832_v8 = vadd.f32 %v4831_v22, %v4820_v19  ;;  %6428 = vmatprep.subr.bf16.mxu1 %v12541_v26  ;;  %11413 = vmatprep.subr.bf16.mxu0 %v12542_v43  ;;  %v12556_v7 = vld [vmem:[#allocation13 + $0x124] ss:$12 sps:$4 sm:$0xff]   ;;  %v12558_v29 = vld [vmem:[#allocation13 + $0x68] ss:$12 sps:$4 sm:$0xff]   ;;  %v12562_v57 = vld [vmem:[#allocation13 + $0x140] ss:$12 sps:$4 sm:$0xff]  }
 0x926   :  { %v12561_v59 = vld [vmem:[#allocation13 + $0x13c] ss:$12 sps:$4 sm:$0xff]   ;;  %v12559_v46 = vld [vmem:[#allocation13 + $0x138] ss:$12 sps:$4 sm:$0xff]   ;;  %v12563_v19 = vld [vmem:[#allocation13 + $0x80] ss:$12 sps:$4 sm:$0xff]  }
 0x927   :  { %4828 = vadd.xlane.f32.xlu0 %v4827_v2  ;;  %v4833_v49 = vadd.f32 %v4832_v8, %v4821_v39  ;;  %11414 = vmatpush3.bf16.msra.mxu0 %v12543_v48  ;;  %v12566_v22 = vld [vmem:[#allocation13 + $0x154] ss:$12 sps:$4 sm:$0xff]   ;;  %v12567_v2 = vld [vmem:[#allocation13 + $0x158] ss:$12 sps:$4 sm:$0xff]   ;;  %v12564_v39 = vld [vmem:[#allocation13 + $0x150] ss:$12 sps:$4 sm:$0xff]  }
 0x928   :  { %6429 = vmatpush1.bf16.msra.mxu1 %v12539_v62  ;;  %11415 = vmatprep.subr.bf16.mxu0 %v12547_v44  ;;  %v12568_v8 = vld [vmem:[#allocation13 + $0x98] ss:$12 sps:$4 sm:$0xff]   ;;  %v12577_v34 = vld [vmem:[#allocation13 + $0x248] ss:$12 sps:$4 sm:$0xff]   ;;  %v13724_v53 = vmov 0.0   ;;  %v4839_v47 = vmul.f32 336.0, %v14396_v18 }
 0x929   :  { %v4834_v52 = vadd.f32 %v4833_v49, %v4822_v32  ;;  %6430 = vmatprep.subr.bf16.mxu1 %v12546_v27  ;;  %v12571_v32 = vld [vmem:[#allocation13 + $0x16c] ss:$12 sps:$4 sm:$0xff]   ;;  %v12572_v49 = vld [vmem:[#allocation13 + $0x170] ss:$12 sps:$4 sm:$0xff]   ;;  %7050 = vst [vmem:[#allocation4] sm:$0xff] %v13724_v53  ;;  %7051 = vst [vmem:[#allocation4 + $0x8] sm:$0xff] %v13724_v53 }
 0x92a   :  { %v12576_v24 = vld [vmem:[#allocation13 + $0x184] ss:$12 sps:$4 sm:$0xff]   ;;  %7052 = vst [vmem:[#allocation4 + $0x10] sm:$0xff] %v13724_v53  ;;  %7053 = vst [vmem:[#allocation4 + $0x18] sm:$0xff] %v13724_v53  ;;  %v4841_v62 = vmul.f32 %v4839_v47, %v14396_v18  ;;  %v4840_v27 = vmul.f32 336.0, %v14398_v15 }
 0x92b   :  { %4835 = vadd.xlane.f32.xlu1 %v4834_v52  ;;  %11416 = vmatpush3.bf16.msra.mxu0 %v12548_v3  ;;  %v12569_v52 = vld [vmem:[#allocation13 + $0x168] ss:$12 sps:$4 sm:$0xff]   ;;  %7054 = vst [vmem:[#allocation4 + $0x20] sm:$0xff] %v13724_v53  ;;  %7055 = vst [vmem:[#allocation4 + $0x28] sm:$0xff] %v13724_v53 }
 0x92c   :  { %6431 = vmatpush1.bf16.msra.mxu1 %v12544_v36  ;;  %11417 = vmatprep.subr.bf16.mxu0 %v12552_v40  ;;  %7056 = vst [vmem:[#allocation4 + $0x30] sm:$0xff] %v13724_v53  ;;  %7057 = vst [vmem:[#allocation4 + $0x38] sm:$0xff] %v13724_v53 }
 0x92d   :  { %6432 = vmatprep.subr.bf16.mxu1 %v12551_v33  ;;  %7058 = vst [vmem:[#allocation4 + $0x40] sm:$0xff] %v13724_v53  ;;  %7059 = vst [vmem:[#allocation4 + $0x48] sm:$0xff] %v13724_v53  ;;  %v4842_v33 = vmul.f32 %v4840_v27, %v14398_v15  ;;  %v12584_v27 = vld [vmem:[#allocation13 + $0x1b0] ss:$12 sps:$4 sm:$0xff]  }
 0x92e   :  { %7060 = vst [vmem:[#allocation4 + $0x50] sm:$0xff] %v13724_v53  ;;  %7061 = vst [vmem:[#allocation4 + $0x58] sm:$0xff] %v13724_v53  ;;  %v12579_v53 = vld [vmem:[#allocation13 + $0x198] ss:$12 sps:$4 sm:$0xff]  }
 0x92f   :  { %11418 = vmatpush3.bf16.msra.mxu0 %v12553_v55 }
 0x930   :  { %6433 = vmatpush1.bf16.msra.mxu1 %v12549_v25  ;;  %11419 = vmatprep.subr.bf16.mxu0 %v12557_v1 }
 0x931   :  { %6434 = vmatprep.subr.bf16.mxu1 %v12556_v7 }
 0x933   :  { %11420 = vmatpush3.bf16.msra.mxu0 %v12558_v29 }
 0x934   :  { %6435 = vmatpush1.bf16.msra.mxu1 %v12554_v41  ;;  %11421 = vmatprep.subr.bf16.mxu0 %v12562_v57 }
 0x935   :  { %6436 = vmatprep.subr.bf16.mxu1 %v12561_v59 }
 0x937   :  { %11422 = vmatpush3.bf16.msra.mxu0 %v12563_v19 }
 0x938   :  { %6437 = vmatpush1.bf16.msra.mxu1 %v12559_v46  ;;  %11423 = vmatprep.subr.bf16.mxu0 %v12567_v2 }
 0x939   :  { %6438 = vmatprep.subr.bf16.mxu1 %v12566_v22 }
 0x93b   :  { %11424 = vmatpush3.bf16.msra.mxu0 %v12568_v8 }
 0x93c   :  { %6439 = vmatpush1.bf16.msra.mxu1 %v12564_v39  ;;  %11425 = vmatprep.subr.bf16.mxu0 %v12572_v49 }
 0x93d   :  { %6440 = vmatprep.subr.bf16.mxu1 %v12571_v32 }
 0x93f   :  { %11426 = vmatpush3.bf16.msra.mxu0 %v12573_v17 }
 0x940   :  { %6441 = vmatpush1.bf16.msra.mxu1 %v12569_v52  ;;  %11439 = vmatprep.subr.bf16.mxu0 %v12577_v34 }
 0x941   :  { %6463 = vmatprep.subr.bf16.mxu1 %v12576_v24 }
 0x9ae   :  { %v4803_v23 = vpop.xlane.xlu0 %4802 }
 0x9b1   :  { %v4810_v26 = vpop.xlane.xlu1 %4809 }
 0x9b4   :  { %v4829_v43 = vpop.xlane.xlu0 %4828 }
 0x9b5   :  { %v4837_v48 = vadd.f32 %v4829_v43, %v4803_v23  ;;  %v12583_v23 = vld [vmem:[#allocation13 + $0x1a0] ss:$12 sps:$4 sm:$0xff]  }
 0x9b7   :  { %v4843_v44 = vsub.f32 %v4837_v48, %v4841_v62  ;;  %v14794_v62 = vlaneseq }
 0x9b8   :  { %v4836_v36 = vpop.xlane.xlu1 %4835 }
 0x9b9   :  { %v4845_v3 = vmul.f32 0.00083333335, %v4843_v44  ;;  %v4838_v40 = vadd.f32 %v4836_v36, %v4810_v26  ;;  %vm7071_vm1 = vcmp.lt.s32.totalorder %v14794_v62, 512  ;;  %v12588_v44 = vld [vmem:[#allocation13 + $0x1b8] ss:$12 sps:$4 sm:$0xff]  }
 0x9ba   :  { %v12591_v36 = vld [vmem:[#allocation13 + $0x1cc] ss:$12 sps:$4 sm:$0xff]  }
 0x9bb   :  { %v4847_v25 = vadd.f32 1e-05, %v4845_v3  ;;  %v4844_v55 = vsub.f32 %v4838_v40, %v4842_v33  ;;  %v12592_v3 = vld [vmem:[#allocation13 + $0x290] ss:$12 sps:$4 sm:$0xff]   ;;  %v12589_v33 = vld [vmem:[#allocation13 + $0x1c8] ss:$12 sps:$4 sm:$0xff]  }
 0x9bc   :  { %v12593_v40 = vld [vmem:[#allocation13 + $0x1d0] ss:$12 sps:$4 sm:$0xff]   ;;  %v12647_v62 = vld [vmem:[#allocation13 + $0x458] ss:$12 sps:$4 sm:$0xff]  }
 0x9bd   :  { %13438 = vrsqrt.f32 %v4847_v25  ;;  %v4846_v7 = vmul.f32 0.00083333335, %v4844_v55  ;;  %v12596_v25 = vld [vmem:[#allocation13 + $0x1e4] ss:$12 sps:$4 sm:$0xff]   ;;  %v12597_v55 = vld [vmem:[#allocation13 + $0x2a8] ss:$12 sps:$4 sm:$0xff]  }
 0x9bf   :  { %v4848_v1 = vadd.f32 1e-05, %v4846_v7  ;;  %v12594_v7 = vld [vmem:[#allocation13 + $0x1e0] ss:$12 sps:$4 sm:$0xff]  }
 0x9c1   :  { %13440 = vrsqrt.f32 %v4848_v1  ;;  %v12598_v1 = vld [vmem:[#allocation13 + $0x1e8] ss:$12 sps:$4 sm:$0xff]  }
 0x9c7   :  { %v13439_v41 = vpop.eup %13438 }
 0x9c8   :  { %v4852_v29 = vmul.f32 %v13439_v41, %v14406_v21  ;;  %v4851_v18 = vmul.f32 %v13439_v41, %v14402_v16  ;;  %v4876_v59 = vmul.f32 %v13439_v41, %v14461_v61  ;;  %v4875_v57 = vmul.f32 %v13439_v41, %v14437_v20 }
 0x9c9   :  { %v4854_v46 = vmul.f32 %v13439_v41, %v14413_v28  ;;  %v4853_v15 = vmul.f32 %v13439_v41, %v14410_v9  ;;  %v4878_v19 = vmul.f32 %v13439_v41, %v14479_v5  ;;  %v4877_v22 = vmul.f32 %v13439_v41, %v14473_v54 }
 0x9ca   :  { %4864 = vst [vmem:[#allocation2 + $0x20] sm:$0xff] %v4852_v29  ;;  %4863 = vst [vmem:[#allocation2 + $0x18] sm:$0xff] %v4851_v18  ;;  %v4856_v21 = vmul.f32 %v13439_v41, %v14427_v30  ;;  %v4855_v16 = vmul.f32 %v13439_v41, %v14416_v56  ;;  %v4880_v61 = vmul.f32 %v13439_v41, %v14509_v51 }
 0x9cb   :  { %4888 = vst [vmem:[#allocation2 + $0xe0] sm:$0xff] %v4876_v59  ;;  %4887 = vst [vmem:[#allocation2 + $0xd8] sm:$0xff] %v4875_v57  ;;  %v4879_v20 = vmul.f32 %v13439_v41, %v14491_v58  ;;  %v13441_v2 = vpop.eup %13440  ;;  %v12601_v41 = vld [vmem:[#allocation13 + $0x1fc] ss:$12 sps:$4 sm:$0xff]  }
 0x9cc   :  { %4866 = vst [vmem:[#allocation2 + $0x30] sm:$0xff] %v4854_v46  ;;  %4865 = vst [vmem:[#allocation2 + $0x28] sm:$0xff] %v4853_v15  ;;  %v4858_v9 = vmul.f32 %v13441_v2, %v14433_v42  ;;  %v4857_v28 = vmul.f32 %v13441_v2, %v14424_v6  ;;  %v4882_v54 = vmul.f32 %v13441_v2, %v14501_v11  ;;  %v12574_v42 = vld [vmem:[#allocation13 + $0x180] ss:$12 sps:$4 sm:$0xff]   ;;  %v12578_v6 = vld [vmem:[#allocation13 + $0x188] ss:$12 sps:$4 sm:$0xff]  }
 0x9cd   :  { %4890 = vst [vmem:[#allocation2 + $0xf0] sm:$0xff] %v4878_v19  ;;  %4889 = vst [vmem:[#allocation2 + $0xe8] sm:$0xff] %v4877_v22  ;;  %v4881_v5 = vmul.f32 %v13441_v2, %v14497_v4  ;;  %v4860_v56 = vmul.f32 %v13441_v2, %v14445_v10  ;;  %v4859_v30 = vmul.f32 %v13441_v2, %v14441_v12  ;;  %v12581_v12 = vld [vmem:[#allocation13 + $0x19c] ss:$12 sps:$4 sm:$0xff]   ;;  %v12582_v10 = vld [vmem:[#allocation13 + $0x260] ss:$12 sps:$4 sm:$0xff]  }
 0x9ce   :  { %4868 = vst [vmem:[#allocation2 + $0x40] sm:$0xff] %v4856_v21  ;;  %4867 = vst [vmem:[#allocation2 + $0x38] sm:$0xff] %v4855_v16  ;;  %v4884_v58 = vmul.f32 %v13441_v2, %v14515_v31  ;;  %v4883_v51 = vmul.f32 %v13441_v2, %v14505_v63  ;;  %v4936_v39 = vpack.c.bf16 %v4858_v9, %v4852_v29  ;;  %v12602_v29 = vld [vmem:[#allocation13 + $0x2c0] ss:$12 sps:$4 sm:$0xff]  }
 0x9cf   :  { %4892 = vst [vmem:[#allocation2 + $0x100] sm:$0xff] %v4880_v61  ;;  %4891 = vst [vmem:[#allocation2 + $0xf8] sm:$0xff] %v4879_v20  ;;  %v4935_v8 = vpack.c.bf16 %v4857_v28, %v4851_v18  ;;  %v4945_v32 = vpack.c.bf16 %v4882_v54, %v4876_v59  ;;  %v4944_v11 = vpack.c.bf16 %v4881_v5, %v4875_v57  ;;  %v12599_v18 = vld [vmem:[#allocation13 + $0x1f8] ss:$12 sps:$4 sm:$0xff]   ;;  %v12603_v59 = vld [vmem:[#allocation13 + $0x200] ss:$12 sps:$4 sm:$0xff]  }
 0x9d0   :  { %v4938_v49 = vpack.c.bf16 %v4860_v56, %v4854_v46  ;;  %v14565_v4 = vpack.c.bf16 %v4859_v30, %v4853_v15  ;;  %v14567_v52 = vpack.c.bf16 %v4884_v58, %v4878_v19  ;;  %v14569_v17 = vpack.c.bf16 %v4883_v51, %v4877_v22  ;;  %6442 = vmatprep.mubr.bf16.mxu1 %v4936_v39  ;;  %v12606_v57 = vld [vmem:[#allocation13 + $0x214] ss:$12 sps:$4 sm:$0xff]   ;;  %v12607_v46 = vld [vmem:[#allocation13 + $0x2d8] ss:$12 sps:$4 sm:$0xff]   ;;  %v12604_v15 = vld [vmem:[#allocation13 + $0x210] ss:$12 sps:$4 sm:$0xff]  }
 0x9d1   :  { %6707 = vmatprep.mubr.bf16.mxu0 %v4936_v39  ;;  %v4862_v31 = vmul.f32 %v13441_v2, %v14453_v13  ;;  %v4861_v63 = vmul.f32 %v13441_v2, %v14449_v50  ;;  %v4886_v24 = vmul.f32 %v13441_v2, %v14533_v14  ;;  %6443 = vmatmul.mubr.bf16.vlgmr.msra.gmra.mrb[76].mxu1 %v4935_v8  ;;  %v12586_v50 = vld [vmem:[#allocation13 + $0x1b4] ss:$12 sps:$4 sm:$0xff]   ;;  %v12587_v13 = vld [vmem:[#allocation13 + $0x278] ss:$12 sps:$4 sm:$0xff]   ;;  %v12621_v54 = vld [vmem:[#allocation13 + $0x25c] ss:$12 sps:$4 sm:$0xff]  }
 0x9d2   :  { %6708 = vmatmul.mubr.bf16.vlgmr.msra.gmra.mrb[56].mxu0 %v4935_v8  ;;  %v4885_v34 = vmul.f32 %v13441_v2, %v14525_v60  ;;  %6464 = vmatpush1.bf16.msra.mxu1 %v12574_v42  ;;  %v12608_v19 = vld [vmem:[#allocation13 + $0x218] ss:$12 sps:$4 sm:$0xff]   ;;  %v12617_v2 = vld [vmem:[#allocation13 + $0x3c8] ss:$12 sps:$4 sm:$0xff]   ;;  %v12614_v9 = vld [vmem:[#allocation13 + $0x240] ss:$12 sps:$4 sm:$0xff]  }
 0x9d3   :  { %11440 = vmatpush3.bf16.msra.mxu0 %v12578_v6  ;;  %v14575_v47 = vpack.c.bf16 %v4862_v31, %v4856_v21  ;;  %v14577_v26 = vpack.c.bf16 %v4861_v63, %v4855_v16  ;;  %v14579_v43 = vpack.c.bf16 %v4886_v24, %v4880_v61  ;;  %6452 = vmatprep.mubr.bf16.mxu1 %v4945_v32  ;;  %v12611_v22 = vld [vmem:[#allocation13 + $0x22c] ss:$12 sps:$4 sm:$0xff]   ;;  %v12612_v21 = vld [vmem:[#allocation13 + $0x2f0] ss:$12 sps:$4 sm:$0xff]   ;;  %v12609_v16 = vld [vmem:[#allocation13 + $0x228] ss:$12 sps:$4 sm:$0xff]  }
 0x9d4   :  { %6715 = vmatprep.mubr.bf16.mxu0 %v4945_v32  ;;  %v14582_v14 = vpack.c.bf16 %v4885_v34, %v4879_v20  ;;  %6465 = vmatprep.subr.bf16.mxu1 %v12581_v12  ;;  %v12613_v61 = vld [vmem:[#allocation13 + $0x230] ss:$12 sps:$4 sm:$0xff]   ;;  %v12618_v28 = vld [vmem:[#allocation13 + $0x308] ss:$12 sps:$4 sm:$0xff]   ;;  %v12622_v5 = vld [vmem:[#allocation13 + $0x3e0] ss:$12 sps:$4 sm:$0xff]  }
 0x9d5   :  { %11441 = vmatprep.subr.bf16.mxu0 %v12582_v10  ;;  %v7066_v60 = vld [vmem:[#allocation2 + $0x40] ss:$8 sm:$0xf] }
 0x9d6   :  { %v7081_v48 = vld [vmem:[#allocation2 + $0x100] ss:$8 sm:$0xf]  ;;  %6466 = vmatpush1.bf16.msra.mxu1 %v12579_v53  ;;  %7074 = vst.msk [vmem:[#allocation4 + $0x40] ss:$8 sm:$0xf] %vm7071_vm1, %v7066_v60 }
 0x9d7   :  { %11442 = vmatpush3.bf16.msra.mxu0 %v12583_v23  ;;  %7086 = vst.msk [vmem:[#allocation4 + $0x41] ss:$8 sm:$0xf] %vm7071_vm1, %v7081_v48  ;;  %6467 = vmatprep.subr.bf16.mxu1 %v12586_v50  ;;  %v12616_v20 = vld [vmem:[#allocation13 + $0x244] ss:$12 sps:$4 sm:$0xff]  }
 0x9d8   :  { %11443 = vmatprep.subr.bf16.mxu0 %v12587_v13  ;;  %v12619_v56 = vld [vmem:[#allocation13 + $0x258] ss:$12 sps:$4 sm:$0xff]   ;;  %v12623_v30 = vld [vmem:[#allocation13 + $0x320] ss:$12 sps:$4 sm:$0xff]   ;;  %v12624_v39 = vld [vmem:[#allocation13 + $0x270] ss:$12 sps:$4 sm:$0xff]  }
 0x9d9   :  { %6453 = vmatmul.mubr.bf16.gmra.mrb[80].mxu1 %v4944_v11  ;;  %v12626_v58 = vld [vmem:[#allocation13 + $0x274] ss:$12 sps:$4 sm:$0xff]   ;;  %v12627_v51 = vld [vmem:[#allocation13 + $0x3f8] ss:$12 sps:$4 sm:$0xff]   ;;  %v12632_v6 = vld [vmem:[#allocation13 + $0x410] ss:$12 sps:$4 sm:$0xff]  }
 0x9da   :  { %6716 = vmatmul.mubr.bf16.gmra.mrb[60].mxu0 %v4944_v11  ;;  %6468 = vmatpush1.bf16.msra.mxu1 %v12584_v27  ;;  %v12628_v42 = vld [vmem:[#allocation13 + $0x338] ss:$12 sps:$4 sm:$0xff]   ;;  %v12629_v32 = vld [vmem:[#allocation13 + $0x288] ss:$12 sps:$4 sm:$0xff]   ;;  %v12633_v11 = vld [vmem:[#allocation13 + $0x350] ss:$12 sps:$4 sm:$0xff]  }
 0x9db   :  { %11444 = vmatpush3.bf16.msra.mxu0 %v12588_v44  ;;  %6495 = vmatprep.mubr.bf16.mxu1 %v4938_v49  ;;  %v12631_v8 = vld [vmem:[#allocation13 + $0x28c] ss:$12 sps:$4 sm:$0xff]   ;;  %v12637_v12 = vld [vmem:[#allocation13 + $0x428] ss:$12 sps:$4 sm:$0xff]   ;;  %v12644_v50 = vld [vmem:[#allocation13 + $0x2d0] ss:$12 sps:$4 sm:$0xff]  }
 0x9dc   :  { %6756 = vmatprep.mubr.bf16.mxu0 %v4938_v49  ;;  %6469 = vmatprep.subr.bf16.mxu1 %v12591_v36  ;;  %v12636_v49 = vld [vmem:[#allocation13 + $0x2a4] ss:$12 sps:$4 sm:$0xff]   ;;  %v12634_v10 = vld [vmem:[#allocation13 + $0x2a0] ss:$12 sps:$4 sm:$0xff]   ;;  %v12638_v31 = vld [vmem:[#allocation13 + $0x368] ss:$12 sps:$4 sm:$0xff]  }
 0x9dd   :  { %11445 = vmatprep.subr.bf16.mxu0 %v12592_v3  ;;  %v12641_v63 = vld [vmem:[#allocation13 + $0x2bc] ss:$12 sps:$4 sm:$0xff]   ;;  %v12642_v24 = vld [vmem:[#allocation13 + $0x440] ss:$12 sps:$4 sm:$0xff]   ;;  %v12639_v34 = vld [vmem:[#allocation13 + $0x2b8] ss:$12 sps:$4 sm:$0xff]  }
 0x9de   :  { %6470 = vmatpush1.bf16.msra.mxu1 %v12589_v33  ;;  %v12643_v53 = vld [vmem:[#allocation13 + $0x380] ss:$12 sps:$4 sm:$0xff]   ;;  %v12648_v13 = vld [vmem:[#allocation13 + $0x398] ss:$12 sps:$4 sm:$0xff]   ;;  %v12652_v48 = vld [vmem:[#allocation13 + $0x470] ss:$12 sps:$4 sm:$0xff]  }
 0x9df   :  { %11446 = vmatpush3.bf16.msra.mxu0 %v12593_v40  ;;  %6471 = vmatprep.subr.bf16.mxu1 %v12596_v25  ;;  %v12646_v23 = vld [vmem:[#allocation13 + $0x2d4] ss:$12 sps:$4 sm:$0xff]   ;;  %v12651_v60 = vld [vmem:[#allocation13 + $0x2ec] ss:$12 sps:$4 sm:$0xff]   ;;  %v12653_v44 = vld [vmem:[#allocation13 + $0x3b0] ss:$12 sps:$4 sm:$0xff]  }
 0x9e0   :  { %11447 = vmatprep.subr.bf16.mxu0 %v12597_v55  ;;  %v12649_v27 = vld [vmem:[#allocation13 + $0x2e8] ss:$12 sps:$4 sm:$0xff]   ;;  %v12656_v36 = vld [vmem:[#allocation13 + $0x304] ss:$12 sps:$4 sm:$0xff]   ;;  %v12654_v33 = vld [vmem:[#allocation13 + $0x300] ss:$12 sps:$4 sm:$0xff]  }
 0x9e1   :  { %v12657_v3 = vld [vmem:[#allocation13 + $0x548] ss:$12 sps:$4 sm:$0xff]   ;;  %v12662_v55 = vld [vmem:[#allocation13 + $0x560] ss:$12 sps:$4 sm:$0xff]  }
 0x9e2   :  { %6472 = vmatpush1.bf16.msra.mxu1 %v12594_v7  ;;  %v12658_v40 = vld [vmem:[#allocation13 + $0x488] ss:$12 sps:$4 sm:$0xff]   ;;  %v12659_v7 = vld [vmem:[#allocation13 + $0x318] ss:$12 sps:$4 sm:$0xff]  }
 0x9e3   :  { %11448 = vmatpush3.bf16.msra.mxu0 %v12598_v1  ;;  %6473 = vmatprep.subr.bf16.mxu1 %v12601_v41  ;;  %v12661_v25 = vld [vmem:[#allocation13 + $0x31c] ss:$12 sps:$4 sm:$0xff]   ;;  %v12663_v1 = vld [vmem:[#allocation13 + $0x4a0] ss:$12 sps:$4 sm:$0xff]  }
 0x9e4   :  { %11449 = vmatprep.subr.bf16.mxu0 %v12602_v29  ;;  %v12666_v41 = vld [vmem:[#allocation13 + $0x334] ss:$12 sps:$4 sm:$0xff]   ;;  %v12667_v29 = vld [vmem:[#allocation13 + $0x578] ss:$12 sps:$4 sm:$0xff]  }
 0x9e6   :  { %6474 = vmatpush1.bf16.msra.mxu1 %v12599_v18  ;;  %v4915_v18 = vld [vmem:[#allocation2 + $0xb0] sm:$0xff] }
 0x9e7   :  { %11450 = vmatpush3.bf16.msra.mxu0 %v12603_v59  ;;  %6475 = vmatprep.subr.bf16.mxu1 %v12606_v57  ;;  %v12664_v59 = vld [vmem:[#allocation13 + $0x330] ss:$12 sps:$4 sm:$0xff]  }
 0x9e8   :  { %11451 = vmatprep.subr.bf16.mxu0 %v12607_v46  ;;  %v4906_v57 = vld [vmem:[#allocation2 + $0x50] sm:$0xff] }
 0x9e9   :  { %v12671_v46 = vld [vmem:[#allocation13 + $0x34c] ss:$12 sps:$4 sm:$0xff]  }
 0x9ea   :  { %6476 = vmatpush1.bf16.msra.mxu1 %v12604_v15  ;;  %v12672_v15 = vld [vmem:[#allocation13 + $0x590] ss:$12 sps:$4 sm:$0xff]  }
 0x9eb   :  { %11452 = vmatpush3.bf16.msra.mxu0 %v12608_v19  ;;  %6477 = vmatprep.subr.bf16.mxu1 %v12611_v22  ;;  %v12669_v19 = vld [vmem:[#allocation13 + $0x348] ss:$12 sps:$4 sm:$0xff]   ;;  %v12673_v22 = vld [vmem:[#allocation13 + $0x4d0] ss:$12 sps:$4 sm:$0xff]  }
 0x9ec   :  { %11453 = vmatprep.subr.bf16.mxu0 %v12612_v21  ;;  %v12676_v21 = vld [vmem:[#allocation13 + $0x364] ss:$12 sps:$4 sm:$0xff]  }
 0x9ee   :  { %6478 = vmatpush1.bf16.msra.mxu1 %v12609_v16  ;;  %v12677_v16 = vld [vmem:[#allocation13 + $0x5a8] ss:$12 sps:$4 sm:$0xff]  }
 0x9ef   :  { %11454 = vmatpush3.bf16.msra.mxu0 %v12613_v61  ;;  %6479 = vmatprep.subr.bf16.mxu1 %v12616_v20  ;;  %v12678_v61 = vld [vmem:[#allocation13 + $0x4e8] ss:$12 sps:$4 sm:$0xff]  }
 0x9f0   :  { %11467 = vmatprep.subr.bf16.mxu0 %v12617_v2  ;;  %v12681_v20 = vld [vmem:[#allocation13 + $0x37c] ss:$12 sps:$4 sm:$0xff]   ;;  %v12682_v2 = vld [vmem:[#allocation13 + $0x5c0] ss:$12 sps:$4 sm:$0xff]  }
 0x9f2   :  { %6757 = vmatmul.mubr.bf16.vlgmr.msra.gmra.mrb[64].mxu0 %v14565_v4  ;;  %6480 = vmatpush1.bf16.msra.mxu1 %v12614_v9  ;;  %v12683_v9 = vld [vmem:[#allocation13 + $0x500] ss:$12 sps:$4 sm:$0xff]  }
 0x9f3   :  { %6764 = vmatprep.mubr.bf16.mxu0 %v14567_v52  ;;  %11468 = vmatpush3.bf16.msra.mxu0 %v12618_v28  ;;  %v12686_v28 = vld [vmem:[#allocation13 + $0x394] ss:$12 sps:$4 sm:$0xff]  }
 0x9f4   :  { %6481 = vmatprep.subr.bf16.mxu1 %v12621_v54  ;;  %11469 = vmatprep.subr.bf16.mxu0 %v12622_v5  ;;  %v12687_v54 = vld [vmem:[#allocation13 + $0x5d8] ss:$12 sps:$4 sm:$0xff]   ;;  %v12684_v5 = vld [vmem:[#allocation13 + $0x390] ss:$12 sps:$4 sm:$0xff]  }
 0x9f6   :  { %6482 = vmatpush1.bf16.msra.mxu1 %v12619_v56  ;;  %v12688_v56 = vld [vmem:[#allocation13 + $0x518] ss:$12 sps:$4 sm:$0xff]  }
 0x9f7   :  { %11470 = vmatpush3.bf16.msra.mxu0 %v12623_v30  ;;  %6483 = vmatprep.subr.bf16.mxu1 %v12626_v58  ;;  %v12691_v30 = vld [vmem:[#allocation13 + $0x3ac] ss:$12 sps:$4 sm:$0xff]   ;;  %v12692_v58 = vld [vmem:[#allocation13 + $0x5f0] ss:$12 sps:$4 sm:$0xff]  }
 0x9f8   :  { %11471 = vmatprep.subr.bf16.mxu0 %v12627_v51  ;;  %v12689_v51 = vld [vmem:[#allocation13 + $0x3a8] ss:$12 sps:$4 sm:$0xff]  }
 0x9fa   :  { %6765 = vmatmul.mubr.bf16.gmra.mrb[68].mxu0 %v14569_v17  ;;  %6484 = vmatpush1.bf16.msra.mxu1 %v12624_v39  ;;  %v12693_v39 = vld [vmem:[#allocation13 + $0x530] ss:$12 sps:$4 sm:$0xff]  }
 0x9fb   :  { %6805 = vmatprep.mubr.bf16.mxu0 %v14575_v47  ;;  %11472 = vmatpush3.bf16.msra.mxu0 %v12628_v42  ;;  %v12696_v42 = vld [vmem:[#allocation13 + $0x3c4] ss:$12 sps:$4 sm:$0xff]  }
 0x9fc   :  { %6485 = vmatprep.subr.bf16.mxu1 %v12631_v8  ;;  %11473 = vmatprep.subr.bf16.mxu0 %v12632_v6  ;;  %v12697_v8 = vld [vmem:[#allocation13 + $0x608] ss:$12 sps:$4 sm:$0xff]  }
 0x9fd   :  { %v4914_v6 = vld [vmem:[#allocation2 + $0xa8] sm:$0xff] }
 0x9fe   :  { %6486 = vmatpush1.bf16.msra.mxu1 %v12629_v32  ;;  %v12694_v32 = vld [vmem:[#allocation13 + $0x3c0] ss:$12 sps:$4 sm:$0xff]  }
 0x9ff   :  { %11474 = vmatpush3.bf16.msra.mxu0 %v12633_v11  ;;  %6487 = vmatprep.subr.bf16.mxu1 %v12636_v49  ;;  %v4924_v11 = vld [vmem:[#allocation2 + $0x110] sm:$0xff] }
 0xa00   :  { %11475 = vmatprep.subr.bf16.mxu0 %v12637_v12  ;;  %v4933_v49 = vld [vmem:[#allocation2 + $0x170] sm:$0xff]  ;;  %v4905_v12 = vld [vmem:[#allocation2 + $0x48] sm:$0xff] }
 0xa02   :  { %6488 = vmatpush1.bf16.msra.mxu1 %v12634_v10  ;;  %v14598_v10 = vpack.c.bf16 %v4914_v6, %v4905_v12  ;;  %v12761_v6 = vld [vmem:[#allocation13 + $0x58c] ss:$12 sps:$4 sm:$0xff]   ;;  %v12767_v12 = vld [vmem:[#allocation13 + $0x5bc] ss:$12 sps:$4 sm:$0xff]  }
 0xa03   :  { %11476 = vmatpush3.bf16.msra.mxu0 %v12638_v31  ;;  %6489 = vmatprep.subr.bf16.mxu1 %v12641_v63  ;;  %v12700_v31 = vld [vmem:[#allocation13 + $0x3dc] ss:$12 sps:$4 sm:$0xff]   ;;  %v12701_v63 = vld [vmem:[#allocation13 + $0x620] ss:$12 sps:$4 sm:$0xff]  }
 0xa04   :  { %11477 = vmatprep.subr.bf16.mxu0 %v12642_v24  ;;  %v14600_v24 = vpack.c.bf16 %v4933_v49, %v4924_v11  ;;  %v12764_v11 = vld [vmem:[#allocation13 + $0x5a4] ss:$12 sps:$4 sm:$0xff]   ;;  %v12762_v49 = vld [vmem:[#allocation13 + $0x5a0] ss:$12 sps:$4 sm:$0xff]  }
 0xa06   :  { %6490 = vmatpush1.bf16.msra.mxu1 %v12639_v34  ;;  %v12698_v34 = vld [vmem:[#allocation13 + $0x3d8] ss:$12 sps:$4 sm:$0xff]  }
 0xa07   :  { %11478 = vmatpush3.bf16.msra.mxu0 %v12643_v53  ;;  %6491 = vmatprep.subr.bf16.mxu1 %v12646_v23  ;;  %v12704_v53 = vld [vmem:[#allocation13 + $0x3f4] ss:$12 sps:$4 sm:$0xff]   ;;  %v12705_v23 = vld [vmem:[#allocation13 + $0x638] ss:$12 sps:$4 sm:$0xff]  }
 0xa08   :  { %11479 = vmatprep.subr.bf16.mxu0 %v12647_v62  ;;  %v4923_v62 = vld [vmem:[#allocation2 + $0x108] sm:$0xff] }
 0xa0a   :  { %6492 = vmatpush1.bf16.msra.mxu1 %v12644_v50  ;;  %v4932_v50 = vld [vmem:[#allocation2 + $0x168] sm:$0xff] }
 0xa0b   :  { %11480 = vmatpush3.bf16.msra.mxu0 %v12648_v13  ;;  %6493 = vmatprep.subr.bf16.mxu1 %v12651_v60  ;;  %v12702_v13 = vld [vmem:[#allocation13 + $0x3f0] ss:$12 sps:$4 sm:$0xff]   ;;  %v4916_v60 = vld [vmem:[#allocation2 + $0xb8] sm:$0xff] }
 0xa0c   :  { %11481 = vmatprep.subr.bf16.mxu0 %v12652_v48  ;;  %v14604_v48 = vpack.c.bf16 %v4932_v50, %v4923_v62  ;;  %v12776_v62 = vld [vmem:[#allocation13 + $0x604] ss:$12 sps:$4 sm:$0xff]   ;;  %v12774_v50 = vld [vmem:[#allocation13 + $0x600] ss:$12 sps:$4 sm:$0xff]  }
 0xa0e   :  { %6494 = vmatpush1.bf16.msra.mxu1 %v12649_v27  ;;  %v4907_v27 = vld [vmem:[#allocation2 + $0x58] sm:$0xff] }
 0xa0f   :  { %11482 = vmatpush3.bf16.msra.mxu0 %v12653_v44  ;;  %6516 = vmatprep.subr.bf16.mxu1 %v12656_v36  ;;  %v12708_v44 = vld [vmem:[#allocation13 + $0x40c] ss:$12 sps:$4 sm:$0xff]   ;;  %v12709_v36 = vld [vmem:[#allocation13 + $0x650] ss:$12 sps:$4 sm:$0xff]  }
 0xa10   :  { %11495 = vmatprep.subr.bf16.mxu0 %v12657_v3  ;;  %v14606_v3 = vpack.c.bf16 %v4916_v60, %v4907_v27  ;;  %v12777_v60 = vld [vmem:[#allocation13 + $0x618] ss:$12 sps:$4 sm:$0xff]   ;;  %v12782_v27 = vld [vmem:[#allocation13 + $0x634] ss:$12 sps:$4 sm:$0xff]  }
 0xa11   :  { %6496 = vmatmul.mubr.bf16.vlgmr.msra.gmra.mrb[76].mxu1 %v14565_v4  ;;  %v12668_v4 = vld [vmem:[#allocation13 + $0x4b8] ss:$12 sps:$4 sm:$0xff]  }
 0xa12   :  { %6806 = vmatmul.mubr.bf16.vlgmr.msra.gmra.mrb[72].mxu0 %v14577_v26  ;;  %6505 = vmatprep.mubr.bf16.mxu1 %v14567_v52  ;;  %v14593_v52 = vpack.c.bf16 %v4915_v18, %v4906_v57  ;;  %v12721_v18 = vld [vmem:[#allocation13 + $0x698] ss:$12 sps:$4 sm:$0xff]   ;;  %v12725_v57 = vld [vmem:[#allocation13 + $0x6b0] ss:$12 sps:$4 sm:$0xff]  }
 0xa13   :  { %6517 = vmatpush1.bf16.msra.mxu1 %v12654_v33  ;;  %6813 = vmatprep.mubr.bf16.mxu0 %v14579_v43  ;;  %v12706_v33 = vld [vmem:[#allocation13 + $0x408] ss:$12 sps:$4 sm:$0xff]  }
 0xa14   :  { %11496 = vmatpush3.bf16.msra.mxu0 %v12658_v40  ;;  %6518 = vmatprep.subr.bf16.mxu1 %v12661_v25  ;;  %v12712_v40 = vld [vmem:[#allocation13 + $0x424] ss:$12 sps:$4 sm:$0xff]   ;;  %v12713_v25 = vld [vmem:[#allocation13 + $0x668] ss:$12 sps:$4 sm:$0xff]  }
 0xa15   :  { %11497 = vmatprep.subr.bf16.mxu0 %v12662_v55  ;;  %v12710_v55 = vld [vmem:[#allocation13 + $0x420] ss:$12 sps:$4 sm:$0xff]  }
 0xa17   :  { %6519 = vmatpush1.bf16.msra.mxu1 %v12659_v7  ;;  %v12716_v7 = vld [vmem:[#allocation13 + $0x43c] ss:$12 sps:$4 sm:$0xff]  }
 0xa18   :  { %11498 = vmatpush3.bf16.msra.mxu0 %v12663_v1  ;;  %6520 = vmatprep.subr.bf16.mxu1 %v12666_v41  ;;  %v12717_v1 = vld [vmem:[#allocation13 + $0x680] ss:$12 sps:$4 sm:$0xff]   ;;  %v12714_v41 = vld [vmem:[#allocation13 + $0x438] ss:$12 sps:$4 sm:$0xff]  }
 0xa19   :  { %6506 = vmatmul.mubr.bf16.gmra.mrb[80].mxu1 %v14569_v17  ;;  %11499 = vmatprep.subr.bf16.mxu0 %v12667_v29  ;;  %v12674_v17 = vld [vmem:[#allocation13 + $0x360] ss:$12 sps:$4 sm:$0xff]  }
 0xa1a   :  { %6814 = vmatmul.mubr.bf16.gmra.mrb[76].mxu0 %v14582_v14  ;;  %6548 = vmatprep.mubr.bf16.mxu1 %v14575_v47  ;;  %v12679_v47 = vld [vmem:[#allocation13 + $0x378] ss:$12 sps:$4 sm:$0xff]   ;;  %v12720_v29 = vld [vmem:[#allocation13 + $0x454] ss:$12 sps:$4 sm:$0xff]  }
 0xa1b   :  { %6521 = vmatpush1.bf16.msra.mxu1 %v12664_v59  ;;  %6854 = vmatprep.mubr.bf16.mxu0 %v14593_v52  ;;  %v12718_v59 = vld [vmem:[#allocation13 + $0x450] ss:$12 sps:$4 sm:$0xff]  }
 0xa1c   :  { %11500 = vmatpush3.bf16.msra.mxu0 %v12668_v4  ;;  %6522 = vmatprep.subr.bf16.mxu1 %v12671_v46  ;;  %v12724_v4 = vld [vmem:[#allocation13 + $0x46c] ss:$12 sps:$4 sm:$0xff]   ;;  %v12722_v46 = vld [vmem:[#allocation13 + $0x468] ss:$12 sps:$4 sm:$0xff]  }
 0xa1d   :  { %11501 = vmatprep.subr.bf16.mxu0 %v12672_v15  ;;  %v12728_v15 = vld [vmem:[#allocation13 + $0x484] ss:$12 sps:$4 sm:$0xff]  }
 0xa1f   :  { %6523 = vmatpush1.bf16.msra.mxu1 %v12669_v19  ;;  %v4925_v19 = vld [vmem:[#allocation2 + $0x118] sm:$0xff] }
 0xa20   :  { %11502 = vmatpush3.bf16.msra.mxu0 %v12673_v22  ;;  %6524 = vmatprep.subr.bf16.mxu1 %v12676_v21  ;;  %v4934_v22 = vld [vmem:[#allocation2 + $0x178] sm:$0xff]  ;;  %v12726_v21 = vld [vmem:[#allocation13 + $0x480] ss:$12 sps:$4 sm:$0xff]  }
 0xa21   :  { %11503 = vmatprep.subr.bf16.mxu0 %v12677_v16  ;;  %v14610_v16 = vpack.c.bf16 %v4934_v22, %v4925_v19  ;;  %v12795_v19 = vld [vmem:[#allocation13 + $0x6a8] ss:$12 sps:$4 sm:$0xff]  }
 0xa23   :  { %6525 = vmatpush1.bf16.msra.mxu1 %v12674_v17  ;;  %v12731_v17 = vld [vmem:[#allocation13 + $0x49c] ss:$12 sps:$4 sm:$0xff]  }
 0xa24   :  { %11504 = vmatpush3.bf16.msra.mxu0 %v12678_v61  ;;  %6526 = vmatprep.subr.bf16.mxu1 %v12681_v20  ;;  %v12729_v61 = vld [vmem:[#allocation13 + $0x498] ss:$12 sps:$4 sm:$0xff]   ;;  %v12734_v20 = vld [vmem:[#allocation13 + $0x4b4] ss:$12 sps:$4 sm:$0xff]  }
 0xa25   :  { %11505 = vmatprep.subr.bf16.mxu0 %v12682_v2  ;;  %v12732_v2 = vld [vmem:[#allocation13 + $0x4b0] ss:$12 sps:$4 sm:$0xff]  }
 0xa27   :  { %6527 = vmatpush1.bf16.msra.mxu1 %v12679_v47  ;;  %v12737_v47 = vld [vmem:[#allocation13 + $0x4cc] ss:$12 sps:$4 sm:$0xff]  }
 0xa28   :  { %11506 = vmatpush3.bf16.msra.mxu0 %v12683_v9  ;;  %6528 = vmatprep.subr.bf16.mxu1 %v12686_v28  ;;  %v12735_v9 = vld [vmem:[#allocation13 + $0x4c8] ss:$12 sps:$4 sm:$0xff]   ;;  %v12738_v28 = vld [vmem:[#allocation13 + $0x4e0] ss:$12 sps:$4 sm:$0xff]  }
 0xa29   :  { %11507 = vmatprep.subr.bf16.mxu0 %v12687_v54  ;;  %v12741_v54 = vld [vmem:[#allocation13 + $0x4f8] ss:$12 sps:$4 sm:$0xff]  }
 0xa2b   :  { %6529 = vmatpush1.bf16.msra.mxu1 %v12684_v5  ;;  %v12746_v5 = vld [vmem:[#allocation13 + $0x514] ss:$12 sps:$4 sm:$0xff]  }
 0xa2c   :  { %11508 = vmatpush3.bf16.msra.mxu0 %v12688_v56  ;;  %6530 = vmatprep.subr.bf16.mxu1 %v12691_v30  ;;  %v12744_v56 = vld [vmem:[#allocation13 + $0x510] ss:$12 sps:$4 sm:$0xff]   ;;  %v12749_v30 = vld [vmem:[#allocation13 + $0x52c] ss:$12 sps:$4 sm:$0xff]  }
 0xa2d   :  { %11509 = vmatprep.subr.bf16.mxu0 %v12692_v58  ;;  %v12750_v58 = vld [vmem:[#allocation13 + $0x540] ss:$12 sps:$4 sm:$0xff]  }
 0xa2f   :  { %6531 = vmatpush1.bf16.msra.mxu1 %v12689_v51  ;;  %v12755_v51 = vld [vmem:[#allocation13 + $0x55c] ss:$12 sps:$4 sm:$0xff]  }
 0xa30   :  { %11510 = vmatpush3.bf16.msra.mxu0 %v12693_v39  ;;  %6532 = vmatprep.subr.bf16.mxu1 %v12696_v42  ;;  %v12753_v39 = vld [vmem:[#allocation13 + $0x558] ss:$12 sps:$4 sm:$0xff]   ;;  %v12758_v42 = vld [vmem:[#allocation13 + $0x574] ss:$12 sps:$4 sm:$0xff]  }
 0xa31   :  { %11629 = vmatprep.subr.bf16.mxu0 %v12697_v8 }
 0xa33   :  { %6855 = vmatmul.mubr.bf16.vlgmr.msra.gmra.mrb[80].mxu0 %v14598_v10  ;;  %6533 = vmatpush1.bf16.msra.mxu1 %v12694_v32  ;;  %v12759_v32 = vld [vmem:[#allocation13 + $0x588] ss:$12 sps:$4 sm:$0xff]  }
 0xa34   :  { %6862 = vmatprep.mubr.bf16.mxu0 %v14600_v24  ;;  %11630 = vmatpush3.bf16.msra.mxu0 %v12697_v8  ;;  %v12756_v8 = vld [vmem:[#allocation13 + $0x570] ss:$12 sps:$4 sm:$0xff]  }
 0xa35   :  { %6534 = vmatprep.subr.bf16.mxu1 %v12700_v31  ;;  %11631 = vmatprep.subr.bf16.mxu0 %v12701_v63  ;;  %v12765_v31 = vld [vmem:[#allocation13 + $0x5b8] ss:$12 sps:$4 sm:$0xff]  }
 0xa37   :  { %6535 = vmatpush1.bf16.msra.mxu1 %v12698_v34  ;;  %v12768_v34 = vld [vmem:[#allocation13 + $0x5d0] ss:$12 sps:$4 sm:$0xff]  }
 0xa38   :  { %11632 = vmatpush3.bf16.msra.mxu0 %v12701_v63  ;;  %6536 = vmatprep.subr.bf16.mxu1 %v12704_v53  ;;  %v12770_v63 = vld [vmem:[#allocation13 + $0x5d4] ss:$12 sps:$4 sm:$0xff]   ;;  %v12773_v53 = vld [vmem:[#allocation13 + $0x5ec] ss:$12 sps:$4 sm:$0xff]  }
 0xa39   :  { %11633 = vmatprep.subr.bf16.mxu0 %v12705_v23 }
 0xa3b   :  { %6863 = vmatmul.mubr.bf16.gmra.mrb[84].mxu0 %v14604_v48  ;;  %6537 = vmatpush1.bf16.msra.mxu1 %v12702_v13  ;;  %v12779_v13 = vld [vmem:[#allocation13 + $0x61c] ss:$12 sps:$4 sm:$0xff]  }
 0xa3c   :  { %11634 = vmatpush3.bf16.msra.mxu0 %v12705_v23  ;;  %11645 = vmatprep.mubr.bf16.mxu0 %v14606_v3  ;;  %v12771_v23 = vld [vmem:[#allocation13 + $0x5e8] ss:$12 sps:$4 sm:$0xff]  }
 0xa3d   :  { %6538 = vmatprep.subr.bf16.mxu1 %v12708_v44  ;;  %11635 = vmatprep.subr.bf16.mxu0 %v12709_v36  ;;  %v12780_v44 = vld [vmem:[#allocation13 + $0x630] ss:$12 sps:$4 sm:$0xff]  }
 0xa3f   :  { %6539 = vmatpush1.bf16.msra.mxu1 %v12706_v33  ;;  %v12783_v33 = vld [vmem:[#allocation13 + $0x648] ss:$12 sps:$4 sm:$0xff]  }
 0xa40   :  { %11636 = vmatpush3.bf16.msra.mxu0 %v12709_v36  ;;  %6540 = vmatprep.subr.bf16.mxu1 %v12712_v40  ;;  %v12785_v36 = vld [vmem:[#allocation13 + $0x64c] ss:$12 sps:$4 sm:$0xff]   ;;  %v12788_v40 = vld [vmem:[#allocation13 + $0x664] ss:$12 sps:$4 sm:$0xff]  }
 0xa41   :  { %11637 = vmatprep.subr.bf16.mxu0 %v12713_v25 }
 0xa43   :  { %6541 = vmatpush1.bf16.msra.mxu1 %v12710_v55 }
 0xa44   :  { %11638 = vmatpush3.bf16.msra.mxu0 %v12713_v25  ;;  %6542 = vmatprep.subr.bf16.mxu1 %v12716_v7  ;;  %v12789_v25 = vld [vmem:[#allocation13 + $0x678] ss:$12 sps:$4 sm:$0xff]   ;;  %v14621_v7 = vld [vmem:[#allocation15] sm:$0x7] }
 0xa45   :  { %11639 = vmatprep.subr.bf16.mxu0 %v12717_v1 }
 0xa47   :  { %6543 = vmatpush1.bf16.msra.mxu1 %v12714_v41  ;;  %v12794_v41 = vld [vmem:[#allocation13 + $0x694] ss:$12 sps:$4 sm:$0xff]  }
 0xa48   :  { %11640 = vmatpush3.bf16.msra.mxu0 %v12717_v1  ;;  %6544 = vmatprep.subr.bf16.mxu1 %v12720_v29 }
 0xa49   :  { %11641 = vmatprep.subr.bf16.mxu0 %v12721_v18 }
 0xa4b   :  { %6545 = vmatpush1.bf16.msra.mxu1 %v12718_v59  ;;  %v5254_v59 = vrot.slane %v14621_v7, %v13990_v45 }
 0xa4c   :  { %11642 = vmatpush3.bf16.msra.mxu0 %v12721_v18  ;;  %6546 = vmatprep.subr.bf16.mxu1 %v12724_v4 }
 0xa4d   :  { %11643 = vmatprep.subr.bf16.mxu0 %v12725_v57 }
 0xa4f   :  { %6547 = vmatpush1.bf16.msra.mxu1 %v12722_v46  ;;  %v12797_v46 = vld [vmem:[#allocation13 + $0x6ac] ss:$12 sps:$4 sm:$0xff]  }
 0xa50   :  { %11644 = vmatpush3.bf16.msra.mxu0 %v12725_v57  ;;  %6569 = vmatprep.subr.bf16.mxu1 %v12728_v15  ;;  %v12792_v57 = vld [vmem:[#allocation13 + $0x690] ss:$12 sps:$4 sm:$0xff]  }
 0xa52   :  { %6549 = vmatmul.mubr.bf16.vlgmr.msra.gmra.mrb[76].mxu1 %v14577_v26  ;;  %v12740_v26 = vld [vmem:[#allocation13 + $0x4e4] ss:$12 sps:$4 sm:$0xff]  }
 0xa53   :  { %11646 = vmatmul.mubr.bf16.vlgmr.msra.gmra.mrb[88].mxu0 %v14610_v16  ;;  %6558 = vmatprep.mubr.bf16.mxu1 %v14579_v43  ;;  %v12743_v43 = vld [vmem:[#allocation13 + $0x4fc] ss:$12 sps:$4 sm:$0xff]  }
 0xa54   :  { %6570 = vmatpush1.bf16.msra.mxu1 %v12726_v21 }
 0xa55   :  { %6571 = vmatprep.subr.bf16.mxu1 %v12731_v17 }
 0xa58   :  { %6572 = vmatpush1.bf16.msra.mxu1 %v12729_v61 }
 0xa59   :  { %6573 = vmatprep.subr.bf16.mxu1 %v12734_v20 }
 0xa5a   :  { %6559 = vmatmul.mubr.bf16.gmra.mrb[80].mxu1 %v14582_v14  ;;  %v12747_v14 = vld [vmem:[#allocation13 + $0x528] ss:$12 sps:$4 sm:$0xff]  }
 0xa5b   :  { %6601 = vmatprep.mubr.bf16.mxu1 %v14593_v52  ;;  %v12752_v52 = vld [vmem:[#allocation13 + $0x544] ss:$12 sps:$4 sm:$0xff]  }
 0xa5c   :  { %6574 = vmatpush1.bf16.msra.mxu1 %v12732_v2 }
 0xa5d   :  { %6575 = vmatprep.subr.bf16.mxu1 %v12737_v47 }
 0xa60   :  { %6576 = vmatpush1.bf16.msra.mxu1 %v12735_v9 }
 0xa61   :  { %6577 = vmatprep.subr.bf16.mxu1 %v12740_v26 }
 0xa64   :  { %6578 = vmatpush1.bf16.msra.mxu1 %v12738_v28 }
 0xa65   :  { %6579 = vmatprep.subr.bf16.mxu1 %v12743_v43 }
 0xa68   :  { %6580 = vmatpush1.bf16.msra.mxu1 %v12741_v54 }
 0xa69   :  { %6581 = vmatprep.subr.bf16.mxu1 %v12746_v5 }
 0xa6c   :  { %6582 = vmatpush1.bf16.msra.mxu1 %v12744_v56 }
 0xa6d   :  { %6583 = vmatprep.subr.bf16.mxu1 %v12749_v30 }
 0xa70   :  { %6584 = vmatpush1.bf16.msra.mxu1 %v12747_v14 }
 0xa71   :  { %6585 = vmatprep.subr.bf16.mxu1 %v12752_v52 }
 0xa74   :  { %6586 = vmatpush1.bf16.msra.mxu1 %v12750_v58 }
 0xa75   :  { %6587 = vmatprep.subr.bf16.mxu1 %v12755_v51 }
 0xa78   :  { %6588 = vmatpush1.bf16.msra.mxu1 %v12753_v39 }
 0xa79   :  { %6589 = vmatprep.subr.bf16.mxu1 %v12758_v42 }
 0xa7c   :  { %6590 = vmatpush1.bf16.msra.mxu1 %v12756_v8 }
 0xa7d   :  { %6591 = vmatprep.subr.bf16.mxu1 %v12761_v6 }
 0xa80   :  { %6592 = vmatpush1.bf16.msra.mxu1 %v12759_v32 }
 0xa81   :  { %6593 = vmatprep.subr.bf16.mxu1 %v12764_v11 }
 0xa84   :  { %6594 = vmatpush1.bf16.msra.mxu1 %v12762_v49 }
 0xa85   :  { %6595 = vmatprep.subr.bf16.mxu1 %v12767_v12 }
 0xa88   :  { %6596 = vmatpush1.bf16.msra.mxu1 %v12765_v31 }
 0xa89   :  { %6597 = vmatprep.subr.bf16.mxu1 %v12770_v63 }
 0xa8c   :  { %6598 = vmatpush1.bf16.msra.mxu1 %v12768_v34 }
 0xa8d   :  { %6599 = vmatprep.subr.bf16.mxu1 %v12773_v53 }
 0xa90   :  { %6600 = vmatpush1.bf16.msra.mxu1 %v12771_v23 }
 0xa91   :  { %6622 = vmatprep.subr.bf16.mxu1 %v12776_v62 }
 0xa93   :  { %6602 = vmatmul.mubr.bf16.vlgmr.msra.gmra.mrb[76].mxu1 %v14598_v10  ;;  %v12786_v10 = vld [vmem:[#allocation13 + $0x660] ss:$12 sps:$4 sm:$0xff]  }
 0xa94   :  { %6611 = vmatprep.mubr.bf16.mxu1 %v14600_v24  ;;  %6623 = vmatpush1.bf16.msra.mxu1 %v12774_v50  ;;  %v12791_v24 = vld [vmem:[#allocation13 + $0x67c] ss:$12 sps:$4 sm:$0xff]  }
 0xa95   :  { %6624 = vmatprep.subr.bf16.mxu1 %v12779_v13 }
 0xa98   :  { %6625 = vmatpush1.bf16.msra.mxu1 %v12777_v60 }
 0xa99   :  { %6626 = vmatprep.subr.bf16.mxu1 %v12782_v27 }
 0xa9b   :  { %6612 = vmatmul.mubr.bf16.gmra.mrb[80].mxu1 %v14604_v48 }
 0xa9c   :  { %6627 = vmatpush1.bf16.msra.mxu1 %v12780_v44  ;;  %6654 = vmatprep.mubr.bf16.mxu1 %v13723_v0 }
 0xa9d   :  { %6628 = vmatprep.subr.bf16.mxu1 %v12785_v36 }
 0xaa0   :  { %6629 = vmatpush1.bf16.msra.mxu1 %v12783_v33 }
 0xaa1   :  { %6630 = vmatprep.subr.bf16.mxu1 %v12788_v40 }
 0xaa4   :  { %6631 = vmatpush1.bf16.msra.mxu1 %v12786_v10 }
 0xaa5   :  { %v11427_v55 = vpop.f32.mrb[56].mxu0  ;;  %6632 = vmatprep.subr.bf16.mxu1 %v12791_v24 }
 0xaa6   :  { %v11428_v1 = vpop.f32.mrb[57].mxu0 }
 0xaa7   :  { %v11429_v29 = vadd.f32 %v11428_v1, %v11427_v55  ;;  %v11430_v48 = vpop.f32.mrb[58].mxu0 }
 0xaa8   :  { %v11431_v18 = vpop.f32.mrb[59].mxu0  ;;  %6633 = vmatpush1.bf16.msra.mxu1 %v12789_v25 }
 0xaa9   :  { %v11432_v4 = vadd.f32 %v11431_v18, %v11430_v48  ;;  %6634 = vmatprep.subr.bf16.mxu1 %v12794_v41  ;;  %v6710_v28 = vadd.f32 %v11429_v29, %v5254_v59 }
 0xaab   :  { %v6713_v15 = vadd.f32 %v11432_v4, %v5254_v59 }
 0xaac   :  { %6635 = vmatpush1.bf16.msra.mxu1 %v12792_v57 }
 0xaad   :  { %v11433_v22 = vpop.f32.mrb[60].mxu0  ;;  %6636 = vmatprep.subr.bf16.mxu1 %v12797_v46 }
 0xaae   :  { %v11434_v21 = vpop.f32.mrb[61].mxu0 }
 0xaaf   :  { %v11435_v17 = vadd.f32 %v11434_v21, %v11433_v22  ;;  %v11436_v61 = vpop.f32.mrb[62].mxu0 }
 0xab0   :  { %v11437_v20 = vpop.f32.mrb[63].mxu0  ;;  %6637 = vmatpush1.bf16.msra.mxu1 %v12795_v19 }
 0xab1   :  { %v11438_v2 = vadd.f32 %v11437_v20, %v11436_v61  ;;  %v6718_v51 = vadd.f32 %v11435_v17, %v5254_v59 }
 0xab3   :  { %v6721_v47 = vadd.f32 %v11438_v2, %v5254_v59  ;;  %6655 = vmatmul.mubr.bf16.vlgmr.msra.gmra.mrb[76].mxu1 %v14606_v3 }
 0xab4   :  { %6664 = vmatprep.mubr.bf16.mxu1 %v13723_v0 }
 0xabb   :  { %6665 = vmatmul.mubr.bf16.gmra.mrb[80].mxu1 %v14610_v16 }
 0xac5   :  { %v11455_v9 = vpop.f32.mrb[64].mxu0 }
 0xac6   :  { %v11456_v26 = vpop.f32.mrb[65].mxu0 }
 0xac7   :  { %v11457_v43 = vadd.f32 %v11456_v26, %v11455_v9  ;;  %v11458_v54 = vpop.f32.mrb[66].mxu0  ;;  %v5246_v9 = vrot.slane %v14621_v7, %v13962_v37 }
 0xac8   :  { %v11459_v5 = vpop.f32.mrb[67].mxu0 }
 0xac9   :  { %v6759_v56 = vadd.f32 %v11457_v43, %v6710_v28  ;;  %v11460_v30 = vadd.f32 %v11459_v5, %v11458_v54  ;;  %v5250_v28 = vrot.slane %v14621_v7, %v13965_v38 }
 0xacb   :  { %v6762_v14 = vadd.f32 %v11460_v30, %v6713_v15 }
 0xacd   :  { %v11461_v52 = vpop.f32.mrb[68].mxu0 }
 0xace   :  { %v11462_v58 = vpop.f32.mrb[69].mxu0 }
 0xacf   :  { %v11463_v39 = vadd.f32 %v11462_v58, %v11461_v52  ;;  %v11464_v42 = vpop.f32.mrb[70].mxu0 }
 0xad0   :  { %v11465_v8 = vpop.f32.mrb[71].mxu0 }
 0xad1   :  { %v6767_v3 = vadd.f32 %v11463_v39, %v6718_v51  ;;  %v11466_v6 = vadd.f32 %v11465_v8, %v11464_v42 }
 0xad3   :  { %v6770_v0 = vadd.f32 %v11466_v6, %v6721_v47 }
 0xae5   :  { %v11483_v32 = vpop.f32.mrb[72].mxu0 }
 0xae6   :  { %v11484_v16 = vpop.f32.mrb[73].mxu0 }
 0xae7   :  { %v11485_v11 = vadd.f32 %v11484_v16, %v11483_v32  ;;  %v11486_v49 = vpop.f32.mrb[74].mxu0 }
 0xae8   :  { %v11487_v12 = vpop.f32.mrb[75].mxu0 }
 0xae9   :  { %v6808_v31 = vadd.f32 %v11485_v11, %v6759_v56  ;;  %v11488_v63 = vadd.f32 %v11487_v12, %v11486_v49 }
 0xaeb   :  { %v6811_v34 = vadd.f32 %v11488_v63, %v6762_v14 }
 0xaed   :  { %v11489_v53 = vpop.f32.mrb[76].mxu0 }
 0xaee   :  { %v11490_v23 = vpop.f32.mrb[77].mxu0 }
 0xaef   :  { %v11491_v62 = vadd.f32 %v11490_v23, %v11489_v53  ;;  %v11492_v50 = vpop.f32.mrb[78].mxu0  ;;  %v12798_v23 = vld [vmem:[#allocation16] ss:$16 sps:$4 sm:$0xff]  }
 0xaf0   :  { %v11493_v13 = vpop.f32.mrb[79].mxu0 }
 0xaf1   :  { %v6816_v60 = vadd.f32 %v11491_v62, %v6767_v3  ;;  %v11494_v27 = vadd.f32 %v11493_v13, %v11492_v50  ;;  %v12800_v62 = vld [vmem:[#allocation16 + $0x4] ss:$16 sps:$4 sm:$0xff]   ;;  %v12801_v50 = vld [vmem:[#allocation16 + $0x8] ss:$16 sps:$4 sm:$0xff]   ;;  %v12803_v13 = vld [vmem:[#allocation16 + $0xc] ss:$16 sps:$4 sm:$0xff]  }
 0xaf2   :  { %9438 = vmatprep.subr.bf16.mxu0 %v12800_v62  ;;  %9684 = vmatprep.subr.bf16.mxu1 %v12803_v13  ;;  %v12837_v62 = vld [vmem:[#allocation16 + $0xc8] ss:$16 sps:$4 sm:$0xff]   ;;  %v12842_v13 = vld [vmem:[#allocation16 + $0xe4] ss:$16 sps:$4 sm:$0xff]  }
 0xaf3   :  { %v6819_v44 = vadd.f32 %v11494_v27, %v6770_v0  ;;  %v12809_v27 = vld [vmem:[#allocation16 + $0x2c] ss:$16 sps:$4 sm:$0xff]   ;;  %9439 = vmatpush1.bf16.msra.mxu0 %v12798_v23  ;;  %9685 = vmatpush1.bf16.msra.mxu1 %v12801_v50  ;;  %v12836_v23 = vld [vmem:[#allocation16 + $0xc4] ss:$16 sps:$4 sm:$0xff]  }
 0xaf4   :  { %9686 = vmatprep.subr.bf16.mxu1 %v12809_v27  ;;  %v12839_v50 = vld [vmem:[#allocation16 + $0xcc] ss:$16 sps:$4 sm:$0xff]   ;;  %v12840_v27 = vld [vmem:[#allocation16 + $0xe0] ss:$16 sps:$4 sm:$0xff]  }
 0xb06   :  { %v11511_v36 = vpop.f32.mrb[80].mxu0 }
 0xb07   :  { %v11512_v33 = vpop.f32.mrb[81].mxu0 }
 0xb08   :  { %v11513_v40 = vadd.f32 %v11512_v33, %v11511_v36  ;;  %v11514_v10 = vpop.f32.mrb[82].mxu0  ;;  %v12807_v36 = vld [vmem:[#allocation16 + $0x28] ss:$16 sps:$4 sm:$0xff]   ;;  %v12812_v33 = vld [vmem:[#allocation16 + $0x44] ss:$16 sps:$4 sm:$0xff]  }
 0xb09   :  { %v11515_v24 = vpop.f32.mrb[83].mxu0  ;;  %9687 = vmatpush1.bf16.msra.mxu1 %v12807_v36  ;;  %v12848_v36 = vld [vmem:[#allocation16 + $0x104] ss:$16 sps:$4 sm:$0xff]  }
 0xb0a   :  { %v11516_v25 = vadd.f32 %v11515_v24, %v11514_v10  ;;  %v6857_v55 = vadd.f32 %v11513_v40, %v6808_v31  ;;  %v12815_v40 = vld [vmem:[#allocation16 + $0x4c] ss:$16 sps:$4 sm:$0xff]   ;;  %v12810_v10 = vld [vmem:[#allocation16 + $0x40] ss:$16 sps:$4 sm:$0xff]   ;;  %v12813_v24 = vld [vmem:[#allocation16 + $0x48] ss:$16 sps:$4 sm:$0xff]  }
 0xb0b   :  { %9688 = vmatprep.subr.bf16.mxu1 %v12815_v40  ;;  %v12846_v40 = vld [vmem:[#allocation16 + $0x100] ss:$16 sps:$4 sm:$0xff]  }
 0xb0c   :  { %v6860_v1 = vadd.f32 %v11516_v25, %v6811_v34  ;;  %v12818_v25 = vld [vmem:[#allocation16 + $0x64] ss:$16 sps:$4 sm:$0xff]  }
 0xb0d   :  { %9689 = vmatpush1.bf16.msra.mxu1 %v12813_v24  ;;  %v12854_v24 = vld [vmem:[#allocation16 + $0x124] ss:$16 sps:$4 sm:$0xff]  }
 0xb0e   :  { %v11517_v41 = vpop.f32.mrb[84].mxu0 }
 0xb0f   :  { %v11518_v29 = vpop.f32.mrb[85].mxu0 }
 0xb10   :  { %v11519_v48 = vadd.f32 %v11518_v29, %v11517_v41  ;;  %v11520_v18 = vpop.f32.mrb[86].mxu0  ;;  %v12819_v41 = vld [vmem:[#allocation16 + $0x68] ss:$16 sps:$4 sm:$0xff]   ;;  %v12824_v29 = vld [vmem:[#allocation16 + $0x84] ss:$16 sps:$4 sm:$0xff]  }
 0xb11   :  { %v11521_v59 = vpop.f32.mrb[87].mxu0 }
 0xb12   :  { %v11522_v4 = vadd.f32 %v11521_v59, %v11520_v18  ;;  %v6865_v57 = vadd.f32 %v11519_v48, %v6816_v60  ;;  %v12806_v60 = vld [vmem:[#allocation16 + $0x24] ss:$16 sps:$4 sm:$0xff]   ;;  %v12827_v48 = vld [vmem:[#allocation16 + $0x8c] ss:$16 sps:$4 sm:$0xff]   ;;  %v12822_v18 = vld [vmem:[#allocation16 + $0x80] ss:$16 sps:$4 sm:$0xff]  }
 0xb13   :  { %9440 = vmatprep.subr.bf16.mxu0 %v12806_v60  ;;  %v12825_v59 = vld [vmem:[#allocation16 + $0x88] ss:$16 sps:$4 sm:$0xff]   ;;  %v12845_v60 = vld [vmem:[#allocation16 + $0xec] ss:$16 sps:$4 sm:$0xff]  }
 0xb14   :  { %v6868_v46 = vadd.f32 %v11522_v4, %v6819_v44  ;;  %v12804_v44 = vld [vmem:[#allocation16 + $0x20] ss:$16 sps:$4 sm:$0xff]   ;;  %v12830_v4 = vld [vmem:[#allocation16 + $0xa4] ss:$16 sps:$4 sm:$0xff]  }
 0xb15   :  { %9441 = vmatpush1.bf16.msra.mxu0 %v12804_v44  ;;  %v12843_v44 = vld [vmem:[#allocation16 + $0xe8] ss:$16 sps:$4 sm:$0xff]  }
 0xb16   :  { %9442 = vmatprep.subr.bf16.mxu0 %v12812_v33  ;;  %v12851_v33 = vld [vmem:[#allocation16 + $0x10c] ss:$16 sps:$4 sm:$0xff]  }
 0xb19   :  { %9443 = vmatpush1.bf16.msra.mxu0 %v12810_v10  ;;  %v12849_v10 = vld [vmem:[#allocation16 + $0x108] ss:$16 sps:$4 sm:$0xff]  }
 0xb1a   :  { %9444 = vmatprep.subr.bf16.mxu0 %v12818_v25  ;;  %v12857_v25 = vld [vmem:[#allocation16 + $0x12c] ss:$16 sps:$4 sm:$0xff]  }
 0xb26   :  { %v11647_v15 = vpop.f32.mrb[88].mxu0 }
 0xb27   :  { %v14628_v19 = vadd.f32 %v11647_v15, %v6865_v57  ;;  %v6905_v22 = vpop.f32.mrb[89].mxu0  ;;  %v12833_v57 = vld [vmem:[#allocation16 + $0xac] ss:$16 sps:$4 sm:$0xff]   ;;  %v12831_v15 = vld [vmem:[#allocation16 + $0xa8] ss:$16 sps:$4 sm:$0xff]  }
 0xb28   :  { %v14630_v21 = vadd.f32 %v6905_v22, %v6857_v55  ;;  %v11648_v17 = vpop.f32.mrb[90].mxu0  ;;  %v12821_v55 = vld [vmem:[#allocation16 + $0x6c] ss:$16 sps:$4 sm:$0xff]  }
 0xb29   :  { %v14632_v61 = vadd.f32 %v11648_v17, %v6868_v46  ;;  %v6908_v20 = vpop.f32.mrb[91].mxu0  ;;  %v6928_v8 = vmax.f32 %v14628_v19, 0.0  ;;  %9690 = vmatprep.subr.bf16.mxu1 %v12821_v55  ;;  %v12828_v46 = vld [vmem:[#allocation16 + $0xa0] ss:$16 sps:$4 sm:$0xff]  }
 0xb2a   :  { %v14634_v2 = vadd.f32 %v6908_v20, %v6860_v1  ;;  %v6922_v32 = vmax.f32 %v14630_v21, 0.0  ;;  %v12816_v1 = vld [vmem:[#allocation16 + $0x60] ss:$16 sps:$4 sm:$0xff]   ;;  %9691 = vmatpush1.bf16.msra.mxu1 %v12819_v41  ;;  %v12860_v41 = vld [vmem:[#allocation16 + $0x144] ss:$16 sps:$4 sm:$0xff]  }
 0xb2b   :  { %9445 = vmatpush1.bf16.msra.mxu0 %v12816_v1  ;;  %9692 = vmatprep.subr.bf16.mxu1 %v12827_v48  ;;  %v12852_v55 = vld [vmem:[#allocation16 + $0x120] ss:$16 sps:$4 sm:$0xff]   ;;  %v12855_v1 = vld [vmem:[#allocation16 + $0x128] ss:$16 sps:$4 sm:$0xff]  }
 0xb2c   :  { %v6958_v63 = vadd.f32 %v6928_v8, %v6922_v32  ;;  %9446 = vmatprep.subr.bf16.mxu0 %v12824_v29  ;;  %v12863_v29 = vld [vmem:[#allocation16 + $0x14c] ss:$16 sps:$4 sm:$0xff]   ;;  %v12858_v48 = vld [vmem:[#allocation16 + $0x140] ss:$16 sps:$4 sm:$0xff]  }
 0xb2e   :  { %9693 = vmatpush1.bf16.msra.mxu1 %v12825_v59  ;;  %v12866_v59 = vld [vmem:[#allocation16 + $0x164] ss:$16 sps:$4 sm:$0xff]  }
 0xb2f   :  { %9447 = vmatpush1.bf16.msra.mxu0 %v12822_v18  ;;  %9694 = vmatprep.subr.bf16.mxu1 %v12833_v57  ;;  %v12861_v18 = vld [vmem:[#allocation16 + $0x148] ss:$16 sps:$4 sm:$0xff]   ;;  %v12864_v57 = vld [vmem:[#allocation16 + $0x160] ss:$16 sps:$4 sm:$0xff]  }
 0xb30   :  { %9448 = vmatprep.subr.bf16.mxu0 %v12830_v4  ;;  %v12869_v4 = vld [vmem:[#allocation16 + $0x16c] ss:$16 sps:$4 sm:$0xff]  }
 0xb32   :  { %9695 = vmatpush1.bf16.msra.mxu1 %v12831_v15  ;;  %v12872_v15 = vld [vmem:[#allocation16 + $0x184] ss:$16 sps:$4 sm:$0xff]  }
 0xb33   :  { %9449 = vmatpush1.bf16.msra.mxu0 %v12828_v46  ;;  %9696 = vmatprep.subr.bf16.mxu1 %v12839_v50  ;;  %v12867_v46 = vld [vmem:[#allocation16 + $0x168] ss:$16 sps:$4 sm:$0xff]  }
 0xb34   :  { %9450 = vmatprep.subr.bf16.mxu0 %v12836_v23 }
 0xb36   :  { %9697 = vmatpush1.bf16.msra.mxu1 %v12837_v62 }
 0xb37   :  { %9698 = vmatprep.subr.bf16.mxu1 %v12845_v60 }
 0xb3a   :  { %9699 = vmatpush1.bf16.msra.mxu1 %v12843_v44 }
 0xb3b   :  { %9700 = vmatprep.subr.bf16.mxu1 %v12851_v33 }
 0xb3e   :  { %9701 = vmatpush1.bf16.msra.mxu1 %v12849_v10 }
 0xb3f   :  { %9702 = vmatprep.subr.bf16.mxu1 %v12857_v25 }
 0xb42   :  { %9703 = vmatpush1.bf16.msra.mxu1 %v12855_v1 }
 0xb43   :  { %9704 = vmatprep.subr.bf16.mxu1 %v12863_v29 }
 0xb46   :  { %9705 = vmatpush1.bf16.msra.mxu1 %v12861_v18 }
 0xb47   :  { %9706 = vmatprep.subr.bf16.mxu1 %v12869_v4 }
 0xb4a   :  { %9707 = vmatpush1.bf16.msra.mxu1 %v12867_v46 }
 0xb86   :  { %v6656_v47 = vpop.f32.mrb[76].mxu1 }
 0xb87   :  { %v6658_v26 = vpop.f32.mrb[77].mxu1  ;;  %v14644_v30 = vadd.f32 %v6656_v47, %v5246_v9 }
 0xb88   :  { %v6660_v43 = vpop.f32.mrb[78].mxu1  ;;  %v14646_v14 = vadd.f32 %v6658_v26, %v5250_v28 }
 0xb89   :  { %v14640_v54 = vadd.f32 %v6660_v43, %v5246_v9  ;;  %v6662_v5 = vpop.f32.mrb[79].mxu1  ;;  %v6920_v7 = vmax.f32 %v14644_v30, 0.0 }
 0xb8a   :  { %v14642_v56 = vadd.f32 %v6662_v5, %v5250_v28  ;;  %v6921_v16 = vmax.f32 %v14646_v14, 0.0 }
 0xb8b   :  { %v6923_v5 = vmax.f32 %v14640_v54, 0.0 }
 0xb8e   :  { %v6666_v52 = vpop.f32.mrb[80].mxu1 }
 0xb8f   :  { %v14648_v58 = vadd.f32 %v6666_v52, %v5246_v9  ;;  %v6668_v51 = vpop.f32.mrb[81].mxu1  ;;  %v6924_v52 = vmax.f32 %v14642_v56, 0.0 }
 0xb90   :  { %v14650_v39 = vadd.f32 %v6668_v51, %v5250_v28  ;;  %v6670_v42 = vpop.f32.mrb[82].mxu1 }
 0xb91   :  { %v6926_v3 = vmax.f32 %v14648_v58, 0.0  ;;  %v14655_v6 = vadd.f32 %v6670_v42, %v5246_v9  ;;  %v6672_v0 = vpop.f32.mrb[83].mxu1 }
 0xb92   :  { %v6927_v11 = vmax.f32 %v14650_v39, 0.0  ;;  %v14660_v49 = vadd.f32 %v6672_v0, %v5250_v28  ;;  %v6925_v0 = vmax.f32 %v14634_v2, 0.0 }
 0xb93   :  { %v6956_v12 = vadd.f32 %v6926_v3, %v6920_v7  ;;  %v6929_v20 = vmax.f32 %v14655_v6, 0.0 }
 0xb94   :  { %v6957_v31 = vadd.f32 %v6927_v11, %v6921_v16  ;;  %v6930_v47 = vmax.f32 %v14660_v49, 0.0 }
 0xb95   :  { %v6959_v14 = vadd.f32 %v6929_v20, %v6923_v5 }
 0xb96   :  { %v6962_v34 = vadd.f32 %v6957_v31, %v6956_v12  ;;  %v6960_v21 = vadd.f32 %v6930_v47, %v6924_v52 }
 0xb98   :  { %v6963_v53 = vadd.f32 %v6962_v34, %v6958_v63  ;;  %v6966_v31 = vadd.f32 %v6960_v21, %v6959_v14  ;;  %v12876_v14 = vld [vmem:[#allocation16 + $0x1a0] ss:$16 sps:$4 sm:$0xff]   ;;  %v12879_v21 = vld [vmem:[#allocation16 + $0x1a8] ss:$16 sps:$4 sm:$0xff]  }
 0xb9a   :  { %6964 = vadd.xlane.f32.xlu0 %v6963_v53  ;;  %v12834_v53 = vld [vmem:[#allocation16 + $0xc0] ss:$16 sps:$4 sm:$0xff]  }
 0xb9b   :  { %9451 = vmatpush1.bf16.msra.mxu0 %v12834_v53  ;;  %v12899_v53 = vld [vmem:[#allocation16 + $0x20c] ss:$16 sps:$4 sm:$0xff]  }
 0xb9c   :  { %9452 = vmatprep.subr.bf16.mxu0 %v12842_v13 }
 0xb9f   :  { %9453 = vmatpush1.bf16.msra.mxu0 %v12840_v27 }
 0xba0   :  { %9454 = vmatprep.subr.bf16.mxu0 %v12848_v36 }
 0xba3   :  { %9455 = vmatpush1.bf16.msra.mxu0 %v12846_v40 }
 0xba4   :  { %9456 = vmatprep.subr.bf16.mxu0 %v12854_v24 }
 0xba7   :  { %9457 = vmatpush1.bf16.msra.mxu0 %v12852_v55 }
 0xba8   :  { %9458 = vmatprep.subr.bf16.mxu0 %v12860_v41 }
 0xbab   :  { %9459 = vmatpush1.bf16.msra.mxu0 %v12858_v48 }
 0xbac   :  { %9460 = vmatprep.subr.bf16.mxu0 %v12866_v59 }
 0xbaf   :  { %9461 = vmatpush1.bf16.msra.mxu0 %v12864_v57  ;;  %v7063_v57 = vld [vmem:[#allocation2] ss:$8 sm:$0xf0] }
 0xbb0   :  { %9462 = vmatprep.subr.bf16.mxu0 %v12872_v15  ;;  %v7078_v15 = vld [vmem:[#allocation2 + $0xc0] ss:$8 sm:$0xf0] }
 0xc27   :  { %v6965_v22 = vpop.xlane.xlu0 %6964 }
 0xc28   :  { %v14672_v17 = vmul.f32 0.0016666667, %v6965_v22  ;;  %v12875_v22 = vld [vmem:[#allocation16 + $0x18c] ss:$16 sps:$4 sm:$0xff]  }
 0xc29   :  { %9708 = vmatprep.subr.bf16.mxu1 %v12875_v22  ;;  %v12897_v22 = vld [vmem:[#allocation16 + $0x208] ss:$16 sps:$4 sm:$0xff]  }
 0xc2a   :  { %v14679_v9 = vsub.f32 %v6926_v3, %v14672_v17  ;;  %v14682_v26 = vsub.f32 %v6927_v11, %v14672_v17  ;;  %v14687_v28 = vsub.f32 %v6928_v8, %v14672_v17  ;;  %v14692_v43 = vsub.f32 %v6920_v7, %v14672_v17 }
 0xc2b   :  { %v14699_v58 = vsub.f32 %v6921_v16, %v14672_v17  ;;  %v14704_v19 = vsub.f32 %v6922_v32, %v14672_v17  ;;  %v6931_v3 = vmax.f32 %v14632_v61, 0.0  ;;  %v7014_v23 = vmul.f32 168.0, %v14672_v17 }
 0xc2c   :  { %v6998_v51 = vmul.f32 %v14679_v9, %v14679_v9  ;;  %v6999_v30 = vmul.f32 %v14682_v26, %v14682_v26  ;;  %v6984_v39 = vmul.f32 %v14692_v43, %v14692_v43  ;;  %v7000_v8 = vmul.f32 %v14687_v28, %v14687_v28 }
 0xc2d   :  { %v6985_v42 = vmul.f32 %v14699_v58, %v14699_v58  ;;  %v6986_v32 = vmul.f32 %v14704_v19, %v14704_v19  ;;  %v6961_v63 = vadd.f32 %v6931_v3, %v6925_v0  ;;  %v7016_v13 = vmul.f32 %v7014_v23, %v14672_v17  ;;  %v12923_v23 = vld [vmem:[#allocation16 + $0x28c] ss:$16 sps:$4 sm:$0xff]  }
 0xc2e   :  { %v7004_v7 = vadd.f32 %v6999_v30, %v6998_v51  ;;  %v12870_v51 = vld [vmem:[#allocation16 + $0x180] ss:$16 sps:$4 sm:$0xff]   ;;  %v12873_v30 = vld [vmem:[#allocation16 + $0x188] ss:$16 sps:$4 sm:$0xff]  }
 0xc2f   :  { %v6990_v16 = vadd.f32 %v6985_v42, %v6984_v39  ;;  %v6967_v34 = vadd.f32 %v6966_v31, %v6961_v63  ;;  %v12878_v39 = vld [vmem:[#allocation16 + $0x1a4] ss:$16 sps:$4 sm:$0xff]   ;;  %v12881_v42 = vld [vmem:[#allocation16 + $0x1ac] ss:$16 sps:$4 sm:$0xff]   ;;  %9463 = vmatpush1.bf16.msra.mxu0 %v12870_v51  ;;  %9709 = vmatpush1.bf16.msra.mxu1 %v12873_v30  ;;  %v12888_v31 = vld [vmem:[#allocation16 + $0x1e0] ss:$16 sps:$4 sm:$0xff]  }
 0xc30   :  { %v7005_v11 = vadd.f32 %v7004_v7, %v7000_v8  ;;  %9464 = vmatprep.subr.bf16.mxu0 %v12878_v39  ;;  %v12884_v8 = vld [vmem:[#allocation16 + $0x1c4] ss:$16 sps:$4 sm:$0xff]   ;;  %9710 = vmatprep.subr.bf16.mxu1 %v12881_v42  ;;  %v12887_v7 = vld [vmem:[#allocation16 + $0x1cc] ss:$16 sps:$4 sm:$0xff]   ;;  %v12891_v63 = vld [vmem:[#allocation16 + $0x1e8] ss:$16 sps:$4 sm:$0xff]  }
 0xc31   :  { %v6991_v12 = vadd.f32 %v6990_v16, %v6986_v32  ;;  %v12882_v32 = vld [vmem:[#allocation16 + $0x1c0] ss:$16 sps:$4 sm:$0xff]   ;;  %v12885_v16 = vld [vmem:[#allocation16 + $0x1c8] ss:$16 sps:$4 sm:$0xff]   ;;  %v12902_v39 = vld [vmem:[#allocation16 + $0x224] ss:$16 sps:$4 sm:$0xff]  }
 0xc32   :  { %7006 = vadd.xlane.f32.xlu0 %v7005_v11  ;;  %v12890_v11 = vld [vmem:[#allocation16 + $0x1e4] ss:$16 sps:$4 sm:$0xff]   ;;  %v12905_v42 = vld [vmem:[#allocation16 + $0x22c] ss:$16 sps:$4 sm:$0xff]  }
 0xc33   :  { %6992 = vadd.xlane.f32.xlu1 %v6991_v12  ;;  %9465 = vmatpush1.bf16.msra.mxu0 %v12876_v14  ;;  %v12893_v12 = vld [vmem:[#allocation16 + $0x1ec] ss:$16 sps:$4 sm:$0xff]  }
 0xc34   :  { %9711 = vmatpush1.bf16.msra.mxu1 %v12879_v21  ;;  %9466 = vmatprep.subr.bf16.mxu0 %v12884_v8  ;;  %v12900_v21 = vld [vmem:[#allocation16 + $0x220] ss:$16 sps:$4 sm:$0xff]   ;;  %v12903_v8 = vld [vmem:[#allocation16 + $0x228] ss:$16 sps:$4 sm:$0xff]  }
 0xc35   :  { %9712 = vmatprep.subr.bf16.mxu1 %v12887_v7  ;;  %v12908_v7 = vld [vmem:[#allocation16 + $0x244] ss:$16 sps:$4 sm:$0xff]  }
 0xc37   :  { %6968 = vadd.xlane.f32.xlu1 %v6967_v34  ;;  %9467 = vmatpush1.bf16.msra.mxu0 %v12882_v32  ;;  %v12896_v34 = vld [vmem:[#allocation16 + $0x204] ss:$16 sps:$4 sm:$0xff]   ;;  %v12911_v32 = vld [vmem:[#allocation16 + $0x24c] ss:$16 sps:$4 sm:$0xff]  }
 0xc38   :  { %9713 = vmatpush1.bf16.msra.mxu1 %v12885_v16  ;;  %9468 = vmatprep.subr.bf16.mxu0 %v12890_v11  ;;  %v12906_v16 = vld [vmem:[#allocation16 + $0x240] ss:$16 sps:$4 sm:$0xff]   ;;  %v12909_v11 = vld [vmem:[#allocation16 + $0x248] ss:$16 sps:$4 sm:$0xff]  }
 0xc39   :  { %9714 = vmatprep.subr.bf16.mxu1 %v12893_v12  ;;  %v12914_v12 = vld [vmem:[#allocation16 + $0x264] ss:$16 sps:$4 sm:$0xff]  }
 0xc3b   :  { %9469 = vmatpush1.bf16.msra.mxu0 %v12888_v31  ;;  %v12917_v31 = vld [vmem:[#allocation16 + $0x26c] ss:$16 sps:$4 sm:$0xff]  }
 0xc3c   :  { %9715 = vmatpush1.bf16.msra.mxu1 %v12891_v63  ;;  %9479 = vmatprep.subr.bf16.mxu0 %v12896_v34  ;;  %v12912_v63 = vld [vmem:[#allocation16 + $0x260] ss:$16 sps:$4 sm:$0xff]   ;;  %v12915_v34 = vld [vmem:[#allocation16 + $0x268] ss:$16 sps:$4 sm:$0xff]  }
 0xc3d   :  { %9725 = vmatprep.subr.bf16.mxu1 %v12899_v53  ;;  %v12920_v53 = vld [vmem:[#allocation16 + $0x284] ss:$16 sps:$4 sm:$0xff]  }
 0xcbf   :  { %v7007_v62 = vpop.xlane.xlu0 %7006 }
 0xcc0   :  { %v6993_v50 = vpop.xlane.xlu1 %6992 }
 0xcc1   :  { %v7012_v60 = vadd.f32 %v7007_v62, %v6993_v50  ;;  %v12918_v62 = vld [vmem:[#allocation16 + $0x280] ss:$16 sps:$4 sm:$0xff]   ;;  %v12921_v50 = vld [vmem:[#allocation16 + $0x288] ss:$16 sps:$4 sm:$0xff]  }
 0xcc3   :  { %v7018_v27 = vsub.f32 %v7012_v60, %v7016_v13  ;;  %v12926_v13 = vld [vmem:[#allocation16 + $0x2a4] ss:$16 sps:$4 sm:$0xff]   ;;  %v12929_v60 = vld [vmem:[#allocation16 + $0x2ac] ss:$16 sps:$4 sm:$0xff]  }
 0xcc4   :  { %v6969_v44 = vpop.xlane.xlu1 %6968 }
 0xcc5   :  { %v7020_v36 = vmul.f32 0.0016666667, %v7018_v27  ;;  %v14734_v33 = vmul.f32 0.0016666667, %v6969_v44  ;;  %v12924_v27 = vld [vmem:[#allocation16 + $0x2a0] ss:$16 sps:$4 sm:$0xff]  }
 0xcc6   :  { %v12927_v44 = vld [vmem:[#allocation16 + $0x2a8] ss:$16 sps:$4 sm:$0xff]  }
 0xcc7   :  { %v7022_v40 = vadd.f32 1e-05, %v7020_v36  ;;  %v6981_v10 = vsub.f32 %v6929_v20, %v14734_v33  ;;  %v6982_v24 = vsub.f32 %v6930_v47, %v14734_v33  ;;  %v6983_v25 = vsub.f32 %v6931_v3, %v14734_v33  ;;  %v12932_v36 = vld [vmem:[#allocation16 + $0x2c4] ss:$16 sps:$4 sm:$0xff]  }
 0xcc8   :  { %v6975_v17 = vsub.f32 %v6923_v5, %v14734_v33  ;;  %v6976_v55 = vsub.f32 %v6924_v52, %v14734_v33  ;;  %v6977_v6 = vsub.f32 %v6925_v0, %v14734_v33 }
 0xcc9   :  { %13442 = vrsqrt.f32 %v7022_v40  ;;  %v7001_v20 = vmul.f32 %v6981_v10, %v6981_v10  ;;  %v7002_v49 = vmul.f32 %v6982_v24, %v6982_v24  ;;  %v7003_v41 = vmul.f32 %v6983_v25, %v6983_v25  ;;  %v12935_v40 = vld [vmem:[#allocation16 + $0x2cc] ss:$16 sps:$4 sm:$0xff]   ;;  %v12930_v10 = vld [vmem:[#allocation16 + $0x2c0] ss:$16 sps:$4 sm:$0xff]   ;;  %v12933_v24 = vld [vmem:[#allocation16 + $0x2c8] ss:$16 sps:$4 sm:$0xff]  }
 0xcca   :  { %v6987_v47 = vmul.f32 %v6975_v17, %v6975_v17  ;;  %v6988_v1 = vmul.f32 %v6976_v55, %v6976_v55  ;;  %v6989_v3 = vmul.f32 %v6977_v6, %v6977_v6  ;;  %v12938_v25 = vld [vmem:[#allocation16 + $0x2e4] ss:$16 sps:$4 sm:$0xff]   ;;  %v12941_v17 = vld [vmem:[#allocation16 + $0x2ec] ss:$16 sps:$4 sm:$0xff]   ;;  %v12936_v55 = vld [vmem:[#allocation16 + $0x2e0] ss:$16 sps:$4 sm:$0xff]  }
 0xccb   :  { %v7008_v61 = vadd.f32 %v7002_v49, %v7001_v20  ;;  %v12939_v6 = vld [vmem:[#allocation16 + $0x2e8] ss:$16 sps:$4 sm:$0xff]   ;;  %v12944_v20 = vld [vmem:[#allocation16 + $0x304] ss:$16 sps:$4 sm:$0xff]   ;;  %v12947_v49 = vld [vmem:[#allocation16 + $0x30c] ss:$16 sps:$4 sm:$0xff]  }
 0xccc   :  { %v6994_v29 = vadd.f32 %v6988_v1, %v6987_v47  ;;  %v12942_v47 = vld [vmem:[#allocation16 + $0x300] ss:$16 sps:$4 sm:$0xff]   ;;  %v12945_v1 = vld [vmem:[#allocation16 + $0x308] ss:$16 sps:$4 sm:$0xff]  }
 0xccd   :  { %v7009_v48 = vadd.f32 %v7008_v61, %v7003_v41  ;;  %v12950_v41 = vld [vmem:[#allocation16 + $0x324] ss:$16 sps:$4 sm:$0xff]   ;;  %v12953_v61 = vld [vmem:[#allocation16 + $0x32c] ss:$16 sps:$4 sm:$0xff]  }
 0xcce   :  { %v6995_v54 = vadd.f32 %v6994_v29, %v6989_v3  ;;  %v12948_v3 = vld [vmem:[#allocation16 + $0x320] ss:$16 sps:$4 sm:$0xff]   ;;  %v12951_v29 = vld [vmem:[#allocation16 + $0x328] ss:$16 sps:$4 sm:$0xff]  }
 0xccf   :  { %7010 = vadd.xlane.f32.xlu1 %v7009_v48  ;;  %v12956_v48 = vld [vmem:[#allocation16 + $0x344] ss:$16 sps:$4 sm:$0xff]  }
 0xcd0   :  { %6996 = vadd.xlane.f32.xlu0 %v6995_v54  ;;  %v12959_v54 = vld [vmem:[#allocation16 + $0x34c] ss:$16 sps:$4 sm:$0xff]  }
 0xcd3   :  { %v13443_v5 = vpop.eup %13442 }
 0xcd4   :  { %v7026_v56 = vmul.f32 %v13443_v5, %v14692_v43  ;;  %v7027_v52 = vmul.f32 %v13443_v5, %v14699_v58  ;;  %v7028_v2 = vmul.f32 %v13443_v5, %v14704_v19  ;;  %v7038_v0 = vmul.f32 %v13443_v5, %v14679_v9 }
 0xcd5   :  { %v7039_v18 = vmul.f32 %v13443_v5, %v14682_v26  ;;  %v7040_v59 = vmul.f32 %v13443_v5, %v14687_v28  ;;  %v12894_v28 = vld [vmem:[#allocation16 + $0x200] ss:$16 sps:$4 sm:$0xff]  }
 0xcd6   :  { %7032 = vst [vmem:[#allocation2] sm:$0xff] %v7026_v56  ;;  %7033 = vst [vmem:[#allocation2 + $0x8] sm:$0xff] %v7027_v52  ;;  %v12954_v5 = vld [vmem:[#allocation16 + $0x340] ss:$16 sps:$4 sm:$0xff]   ;;  %v12957_v56 = vld [vmem:[#allocation16 + $0x348] ss:$16 sps:$4 sm:$0xff]  }
 0xcd7   :  { %7034 = vst [vmem:[#allocation2 + $0x10] sm:$0xff] %v7028_v2  ;;  %7044 = vst [vmem:[#allocation2 + $0xc0] sm:$0xff] %v7038_v0  ;;  %v12962_v52 = vld [vmem:[#allocation16 + $0x364] ss:$16 sps:$4 sm:$0xff]   ;;  %v12965_v2 = vld [vmem:[#allocation16 + $0x36c] ss:$16 sps:$4 sm:$0xff]  }
 0xcd8   :  { %7045 = vst [vmem:[#allocation2 + $0xc8] sm:$0xff] %v7039_v18  ;;  %7046 = vst [vmem:[#allocation2 + $0xd0] sm:$0xff] %v7040_v59  ;;  %v12960_v0 = vld [vmem:[#allocation16 + $0x360] ss:$16 sps:$4 sm:$0xff]   ;;  %v12963_v18 = vld [vmem:[#allocation16 + $0x368] ss:$16 sps:$4 sm:$0xff]  }
 0xcd9   :  { %v12968_v59 = vld [vmem:[#allocation16 + $0x384] ss:$16 sps:$4 sm:$0xff]  }
 0xcde   :  { %v7062_v4 = vld [vmem:[#allocation2] ss:$8 sm:$0xf] }
 0xcdf   :  { %v7064_v46 = vor.u32 %v7063_v57, %v7062_v4  ;;  %v7077_v43 = vld [vmem:[#allocation2 + $0xc0] ss:$8 sm:$0xf]  ;;  %v12971_v4 = vld [vmem:[#allocation16 + $0x38c] ss:$16 sps:$4 sm:$0xff]  }
 0xce0   :  { %v7079_v58 = vor.u32 %v7078_v15, %v7077_v43  ;;  %v12966_v57 = vld [vmem:[#allocation16 + $0x380] ss:$16 sps:$4 sm:$0xff]   ;;  %v12974_v43 = vld [vmem:[#allocation16 + $0x3a4] ss:$16 sps:$4 sm:$0xff]   ;;  %v12977_v15 = vld [vmem:[#allocation16 + $0x3ac] ss:$16 sps:$4 sm:$0xff]  }
 0xce1   :  { %7067 = vst [vmem:[#allocation4] ss:$8 sm:$0xf] %v7064_v46  ;;  %7068 = vst [vmem:[#allocation4] ss:$8 sm:$0xf0] %v7064_v46 }
 0xce2   :  { %7083 = vst [vmem:[#allocation4 + $0x1] ss:$8 sm:$0xf] %v7079_v58  ;;  %7084 = vst [vmem:[#allocation4 + $0x1] ss:$8 sm:$0xf0] %v7079_v58 }
 0xce3   :  { %v12969_v46 = vld [vmem:[#allocation16 + $0x388] ss:$16 sps:$4 sm:$0xff]   ;;  %v12972_v58 = vld [vmem:[#allocation16 + $0x3a0] ss:$16 sps:$4 sm:$0xff]  }
 0xce9   :  { %v7089_v9 = vld [vmem:[#allocation4 + $0x8] sm:$0xff]  ;;  %v7088_v26 = vld [vmem:[#allocation4] sm:$0xff]  ;;  %v7091_v30 = vld [vmem:[#allocation4 + $0x18] sm:$0xff] }
 0xcea   :  { %v7101_v19 = vpack.c.bf16 %v7089_v9, %v7089_v9  ;;  %v7100_v51 = vpack.c.bf16 %v7088_v26, %v7088_v26  ;;  %v7103_v14 = vpack.c.bf16 %v7091_v30, %v7091_v30  ;;  %v12975_v9 = vld [vmem:[#allocation16 + $0x3a8] ss:$16 sps:$4 sm:$0xff]   ;;  %v12980_v26 = vld [vmem:[#allocation16 + $0x3c4] ss:$16 sps:$4 sm:$0xff]   ;;  %v12989_v30 = vld [vmem:[#allocation16 + $0x3ec] ss:$16 sps:$4 sm:$0xff]  }
 0xcec   :  { %9470 = vmatprep.mubr.bf16.mxu0 %v7101_v19  ;;  %9716 = vmatprep.mubr.bf16.mxu1 %v7101_v19  ;;  %v12983_v19 = vld [vmem:[#allocation16 + $0x3cc] ss:$16 sps:$4 sm:$0xff]  }
 0xced   :  { %9471 = vmatmul.mubr.bf16.vlgmr.msra.gmra.mrb[92].mxu0 %v7100_v51  ;;  %9717 = vmatmul.mubr.bf16.vlgmr.msra.gmra.mrb[84].mxu1 %v7100_v51  ;;  %v12986_v51 = vld [vmem:[#allocation16 + $0x3e4] ss:$16 sps:$4 sm:$0xff]  }
 0xcee   :  { %9480 = vmatpush1.bf16.msra.mxu0 %v12894_v28  ;;  %9726 = vmatpush1.bf16.msra.mxu1 %v12897_v22  ;;  %v12978_v28 = vld [vmem:[#allocation16 + $0x3c0] ss:$16 sps:$4 sm:$0xff]   ;;  %v12981_v22 = vld [vmem:[#allocation16 + $0x3c8] ss:$16 sps:$4 sm:$0xff]  }
 0xcef   :  { %9511 = vmatprep.mubr.bf16.mxu0 %v7103_v14  ;;  %9757 = vmatprep.mubr.bf16.mxu1 %v7103_v14  ;;  %v12992_v14 = vld [vmem:[#allocation16 + $0x404] ss:$16 sps:$4 sm:$0xff]  }
 0xcf0   :  { %9481 = vmatprep.subr.bf16.mxu0 %v12902_v39  ;;  %9727 = vmatprep.subr.bf16.mxu1 %v12905_v42  ;;  %v12984_v39 = vld [vmem:[#allocation16 + $0x3e0] ss:$16 sps:$4 sm:$0xff]   ;;  %v12987_v42 = vld [vmem:[#allocation16 + $0x3e8] ss:$16 sps:$4 sm:$0xff]  }
 0xcf2   :  { %9482 = vmatpush1.bf16.msra.mxu0 %v12900_v21  ;;  %9728 = vmatpush1.bf16.msra.mxu1 %v12903_v8  ;;  %v12995_v21 = vld [vmem:[#allocation16 + $0x40c] ss:$16 sps:$4 sm:$0xff]  }
 0xcf3   :  { %9483 = vmatprep.subr.bf16.mxu0 %v12908_v7  ;;  %9729 = vmatprep.subr.bf16.mxu1 %v12911_v32  ;;  %v7090_v8 = vld [vmem:[#allocation4 + $0x10] sm:$0xff]  ;;  %v7093_v7 = vld [vmem:[#allocation4 + $0x28] sm:$0xff] }
 0xcf4   :  { %v12990_v32 = vld [vmem:[#allocation16 + $0x400] ss:$16 sps:$4 sm:$0xff]  }
 0xcf6   :  { %9484 = vmatpush1.bf16.msra.mxu0 %v12906_v16  ;;  %9730 = vmatpush1.bf16.msra.mxu1 %v12909_v11  ;;  %v7102_v16 = vpack.c.bf16 %v7090_v8, %v7090_v8  ;;  %v12993_v11 = vld [vmem:[#allocation16 + $0x408] ss:$16 sps:$4 sm:$0xff]   ;;  %v13068_v8 = vld [vmem:[#allocation16 + $0x5a0] ss:$16 sps:$4 sm:$0xff]  }
 0xcf7   :  { %9485 = vmatprep.subr.bf16.mxu0 %v12914_v12  ;;  %9731 = vmatprep.subr.bf16.mxu1 %v12917_v31  ;;  %v7105_v12 = vpack.c.bf16 %v7093_v7, %v7093_v7  ;;  %v12998_v31 = vld [vmem:[#allocation16 + $0x424] ss:$16 sps:$4 sm:$0xff]  }
 0xcfa   :  { %9486 = vmatpush1.bf16.msra.mxu0 %v12912_v63  ;;  %9732 = vmatpush1.bf16.msra.mxu1 %v12915_v34  ;;  %v13001_v63 = vld [vmem:[#allocation16 + $0x42c] ss:$16 sps:$4 sm:$0xff]   ;;  %v12996_v34 = vld [vmem:[#allocation16 + $0x420] ss:$16 sps:$4 sm:$0xff]  }
 0xcfb   :  { %9487 = vmatprep.subr.bf16.mxu0 %v12920_v53  ;;  %9733 = vmatprep.subr.bf16.mxu1 %v12923_v23  ;;  %v12999_v53 = vld [vmem:[#allocation16 + $0x428] ss:$16 sps:$4 sm:$0xff]   ;;  %v13004_v23 = vld [vmem:[#allocation16 + $0x444] ss:$16 sps:$4 sm:$0xff]  }
 0xcfe   :  { %9488 = vmatpush1.bf16.msra.mxu0 %v12918_v62  ;;  %9734 = vmatpush1.bf16.msra.mxu1 %v12921_v50  ;;  %v13007_v62 = vld [vmem:[#allocation16 + $0x44c] ss:$16 sps:$4 sm:$0xff]   ;;  %v13002_v50 = vld [vmem:[#allocation16 + $0x440] ss:$16 sps:$4 sm:$0xff]  }
 0xcff   :  { %9489 = vmatprep.subr.bf16.mxu0 %v12926_v13  ;;  %9735 = vmatprep.subr.bf16.mxu1 %v12929_v60  ;;  %v13005_v13 = vld [vmem:[#allocation16 + $0x448] ss:$16 sps:$4 sm:$0xff]   ;;  %v13010_v60 = vld [vmem:[#allocation16 + $0x464] ss:$16 sps:$4 sm:$0xff]  }
 0xd02   :  { %9490 = vmatpush1.bf16.msra.mxu0 %v12924_v27  ;;  %9736 = vmatpush1.bf16.msra.mxu1 %v12927_v44  ;;  %v13013_v27 = vld [vmem:[#allocation16 + $0x46c] ss:$16 sps:$4 sm:$0xff]   ;;  %v13008_v44 = vld [vmem:[#allocation16 + $0x460] ss:$16 sps:$4 sm:$0xff]  }
 0xd03   :  { %9491 = vmatprep.subr.bf16.mxu0 %v12932_v36  ;;  %9737 = vmatprep.subr.bf16.mxu1 %v12935_v40  ;;  %v13011_v36 = vld [vmem:[#allocation16 + $0x468] ss:$16 sps:$4 sm:$0xff]   ;;  %v13016_v40 = vld [vmem:[#allocation16 + $0x484] ss:$16 sps:$4 sm:$0xff]  }
 0xd06   :  { %9492 = vmatpush1.bf16.msra.mxu0 %v12930_v10  ;;  %9738 = vmatpush1.bf16.msra.mxu1 %v12933_v24  ;;  %v13019_v10 = vld [vmem:[#allocation16 + $0x48c] ss:$16 sps:$4 sm:$0xff]   ;;  %v13014_v24 = vld [vmem:[#allocation16 + $0x480] ss:$16 sps:$4 sm:$0xff]  }
 0xd07   :  { %9493 = vmatprep.subr.bf16.mxu0 %v12938_v25  ;;  %9739 = vmatprep.subr.bf16.mxu1 %v12941_v17  ;;  %v13017_v25 = vld [vmem:[#allocation16 + $0x488] ss:$16 sps:$4 sm:$0xff]   ;;  %v13022_v17 = vld [vmem:[#allocation16 + $0x4a4] ss:$16 sps:$4 sm:$0xff]  }
 0xd0a   :  { %9494 = vmatpush1.bf16.msra.mxu0 %v12936_v55  ;;  %9740 = vmatpush1.bf16.msra.mxu1 %v12939_v6  ;;  %v13025_v55 = vld [vmem:[#allocation16 + $0x4ac] ss:$16 sps:$4 sm:$0xff]   ;;  %v13020_v6 = vld [vmem:[#allocation16 + $0x4a0] ss:$16 sps:$4 sm:$0xff]  }
 0xd0b   :  { %9495 = vmatprep.subr.bf16.mxu0 %v12944_v20  ;;  %9741 = vmatprep.subr.bf16.mxu1 %v12947_v49  ;;  %v13023_v20 = vld [vmem:[#allocation16 + $0x4a8] ss:$16 sps:$4 sm:$0xff]   ;;  %v13028_v49 = vld [vmem:[#allocation16 + $0x4c4] ss:$16 sps:$4 sm:$0xff]  }
 0xd0e   :  { %9496 = vmatpush1.bf16.msra.mxu0 %v12942_v47  ;;  %9742 = vmatpush1.bf16.msra.mxu1 %v12945_v1  ;;  %v13031_v47 = vld [vmem:[#allocation16 + $0x4cc] ss:$16 sps:$4 sm:$0xff]   ;;  %v13026_v1 = vld [vmem:[#allocation16 + $0x4c0] ss:$16 sps:$4 sm:$0xff]  }
 0xd0f   :  { %9497 = vmatprep.subr.bf16.mxu0 %v12950_v41  ;;  %9743 = vmatprep.subr.bf16.mxu1 %v12953_v61  ;;  %v13029_v41 = vld [vmem:[#allocation16 + $0x4c8] ss:$16 sps:$4 sm:$0xff]   ;;  %v13034_v61 = vld [vmem:[#allocation16 + $0x4e4] ss:$16 sps:$4 sm:$0xff]  }
 0xd12   :  { %9498 = vmatpush1.bf16.msra.mxu0 %v12948_v3  ;;  %9744 = vmatpush1.bf16.msra.mxu1 %v12951_v29  ;;  %v13037_v3 = vld [vmem:[#allocation16 + $0x4ec] ss:$16 sps:$4 sm:$0xff]   ;;  %v13032_v29 = vld [vmem:[#allocation16 + $0x4e0] ss:$16 sps:$4 sm:$0xff]  }
 0xd13   :  { %9499 = vmatprep.subr.bf16.mxu0 %v12956_v48  ;;  %9745 = vmatprep.subr.bf16.mxu1 %v12959_v54  ;;  %v13035_v48 = vld [vmem:[#allocation16 + $0x4e8] ss:$16 sps:$4 sm:$0xff]   ;;  %v13040_v54 = vld [vmem:[#allocation16 + $0x504] ss:$16 sps:$4 sm:$0xff]  }
 0xd16   :  { %9500 = vmatpush1.bf16.msra.mxu0 %v12954_v5  ;;  %9746 = vmatpush1.bf16.msra.mxu1 %v12957_v56  ;;  %v13043_v5 = vld [vmem:[#allocation16 + $0x50c] ss:$16 sps:$4 sm:$0xff]   ;;  %v13038_v56 = vld [vmem:[#allocation16 + $0x500] ss:$16 sps:$4 sm:$0xff]  }
 0xd17   :  { %9501 = vmatprep.subr.bf16.mxu0 %v12962_v52  ;;  %9747 = vmatprep.subr.bf16.mxu1 %v12965_v2  ;;  %v13041_v52 = vld [vmem:[#allocation16 + $0x508] ss:$16 sps:$4 sm:$0xff]   ;;  %v13046_v2 = vld [vmem:[#allocation16 + $0x524] ss:$16 sps:$4 sm:$0xff]  }
 0xd1a   :  { %9502 = vmatpush1.bf16.msra.mxu0 %v12960_v0  ;;  %9748 = vmatpush1.bf16.msra.mxu1 %v12963_v18  ;;  %v13049_v0 = vld [vmem:[#allocation16 + $0x52c] ss:$16 sps:$4 sm:$0xff]   ;;  %v13044_v18 = vld [vmem:[#allocation16 + $0x520] ss:$16 sps:$4 sm:$0xff]  }
 0xd1b   :  { %9503 = vmatprep.subr.bf16.mxu0 %v12968_v59  ;;  %9749 = vmatprep.subr.bf16.mxu1 %v12971_v4  ;;  %v13047_v59 = vld [vmem:[#allocation16 + $0x528] ss:$16 sps:$4 sm:$0xff]   ;;  %v13052_v4 = vld [vmem:[#allocation16 + $0x544] ss:$16 sps:$4 sm:$0xff]  }
 0xd1e   :  { %9504 = vmatpush1.bf16.msra.mxu0 %v12966_v57  ;;  %9750 = vmatpush1.bf16.msra.mxu1 %v12969_v46  ;;  %v13055_v57 = vld [vmem:[#allocation16 + $0x54c] ss:$16 sps:$4 sm:$0xff]   ;;  %v13050_v46 = vld [vmem:[#allocation16 + $0x540] ss:$16 sps:$4 sm:$0xff]  }
 0xd1f   :  { %9505 = vmatprep.subr.bf16.mxu0 %v12974_v43  ;;  %9751 = vmatprep.subr.bf16.mxu1 %v12977_v15  ;;  %v13053_v43 = vld [vmem:[#allocation16 + $0x548] ss:$16 sps:$4 sm:$0xff]   ;;  %v13058_v15 = vld [vmem:[#allocation16 + $0x564] ss:$16 sps:$4 sm:$0xff]  }
 0xd22   :  { %9506 = vmatpush1.bf16.msra.mxu0 %v12972_v58  ;;  %9752 = vmatpush1.bf16.msra.mxu1 %v12975_v9  ;;  %v13061_v58 = vld [vmem:[#allocation16 + $0x56c] ss:$16 sps:$4 sm:$0xff]   ;;  %v13056_v9 = vld [vmem:[#allocation16 + $0x560] ss:$16 sps:$4 sm:$0xff]  }
 0xd23   :  { %9507 = vmatprep.subr.bf16.mxu0 %v12980_v26  ;;  %9753 = vmatprep.subr.bf16.mxu1 %v12983_v19  ;;  %v13059_v26 = vld [vmem:[#allocation16 + $0x568] ss:$16 sps:$4 sm:$0xff]   ;;  %v13064_v19 = vld [vmem:[#allocation16 + $0x584] ss:$16 sps:$4 sm:$0xff]  }
 0xd26   :  { %9508 = vmatpush1.bf16.msra.mxu0 %v12978_v28  ;;  %9754 = vmatpush1.bf16.msra.mxu1 %v12981_v22  ;;  %v13067_v28 = vld [vmem:[#allocation16 + $0x58c] ss:$16 sps:$4 sm:$0xff]   ;;  %v13062_v22 = vld [vmem:[#allocation16 + $0x580] ss:$16 sps:$4 sm:$0xff]  }
 0xd27   :  { %9509 = vmatprep.subr.bf16.mxu0 %v12986_v51  ;;  %9755 = vmatprep.subr.bf16.mxu1 %v12989_v30  ;;  %v13065_v51 = vld [vmem:[#allocation16 + $0x588] ss:$16 sps:$4 sm:$0xff]   ;;  %v7015_v30 = vmul.f32 168.0, %v14734_v33 }
 0xd29   :  { %v7017_v7 = vmul.f32 %v7015_v30, %v14734_v33  ;;  %v13083_v33 = vld [vmem:[#allocation16 + $0x5e8] ss:$16 sps:$4 sm:$0xff]  }
 0xd2a   :  { %9510 = vmatpush1.bf16.msra.mxu0 %v12984_v39  ;;  %9756 = vmatpush1.bf16.msra.mxu1 %v12987_v42  ;;  %v13070_v39 = vld [vmem:[#allocation16 + $0x5a4] ss:$16 sps:$4 sm:$0xff]   ;;  %v13073_v42 = vld [vmem:[#allocation16 + $0x5ac] ss:$16 sps:$4 sm:$0xff]   ;;  %v13137_v30 = vld [vmem:[#allocation16 + $0x708] ss:$16 sps:$4 sm:$0xff]  }
 0xd2b   :  { %9520 = vmatprep.subr.bf16.mxu0 %v12992_v14  ;;  %9766 = vmatprep.subr.bf16.mxu1 %v12995_v21 }
 0xd2d   :  { %9512 = vmatmul.mubr.bf16.vlgmr.msra.gmra.mrb[92].mxu0 %v7102_v16  ;;  %9758 = vmatmul.mubr.bf16.vlgmr.msra.gmra.mrb[84].mxu1 %v7102_v16  ;;  %v13071_v16 = vld [vmem:[#allocation16 + $0x5a8] ss:$16 sps:$4 sm:$0xff]  }
 0xd2e   :  { %9521 = vmatpush1.bf16.msra.mxu0 %v12990_v32  ;;  %9552 = vmatprep.mubr.bf16.mxu0 %v7105_v12 }
 0xd2f   :  { %9767 = vmatpush1.bf16.msra.mxu1 %v12993_v11  ;;  %9798 = vmatprep.mubr.bf16.mxu1 %v7105_v12  ;;  %v13076_v11 = vld [vmem:[#allocation16 + $0x5c4] ss:$16 sps:$4 sm:$0xff]   ;;  %v13079_v12 = vld [vmem:[#allocation16 + $0x5cc] ss:$16 sps:$4 sm:$0xff]  }
 0xd30   :  { %9522 = vmatprep.subr.bf16.mxu0 %v12998_v31  ;;  %9768 = vmatprep.subr.bf16.mxu1 %v13001_v63  ;;  %v13074_v63 = vld [vmem:[#allocation16 + $0x5c0] ss:$16 sps:$4 sm:$0xff]  }
 0xd32   :  { %9523 = vmatpush1.bf16.msra.mxu0 %v12996_v34 }
 0xd33   :  { %9769 = vmatpush1.bf16.msra.mxu1 %v12999_v53  ;;  %9524 = vmatprep.subr.bf16.mxu0 %v13004_v23  ;;  %v13077_v53 = vld [vmem:[#allocation16 + $0x5c8] ss:$16 sps:$4 sm:$0xff]   ;;  %v13082_v23 = vld [vmem:[#allocation16 + $0x5e4] ss:$16 sps:$4 sm:$0xff]  }
 0xd34   :  { %9770 = vmatprep.subr.bf16.mxu1 %v13007_v62  ;;  %v13085_v62 = vld [vmem:[#allocation16 + $0x5ec] ss:$16 sps:$4 sm:$0xff]  }
 0xd36   :  { %9525 = vmatpush1.bf16.msra.mxu0 %v13002_v50 }
 0xd37   :  { %9771 = vmatpush1.bf16.msra.mxu1 %v13005_v13  ;;  %9526 = vmatprep.subr.bf16.mxu0 %v13010_v60  ;;  %v13080_v13 = vld [vmem:[#allocation16 + $0x5e0] ss:$16 sps:$4 sm:$0xff]   ;;  %v13088_v60 = vld [vmem:[#allocation16 + $0x604] ss:$16 sps:$4 sm:$0xff]  }
 0xd38   :  { %9772 = vmatprep.subr.bf16.mxu1 %v13013_v27  ;;  %v7092_v27 = vld [vmem:[#allocation4 + $0x20] sm:$0xff] }
 0xd3a   :  { %9527 = vmatpush1.bf16.msra.mxu0 %v13008_v44  ;;  %v13091_v44 = vld [vmem:[#allocation16 + $0x60c] ss:$16 sps:$4 sm:$0xff]  }
 0xd3b   :  { %9773 = vmatpush1.bf16.msra.mxu1 %v13011_v36  ;;  %9528 = vmatprep.subr.bf16.mxu0 %v13016_v40  ;;  %v13086_v36 = vld [vmem:[#allocation16 + $0x600] ss:$16 sps:$4 sm:$0xff]  }
 0xd3c   :  { %9774 = vmatprep.subr.bf16.mxu1 %v13019_v10  ;;  %v7095_v40 = vld [vmem:[#allocation4 + $0x38] sm:$0xff]  ;;  %v7104_v10 = vpack.c.bf16 %v7092_v27, %v7092_v27 }
 0xd3d   :  { %v13172_v27 = vld [vmem:[#allocation16 + $0x7c4] ss:$16 sps:$4 sm:$0xff]  }
 0xd3e   :  { %9529 = vmatpush1.bf16.msra.mxu0 %v13014_v24  ;;  %v13089_v24 = vld [vmem:[#allocation16 + $0x608] ss:$16 sps:$4 sm:$0xff]  }
 0xd3f   :  { %9775 = vmatpush1.bf16.msra.mxu1 %v13017_v25  ;;  %9530 = vmatprep.subr.bf16.mxu0 %v13022_v17  ;;  %v13094_v25 = vld [vmem:[#allocation16 + $0x624] ss:$16 sps:$4 sm:$0xff]   ;;  %v7107_v17 = vpack.c.bf16 %v7095_v40, %v7095_v40  ;;  %v13173_v40 = vld [vmem:[#allocation16 + $0x7c8] ss:$16 sps:$4 sm:$0xff]  }
 0xd40   :  { %9776 = vmatprep.subr.bf16.mxu1 %v13025_v55  ;;  %v13097_v55 = vld [vmem:[#allocation16 + $0x62c] ss:$16 sps:$4 sm:$0xff]  }
 0xd42   :  { %9531 = vmatpush1.bf16.msra.mxu0 %v13020_v6  ;;  %v13092_v6 = vld [vmem:[#allocation16 + $0x620] ss:$16 sps:$4 sm:$0xff]  }
 0xd43   :  { %9777 = vmatpush1.bf16.msra.mxu1 %v13023_v20  ;;  %9532 = vmatprep.subr.bf16.mxu0 %v13028_v49  ;;  %v13095_v20 = vld [vmem:[#allocation16 + $0x628] ss:$16 sps:$4 sm:$0xff]   ;;  %v13100_v49 = vld [vmem:[#allocation16 + $0x644] ss:$16 sps:$4 sm:$0xff]  }
 0xd44   :  { %9778 = vmatprep.subr.bf16.mxu1 %v13031_v47  ;;  %v13103_v47 = vld [vmem:[#allocation16 + $0x64c] ss:$16 sps:$4 sm:$0xff]  }
 0xd46   :  { %9533 = vmatpush1.bf16.msra.mxu0 %v13026_v1 }
 0xd47   :  { %9779 = vmatpush1.bf16.msra.mxu1 %v13029_v41  ;;  %9534 = vmatprep.subr.bf16.mxu0 %v13034_v61  ;;  %v13098_v41 = vld [vmem:[#allocation16 + $0x640] ss:$16 sps:$4 sm:$0xff]   ;;  %v13101_v61 = vld [vmem:[#allocation16 + $0x648] ss:$16 sps:$4 sm:$0xff]  }
 0xd48   :  { %9780 = vmatprep.subr.bf16.mxu1 %v13037_v3  ;;  %v13106_v3 = vld [vmem:[#allocation16 + $0x664] ss:$16 sps:$4 sm:$0xff]  }
 0xd4a   :  { %9535 = vmatpush1.bf16.msra.mxu0 %v13032_v29  ;;  %v13109_v29 = vld [vmem:[#allocation16 + $0x66c] ss:$16 sps:$4 sm:$0xff]  }
 0xd4b   :  { %9781 = vmatpush1.bf16.msra.mxu1 %v13035_v48  ;;  %9536 = vmatprep.subr.bf16.mxu0 %v13040_v54  ;;  %v13104_v48 = vld [vmem:[#allocation16 + $0x660] ss:$16 sps:$4 sm:$0xff]   ;;  %v13107_v54 = vld [vmem:[#allocation16 + $0x668] ss:$16 sps:$4 sm:$0xff]  }
 0xd4c   :  { %9782 = vmatprep.subr.bf16.mxu1 %v13043_v5  ;;  %v13112_v5 = vld [vmem:[#allocation16 + $0x684] ss:$16 sps:$4 sm:$0xff]  }
 0xd4e   :  { %9537 = vmatpush1.bf16.msra.mxu0 %v13038_v56  ;;  %v13115_v56 = vld [vmem:[#allocation16 + $0x68c] ss:$16 sps:$4 sm:$0xff]  }
 0xd4f   :  { %9783 = vmatpush1.bf16.msra.mxu1 %v13041_v52  ;;  %9538 = vmatprep.subr.bf16.mxu0 %v13046_v2  ;;  %v13110_v52 = vld [vmem:[#allocation16 + $0x680] ss:$16 sps:$4 sm:$0xff]   ;;  %v13113_v2 = vld [vmem:[#allocation16 + $0x688] ss:$16 sps:$4 sm:$0xff]  }
 0xd50   :  { %9784 = vmatprep.subr.bf16.mxu1 %v13049_v0  ;;  %v13118_v0 = vld [vmem:[#allocation16 + $0x6a4] ss:$16 sps:$4 sm:$0xff]  }
 0xd52   :  { %9539 = vmatpush1.bf16.msra.mxu0 %v13044_v18  ;;  %v13121_v18 = vld [vmem:[#allocation16 + $0x6ac] ss:$16 sps:$4 sm:$0xff]  }
 0xd53   :  { %9785 = vmatpush1.bf16.msra.mxu1 %v13047_v59  ;;  %9540 = vmatprep.subr.bf16.mxu0 %v13052_v4  ;;  %v13116_v59 = vld [vmem:[#allocation16 + $0x6a0] ss:$16 sps:$4 sm:$0xff]   ;;  %v13119_v4 = vld [vmem:[#allocation16 + $0x6a8] ss:$16 sps:$4 sm:$0xff]  }
 0xd54   :  { %9786 = vmatprep.subr.bf16.mxu1 %v13055_v57  ;;  %v13124_v57 = vld [vmem:[#allocation16 + $0x6c4] ss:$16 sps:$4 sm:$0xff]  }
 0xd56   :  { %9541 = vmatpush1.bf16.msra.mxu0 %v13050_v46  ;;  %v13127_v46 = vld [vmem:[#allocation16 + $0x6cc] ss:$16 sps:$4 sm:$0xff]  }
 0xd57   :  { %9787 = vmatpush1.bf16.msra.mxu1 %v13053_v43  ;;  %9542 = vmatprep.subr.bf16.mxu0 %v13058_v15  ;;  %v13122_v43 = vld [vmem:[#allocation16 + $0x6c0] ss:$16 sps:$4 sm:$0xff]   ;;  %v13125_v15 = vld [vmem:[#allocation16 + $0x6c8] ss:$16 sps:$4 sm:$0xff]  }
 0xd58   :  { %9788 = vmatprep.subr.bf16.mxu1 %v13061_v58  ;;  %v13130_v58 = vld [vmem:[#allocation16 + $0x6e4] ss:$16 sps:$4 sm:$0xff]  }
 0xd5a   :  { %9543 = vmatpush1.bf16.msra.mxu0 %v13056_v9  ;;  %v13133_v9 = vld [vmem:[#allocation16 + $0x6ec] ss:$16 sps:$4 sm:$0xff]  }
 0xd5b   :  { %9789 = vmatpush1.bf16.msra.mxu1 %v13059_v26  ;;  %9544 = vmatprep.subr.bf16.mxu0 %v13064_v19  ;;  %v13128_v26 = vld [vmem:[#allocation16 + $0x6e0] ss:$16 sps:$4 sm:$0xff]   ;;  %v13131_v19 = vld [vmem:[#allocation16 + $0x6e8] ss:$16 sps:$4 sm:$0xff]  }
 0xd5c   :  { %9790 = vmatprep.subr.bf16.mxu1 %v13067_v28  ;;  %v7011_v14 = vpop.xlane.xlu1 %7010  ;;  %v13136_v28 = vld [vmem:[#allocation16 + $0x704] ss:$16 sps:$4 sm:$0xff]  }
 0xd5d   :  { %v6997_v21 = vpop.xlane.xlu0 %6996 }
 0xd5e   :  { %9545 = vmatpush1.bf16.msra.mxu0 %v13062_v22  ;;  %v7013_v32 = vadd.f32 %v7011_v14, %v6997_v21  ;;  %v13139_v22 = vld [vmem:[#allocation16 + $0x70c] ss:$16 sps:$4 sm:$0xff]   ;;  %v13140_v14 = vld [vmem:[#allocation16 + $0x720] ss:$16 sps:$4 sm:$0xff]   ;;  %v13143_v21 = vld [vmem:[#allocation16 + $0x728] ss:$16 sps:$4 sm:$0xff]  }
 0xd5f   :  { %9791 = vmatpush1.bf16.msra.mxu1 %v13065_v51  ;;  %9546 = vmatprep.subr.bf16.mxu0 %v13070_v39  ;;  %v13134_v51 = vld [vmem:[#allocation16 + $0x700] ss:$16 sps:$4 sm:$0xff]   ;;  %v13142_v39 = vld [vmem:[#allocation16 + $0x724] ss:$16 sps:$4 sm:$0xff]  }
 0xd60   :  { %9792 = vmatprep.subr.bf16.mxu1 %v13073_v42  ;;  %v7019_v31 = vsub.f32 %v7013_v32, %v7017_v7  ;;  %v13145_v42 = vld [vmem:[#allocation16 + $0x72c] ss:$16 sps:$4 sm:$0xff]   ;;  %v13146_v32 = vld [vmem:[#allocation16 + $0x740] ss:$16 sps:$4 sm:$0xff]  }
 0xd61   :  { %v13151_v7 = vld [vmem:[#allocation16 + $0x74c] ss:$16 sps:$4 sm:$0xff]  }
 0xd62   :  { %9547 = vmatpush1.bf16.msra.mxu0 %v13068_v8  ;;  %v7021_v34 = vmul.f32 0.0016666667, %v7019_v31  ;;  %v13148_v8 = vld [vmem:[#allocation16 + $0x744] ss:$16 sps:$4 sm:$0xff]   ;;  %v13152_v31 = vld [vmem:[#allocation16 + $0x760] ss:$16 sps:$4 sm:$0xff]  }
 0xd63   :  { %9793 = vmatpush1.bf16.msra.mxu1 %v13071_v16  ;;  %9548 = vmatprep.subr.bf16.mxu0 %v13076_v11  ;;  %v13149_v16 = vld [vmem:[#allocation16 + $0x748] ss:$16 sps:$4 sm:$0xff]   ;;  %v13154_v11 = vld [vmem:[#allocation16 + $0x764] ss:$16 sps:$4 sm:$0xff]  }
 0xd64   :  { %9794 = vmatprep.subr.bf16.mxu1 %v13079_v12  ;;  %v7023_v50 = vadd.f32 1e-05, %v7021_v34  ;;  %v13157_v12 = vld [vmem:[#allocation16 + $0x76c] ss:$16 sps:$4 sm:$0xff]   ;;  %v13160_v34 = vld [vmem:[#allocation16 + $0x784] ss:$16 sps:$4 sm:$0xff]  }
 0xd66   :  { %9549 = vmatpush1.bf16.msra.mxu0 %v13074_v63  ;;  %13444 = vrsqrt.f32 %v7023_v50  ;;  %v13155_v63 = vld [vmem:[#allocation16 + $0x768] ss:$16 sps:$4 sm:$0xff]   ;;  %v13166_v50 = vld [vmem:[#allocation16 + $0x7a4] ss:$16 sps:$4 sm:$0xff]  }
 0xd67   :  { %9795 = vmatpush1.bf16.msra.mxu1 %v13077_v53  ;;  %9550 = vmatprep.subr.bf16.mxu0 %v13082_v23  ;;  %v13163_v53 = vld [vmem:[#allocation16 + $0x78c] ss:$16 sps:$4 sm:$0xff]   ;;  %v13158_v23 = vld [vmem:[#allocation16 + $0x780] ss:$16 sps:$4 sm:$0xff]  }
 0xd68   :  { %9796 = vmatprep.subr.bf16.mxu1 %v13085_v62  ;;  %v13161_v62 = vld [vmem:[#allocation16 + $0x788] ss:$16 sps:$4 sm:$0xff]  }
 0xd6a   :  { %9551 = vmatpush1.bf16.msra.mxu0 %v13080_v13  ;;  %v13169_v13 = vld [vmem:[#allocation16 + $0x7ac] ss:$16 sps:$4 sm:$0xff]  }
 0xd6b   :  { %9797 = vmatpush1.bf16.msra.mxu1 %v13083_v33  ;;  %9561 = vmatprep.subr.bf16.mxu0 %v13088_v60  ;;  %v13164_v33 = vld [vmem:[#allocation16 + $0x7a0] ss:$16 sps:$4 sm:$0xff]   ;;  %v13167_v60 = vld [vmem:[#allocation16 + $0x7a8] ss:$16 sps:$4 sm:$0xff]  }
 0xd6c   :  { %9807 = vmatprep.subr.bf16.mxu1 %v13091_v44  ;;  %v13175_v44 = vld [vmem:[#allocation16 + $0x7cc] ss:$16 sps:$4 sm:$0xff]  }
 0xd6d   :  { %9553 = vmatmul.mubr.bf16.vlgmr.msra.gmra.mrb[92].mxu0 %v7104_v10 }
 0xd6e   :  { %9799 = vmatmul.mubr.bf16.vlgmr.msra.gmra.mrb[84].mxu1 %v7104_v10  ;;  %9562 = vmatpush1.bf16.msra.mxu0 %v13086_v36  ;;  %v13170_v36 = vld [vmem:[#allocation16 + $0x7c0] ss:$16 sps:$4 sm:$0xff]   ;;  %v13178_v10 = vld [vmem:[#allocation16 + $0x7e4] ss:$16 sps:$4 sm:$0xff]  }
 0xd6f   :  { %9593 = vmatprep.mubr.bf16.mxu0 %v7107_v17  ;;  %9808 = vmatpush1.bf16.msra.mxu1 %v13089_v24  ;;  %v13181_v24 = vld [vmem:[#allocation16 + $0x7ec] ss:$16 sps:$4 sm:$0xff]  }
 0xd70   :  { %9839 = vmatprep.mubr.bf16.mxu1 %v7107_v17  ;;  %9563 = vmatprep.subr.bf16.mxu0 %v13094_v25  ;;  %v13445_v1 = vpop.eup %13444  ;;  %v13176_v25 = vld [vmem:[#allocation16 + $0x7e0] ss:$16 sps:$4 sm:$0xff]   ;;  %v13179_v17 = vld [vmem:[#allocation16 + $0x7e8] ss:$16 sps:$4 sm:$0xff]  }
 0xd71   :  { %9809 = vmatprep.subr.bf16.mxu1 %v13097_v55  ;;  %v13184_v55 = vld [vmem:[#allocation16 + $0x804] ss:$16 sps:$4 sm:$0xff]  }
 0xd72   :  { %9564 = vmatpush1.bf16.msra.mxu0 %v13092_v6  ;;  %v7094_v6 = vld [vmem:[#allocation4 + $0x30] sm:$0xff] }
 0xd73   :  { %9810 = vmatpush1.bf16.msra.mxu1 %v13095_v20  ;;  %9565 = vmatprep.subr.bf16.mxu0 %v13100_v49  ;;  %v13187_v20 = vld [vmem:[#allocation16 + $0x80c] ss:$16 sps:$4 sm:$0xff]   ;;  %v13182_v49 = vld [vmem:[#allocation16 + $0x800] ss:$16 sps:$4 sm:$0xff]   ;;  %v7106_v1 = vpack.c.bf16 %v7094_v6, %v7094_v6 }
 0xd74   :  { %9811 = vmatprep.subr.bf16.mxu1 %v13103_v47  ;;  %v7097_v47 = vld [vmem:[#allocation4 + $0x48] sm:$0xff]  ;;  %v13271_v6 = vld [vmem:[#allocation16 + $0x9cc] ss:$16 sps:$4 sm:$0xff]  }
 0xd76   :  { %9566 = vmatpush1.bf16.msra.mxu0 %v13098_v41  ;;  %v13185_v41 = vld [vmem:[#allocation16 + $0x808] ss:$16 sps:$4 sm:$0xff]  }
 0xd77   :  { %9812 = vmatpush1.bf16.msra.mxu1 %v13101_v61  ;;  %9567 = vmatprep.subr.bf16.mxu0 %v13106_v3  ;;  %v13190_v61 = vld [vmem:[#allocation16 + $0x824] ss:$16 sps:$4 sm:$0xff]   ;;  %v7109_v3 = vpack.c.bf16 %v7097_v47, %v7097_v47 }
 0xd78   :  { %9813 = vmatprep.subr.bf16.mxu1 %v13109_v29  ;;  %v13193_v29 = vld [vmem:[#allocation16 + $0x82c] ss:$16 sps:$4 sm:$0xff]   ;;  %v13274_v47 = vld [vmem:[#allocation16 + $0x9e4] ss:$16 sps:$4 sm:$0xff]  }
 0xd7a   :  { %9568 = vmatpush1.bf16.msra.mxu0 %v13104_v48  ;;  %v13188_v48 = vld [vmem:[#allocation16 + $0x820] ss:$16 sps:$4 sm:$0xff]  }
 0xd7b   :  { %9814 = vmatpush1.bf16.msra.mxu1 %v13107_v54  ;;  %9569 = vmatprep.subr.bf16.mxu0 %v13112_v5  ;;  %v13191_v54 = vld [vmem:[#allocation16 + $0x828] ss:$16 sps:$4 sm:$0xff]   ;;  %v13196_v5 = vld [vmem:[#allocation16 + $0x844] ss:$16 sps:$4 sm:$0xff]  }
 0xd7c   :  { %9815 = vmatprep.subr.bf16.mxu1 %v13115_v56  ;;  %v13199_v56 = vld [vmem:[#allocation16 + $0x84c] ss:$16 sps:$4 sm:$0xff]  }
 0xd7e   :  { %9570 = vmatpush1.bf16.msra.mxu0 %v13110_v52  ;;  %v13194_v52 = vld [vmem:[#allocation16 + $0x840] ss:$16 sps:$4 sm:$0xff]  }
 0xd7f   :  { %9816 = vmatpush1.bf16.msra.mxu1 %v13113_v2  ;;  %9571 = vmatprep.subr.bf16.mxu0 %v13118_v0  ;;  %v13197_v2 = vld [vmem:[#allocation16 + $0x848] ss:$16 sps:$4 sm:$0xff]   ;;  %v13202_v0 = vld [vmem:[#allocation16 + $0x864] ss:$16 sps:$4 sm:$0xff]  }
 0xd80   :  { %9817 = vmatprep.subr.bf16.mxu1 %v13121_v18  ;;  %v13205_v18 = vld [vmem:[#allocation16 + $0x86c] ss:$16 sps:$4 sm:$0xff]  }
 0xd82   :  { %9572 = vmatpush1.bf16.msra.mxu0 %v13116_v59  ;;  %v13200_v59 = vld [vmem:[#allocation16 + $0x860] ss:$16 sps:$4 sm:$0xff]  }
 0xd83   :  { %9818 = vmatpush1.bf16.msra.mxu1 %v13119_v4  ;;  %9573 = vmatprep.subr.bf16.mxu0 %v13124_v57  ;;  %v13203_v4 = vld [vmem:[#allocation16 + $0x868] ss:$16 sps:$4 sm:$0xff]   ;;  %v13208_v57 = vld [vmem:[#allocation16 + $0x884] ss:$16 sps:$4 sm:$0xff]  }
 0xd84   :  { %9819 = vmatprep.subr.bf16.mxu1 %v13127_v46  ;;  %v13211_v46 = vld [vmem:[#allocation16 + $0x88c] ss:$16 sps:$4 sm:$0xff]  }
 0xd86   :  { %9574 = vmatpush1.bf16.msra.mxu0 %v13122_v43  ;;  %v13206_v43 = vld [vmem:[#allocation16 + $0x880] ss:$16 sps:$4 sm:$0xff]  }
 0xd87   :  { %9820 = vmatpush1.bf16.msra.mxu1 %v13125_v15  ;;  %9575 = vmatprep.subr.bf16.mxu0 %v13130_v58  ;;  %v13209_v15 = vld [vmem:[#allocation16 + $0x888] ss:$16 sps:$4 sm:$0xff]   ;;  %v13214_v58 = vld [vmem:[#allocation16 + $0x8a4] ss:$16 sps:$4 sm:$0xff]  }
 0xd88   :  { %9821 = vmatprep.subr.bf16.mxu1 %v13133_v9  ;;  %v13217_v9 = vld [vmem:[#allocation16 + $0x8ac] ss:$16 sps:$4 sm:$0xff]  }
 0xd8a   :  { %9576 = vmatpush1.bf16.msra.mxu0 %v13128_v26  ;;  %v13212_v26 = vld [vmem:[#allocation16 + $0x8a0] ss:$16 sps:$4 sm:$0xff]  }
 0xd8b   :  { %9822 = vmatpush1.bf16.msra.mxu1 %v13131_v19  ;;  %9577 = vmatprep.subr.bf16.mxu0 %v13136_v28  ;;  %v13215_v19 = vld [vmem:[#allocation16 + $0x8a8] ss:$16 sps:$4 sm:$0xff]   ;;  %v13220_v28 = vld [vmem:[#allocation16 + $0x8c4] ss:$16 sps:$4 sm:$0xff]  }
 0xd8c   :  { %9823 = vmatprep.subr.bf16.mxu1 %v13139_v22  ;;  %v13223_v22 = vld [vmem:[#allocation16 + $0x8cc] ss:$16 sps:$4 sm:$0xff]  }
 0xd8e   :  { %9578 = vmatpush1.bf16.msra.mxu0 %v13134_v51  ;;  %v13218_v51 = vld [vmem:[#allocation16 + $0x8c0] ss:$16 sps:$4 sm:$0xff]  }
 0xd8f   :  { %9824 = vmatpush1.bf16.msra.mxu1 %v13137_v30  ;;  %9579 = vmatprep.subr.bf16.mxu0 %v13142_v39  ;;  %v13221_v30 = vld [vmem:[#allocation16 + $0x8c8] ss:$16 sps:$4 sm:$0xff]   ;;  %v13226_v39 = vld [vmem:[#allocation16 + $0x8e4] ss:$16 sps:$4 sm:$0xff]  }
 0xd90   :  { %9825 = vmatprep.subr.bf16.mxu1 %v13145_v42  ;;  %v13229_v42 = vld [vmem:[#allocation16 + $0x8ec] ss:$16 sps:$4 sm:$0xff]  }
 0xd92   :  { %9580 = vmatpush1.bf16.msra.mxu0 %v13140_v14  ;;  %v13224_v14 = vld [vmem:[#allocation16 + $0x8e0] ss:$16 sps:$4 sm:$0xff]  }
 0xd93   :  { %9826 = vmatpush1.bf16.msra.mxu1 %v13143_v21  ;;  %9581 = vmatprep.subr.bf16.mxu0 %v13148_v8  ;;  %v13227_v21 = vld [vmem:[#allocation16 + $0x8e8] ss:$16 sps:$4 sm:$0xff]   ;;  %v13232_v8 = vld [vmem:[#allocation16 + $0x904] ss:$16 sps:$4 sm:$0xff]  }
 0xd94   :  { %9827 = vmatprep.subr.bf16.mxu1 %v13151_v7  ;;  %v13235_v7 = vld [vmem:[#allocation16 + $0x90c] ss:$16 sps:$4 sm:$0xff]  }
 0xd96   :  { %9582 = vmatpush1.bf16.msra.mxu0 %v13146_v32  ;;  %v13230_v32 = vld [vmem:[#allocation16 + $0x900] ss:$16 sps:$4 sm:$0xff]  }
 0xd97   :  { %9828 = vmatpush1.bf16.msra.mxu1 %v13149_v16  ;;  %9583 = vmatprep.subr.bf16.mxu0 %v13154_v11  ;;  %v13233_v16 = vld [vmem:[#allocation16 + $0x908] ss:$16 sps:$4 sm:$0xff]   ;;  %v13238_v11 = vld [vmem:[#allocation16 + $0x924] ss:$16 sps:$4 sm:$0xff]  }
 0xd98   :  { %9829 = vmatprep.subr.bf16.mxu1 %v13157_v12  ;;  %v13241_v12 = vld [vmem:[#allocation16 + $0x92c] ss:$16 sps:$4 sm:$0xff]  }
 0xd9a   :  { %9584 = vmatpush1.bf16.msra.mxu0 %v13152_v31  ;;  %v13236_v31 = vld [vmem:[#allocation16 + $0x920] ss:$16 sps:$4 sm:$0xff]  }
 0xd9b   :  { %9830 = vmatpush1.bf16.msra.mxu1 %v13155_v63  ;;  %9585 = vmatprep.subr.bf16.mxu0 %v13160_v34  ;;  %v13239_v63 = vld [vmem:[#allocation16 + $0x928] ss:$16 sps:$4 sm:$0xff]   ;;  %v13244_v34 = vld [vmem:[#allocation16 + $0x944] ss:$16 sps:$4 sm:$0xff]  }
 0xd9c   :  { %9831 = vmatprep.subr.bf16.mxu1 %v13163_v53  ;;  %v13247_v53 = vld [vmem:[#allocation16 + $0x94c] ss:$16 sps:$4 sm:$0xff]  }
 0xd9e   :  { %9586 = vmatpush1.bf16.msra.mxu0 %v13158_v23  ;;  %v13242_v23 = vld [vmem:[#allocation16 + $0x940] ss:$16 sps:$4 sm:$0xff]  }
 0xd9f   :  { %9832 = vmatpush1.bf16.msra.mxu1 %v13161_v62  ;;  %9587 = vmatprep.subr.bf16.mxu0 %v13166_v50  ;;  %v13245_v62 = vld [vmem:[#allocation16 + $0x948] ss:$16 sps:$4 sm:$0xff]   ;;  %v13250_v50 = vld [vmem:[#allocation16 + $0x964] ss:$16 sps:$4 sm:$0xff]  }
 0xda0   :  { %9833 = vmatprep.subr.bf16.mxu1 %v13169_v13  ;;  %v13253_v13 = vld [vmem:[#allocation16 + $0x96c] ss:$16 sps:$4 sm:$0xff]  }
 0xda2   :  { %9588 = vmatpush1.bf16.msra.mxu0 %v13164_v33  ;;  %v13248_v33 = vld [vmem:[#allocation16 + $0x960] ss:$16 sps:$4 sm:$0xff]  }
 0xda3   :  { %9834 = vmatpush1.bf16.msra.mxu1 %v13167_v60  ;;  %9589 = vmatprep.subr.bf16.mxu0 %v13172_v27  ;;  %v13251_v60 = vld [vmem:[#allocation16 + $0x968] ss:$16 sps:$4 sm:$0xff]   ;;  %v13256_v27 = vld [vmem:[#allocation16 + $0x984] ss:$16 sps:$4 sm:$0xff]  }
 0xda4   :  { %9835 = vmatprep.subr.bf16.mxu1 %v13175_v44  ;;  %v13259_v44 = vld [vmem:[#allocation16 + $0x98c] ss:$16 sps:$4 sm:$0xff]  }
 0xda6   :  { %9590 = vmatpush1.bf16.msra.mxu0 %v13170_v36  ;;  %v13254_v36 = vld [vmem:[#allocation16 + $0x980] ss:$16 sps:$4 sm:$0xff]  }
 0xda7   :  { %9836 = vmatpush1.bf16.msra.mxu1 %v13173_v40  ;;  %9591 = vmatprep.subr.bf16.mxu0 %v13178_v10  ;;  %v13257_v40 = vld [vmem:[#allocation16 + $0x988] ss:$16 sps:$4 sm:$0xff]   ;;  %v13262_v10 = vld [vmem:[#allocation16 + $0x9a4] ss:$16 sps:$4 sm:$0xff]  }
 0xda8   :  { %9837 = vmatprep.subr.bf16.mxu1 %v13181_v24  ;;  %v13265_v24 = vld [vmem:[#allocation16 + $0x9ac] ss:$16 sps:$4 sm:$0xff]  }
 0xdaa   :  { %9592 = vmatpush1.bf16.msra.mxu0 %v13176_v25  ;;  %v13260_v25 = vld [vmem:[#allocation16 + $0x9a0] ss:$16 sps:$4 sm:$0xff]  }
 0xdab   :  { %9838 = vmatpush1.bf16.msra.mxu1 %v13179_v17  ;;  %9602 = vmatprep.subr.bf16.mxu0 %v13184_v55  ;;  %v13263_v17 = vld [vmem:[#allocation16 + $0x9a8] ss:$16 sps:$4 sm:$0xff]   ;;  %v13268_v55 = vld [vmem:[#allocation16 + $0x9c4] ss:$16 sps:$4 sm:$0xff]  }
 0xdac   :  { %9848 = vmatprep.subr.bf16.mxu1 %v13187_v20  ;;  %v13266_v20 = vld [vmem:[#allocation16 + $0x9c0] ss:$16 sps:$4 sm:$0xff]  }
 0xdad   :  { %9594 = vmatmul.mubr.bf16.vlgmr.msra.gmra.mrb[92].mxu0 %v7106_v1 }
 0xdae   :  { %9840 = vmatmul.mubr.bf16.vlgmr.msra.gmra.mrb[84].mxu1 %v7106_v1  ;;  %9603 = vmatpush1.bf16.msra.mxu0 %v13182_v49  ;;  %v13269_v49 = vld [vmem:[#allocation16 + $0x9c8] ss:$16 sps:$4 sm:$0xff]   ;;  %v13277_v1 = vld [vmem:[#allocation16 + $0x9ec] ss:$16 sps:$4 sm:$0xff]  }
 0xdaf   :  { %9634 = vmatprep.mubr.bf16.mxu0 %v7109_v3  ;;  %9849 = vmatpush1.bf16.msra.mxu1 %v13185_v41  ;;  %v13272_v41 = vld [vmem:[#allocation16 + $0x9e0] ss:$16 sps:$4 sm:$0xff]  }
 0xdb0   :  { %9880 = vmatprep.mubr.bf16.mxu1 %v7109_v3  ;;  %9604 = vmatprep.subr.bf16.mxu0 %v13190_v61  ;;  %v13275_v61 = vld [vmem:[#allocation16 + $0x9e8] ss:$16 sps:$4 sm:$0xff]   ;;  %v13280_v3 = vld [vmem:[#allocation16 + $0xa04] ss:$16 sps:$4 sm:$0xff]  }
 0xdb1   :  { %9850 = vmatprep.subr.bf16.mxu1 %v13193_v29  ;;  %v7096_v29 = vld [vmem:[#allocation4 + $0x40] sm:$0xff] }
 0xdb2   :  { %9605 = vmatpush1.bf16.msra.mxu0 %v13188_v48  ;;  %v13283_v48 = vld [vmem:[#allocation16 + $0xa0c] ss:$16 sps:$4 sm:$0xff]  }
 0xdb3   :  { %9851 = vmatpush1.bf16.msra.mxu1 %v13191_v54  ;;  %9606 = vmatprep.subr.bf16.mxu0 %v13196_v5  ;;  %v13278_v54 = vld [vmem:[#allocation16 + $0xa00] ss:$16 sps:$4 sm:$0xff]  }
 0xdb4   :  { %9852 = vmatprep.subr.bf16.mxu1 %v13199_v56  ;;  %v7099_v5 = vld [vmem:[#allocation4 + $0x58] sm:$0xff]  ;;  %v7108_v56 = vpack.c.bf16 %v7096_v29, %v7096_v29  ;;  %v13367_v29 = vld [vmem:[#allocation16 + $0xbcc] ss:$16 sps:$4 sm:$0xff]  }
 0xdb6   :  { %9607 = vmatpush1.bf16.msra.mxu0 %v13194_v52  ;;  %v13281_v52 = vld [vmem:[#allocation16 + $0xa08] ss:$16 sps:$4 sm:$0xff]  }
 0xdb7   :  { %9853 = vmatpush1.bf16.msra.mxu1 %v13197_v2  ;;  %9608 = vmatprep.subr.bf16.mxu0 %v13202_v0  ;;  %v13286_v2 = vld [vmem:[#allocation16 + $0xa24] ss:$16 sps:$4 sm:$0xff]   ;;  %v7111_v0 = vpack.c.bf16 %v7099_v5, %v7099_v5 }
 0xdb8   :  { %9854 = vmatprep.subr.bf16.mxu1 %v13205_v18  ;;  %v13289_v18 = vld [vmem:[#allocation16 + $0xa2c] ss:$16 sps:$4 sm:$0xff]   ;;  %v13370_v5 = vld [vmem:[#allocation16 + $0xbe4] ss:$16 sps:$4 sm:$0xff]  }
 0xdba   :  { %9609 = vmatpush1.bf16.msra.mxu0 %v13200_v59  ;;  %v13284_v59 = vld [vmem:[#allocation16 + $0xa20] ss:$16 sps:$4 sm:$0xff]  }
 0xdbb   :  { %9855 = vmatpush1.bf16.msra.mxu1 %v13203_v4  ;;  %9610 = vmatprep.subr.bf16.mxu0 %v13208_v57  ;;  %v13287_v4 = vld [vmem:[#allocation16 + $0xa28] ss:$16 sps:$4 sm:$0xff]   ;;  %v13292_v57 = vld [vmem:[#allocation16 + $0xa44] ss:$16 sps:$4 sm:$0xff]  }
 0xdbc   :  { %9856 = vmatprep.subr.bf16.mxu1 %v13211_v46  ;;  %v13295_v46 = vld [vmem:[#allocation16 + $0xa4c] ss:$16 sps:$4 sm:$0xff]  }
 0xdbe   :  { %9611 = vmatpush1.bf16.msra.mxu0 %v13206_v43  ;;  %v13290_v43 = vld [vmem:[#allocation16 + $0xa40] ss:$16 sps:$4 sm:$0xff]  }
 0xdbf   :  { %9857 = vmatpush1.bf16.msra.mxu1 %v13209_v15  ;;  %9612 = vmatprep.subr.bf16.mxu0 %v13214_v58  ;;  %v13293_v15 = vld [vmem:[#allocation16 + $0xa48] ss:$16 sps:$4 sm:$0xff]   ;;  %v13298_v58 = vld [vmem:[#allocation16 + $0xa64] ss:$16 sps:$4 sm:$0xff]  }
 0xdc0   :  { %9858 = vmatprep.subr.bf16.mxu1 %v13217_v9  ;;  %v13301_v9 = vld [vmem:[#allocation16 + $0xa6c] ss:$16 sps:$4 sm:$0xff]  }
 0xdc2   :  { %9613 = vmatpush1.bf16.msra.mxu0 %v13212_v26  ;;  %v13296_v26 = vld [vmem:[#allocation16 + $0xa60] ss:$16 sps:$4 sm:$0xff]  }
 0xdc3   :  { %9859 = vmatpush1.bf16.msra.mxu1 %v13215_v19  ;;  %9614 = vmatprep.subr.bf16.mxu0 %v13220_v28  ;;  %v13299_v19 = vld [vmem:[#allocation16 + $0xa68] ss:$16 sps:$4 sm:$0xff]   ;;  %v13304_v28 = vld [vmem:[#allocation16 + $0xa84] ss:$16 sps:$4 sm:$0xff]  }
 0xdc4   :  { %9860 = vmatprep.subr.bf16.mxu1 %v13223_v22  ;;  %v13307_v22 = vld [vmem:[#allocation16 + $0xa8c] ss:$16 sps:$4 sm:$0xff]  }
 0xdc6   :  { %9615 = vmatpush1.bf16.msra.mxu0 %v13218_v51  ;;  %v13302_v51 = vld [vmem:[#allocation16 + $0xa80] ss:$16 sps:$4 sm:$0xff]  }
 0xdc7   :  { %9861 = vmatpush1.bf16.msra.mxu1 %v13221_v30  ;;  %9616 = vmatprep.subr.bf16.mxu0 %v13226_v39  ;;  %v13305_v30 = vld [vmem:[#allocation16 + $0xa88] ss:$16 sps:$4 sm:$0xff]   ;;  %v13310_v39 = vld [vmem:[#allocation16 + $0xaa4] ss:$16 sps:$4 sm:$0xff]  }
 0xdc8   :  { %9862 = vmatprep.subr.bf16.mxu1 %v13229_v42  ;;  %v13313_v42 = vld [vmem:[#allocation16 + $0xaac] ss:$16 sps:$4 sm:$0xff]  }
 0xdca   :  { %9617 = vmatpush1.bf16.msra.mxu0 %v13224_v14  ;;  %v13308_v14 = vld [vmem:[#allocation16 + $0xaa0] ss:$16 sps:$4 sm:$0xff]  }
 0xdcb   :  { %9863 = vmatpush1.bf16.msra.mxu1 %v13227_v21  ;;  %9618 = vmatprep.subr.bf16.mxu0 %v13232_v8  ;;  %v13311_v21 = vld [vmem:[#allocation16 + $0xaa8] ss:$16 sps:$4 sm:$0xff]   ;;  %v13316_v8 = vld [vmem:[#allocation16 + $0xac4] ss:$16 sps:$4 sm:$0xff]  }
 0xdcc   :  { %9864 = vmatprep.subr.bf16.mxu1 %v13235_v7  ;;  %v13319_v7 = vld [vmem:[#allocation16 + $0xacc] ss:$16 sps:$4 sm:$0xff]  }
 0xdce   :  { %9619 = vmatpush1.bf16.msra.mxu0 %v13230_v32  ;;  %v13314_v32 = vld [vmem:[#allocation16 + $0xac0] ss:$16 sps:$4 sm:$0xff]  }
 0xdcf   :  { %9865 = vmatpush1.bf16.msra.mxu1 %v13233_v16  ;;  %9620 = vmatprep.subr.bf16.mxu0 %v13238_v11  ;;  %v13317_v16 = vld [vmem:[#allocation16 + $0xac8] ss:$16 sps:$4 sm:$0xff]   ;;  %v13322_v11 = vld [vmem:[#allocation16 + $0xae4] ss:$16 sps:$4 sm:$0xff]  }
 0xdd0   :  { %9866 = vmatprep.subr.bf16.mxu1 %v13241_v12  ;;  %v13325_v12 = vld [vmem:[#allocation16 + $0xaec] ss:$16 sps:$4 sm:$0xff]  }
 0xdd2   :  { %9621 = vmatpush1.bf16.msra.mxu0 %v13236_v31  ;;  %v13320_v31 = vld [vmem:[#allocation16 + $0xae0] ss:$16 sps:$4 sm:$0xff]  }
 0xdd3   :  { %9867 = vmatpush1.bf16.msra.mxu1 %v13239_v63  ;;  %9622 = vmatprep.subr.bf16.mxu0 %v13244_v34  ;;  %v13323_v63 = vld [vmem:[#allocation16 + $0xae8] ss:$16 sps:$4 sm:$0xff]   ;;  %v13328_v34 = vld [vmem:[#allocation16 + $0xb04] ss:$16 sps:$4 sm:$0xff]  }
 0xdd4   :  { %9868 = vmatprep.subr.bf16.mxu1 %v13247_v53  ;;  %v13331_v53 = vld [vmem:[#allocation16 + $0xb0c] ss:$16 sps:$4 sm:$0xff]  }
 0xdd6   :  { %9623 = vmatpush1.bf16.msra.mxu0 %v13242_v23  ;;  %v13326_v23 = vld [vmem:[#allocation16 + $0xb00] ss:$16 sps:$4 sm:$0xff]  }
 0xdd7   :  { %9869 = vmatpush1.bf16.msra.mxu1 %v13245_v62  ;;  %9624 = vmatprep.subr.bf16.mxu0 %v13250_v50  ;;  %v13329_v62 = vld [vmem:[#allocation16 + $0xb08] ss:$16 sps:$4 sm:$0xff]   ;;  %v13334_v50 = vld [vmem:[#allocation16 + $0xb24] ss:$16 sps:$4 sm:$0xff]  }
 0xdd8   :  { %9870 = vmatprep.subr.bf16.mxu1 %v13253_v13  ;;  %v13337_v13 = vld [vmem:[#allocation16 + $0xb2c] ss:$16 sps:$4 sm:$0xff]  }
 0xdda   :  { %9625 = vmatpush1.bf16.msra.mxu0 %v13248_v33  ;;  %v13332_v33 = vld [vmem:[#allocation16 + $0xb20] ss:$16 sps:$4 sm:$0xff]  }
 0xddb   :  { %9871 = vmatpush1.bf16.msra.mxu1 %v13251_v60  ;;  %9626 = vmatprep.subr.bf16.mxu0 %v13256_v27  ;;  %v13335_v60 = vld [vmem:[#allocation16 + $0xb28] ss:$16 sps:$4 sm:$0xff]   ;;  %v13340_v27 = vld [vmem:[#allocation16 + $0xb44] ss:$16 sps:$4 sm:$0xff]  }
 0xddc   :  { %9872 = vmatprep.subr.bf16.mxu1 %v13259_v44  ;;  %v13343_v44 = vld [vmem:[#allocation16 + $0xb4c] ss:$16 sps:$4 sm:$0xff]  }
 0xdde   :  { %9627 = vmatpush1.bf16.msra.mxu0 %v13254_v36  ;;  %v13338_v36 = vld [vmem:[#allocation16 + $0xb40] ss:$16 sps:$4 sm:$0xff]  }
 0xddf   :  { %9873 = vmatpush1.bf16.msra.mxu1 %v13257_v40  ;;  %9628 = vmatprep.subr.bf16.mxu0 %v13262_v10  ;;  %v13341_v40 = vld [vmem:[#allocation16 + $0xb48] ss:$16 sps:$4 sm:$0xff]   ;;  %v13346_v10 = vld [vmem:[#allocation16 + $0xb64] ss:$16 sps:$4 sm:$0xff]  }
 0xde0   :  { %9874 = vmatprep.subr.bf16.mxu1 %v13265_v24  ;;  %v13349_v24 = vld [vmem:[#allocation16 + $0xb6c] ss:$16 sps:$4 sm:$0xff]  }
 0xde2   :  { %9629 = vmatpush1.bf16.msra.mxu0 %v13260_v25  ;;  %v13344_v25 = vld [vmem:[#allocation16 + $0xb60] ss:$16 sps:$4 sm:$0xff]  }
 0xde3   :  { %9875 = vmatpush1.bf16.msra.mxu1 %v13263_v17  ;;  %9630 = vmatprep.subr.bf16.mxu0 %v13268_v55  ;;  %v13347_v17 = vld [vmem:[#allocation16 + $0xb68] ss:$16 sps:$4 sm:$0xff]   ;;  %v13352_v55 = vld [vmem:[#allocation16 + $0xb84] ss:$16 sps:$4 sm:$0xff]  }
 0xde4   :  { %9876 = vmatprep.subr.bf16.mxu1 %v13271_v6  ;;  %v13355_v6 = vld [vmem:[#allocation16 + $0xb8c] ss:$16 sps:$4 sm:$0xff]  }
 0xde6   :  { %9631 = vmatpush1.bf16.msra.mxu0 %v13266_v20  ;;  %v13350_v20 = vld [vmem:[#allocation16 + $0xb80] ss:$16 sps:$4 sm:$0xff]  }
 0xde7   :  { %9877 = vmatpush1.bf16.msra.mxu1 %v13269_v49  ;;  %9632 = vmatprep.subr.bf16.mxu0 %v13274_v47  ;;  %v13353_v49 = vld [vmem:[#allocation16 + $0xb88] ss:$16 sps:$4 sm:$0xff]   ;;  %v13358_v47 = vld [vmem:[#allocation16 + $0xba4] ss:$16 sps:$4 sm:$0xff]  }
 0xde8   :  { %9878 = vmatprep.subr.bf16.mxu1 %v13277_v1  ;;  %v13361_v1 = vld [vmem:[#allocation16 + $0xbac] ss:$16 sps:$4 sm:$0xff]  }
 0xdea   :  { %9633 = vmatpush1.bf16.msra.mxu0 %v13272_v41  ;;  %v13356_v41 = vld [vmem:[#allocation16 + $0xba0] ss:$16 sps:$4 sm:$0xff]  }
 0xdeb   :  { %9879 = vmatpush1.bf16.msra.mxu1 %v13275_v61  ;;  %9643 = vmatprep.subr.bf16.mxu0 %v13280_v3  ;;  %v13359_v61 = vld [vmem:[#allocation16 + $0xba8] ss:$16 sps:$4 sm:$0xff]   ;;  %v13364_v3 = vld [vmem:[#allocation16 + $0xbc4] ss:$16 sps:$4 sm:$0xff]  }
 0xdec   :  { %9889 = vmatprep.subr.bf16.mxu1 %v13283_v48  ;;  %v13362_v48 = vld [vmem:[#allocation16 + $0xbc0] ss:$16 sps:$4 sm:$0xff]  }
 0xded   :  { %9635 = vmatmul.mubr.bf16.vlgmr.msra.gmra.mrb[92].mxu0 %v7108_v56 }
 0xdee   :  { %9881 = vmatmul.mubr.bf16.vlgmr.msra.gmra.mrb[84].mxu1 %v7108_v56  ;;  %9644 = vmatpush1.bf16.msra.mxu0 %v13278_v54  ;;  %v13365_v54 = vld [vmem:[#allocation16 + $0xbc8] ss:$16 sps:$4 sm:$0xff]   ;;  %v13373_v56 = vld [vmem:[#allocation16 + $0xbec] ss:$16 sps:$4 sm:$0xff]  }
 0xdef   :  { %9675 = vmatprep.mubr.bf16.mxu0 %v7111_v0  ;;  %9890 = vmatpush1.bf16.msra.mxu1 %v13281_v52  ;;  %v13368_v52 = vld [vmem:[#allocation16 + $0xbe0] ss:$16 sps:$4 sm:$0xff]  }
 0xdf0   :  { %9921 = vmatprep.mubr.bf16.mxu1 %v7111_v0  ;;  %9645 = vmatprep.subr.bf16.mxu0 %v13286_v2  ;;  %v13371_v2 = vld [vmem:[#allocation16 + $0xbe8] ss:$16 sps:$4 sm:$0xff]  }
 0xdf1   :  { %9891 = vmatprep.subr.bf16.mxu1 %v13289_v18  ;;  %v13374_v0 = vld [vmem:[#allocation19 + $0x40] sm:$0xff]  }
 0xdf2   :  { %9646 = vmatpush1.bf16.msra.mxu0 %v13284_v59  ;;  %v7098_v18 = vld [vmem:[#allocation4 + $0x50] sm:$0xff] }
 0xdf3   :  { %9892 = vmatpush1.bf16.msra.mxu1 %v13287_v4  ;;  %9647 = vmatprep.subr.bf16.mxu0 %v13292_v57  ;;  %v13375_v59 = vld [vmem:[#allocation19] sm:$0xff]   ;;  %v7110_v4 = vpack.c.bf16 %v7098_v18, %v7098_v18  ;;  %v13376_v57 = vld [vmem:[#allocation19 + $0x48] sm:$0xff]  }
 0xdf4   :  { %9893 = vmatprep.subr.bf16.mxu1 %v13295_v46  ;;  %v13377_v46 = vld [vmem:[#allocation19 + $0x8] sm:$0xff]  }
 0xdf6   :  { %9648 = vmatpush1.bf16.msra.mxu0 %v13290_v43  ;;  %v13378_v43 = vld [vmem:[#allocation19 + $0x50] sm:$0xff]  }
 0xdf7   :  { %9894 = vmatpush1.bf16.msra.mxu1 %v13293_v15  ;;  %9649 = vmatprep.subr.bf16.mxu0 %v13298_v58  ;;  %v13379_v15 = vld [vmem:[#allocation19 + $0x10] sm:$0xff]   ;;  %v13380_v58 = vld [vmem:[#allocation19 + $0x58] sm:$0xff]  }
 0xdf8   :  { %9895 = vmatprep.subr.bf16.mxu1 %v13301_v9  ;;  %v13381_v9 = vld [vmem:[#allocation19 + $0x18] sm:$0xff]  }
 0xdfa   :  { %9650 = vmatpush1.bf16.msra.mxu0 %v13296_v26  ;;  %v13382_v26 = vld [vmem:[#allocation19 + $0x60] sm:$0xff]  }
 0xdfb   :  { %9896 = vmatpush1.bf16.msra.mxu1 %v13299_v19  ;;  %9651 = vmatprep.subr.bf16.mxu0 %v13304_v28  ;;  %v13383_v19 = vld [vmem:[#allocation19 + $0x20] sm:$0xff]   ;;  %v13384_v28 = vld [vmem:[#allocation19 + $0x68] sm:$0xff]  }
 0xdfc   :  { %9897 = vmatprep.subr.bf16.mxu1 %v13307_v22  ;;  %v13385_v22 = vld [vmem:[#allocation19 + $0x28] sm:$0xff]  }
 0xdfe   :  { %9652 = vmatpush1.bf16.msra.mxu0 %v13302_v51  ;;  %v13386_v51 = vld [vmem:[#allocation19 + $0x70] sm:$0xff]  }
 0xdff   :  { %9898 = vmatpush1.bf16.msra.mxu1 %v13305_v30  ;;  %9653 = vmatprep.subr.bf16.mxu0 %v13310_v39  ;;  %v13387_v30 = vld [vmem:[#allocation19 + $0x30] sm:$0xff]   ;;  %v13388_v39 = vld [vmem:[#allocation19 + $0x78] sm:$0xff]  }
 0xe00   :  { %9899 = vmatprep.subr.bf16.mxu1 %v13313_v42  ;;  %v13389_v42 = vld [vmem:[#allocation19 + $0x38] sm:$0xff]  }
 0xe02   :  { %9654 = vmatpush1.bf16.msra.mxu0 %v13308_v14  ;;  %v13390_v14 = vld [vmem:[#allocation19 + $0xc0] sm:$0xff]  }
 0xe03   :  { %9900 = vmatpush1.bf16.msra.mxu1 %v13311_v21  ;;  %9655 = vmatprep.subr.bf16.mxu0 %v13316_v8  ;;  %v7496_v21 = vld [vmem:[#allocation18] sm:$0xf]  ;;  %v7512_v8 = vsub.s32 3, %v13957_v35  ;;  %v13392_v35 = vld [vmem:[#allocation19 + $0xc8] sm:$0xff]  }
 0xe04   :  { %9901 = vmatprep.subr.bf16.mxu1 %v13319_v7  ;;  %v7501_v7 = vrot.slane %v7496_v21, %v13962_v37  ;;  %v13393_v37 = vld [vmem:[#allocation19 + $0x88] sm:$0xff]  }
 0xe06   :  { %9656 = vmatpush1.bf16.msra.mxu0 %v13314_v32  ;;  %v7505_v32 = vrot.slane %v7496_v21, %v13965_v38  ;;  %v13394_v38 = vld [vmem:[#allocation19 + $0xd0] sm:$0xff]  }
 0xe07   :  { %9902 = vmatpush1.bf16.msra.mxu1 %v13317_v16  ;;  %9657 = vmatprep.subr.bf16.mxu0 %v13322_v11  ;;  %v7513_v16 = vrot.slane %v7496_v21, %v7512_v8 }
 0xe08   :  { %9903 = vmatprep.subr.bf16.mxu1 %v13325_v12 }
 0xe0a   :  { %9658 = vmatpush1.bf16.msra.mxu0 %v13320_v31 }
 0xe0b   :  { %9904 = vmatpush1.bf16.msra.mxu1 %v13323_v63  ;;  %9659 = vmatprep.subr.bf16.mxu0 %v13328_v34 }
 0xe0c   :  { %9905 = vmatprep.subr.bf16.mxu1 %v13331_v53 }
 0xe0e   :  { %9660 = vmatpush1.bf16.msra.mxu0 %v13326_v23 }
 0xe0f   :  { %9906 = vmatpush1.bf16.msra.mxu1 %v13329_v62  ;;  %9661 = vmatprep.subr.bf16.mxu0 %v13334_v50 }
 0xe10   :  { %9907 = vmatprep.subr.bf16.mxu1 %v13337_v13 }
 0xe12   :  { %9662 = vmatpush1.bf16.msra.mxu0 %v13332_v33 }
 0xe13   :  { %9908 = vmatpush1.bf16.msra.mxu1 %v13335_v60  ;;  %9663 = vmatprep.subr.bf16.mxu0 %v13340_v27  ;;  %v13391_v27 = vld [vmem:[#allocation19 + $0x80] sm:$0xff]  }
 0xe14   :  { %9909 = vmatprep.subr.bf16.mxu1 %v13343_v44 }
 0xe16   :  { %9664 = vmatpush1.bf16.msra.mxu0 %v13338_v36 }
 0xe17   :  { %9910 = vmatpush1.bf16.msra.mxu1 %v13341_v40  ;;  %9665 = vmatprep.subr.bf16.mxu0 %v13346_v10  ;;  %v13395_v40 = vld [vmem:[#allocation19 + $0x90] sm:$0xff]   ;;  %v13396_v10 = vld [vmem:[#allocation19 + $0xd8] sm:$0xff]  }
 0xe18   :  { %9911 = vmatprep.subr.bf16.mxu1 %v13349_v24  ;;  %v13397_v24 = vld [vmem:[#allocation19 + $0x98] sm:$0xff]  }
 0xe1a   :  { %9666 = vmatpush1.bf16.msra.mxu0 %v13344_v25  ;;  %v13398_v25 = vld [vmem:[#allocation19 + $0xe0] sm:$0xff]  }
 0xe1b   :  { %9912 = vmatpush1.bf16.msra.mxu1 %v13347_v17  ;;  %9667 = vmatprep.subr.bf16.mxu0 %v13352_v55  ;;  %v13399_v17 = vld [vmem:[#allocation19 + $0xa0] sm:$0xff]   ;;  %v13400_v55 = vld [vmem:[#allocation19 + $0xe8] sm:$0xff]  }
 0xe1c   :  { %9913 = vmatprep.subr.bf16.mxu1 %v13355_v6  ;;  %v13401_v6 = vld [vmem:[#allocation19 + $0xa8] sm:$0xff]  }
 0xe1e   :  { %9668 = vmatpush1.bf16.msra.mxu0 %v13350_v20  ;;  %v13402_v20 = vld [vmem:[#allocation19 + $0xf0] sm:$0xff]  }
 0xe1f   :  { %9914 = vmatpush1.bf16.msra.mxu1 %v13353_v49  ;;  %9669 = vmatprep.subr.bf16.mxu0 %v13358_v47  ;;  %v13403_v49 = vld [vmem:[#allocation19 + $0xb0] sm:$0xff]   ;;  %v7509_v47 = vrot.slane %v7496_v21, %v13990_v45 }
 0xe20   :  { %9915 = vmatprep.subr.bf16.mxu1 %v13361_v1  ;;  %v13404_v1 = vld [vmem:[#allocation19 + $0xf8] sm:$0xff]  }
 0xe22   :  { %9670 = vmatpush1.bf16.msra.mxu0 %v13356_v41  ;;  %v13405_v41 = vld [vmem:[#allocation19 + $0xb8] sm:$0xff]  }
 0xe23   :  { %9916 = vmatpush1.bf16.msra.mxu1 %v13359_v61  ;;  %9671 = vmatprep.subr.bf16.mxu0 %v13364_v3 }
 0xe24   :  { %9917 = vmatprep.subr.bf16.mxu1 %v13367_v29 }
 0xe26   :  { %9672 = vmatpush1.bf16.msra.mxu0 %v13362_v48 }
 0xe27   :  { %9918 = vmatpush1.bf16.msra.mxu1 %v13365_v54  ;;  %9673 = vmatprep.subr.bf16.mxu0 %v13370_v5 }
 0xe28   :  { %9919 = vmatprep.subr.bf16.mxu1 %v13373_v56 }
 0xe2a   :  { %9674 = vmatpush1.bf16.msra.mxu0 %v13368_v52  ;;  %v11352_v52 = vld [vmem:[#allocation21] ss:$0 sm:$0xff] }
 0xe2b   :  { %9920 = vmatpush1.bf16.msra.mxu1 %v13371_v2  ;;  %11533 = vmatprep.subr.bf16.mxu0 %v13374_v0 }
 0xe2d   :  { %9676 = vmatmul.mubr.bf16.vlgmr.msra.gmra.mrb[92].mxu0 %v7110_v4 }
 0xe2e   :  { %9922 = vmatmul.mubr.bf16.vlgmr.msra.gmra.mrb[84].mxu1 %v7110_v4  ;;  %11534 = vmatpush3.bf16.msra.mxu0 %v13375_v59 }
 0xe2f   :  { %11535 = vmatprep.subr.bf16.mxu0 %v13376_v57 }
 0xe32   :  { %11536 = vmatpush3.bf16.msra.mxu0 %v13377_v46 }
 0xe33   :  { %11537 = vmatprep.subr.bf16.mxu0 %v13378_v43 }
 0xe36   :  { %11538 = vmatpush3.bf16.msra.mxu0 %v13379_v15 }
 0xe37   :  { %11539 = vmatprep.subr.bf16.mxu0 %v13380_v58 }
 0xe3a   :  { %11540 = vmatpush3.bf16.msra.mxu0 %v13381_v9 }
 0xe3b   :  { %11541 = vmatprep.subr.bf16.mxu0 %v13382_v26 }
 0xe3e   :  { %11542 = vmatpush3.bf16.msra.mxu0 %v13383_v19 }
 0xe3f   :  { %11543 = vmatprep.subr.bf16.mxu0 %v13384_v28 }
 0xe42   :  { %11544 = vmatpush3.bf16.msra.mxu0 %v13385_v22 }
 0xe43   :  { %11545 = vmatprep.subr.bf16.mxu0 %v13386_v51 }
 0xe46   :  { %11546 = vmatpush3.bf16.msra.mxu0 %v13387_v30 }
 0xe47   :  { %11547 = vmatprep.subr.bf16.mxu0 %v13388_v39 }
 0xe4a   :  { %11548 = vmatpush3.bf16.msra.mxu0 %v13389_v42 }
 0xe4b   :  { %11555 = vmatprep.subr.bf16.mxu0 %v13390_v14 }
 0xf00   :  { %v9677_v11 = vpop.f32.mrb[92].mxu0 }
 0xf01   :  { %v11657_v12 = vadd.f32 %v9677_v11, %v7501_v7  ;;  %v9923_v31 = vpop.f32.mrb[84].mxu1  ;;  %v9679_v63 = vpop.f32.mrb[93].mxu0 }
 0xf02   :  { %v11658_v34 = vadd.f32 %v9679_v63, %v7505_v32  ;;  %v9925_v53 = vpop.f32.mrb[85].mxu1  ;;  %v9681_v23 = vpop.f32.mrb[94].mxu0  ;;  %v11659_v61 = vadd.f32 %v9923_v31, %v7509_v47 }
 0xf03   :  { %v11660_v62 = vadd.f32 %v9925_v53, %v7513_v16  ;;  %v9927_v50 = vpop.f32.mrb[86].mxu1  ;;  %v9682_v13 = vpop.f32.mrb[95].mxu0  ;;  %v9930_v44 = vpack.c.bf16 %v11657_v12, %v11657_v12 }
 0xf04   :  { %v9931_v33 = vpack.c.bf16 %v11658_v34, %v11658_v34  ;;  %v9928_v60 = vpop.f32.mrb[87].mxu1  ;;  %v9932_v3 = vpack.c.bf16 %v11659_v61, %v11659_v61 }
 0xf05   :  { %v9933_v36 = vpack.c.bf16 %v11660_v62, %v11660_v62 }
 0xf06   :  { %10229 = vmatprep.mubr.bf16.mxu0 %v9931_v33 }
 0xf07   :  { %10230 = vmatmul.mubr.bf16.vlgmr.msra.gmra.mrb[96].mxu0 %v9930_v44 }
 0xf08   :  { %11556 = vmatpush3.bf16.msra.mxu0 %v13391_v27  ;;  %10269 = vmatprep.mubr.bf16.mxu0 %v9933_v36 }
 0xf09   :  { %11557 = vmatprep.subr.bf16.mxu0 %v13392_v35 }
 0xf0c   :  { %11558 = vmatpush3.bf16.msra.mxu0 %v13393_v37 }
 0xf0d   :  { %11559 = vmatprep.subr.bf16.mxu0 %v13394_v38 }
 0xf10   :  { %11560 = vmatpush3.bf16.msra.mxu0 %v13395_v40 }
 0xf11   :  { %11561 = vmatprep.subr.bf16.mxu0 %v13396_v10 }
 0xf14   :  { %11562 = vmatpush3.bf16.msra.mxu0 %v13397_v24 }
 0xf15   :  { %11563 = vmatprep.subr.bf16.mxu0 %v13398_v25 }
 0xf18   :  { %11564 = vmatpush3.bf16.msra.mxu0 %v13399_v17 }
 0xf19   :  { %11565 = vmatprep.subr.bf16.mxu0 %v13400_v55 }
 0xf1c   :  { %11566 = vmatpush3.bf16.msra.mxu0 %v13401_v6 }
 0xf1d   :  { %11567 = vmatprep.subr.bf16.mxu0 %v13402_v20 }
 0xf20   :  { %11568 = vmatpush3.bf16.msra.mxu0 %v13403_v49 }
 0xf21   :  { %11569 = vmatprep.subr.bf16.mxu0 %v13404_v1 }
 0xf24   :  { %11570 = vmatpush3.bf16.msra.mxu0 %v13405_v41 }
 0xf27   :  { %10270 = vmatmul.mubr.bf16.vlgmr.msra.gmra.mrb[100].mxu0 %v9932_v3 }
 0xfda   :  { %v11549_v29 = vpop.f32.mrb[96].mxu0 }
 0xfdb   :  { %v11550_v48 = vpop.f32.mrb[97].mxu0 }
 0xfdc   :  { %v11551_v54 = vadd.f32 %v11550_v48, %v11549_v29  ;;  %v11552_v5 = vpop.f32.mrb[98].mxu0 }
 0xfdd   :  { %v11553_v56 = vpop.f32.mrb[99].mxu0 }
 0xfde   :  { %v10232_v18 = vadd.f32 %v11551_v54, %v11352_v52 }
 0xffa   :  { %v11571_v2 = vpop.f32.mrb[100].mxu0 }
 0xffb   :  { %v11572_v0 = vpop.f32.mrb[101].mxu0 }
 0xffc   :  { %v11573_v59 = vadd.f32 %v11572_v0, %v11571_v2  ;;  %v11574_v45 = vpop.f32.mrb[102].mxu0 }
 0xffd   :  { %v11575_v4 = vpop.f32.mrb[103].mxu0 }
 0xffe   :  { %v10272_v57 = vadd.f32 %v11573_v59, %v10232_v18 }
0x1000   :  { %10277 = vst [vmem:[%s14781_s12] sm:$0xff] %v10272_v57 }
0x1001   :  { %10282 = vsyncpa [#allocation6], 1 }
0x1002   :  { %10283 = vsyncpa [#allocation8], 1 }
0x1003   :  { %10284 = vsyncpa [#allocation11], 1 }
0x1004   :  { %10285 = vsyncpa [#allocation14], 1 }
0x1005   :  { %10286 = vsyncpa [#allocation17], 1 }
0x1006   :  { %10287 = vsyncpa [#allocation20], 1 }

</bundles_post_ra>
